<compile_context>
chip_gen: v7x
topology: tpu7x:2x2x1
jax: 0.10.0
libtpu: 0.0.40
codegen_flags: <defaults>
</compile_context>

<pallas_src>
import functools

import jax
import jax.numpy as jnp
from jax.experimental import pallas as pl
from jax.experimental.pallas import tpu as pltpu

BN_EPS = 1e-5


# ----------------------------- Pallas kernels ------------------------------

def _convt_bn_relu_kernel(cols_ref, w_ref, gamma_ref, beta_ref, out_ref):
    # cols: (M, K*K*Cin), w: (K*K*Cin, Cout).  One MXU matmul, then training-
    # mode BatchNorm2d (batch statistics, biased variance, eps=1e-5) + ReLU,
    # all resident in VMEM.
    y = jnp.dot(cols_ref[...], w_ref[...], preferred_element_type=jnp.float32)
    mean = jnp.mean(y, axis=0, keepdims=True)
    var = jnp.mean(jnp.square(y - mean), axis=0, keepdims=True)
    inv = jax.lax.rsqrt(var + BN_EPS)
    out_ref[...] = jnp.maximum((y - mean) * inv * gamma_ref[...] + beta_ref[...],
                               0.0)


def _convt_tanh_kernel(cols_ref, w_ref, out_ref):
    y = jnp.dot(cols_ref[...], w_ref[...], preferred_element_type=jnp.float32)
    out_ref[...] = jnp.tanh(y)


def _fused_convt_bn_relu(cols, w_mat, gamma, beta):
    M, Kd = cols.shape
    Cout = w_mat.shape[1]
    return pl.pallas_call(
        _convt_bn_relu_kernel,
        out_shape=jax.ShapeDtypeStruct((M, Cout), jnp.float32),
        grid=(1,),
        in_specs=[pl.BlockSpec((M, Kd), lambda i: (0, 0)),
                  pl.BlockSpec((Kd, Cout), lambda i: (0, 0)),
                  pl.BlockSpec((1, Cout), lambda i: (0, 0)),
                  pl.BlockSpec((1, Cout), lambda i: (0, 0))],
        out_specs=pl.BlockSpec((M, Cout), lambda i: (0, 0)),
        compiler_params=pltpu.CompilerParams(
            dimension_semantics=("arbitrary",)),
    )(cols, w_mat, gamma, beta)


def _fused_convt_tanh(cols, w_mat):
    M, Kd = cols.shape
    Cout = w_mat.shape[1]
    return pl.pallas_call(
        _convt_tanh_kernel,
        out_shape=jax.ShapeDtypeStruct((M, Cout), jnp.float32),
        grid=(1,),
        in_specs=[pl.BlockSpec((M, Kd), lambda i: (0, 0)),
                  pl.BlockSpec((Kd, Cout), lambda i: (0, 0))],
        out_specs=pl.BlockSpec((M, Cout), lambda i: (0, 0)),
        compiler_params=pltpu.CompilerParams(
            dimension_semantics=("arbitrary",)),
    )(cols, w_mat)


# ------------------------------ layer wrapper -------------------------------

def conv_transpose_layer(x_nhwc, lyr):
    """ConvTranspose2d(bias=False) + (BN+ReLU | Tanh); input/output NHWC."""
    N, Hin, Win, Cin = x_nhwc.shape
    K, s, p = lyr['K'], lyr['stride'], lyr['pad']
    Cout = lyr['w_mat'].shape[1]
    Hout = (Hin - 1) * s - 2 * p + K
    Wout = (Win - 1) * s - 2 * p + K
    pe = K - 1 - p  # edge padding of the fractionally-strided (dilated) input

    # Zero-dilate by the stride and edge-pad in a single XLA pad op.
    xd = jax.lax.pad(x_nhwc, jnp.array(0.0, x_nhwc.dtype),
                     ((0, 0, 0), (pe, pe, s - 1), (pe, pe, s - 1), (0, 0, 0)))
    # im2col: K*K static window slices concatenated on the channel (lane) axis.
    slabs = [xd[:, a:a + Hout, b:b + Wout, :]
             for a in range(K) for b in range(K)]
    cols = jnp.concatenate(slabs, axis=-1).reshape(N * Hout * Wout, K * K * Cin)

    if lyr['act'] == 'relu':
        y2d = _fused_convt_bn_relu(cols, lyr['w_mat'], lyr['gamma'], lyr['beta'])
    else:
        y2d = _fused_convt_tanh(cols, lyr['w_mat'])
    return y2d.reshape(N, Hout, Wout, Cout)


# ------------------------------- parameters ---------------------------------

def _prep_weight(w_pt):
    """PyTorch ConvTranspose2d weight (Cin, Cout, K, K) -> (K*K*Cin, Cout)
    matmul layout of the equivalent flipped-kernel regular convolution."""
    Cin, Cout, K, _ = w_pt.shape
    w_flip = w_pt[:, :, ::-1, ::-1]
    return jnp.transpose(w_flip, (2, 3, 0, 1)).reshape(K * K * Cin, Cout)


def make_generator_params(key, image_size, ngf, extra_layers, nz):
    """Deterministic synthetic parameters matching the PyTorch __init__ shapes."""
    def layer(k, cin, cout, ksz, stride, pad, act):
        kw, kg, kb = jax.random.split(k, 3)
        w_pt = jax.random.normal(kw, (cin, cout, ksz, ksz), jnp.float32) * 0.02
        lyr = dict(w_pt=w_pt, w_mat=_prep_weight(w_pt), K=ksz, stride=stride,
                   pad=pad, act=act)
        if act == 'relu':
            lyr['gamma'] = (1.0 + 0.1 * jax.random.normal(
                kg, (cout,), jnp.float32)).reshape(1, cout)
            lyr['beta'] = (0.1 * jax.random.normal(
                kb, (cout,), jnp.float32)).reshape(1, cout)
        return lyr

    keys = iter(jax.random.split(key, 32))
    layers = []
    size = image_size // 8
    # Conv(1): ConvTranspose2d(nz, ngf*size, 4, 1, 0) + BN + ReLU
    layers.append(layer(next(keys), nz, ngf * size, 4, 1, 0, 'relu'))
    size //= 2
    while size > 0:
        layers.append(layer(next(keys), ngf * size * 2, ngf * size, 4, 2, 1,
                            'relu'))
        size //= 2
    for _ in range(extra_layers):
        layers.append(layer(next(keys), ngf, ngf, 3, 1, 1, 'relu'))
    # final: ConvTranspose2d(ngf, 3, 4, 2, 1) + Tanh
    layers.append(layer(next(keys), ngf, 3, 4, 2, 1, 'tanh'))
    return layers


# --------------------------------- forward ----------------------------------

def generator_forward(params, z_nchw):
    x = jnp.transpose(z_nchw, (0, 2, 3, 1))      # single NCHW -> NHWC
    for lyr in params:
        x = conv_transpose_layer(x, lyr)
    return jnp.transpose(x, (0, 3, 1, 2))        # single NHWC -> NCHW


def reference_forward(params, z_nchw):
    """Pure-XLA reference (conv_general_dilated) for correctness checking."""
    x = z_nchw
    for lyr in params:
        K, s, p = lyr['K'], lyr['stride'], lyr['pad']
        w_oihw = jnp.transpose(lyr['w_pt'][:, :, ::-1, ::-1], (1, 0, 2, 3))
        x = jax.lax.conv_general_dilated(
            x, w_oihw, window_strides=(1, 1),
            padding=[(K - 1 - p, K - 1 - p)] * 2,
            lhs_dilation=(s, s),
            dimension_numbers=('NCHW', 'OIHW', 'NCHW'),
            precision=jax.lax.Precision.HIGHEST)
        if lyr['act'] == 'relu':
            mean = jnp.mean(x, axis=(0, 2, 3), keepdims=True)
            var = jnp.mean(jnp.square(x - mean), axis=(0, 2, 3), keepdims=True)
            xn = (x - mean) * jax.lax.rsqrt(var + BN_EPS)
            x = jnp.maximum(xn * lyr['gamma'].reshape(1, -1, 1, 1)
                            + lyr['beta'].reshape(1, -1, 1, 1), 0.0)
        else:
            x = jnp.tanh(x)
    return x


# ----------------------------------- main ------------------------------------

if __name__ == "__main__":
    # image_size=32 -> 5 conv-transpose layers total (4 BN+ReLU, 1 Tanh).
    image_size, ngf, extra_layers, nz = 32, 8, 1, 16
    batch = 2

    key = jax.random.PRNGKey(0)
    kp, kx = jax.random.split(key)
    params = make_generator_params(kp, image_size, ngf, extra_layers, nz)

    z = jax.random.normal(kx, (batch, nz, 1, 1), jnp.float32)  # NCHW latent

    fwd = jax.jit(functools.partial(generator_forward, params))
    out = jax.block_until_ready(fwd(z))

    assert out.shape == (batch, 3, image_size, image_size), out.shape
    assert bool(jnp.all(jnp.isfinite(out)))
    assert bool(jnp.all(jnp.abs(out) <= 1.0 + 1e-6))  # tanh range

    ref = jax.block_until_ready(
        jax.jit(functools.partial(reference_forward, params))(z))
    max_err = float(jnp.max(jnp.abs(out - ref)))
    assert max_err < 1e-2, f"mismatch vs XLA reference: {max_err}"

    print("KERNEL_OK")
</pallas_src>

<mosaic_0001>
module attributes {stable_mosaic.version = 11 : i64} {
  func.func @_convt_bn_relu_kernel(%arg0: i32, %arg1: memref<32x256xf32, #tpu.memory_space<vmem>>, %arg2: memref<256x32xf32, #tpu.memory_space<vmem>>, %arg3: memref<1x32xf32, #tpu.memory_space<vmem>>, %arg4: memref<1x32xf32, #tpu.memory_space<vmem>>, %arg5: memref<32x32xf32, #tpu.memory_space<vmem>>) attributes {dimension_semantics = [#tpu.dimension_semantics<arbitrary>], iteration_bounds = array<i64: 1>, scalar_prefetch = 0 : i64, scratch_operands = 0 : i64, tpu.core_type = #tpu.core_type<tc>, window_params = [{pipeline_mode = #tpu.pipeline_mode<synchronous>, transform_indices = @transform_0, window_bounds = array<i64: 32, 256>}, {pipeline_mode = #tpu.pipeline_mode<synchronous>, transform_indices = @transform_1, window_bounds = array<i64: 256, 32>}, {pipeline_mode = #tpu.pipeline_mode<synchronous>, transform_indices = @transform_2, window_bounds = array<i64: 1, 32>}, {pipeline_mode = #tpu.pipeline_mode<synchronous>, transform_indices = @transform_3, window_bounds = array<i64: 1, 32>}, {pipeline_mode = #tpu.pipeline_mode<synchronous>, transform_indices = @transform_4, window_bounds = array<i64: 32, 32>}]} {
    %c0 = arith.constant 0 : index
    %c0_0 = arith.constant 0 : index
    %0 = vector.load %arg1[%c0, %c0_0] : memref<32x256xf32, #tpu.memory_space<vmem>>, vector<32x256xf32>
    %c0_1 = arith.constant 0 : index
    %c0_2 = arith.constant 0 : index
    %1 = vector.load %arg2[%c0_1, %c0_2] : memref<256x32xf32, #tpu.memory_space<vmem>>, vector<256x32xf32>
    %cst = arith.constant dense<0.000000e+00> : vector<32x32xf32>
    %2 = tpu.matmul %0, %1, %cst {dimension_numbers = #tpu.dot_dimension_numbers<[1], [0], [0], [1], [0, 0, 1, 1], [], []>} : vector<32x256xf32>, vector<256x32xf32>, vector<32x32xf32> -> vector<32x32xf32>
    %cst_3 = arith.constant dense<0.000000e+00> : vector<32xf32>
    %3 = vector.multi_reduction <add>, %2, %cst_3 [0] : vector<32x32xf32> to vector<32xf32>
    %4 = vector.shape_cast %3 : vector<32xf32> to vector<1x32xf32>
    %cst_4 = arith.constant 3.200000e+01 : f32
    %5 = vector.broadcast %cst_4 : f32 to vector<1x32xf32>
    %6 = arith.divf %4, %5 : vector<1x32xf32>
    %7 = vector.broadcast %6 : vector<1x32xf32> to vector<32x32xf32>
    %8 = arith.subf %2, %7 : vector<32x32xf32>
    %9 = arith.mulf %8, %8 : vector<32x32xf32>
    %cst_5 = arith.constant dense<0.000000e+00> : vector<32xf32>
    %10 = vector.multi_reduction <add>, %9, %cst_5 [0] : vector<32x32xf32> to vector<32xf32>
    %11 = vector.shape_cast %10 : vector<32xf32> to vector<1x32xf32>
    %cst_6 = arith.constant 3.200000e+01 : f32
    %12 = vector.broadcast %cst_6 : f32 to vector<1x32xf32>
    %13 = arith.divf %11, %12 : vector<1x32xf32>
    %cst_7 = arith.constant 9.99999974E-6 : f32
    %14 = vector.broadcast %cst_7 : f32 to vector<1x32xf32>
    %15 = arith.addf %13, %14 : vector<1x32xf32>
    %16 = math.rsqrt %15 : vector<1x32xf32>
    %17 = vector.broadcast %6 : vector<1x32xf32> to vector<32x32xf32>
    %18 = arith.subf %2, %17 : vector<32x32xf32>
    %19 = vector.broadcast %16 : vector<1x32xf32> to vector<32x32xf32>
    %20 = arith.mulf %18, %19 : vector<32x32xf32>
    %c0_8 = arith.constant 0 : index
    %c0_9 = arith.constant 0 : index
    %21 = vector.load %arg3[%c0_8, %c0_9] : memref<1x32xf32, #tpu.memory_space<vmem>>, vector<1x32xf32>
    %22 = vector.broadcast %21 : vector<1x32xf32> to vector<32x32xf32>
    %23 = arith.mulf %20, %22 : vector<32x32xf32>
    %c0_10 = arith.constant 0 : index
    %c0_11 = arith.constant 0 : index
    %24 = vector.load %arg4[%c0_10, %c0_11] : memref<1x32xf32, #tpu.memory_space<vmem>>, vector<1x32xf32>
    %25 = vector.broadcast %24 : vector<1x32xf32> to vector<32x32xf32>
    %26 = arith.addf %23, %25 : vector<32x32xf32>
    %cst_12 = arith.constant 0.000000e+00 : f32
    %27 = vector.broadcast %cst_12 : f32 to vector<32x32xf32>
    %28 = arith.maximumf %26, %27 : vector<32x32xf32>
    %c0_13 = arith.constant 0 : index
    %c0_14 = arith.constant 0 : index
    %29 = vector.load %arg5[%c0_13, %c0_14] : memref<32x32xf32, #tpu.memory_space<vmem>>, vector<32x32xf32>
    tpu.vector_store %arg5[%c0_13, %c0_14], %28 {strides = array<i32>} : memref<32x32xf32, #tpu.memory_space<vmem>>, vector<32x32xf32>,
    return
  }
  func.func @transform_0(%arg0: i32) -> (i32, i32) {
    %c0_i32 = arith.constant 0 : i32
    %c0_i32_0 = arith.constant 0 : i32
    %c0_i32_1 = arith.constant 0 : i32
    return %c0_i32, %c0_i32_0 : i32, i32
  }
  func.func @transform_1(%arg0: i32) -> (i32, i32) {
    %c0_i32 = arith.constant 0 : i32
    %c0_i32_0 = arith.constant 0 : i32
    %c0_i32_1 = arith.constant 0 : i32
    return %c0_i32, %c0_i32_0 : i32, i32
  }
  func.func @transform_2(%arg0: i32) -> (i32, i32) {
    %c0_i32 = arith.constant 0 : i32
    %c0_i32_0 = arith.constant 0 : i32
    %c0_i32_1 = arith.constant 0 : i32
    return %c0_i32, %c0_i32_0 : i32, i32
  }
  func.func @transform_3(%arg0: i32) -> (i32, i32) {
    %c0_i32 = arith.constant 0 : i32
    %c0_i32_0 = arith.constant 0 : i32
    %c0_i32_1 = arith.constant 0 : i32
    return %c0_i32, %c0_i32_0 : i32, i32
  }
  func.func @transform_4(%arg0: i32) -> (i32, i32) {
    %c0_i32 = arith.constant 0 : i32
    %c0_i32_0 = arith.constant 0 : i32
    %c0_i32_1 = arith.constant 0 : i32
    return %c0_i32, %c0_i32_0 : i32, i32
  }
}

module attributes {stable_mosaic.version = 11 : i64} {
  func.func @_convt_bn_relu_kernel(%arg0: i32, %arg1: memref<128x512xf32, #tpu.memory_space<vmem>>, %arg2: memref<512x16xf32, #tpu.memory_space<vmem>>, %arg3: memref<1x16xf32, #tpu.memory_space<vmem>>, %arg4: memref<1x16xf32, #tpu.memory_space<vmem>>, %arg5: memref<128x16xf32, #tpu.memory_space<vmem>>) attributes {dimension_semantics = [#tpu.dimension_semantics<arbitrary>], iteration_bounds = array<i64: 1>, scalar_prefetch = 0 : i64, scratch_operands = 0 : i64, tpu.core_type = #tpu.core_type<tc>, window_params = [{pipeline_mode = #tpu.pipeline_mode<synchronous>, transform_indices = @transform_0, window_bounds = array<i64: 128, 512>}, {pipeline_mode = #tpu.pipeline_mode<synchronous>, transform_indices = @transform_1, window_bounds = array<i64: 512, 16>}, {pipeline_mode = #tpu.pipeline_mode<synchronous>, transform_indices = @transform_2, window_bounds = array<i64: 1, 16>}, {pipeline_mode = #tpu.pipeline_mode<synchronous>, transform_indices = @transform_3, window_bounds = array<i64: 1, 16>}, {pipeline_mode = #tpu.pipeline_mode<synchronous>, transform_indices = @transform_4, window_bounds = array<i64: 128, 16>}]} {
    %c0 = arith.constant 0 : index
    %c0_0 = arith.constant 0 : index
    %0 = vector.load %arg1[%c0, %c0_0] : memref<128x512xf32, #tpu.memory_space<vmem>>, vector<128x512xf32>
    %c0_1 = arith.constant 0 : index
    %c0_2 = arith.constant 0 : index
    %1 = vector.load %arg2[%c0_1, %c0_2] : memref<512x16xf32, #tpu.memory_space<vmem>>, vector<512x16xf32>
    %cst = arith.constant dense<0.000000e+00> : vector<128x16xf32>
    %2 = tpu.matmul %0, %1, %cst {dimension_numbers = #tpu.dot_dimension_numbers<[1], [0], [0], [1], [0, 0, 1, 1], [], []>} : vector<128x512xf32>, vector<512x16xf32>, vector<128x16xf32> -> vector<128x16xf32>
    %cst_3 = arith.constant dense<0.000000e+00> : vector<16xf32>
    %3 = vector.multi_reduction <add>, %2, %cst_3 [0] : vector<128x16xf32> to vector<16xf32>
    %4 = vector.shape_cast %3 : vector<16xf32> to vector<1x16xf32>
    %cst_4 = arith.constant 1.280000e+02 : f32
    %5 = vector.broadcast %cst_4 : f32 to vector<1x16xf32>
    %6 = arith.divf %4, %5 : vector<1x16xf32>
    %7 = vector.broadcast %6 : vector<1x16xf32> to vector<128x16xf32>
    %8 = arith.subf %2, %7 : vector<128x16xf32>
    %9 = arith.mulf %8, %8 : vector<128x16xf32>
    %cst_5 = arith.constant dense<0.000000e+00> : vector<16xf32>
    %10 = vector.multi_reduction <add>, %9, %cst_5 [0] : vector<128x16xf32> to vector<16xf32>
    %11 = vector.shape_cast %10 : vector<16xf32> to vector<1x16xf32>
    %cst_6 = arith.constant 1.280000e+02 : f32
    %12 = vector.broadcast %cst_6 : f32 to vector<1x16xf32>
    %13 = arith.divf %11, %12 : vector<1x16xf32>
    %cst_7 = arith.constant 9.99999974E-6 : f32
    %14 = vector.broadcast %cst_7 : f32 to vector<1x16xf32>
    %15 = arith.addf %13, %14 : vector<1x16xf32>
    %16 = math.rsqrt %15 : vector<1x16xf32>
    %17 = vector.broadcast %6 : vector<1x16xf32> to vector<128x16xf32>
    %18 = arith.subf %2, %17 : vector<128x16xf32>
    %19 = vector.broadcast %16 : vector<1x16xf32> to vector<128x16xf32>
    %20 = arith.mulf %18, %19 : vector<128x16xf32>
    %c0_8 = arith.constant 0 : index
    %c0_9 = arith.constant 0 : index
    %21 = vector.load %arg3[%c0_8, %c0_9] : memref<1x16xf32, #tpu.memory_space<vmem>>, vector<1x16xf32>
    %22 = vector.broadcast %21 : vector<1x16xf32> to vector<128x16xf32>
    %23 = arith.mulf %20, %22 : vector<128x16xf32>
    %c0_10 = arith.constant 0 : index
    %c0_11 = arith.constant 0 : index
    %24 = vector.load %arg4[%c0_10, %c0_11] : memref<1x16xf32, #tpu.memory_space<vmem>>, vector<1x16xf32>
    %25 = vector.broadcast %24 : vector<1x16xf32> to vector<128x16xf32>
    %26 = arith.addf %23, %25 : vector<128x16xf32>
    %cst_12 = arith.constant 0.000000e+00 : f32
    %27 = vector.broadcast %cst_12 : f32 to vector<128x16xf32>
    %28 = arith.maximumf %26, %27 : vector<128x16xf32>
    %c0_13 = arith.constant 0 : index
    %c0_14 = arith.constant 0 : index
    %29 = vector.load %arg5[%c0_13, %c0_14] : memref<128x16xf32, #tpu.memory_space<vmem>>, vector<128x16xf32>
    tpu.vector_store %arg5[%c0_13, %c0_14], %28 {strides = array<i32>} : memref<128x16xf32, #tpu.memory_space<vmem>>, vector<128x16xf32>,
    return
  }
  func.func @transform_0(%arg0: i32) -> (i32, i32) {
    %c0_i32 = arith.constant 0 : i32
    %c0_i32_0 = arith.constant 0 : i32
    %c0_i32_1 = arith.constant 0 : i32
    return %c0_i32, %c0_i32_0 : i32, i32
  }
  func.func @transform_1(%arg0: i32) -> (i32, i32) {
    %c0_i32 = arith.constant 0 : i32
    %c0_i32_0 = arith.constant 0 : i32
    %c0_i32_1 = arith.constant 0 : i32
    return %c0_i32, %c0_i32_0 : i32, i32
  }
  func.func @transform_2(%arg0: i32) -> (i32, i32) {
    %c0_i32 = arith.constant 0 : i32
    %c0_i32_0 = arith.constant 0 : i32
    %c0_i32_1 = arith.constant 0 : i32
    return %c0_i32, %c0_i32_0 : i32, i32
  }
  func.func @transform_3(%arg0: i32) -> (i32, i32) {
    %c0_i32 = arith.constant 0 : i32
    %c0_i32_0 = arith.constant 0 : i32
    %c0_i32_1 = arith.constant 0 : i32
    return %c0_i32, %c0_i32_0 : i32, i32
  }
  func.func @transform_4(%arg0: i32) -> (i32, i32) {
    %c0_i32 = arith.constant 0 : i32
    %c0_i32_0 = arith.constant 0 : i32
    %c0_i32_1 = arith.constant 0 : i32
    return %c0_i32, %c0_i32_0 : i32, i32
  }
}

module attributes {stable_mosaic.version = 11 : i64} {
  func.func @_convt_bn_relu_kernel(%arg0: i32, %arg1: memref<512x256xf32, #tpu.memory_space<vmem>>, %arg2: memref<256x8xf32, #tpu.memory_space<vmem>>, %arg3: memref<1x8xf32, #tpu.memory_space<vmem>>, %arg4: memref<1x8xf32, #tpu.memory_space<vmem>>, %arg5: memref<512x8xf32, #tpu.memory_space<vmem>>) attributes {dimension_semantics = [#tpu.dimension_semantics<arbitrary>], iteration_bounds = array<i64: 1>, scalar_prefetch = 0 : i64, scratch_operands = 0 : i64, tpu.core_type = #tpu.core_type<tc>, window_params = [{pipeline_mode = #tpu.pipeline_mode<synchronous>, transform_indices = @transform_0, window_bounds = array<i64: 512, 256>}, {pipeline_mode = #tpu.pipeline_mode<synchronous>, transform_indices = @transform_1, window_bounds = array<i64: 256, 8>}, {pipeline_mode = #tpu.pipeline_mode<synchronous>, transform_indices = @transform_2, window_bounds = array<i64: 1, 8>}, {pipeline_mode = #tpu.pipeline_mode<synchronous>, transform_indices = @transform_3, window_bounds = array<i64: 1, 8>}, {pipeline_mode = #tpu.pipeline_mode<synchronous>, transform_indices = @transform_4, window_bounds = array<i64: 512, 8>}]} {
    %c0 = arith.constant 0 : index
    %c0_0 = arith.constant 0 : index
    %0 = vector.load %arg1[%c0, %c0_0] : memref<512x256xf32, #tpu.memory_space<vmem>>, vector<512x256xf32>
    %c0_1 = arith.constant 0 : index
    %c0_2 = arith.constant 0 : index
    %1 = vector.load %arg2[%c0_1, %c0_2] : memref<256x8xf32, #tpu.memory_space<vmem>>, vector<256x8xf32>
    %cst = arith.constant dense<0.000000e+00> : vector<512x8xf32>
    %2 = tpu.matmul %0, %1, %cst {dimension_numbers = #tpu.dot_dimension_numbers<[1], [0], [0], [1], [0, 0, 1, 1], [], []>} : vector<512x256xf32>, vector<256x8xf32>, vector<512x8xf32> -> vector<512x8xf32>
    %cst_3 = arith.constant dense<0.000000e+00> : vector<8xf32>
    %3 = vector.multi_reduction <add>, %2, %cst_3 [0] : vector<512x8xf32> to vector<8xf32>
    %4 = vector.shape_cast %3 : vector<8xf32> to vector<1x8xf32>
    %cst_4 = arith.constant 5.120000e+02 : f32
    %5 = vector.broadcast %cst_4 : f32 to vector<1x8xf32>
    %6 = arith.divf %4, %5 : vector<1x8xf32>
    %7 = vector.broadcast %6 : vector<1x8xf32> to vector<512x8xf32>
    %8 = arith.subf %2, %7 : vector<512x8xf32>
    %9 = arith.mulf %8, %8 : vector<512x8xf32>
    %cst_5 = arith.constant dense<0.000000e+00> : vector<8xf32>
    %10 = vector.multi_reduction <add>, %9, %cst_5 [0] : vector<512x8xf32> to vector<8xf32>
    %11 = vector.shape_cast %10 : vector<8xf32> to vector<1x8xf32>
    %cst_6 = arith.constant 5.120000e+02 : f32
    %12 = vector.broadcast %cst_6 : f32 to vector<1x8xf32>
    %13 = arith.divf %11, %12 : vector<1x8xf32>
    %cst_7 = arith.constant 9.99999974E-6 : f32
    %14 = vector.broadcast %cst_7 : f32 to vector<1x8xf32>
    %15 = arith.addf %13, %14 : vector<1x8xf32>
    %16 = math.rsqrt %15 : vector<1x8xf32>
    %17 = vector.broadcast %6 : vector<1x8xf32> to vector<512x8xf32>
    %18 = arith.subf %2, %17 : vector<512x8xf32>
    %19 = vector.broadcast %16 : vector<1x8xf32> to vector<512x8xf32>
    %20 = arith.mulf %18, %19 : vector<512x8xf32>
    %c0_8 = arith.constant 0 : index
    %c0_9 = arith.constant 0 : index
    %21 = vector.load %arg3[%c0_8, %c0_9] : memref<1x8xf32, #tpu.memory_space<vmem>>, vector<1x8xf32>
    %22 = vector.broadcast %21 : vector<1x8xf32> to vector<512x8xf32>
    %23 = arith.mulf %20, %22 : vector<512x8xf32>
    %c0_10 = arith.constant 0 : index
    %c0_11 = arith.constant 0 : index
    %24 = vector.load %arg4[%c0_10, %c0_11] : memref<1x8xf32, #tpu.memory_space<vmem>>, vector<1x8xf32>
    %25 = vector.broadcast %24 : vector<1x8xf32> to vector<512x8xf32>
    %26 = arith.addf %23, %25 : vector<512x8xf32>
    %cst_12 = arith.constant 0.000000e+00 : f32
    %27 = vector.broadcast %cst_12 : f32 to vector<512x8xf32>
    %28 = arith.maximumf %26, %27 : vector<512x8xf32>
    %c0_13 = arith.constant 0 : index
    %c0_14 = arith.constant 0 : index
    %29 = vector.load %arg5[%c0_13, %c0_14] : memref<512x8xf32, #tpu.memory_space<vmem>>, vector<512x8xf32>
    tpu.vector_store %arg5[%c0_13, %c0_14], %28 {strides = array<i32>} : memref<512x8xf32, #tpu.memory_space<vmem>>, vector<512x8xf32>,
    return
  }
  func.func @transform_0(%arg0: i32) -> (i32, i32) {
    %c0_i32 = arith.constant 0 : i32
    %c0_i32_0 = arith.constant 0 : i32
    %c0_i32_1 = arith.constant 0 : i32
    return %c0_i32, %c0_i32_0 : i32, i32
  }
  func.func @transform_1(%arg0: i32) -> (i32, i32) {
    %c0_i32 = arith.constant 0 : i32
    %c0_i32_0 = arith.constant 0 : i32
    %c0_i32_1 = arith.constant 0 : i32
    return %c0_i32, %c0_i32_0 : i32, i32
  }
  func.func @transform_2(%arg0: i32) -> (i32, i32) {
    %c0_i32 = arith.constant 0 : i32
    %c0_i32_0 = arith.constant 0 : i32
    %c0_i32_1 = arith.constant 0 : i32
    return %c0_i32, %c0_i32_0 : i32, i32
  }
  func.func @transform_3(%arg0: i32) -> (i32, i32) {
    %c0_i32 = arith.constant 0 : i32
    %c0_i32_0 = arith.constant 0 : i32
    %c0_i32_1 = arith.constant 0 : i32
    return %c0_i32, %c0_i32_0 : i32, i32
  }
  func.func @transform_4(%arg0: i32) -> (i32, i32) {
    %c0_i32 = arith.constant 0 : i32
    %c0_i32_0 = arith.constant 0 : i32
    %c0_i32_1 = arith.constant 0 : i32
    return %c0_i32, %c0_i32_0 : i32, i32
  }
}

module attributes {stable_mosaic.version = 11 : i64} {
  func.func @_convt_bn_relu_kernel(%arg0: i32, %arg1: memref<512x72xf32, #tpu.memory_space<vmem>>, %arg2: memref<72x8xf32, #tpu.memory_space<vmem>>, %arg3: memref<1x8xf32, #tpu.memory_space<vmem>>, %arg4: memref<1x8xf32, #tpu.memory_space<vmem>>, %arg5: memref<512x8xf32, #tpu.memory_space<vmem>>) attributes {dimension_semantics = [#tpu.dimension_semantics<arbitrary>], iteration_bounds = array<i64: 1>, scalar_prefetch = 0 : i64, scratch_operands = 0 : i64, tpu.core_type = #tpu.core_type<tc>, window_params = [{pipeline_mode = #tpu.pipeline_mode<synchronous>, transform_indices = @transform_0, window_bounds = array<i64: 512, 72>}, {pipeline_mode = #tpu.pipeline_mode<synchronous>, transform_indices = @transform_1, window_bounds = array<i64: 72, 8>}, {pipeline_mode = #tpu.pipeline_mode<synchronous>, transform_indices = @transform_2, window_bounds = array<i64: 1, 8>}, {pipeline_mode = #tpu.pipeline_mode<synchronous>, transform_indices = @transform_3, window_bounds = array<i64: 1, 8>}, {pipeline_mode = #tpu.pipeline_mode<synchronous>, transform_indices = @transform_4, window_bounds = array<i64: 512, 8>}]} {
    %c0 = arith.constant 0 : index
    %c0_0 = arith.constant 0 : index
    %0 = vector.load %arg1[%c0, %c0_0] : memref<512x72xf32, #tpu.memory_space<vmem>>, vector<512x72xf32>
    %c0_1 = arith.constant 0 : index
    %c0_2 = arith.constant 0 : index
    %1 = vector.load %arg2[%c0_1, %c0_2] : memref<72x8xf32, #tpu.memory_space<vmem>>, vector<72x8xf32>
    %cst = arith.constant dense<0.000000e+00> : vector<512x8xf32>
    %2 = tpu.matmul %0, %1, %cst {dimension_numbers = #tpu.dot_dimension_numbers<[1], [0], [0], [1], [0, 0, 1, 1], [], []>} : vector<512x72xf32>, vector<72x8xf32>, vector<512x8xf32> -> vector<512x8xf32>
    %cst_3 = arith.constant dense<0.000000e+00> : vector<8xf32>
    %3 = vector.multi_reduction <add>, %2, %cst_3 [0] : vector<512x8xf32> to vector<8xf32>
    %4 = vector.shape_cast %3 : vector<8xf32> to vector<1x8xf32>
    %cst_4 = arith.constant 5.120000e+02 : f32
    %5 = vector.broadcast %cst_4 : f32 to vector<1x8xf32>
    %6 = arith.divf %4, %5 : vector<1x8xf32>
    %7 = vector.broadcast %6 : vector<1x8xf32> to vector<512x8xf32>
    %8 = arith.subf %2, %7 : vector<512x8xf32>
    %9 = arith.mulf %8, %8 : vector<512x8xf32>
    %cst_5 = arith.constant dense<0.000000e+00> : vector<8xf32>
    %10 = vector.multi_reduction <add>, %9, %cst_5 [0] : vector<512x8xf32> to vector<8xf32>
    %11 = vector.shape_cast %10 : vector<8xf32> to vector<1x8xf32>
    %cst_6 = arith.constant 5.120000e+02 : f32
    %12 = vector.broadcast %cst_6 : f32 to vector<1x8xf32>
    %13 = arith.divf %11, %12 : vector<1x8xf32>
    %cst_7 = arith.constant 9.99999974E-6 : f32
    %14 = vector.broadcast %cst_7 : f32 to vector<1x8xf32>
    %15 = arith.addf %13, %14 : vector<1x8xf32>
    %16 = math.rsqrt %15 : vector<1x8xf32>
    %17 = vector.broadcast %6 : vector<1x8xf32> to vector<512x8xf32>
    %18 = arith.subf %2, %17 : vector<512x8xf32>
    %19 = vector.broadcast %16 : vector<1x8xf32> to vector<512x8xf32>
    %20 = arith.mulf %18, %19 : vector<512x8xf32>
    %c0_8 = arith.constant 0 : index
    %c0_9 = arith.constant 0 : index
    %21 = vector.load %arg3[%c0_8, %c0_9] : memref<1x8xf32, #tpu.memory_space<vmem>>, vector<1x8xf32>
    %22 = vector.broadcast %21 : vector<1x8xf32> to vector<512x8xf32>
    %23 = arith.mulf %20, %22 : vector<512x8xf32>
    %c0_10 = arith.constant 0 : index
    %c0_11 = arith.constant 0 : index
    %24 = vector.load %arg4[%c0_10, %c0_11] : memref<1x8xf32, #tpu.memory_space<vmem>>, vector<1x8xf32>
    %25 = vector.broadcast %24 : vector<1x8xf32> to vector<512x8xf32>
    %26 = arith.addf %23, %25 : vector<512x8xf32>
    %cst_12 = arith.constant 0.000000e+00 : f32
    %27 = vector.broadcast %cst_12 : f32 to vector<512x8xf32>
    %28 = arith.maximumf %26, %27 : vector<512x8xf32>
    %c0_13 = arith.constant 0 : index
    %c0_14 = arith.constant 0 : index
    %29 = vector.load %arg5[%c0_13, %c0_14] : memref<512x8xf32, #tpu.memory_space<vmem>>, vector<512x8xf32>
    tpu.vector_store %arg5[%c0_13, %c0_14], %28 {strides = array<i32>} : memref<512x8xf32, #tpu.memory_space<vmem>>, vector<512x8xf32>,
    return
  }
  func.func @transform_0(%arg0: i32) -> (i32, i32) {
    %c0_i32 = arith.constant 0 : i32
    %c0_i32_0 = arith.constant 0 : i32
    %c0_i32_1 = arith.constant 0 : i32
    return %c0_i32, %c0_i32_0 : i32, i32
  }
  func.func @transform_1(%arg0: i32) -> (i32, i32) {
    %c0_i32 = arith.constant 0 : i32
    %c0_i32_0 = arith.constant 0 : i32
    %c0_i32_1 = arith.constant 0 : i32
    return %c0_i32, %c0_i32_0 : i32, i32
  }
  func.func @transform_2(%arg0: i32) -> (i32, i32) {
    %c0_i32 = arith.constant 0 : i32
    %c0_i32_0 = arith.constant 0 : i32
    %c0_i32_1 = arith.constant 0 : i32
    return %c0_i32, %c0_i32_0 : i32, i32
  }
  func.func @transform_3(%arg0: i32) -> (i32, i32) {
    %c0_i32 = arith.constant 0 : i32
    %c0_i32_0 = arith.constant 0 : i32
    %c0_i32_1 = arith.constant 0 : i32
    return %c0_i32, %c0_i32_0 : i32, i32
  }
  func.func @transform_4(%arg0: i32) -> (i32, i32) {
    %c0_i32 = arith.constant 0 : i32
    %c0_i32_0 = arith.constant 0 : i32
    %c0_i32_1 = arith.constant 0 : i32
    return %c0_i32, %c0_i32_0 : i32, i32
  }
}

module attributes {stable_mosaic.version = 11 : i64} {
  func.func @_convt_tanh_kernel(%arg0: i32, %arg1: memref<2048x128xf32, #tpu.memory_space<vmem>>, %arg2: memref<128x3xf32, #tpu.memory_space<vmem>>, %arg3: memref<2048x3xf32, #tpu.memory_space<vmem>>) attributes {dimension_semantics = [#tpu.dimension_semantics<arbitrary>], iteration_bounds = array<i64: 1>, scalar_prefetch = 0 : i64, scratch_operands = 0 : i64, tpu.core_type = #tpu.core_type<tc>, window_params = [{pipeline_mode = #tpu.pipeline_mode<synchronous>, transform_indices = @transform_0, window_bounds = array<i64: 2048, 128>}, {pipeline_mode = #tpu.pipeline_mode<synchronous>, transform_indices = @transform_1, window_bounds = array<i64: 128, 3>}, {pipeline_mode = #tpu.pipeline_mode<synchronous>, transform_indices = @transform_2, window_bounds = array<i64: 2048, 3>}]} {
    %c0 = arith.constant 0 : index
    %c0_0 = arith.constant 0 : index
    %0 = vector.load %arg1[%c0, %c0_0] : memref<2048x128xf32, #tpu.memory_space<vmem>>, vector<2048x128xf32>
    %c0_1 = arith.constant 0 : index
    %c0_2 = arith.constant 0 : index
    %1 = vector.load %arg2[%c0_1, %c0_2] : memref<128x3xf32, #tpu.memory_space<vmem>>, vector<128x3xf32>
    %cst = arith.constant dense<0.000000e+00> : vector<2048x3xf32>
    %2 = tpu.matmul %0, %1, %cst {dimension_numbers = #tpu.dot_dimension_numbers<[1], [0], [0], [1], [0, 0, 1, 1], [], []>} : vector<2048x128xf32>, vector<128x3xf32>, vector<2048x3xf32> -> vector<2048x3xf32>
    %3 = math.tanh %2 : vector<2048x3xf32>
    %c0_3 = arith.constant 0 : index
    %c0_4 = arith.constant 0 : index
    %4 = vector.load %arg3[%c0_3, %c0_4] : memref<2048x3xf32, #tpu.memory_space<vmem>>, vector<2048x3xf32>
    tpu.vector_store %arg3[%c0_3, %c0_4], %3 {strides = array<i32>} : memref<2048x3xf32, #tpu.memory_space<vmem>>, vector<2048x3xf32>,
    return
  }
  func.func @transform_0(%arg0: i32) -> (i32, i32) {
    %c0_i32 = arith.constant 0 : i32
    %c0_i32_0 = arith.constant 0 : i32
    %c0_i32_1 = arith.constant 0 : i32
    return %c0_i32, %c0_i32_0 : i32, i32
  }
  func.func @transform_1(%arg0: i32) -> (i32, i32) {
    %c0_i32 = arith.constant 0 : i32
    %c0_i32_0 = arith.constant 0 : i32
    %c0_i32_1 = arith.constant 0 : i32
    return %c0_i32, %c0_i32_0 : i32, i32
  }
  func.func @transform_2(%arg0: i32) -> (i32, i32) {
    %c0_i32 = arith.constant 0 : i32
    %c0_i32_0 = arith.constant 0 : i32
    %c0_i32_1 = arith.constant 0 : i32
    return %c0_i32, %c0_i32_0 : i32, i32
  }
}

</mosaic_0001>

<bundles_post_ra>
// kernel: generator_forward.5
= control target key start
LH: loop header
LB: loop body
LE: loop exit
PB: predicated region body
PF: predicated region fallthrough
CT: control target
= control target key end

     0   :  { %9 = vsyncpa [#allocation3], 0  ;;  %s551_s0 = inlined_call_operand.vmem [shape: f32[32,256], index: 0, kind: input, shape index: {}]   ;;  %s552_s1 = inlined_call_operand.hbm [shape: f32[256,32], index: 1, kind: input, shape index: {}]   ;;  %s553_s2 = inlined_call_operand.hbm [shape: f32[1,32], index: 2, kind: input, shape index: {}]   ;;  %s554_s3 = inlined_call_operand.hbm [shape: f32[1,32], index: 3, kind: input, shape index: {}]   ;;  %s555_s4 = inlined_call_operand.vmem [shape: f32[32,32], index: 4, kind: output, shape index: {}]  }
   0x1   :  { %10 = vsyncpa [#allocation5], 0  ;;  %s430_s15 = smov [#allocation4]   ;;  %s431_s17 = smov [#allocation2]  }
   0x2   :  { %s31_s16 = sshll.u32 %s430_s15, 4  ;;  %s18_s18 = sshll.u32 %s431_s17, 4  ;;  %s32_s16 = int_to_ptr.vmem [resolvable:$true] %s31_s16  ;;  %s460_s18 = int_to_ptr.vmem [resolvable:$true] %s18_s18 }
   0x3   :  { %s360_s21 = scalar_lea.hbm %s553_s2, 16 }
   0x4   :  { %p361_p0 = scmp.ne.s32.totalorder %s553_s2, %s360_s21  ;;  %p364_p1 = scmp.lt.u32.totalorder %s360_s21, %s553_s2 }
   0x6   :  { %p366_p2 = pnand %p364_p1, %p361_p0 }
   0x8   :  { %369 = shalt.err (!%p366_p2)
}
   0x9   :  { %s370_s26 = scalar_lea.vmem %s32_s16, 16  ;;  %s374_s27 = scalar_lea.vmem %s32_s16, 32 }
   0xa   :  { %p371_p3 = scmp.ne.s32.totalorder %s32_s16, %s370_s26  ;;  %p375_p4 = scmp.lt.s32.totalorder %s32_s16, %s32_s16 }
   0xb   :  { %p376_p5 = scmp.lt.s32.totalorder %s374_s27, %s370_s26 }
   0xd   :  { %p377_p6 = por %p376_p5, %p375_p4 }
   0xf   :  { %p378_p7 = pnand %p377_p6, %p371_p3 }
  0x11   :  { %381 = shalt.err (!%p378_p7)
}
  0x12   :  { %34 = dma.hbm_to_vmem [thread:$0]  %s553_s2, 16, %s32_s16, [#allocation5]  }
  0x13   :  { %s382_s6 = scalar_lea.hbm %s552_s1, 4096 }
  0x14   :  { %p383_p8 = scmp.ne.s32.totalorder %s552_s1, %s382_s6  ;;  %p386_p9 = scmp.lt.u32.totalorder %s382_s6, %s552_s1 }
  0x16   :  { %p388_p10 = pnand %p386_p9, %p383_p8 }
  0x18   :  { %391 = shalt.err (!%p388_p10)
}
  0x19   :  { %s392_s11 = scalar_lea.vmem %s460_s18, 4096  ;;  %p397_p12 = scmp.lt.s32.totalorder %s460_s18, %s460_s18 }
  0x1a   :  { %p393_p11 = scmp.ne.s32.totalorder %s460_s18, %s392_s11  ;;  %p398_p13 = scmp.lt.s32.totalorder %s392_s11, %s392_s11 }
  0x1c   :  { %p399_p0 = por %p398_p13, %p397_p12 }
  0x1e   :  { %p400_p1 = pnand %p399_p0, %p393_p11 }
  0x20   :  { %403 = shalt.err (!%p400_p1)
}
  0x21   :  { %s432_s2 = smov 128   ;;  %s433_s12 = smov 8  }
  0x22   :  { %24 = dma.hbm_to_vmem [thread:$0]  %s552_s1, 4096, %s460_s18, [#allocation3], %s432_s2, %s432_s2, %s433_s12  }
  0x23   :  { %s434_s15 = smov [#allocation6]   ;;  %s404_s20 = scalar_lea.hbm %s554_s3, 16 }
  0x24   :  { %s41_s16 = sshll.u32 %s434_s15, 4  ;;  %p405_p2 = scmp.ne.s32.totalorder %s554_s3, %s404_s20  ;;  %s42_s16 = int_to_ptr.vmem [resolvable:$true] %s41_s16 }
  0x25   :  { %p408_p3 = scmp.lt.u32.totalorder %s404_s20, %s554_s3 }
  0x27   :  { %p410_p4 = pnand %p408_p3, %p405_p2 }
  0x29   :  { %413 = shalt.err (!%p410_p4)
}
  0x2a   :  { %s414_s25 = scalar_lea.vmem %s42_s16, 16  ;;  %s418_s1 = scalar_lea.vmem %s42_s16, 32 }
  0x2b   :  { %p415_p5 = scmp.ne.s32.totalorder %s42_s16, %s414_s25  ;;  %p419_p6 = scmp.lt.s32.totalorder %s42_s16, %s42_s16 }
  0x2c   :  { %p420_p7 = scmp.lt.s32.totalorder %s418_s1, %s414_s25 }
  0x2e   :  { %p421_p8 = por %p420_p7, %p419_p6 }
  0x30   :  { %p422_p9 = pnand %p421_p8, %p415_p5 }
  0x32   :  { %425 = shalt.err (!%p422_p9)
}
  0x33   :  { %44 = dma.hbm_to_vmem [thread:$0]  %s554_s3, 16, %s42_s16, [#allocation5]  }
  0x34   :  { %426 = dma.done.wait [#allocation3], 4096  }
  0x35   :  { %427 = vsyncadd [#allocation3], 4294963200 }
  0x36   :  { %428 = dma.done.wait [#allocation5], 32  }
  0x37   :  { %429 = vsyncadd [#allocation5], 4294967264  ;;  %v78_v0 = vld [vmem:[#allocation2 + $0x80] sm:$0xff]  ;;  %v79_v1 = vld [vmem:[#allocation2 + $0x88] sm:$0xff]  ;;  %vm179_vm0 = vcmask 261120  }
  0x38   :  { %v62_v2 = vld [vmem:[#allocation2] sm:$0xff]  ;;  %v305_v3 = vpack.c.bf16 %v79_v1, %v78_v0  ;;  %v63_v4 = vld [vmem:[#allocation2 + $0x8] sm:$0xff]  ;;  %v80_v5 = vld [vmem:[#allocation2 + $0x90] sm:$0xff] }
  0x39   :  { %v81_v6 = vld [vmem:[#allocation2 + $0x98] sm:$0xff]  ;;  %v307_v7 = vpack.c.bf16 %v63_v4, %v62_v2  ;;  %v64_v9 = vld [vmem:[#allocation2 + $0x10] sm:$0xff]  ;;  %v82_v11 = vld [vmem:[#allocation2 + $0xa0] sm:$0xff] }
  0x3a   :  { %v309_v8 = vpack.c.bf16 %v81_v6, %v80_v5  ;;  %v65_v10 = vld [vmem:[#allocation2 + $0x18] sm:$0xff]  ;;  %306 = vmatprep.subr.bf16.mxu0 %v305_v3  ;;  %337 = vmatprep.subr.bf16.mxu1 %v305_v3  ;;  %v83_v12 = vld [vmem:[#allocation2 + $0xa8] sm:$0xff]  ;;  %v66_v15 = vld [vmem:[#allocation2 + $0x20] sm:$0xff] }
  0x3b   :  { %308 = vmatpush3.bf16.msra.mxu0 %v307_v7  ;;  %345 = vmatpush3.bf16.msra.mxu1 %v307_v7  ;;  %v311_v13 = vpack.c.bf16 %v65_v10, %v64_v9  ;;  %v313_v14 = vpack.c.bf16 %v83_v12, %v82_v11  ;;  %v67_v16 = vld [vmem:[#allocation2 + $0x28] sm:$0xff]  ;;  %v84_v17 = vld [vmem:[#allocation2 + $0xb0] sm:$0xff]  ;;  %v85_v18 = vld [vmem:[#allocation2 + $0xb8] sm:$0xff] }
  0x3c   :  { %310 = vmatprep.subr.bf16.mxu0 %v309_v8  ;;  %338 = vmatprep.subr.bf16.mxu1 %v309_v8  ;;  %v315_v19 = vpack.c.bf16 %v67_v16, %v66_v15  ;;  %v317_v20 = vpack.c.bf16 %v85_v18, %v84_v17  ;;  %v68_v21 = vld [vmem:[#allocation2 + $0x30] sm:$0xff]  ;;  %v69_v22 = vld [vmem:[#allocation2 + $0x38] sm:$0xff]  ;;  %v86_v23 = vld [vmem:[#allocation2 + $0xc0] sm:$0xff] }
  0x3d   :  { %v87_v24 = vld [vmem:[#allocation2 + $0xc8] sm:$0xff]  ;;  %v319_v27 = vpack.c.bf16 %v69_v22, %v68_v21  ;;  %v70_v29 = vld [vmem:[#allocation2 + $0x40] sm:$0xff]  ;;  %v88_v31 = vld [vmem:[#allocation2 + $0xd0] sm:$0xff] }
  0x3e   :  { %v55_v25 = vld [vmem:[%s551_s0 + $0x8] sm:$0xff]  ;;  %v321_v28 = vpack.c.bf16 %v87_v24, %v86_v23  ;;  %v89_v32 = vld [vmem:[#allocation2 + $0xd8] sm:$0xff]  ;;  %v72_v35 = vld [vmem:[#allocation2 + $0x50] sm:$0xff] }
  0x3f   :  { %312 = vmatpush3.bf16.msra.mxu0 %v311_v13  ;;  %346 = vmatpush3.bf16.msra.mxu1 %v311_v13  ;;  %v59_v26 = vld [vmem:[%s551_s0 + $0x28] sm:$0xff]  ;;  %v325_v34 = vpack.c.bf16 %v89_v32, %v88_v31  ;;  %v73_v36 = vld [vmem:[#allocation2 + $0x58] sm:$0xff]  ;;  %v90_v37 = vld [vmem:[#allocation2 + $0xe0] sm:$0xff] }
  0x40   :  { %314 = vmatprep.subr.bf16.mxu0 %v313_v14  ;;  %339 = vmatprep.subr.bf16.mxu1 %v313_v14  ;;  %v71_v30 = vld [vmem:[#allocation2 + $0x48] sm:$0xff]  ;;  %v327_v39 = vpack.c.bf16 %v73_v36, %v72_v35  ;;  %v74_v41 = vld [vmem:[#allocation2 + $0x60] sm:$0xff]  ;;  %v92_v43 = vld [vmem:[#allocation2 + $0xf0] sm:$0xff] }
  0x41   :  { %158 = vmatprep.mubr.f32.mxu0 %v55_v25  ;;  %168 = vmatprep.mubr.f32.mxu1 %v59_v26  ;;  %v323_v33 = vpack.c.bf16 %v71_v30, %v70_v29  ;;  %v91_v38 = vld [vmem:[#allocation2 + $0xe8] sm:$0xff]  ;;  %v93_v44 = vld [vmem:[#allocation2 + $0xf8] sm:$0xff]  ;;  %v76_v47 = vld [vmem:[#allocation2 + $0x70] sm:$0xff] }
  0x42   :  { %v329_v40 = vpack.c.bf16 %v91_v38, %v90_v37  ;;  %v75_v42 = vld [vmem:[#allocation2 + $0x68] sm:$0xff]  ;;  %v333_v46 = vpack.c.bf16 %v93_v44, %v92_v43  ;;  %v77_v48 = vld [vmem:[#allocation2 + $0x78] sm:$0xff]  ;;  %v54_v50 = vld [vmem:[%s551_s0] sm:$0xff] }
  0x43   :  { %316 = vmatpush3.bf16.msra.mxu0 %v315_v19  ;;  %347 = vmatpush3.bf16.msra.mxu1 %v315_v19  ;;  %v331_v45 = vpack.c.bf16 %v75_v42, %v74_v41  ;;  %v335_v49 = vpack.c.bf16 %v77_v48, %v76_v47  ;;  %v58_v51 = vld [vmem:[%s551_s0 + $0x20] sm:$0xff]  ;;  %v57_v52 = vld [vmem:[%s551_s0 + $0x18] sm:$0xff]  ;;  %v56_v54 = vld [vmem:[%s551_s0 + $0x10] sm:$0xff] }
  0x44   :  { %318 = vmatprep.subr.bf16.mxu0 %v317_v20  ;;  %340 = vmatprep.subr.bf16.mxu1 %v317_v20  ;;  %v61_v53 = vld [vmem:[%s551_s0 + $0x38] sm:$0xff]  ;;  %v60_v55 = vld [vmem:[%s551_s0 + $0x30] sm:$0xff]  ;;  %v259_v42 = vld [vmem:[#allocation4] ss:$0 sm:$0xff] }
  0x45   :  { %v260_v47 = vld [vmem:[#allocation6] ss:$0 sm:$0xff] }
  0x47   :  { %320 = vmatpush3.bf16.msra.mxu0 %v319_v27  ;;  %348 = vmatpush3.bf16.msra.mxu1 %v319_v27 }
  0x48   :  { %322 = vmatprep.subr.bf16.mxu0 %v321_v28  ;;  %341 = vmatprep.subr.bf16.mxu1 %v321_v28 }
  0x4b   :  { %324 = vmatpush3.bf16.msra.mxu0 %v323_v33  ;;  %349 = vmatpush3.bf16.msra.mxu1 %v323_v33 }
  0x4c   :  { %326 = vmatprep.subr.bf16.mxu0 %v325_v34  ;;  %342 = vmatprep.subr.bf16.mxu1 %v325_v34 }
  0x4f   :  { %328 = vmatpush3.bf16.msra.mxu0 %v327_v39  ;;  %350 = vmatpush3.bf16.msra.mxu1 %v327_v39 }
  0x50   :  { %330 = vmatprep.subr.bf16.mxu0 %v329_v40  ;;  %343 = vmatprep.subr.bf16.mxu1 %v329_v40 }
  0x53   :  { %332 = vmatpush3.bf16.msra.mxu0 %v331_v45  ;;  %351 = vmatpush3.bf16.msra.mxu1 %v331_v45 }
  0x54   :  { %334 = vmatprep.subr.bf16.mxu0 %v333_v46  ;;  %344 = vmatprep.subr.bf16.mxu1 %v333_v46 }
  0x57   :  { %336 = vmatpush3.bf16.msra.mxu0 %v335_v49  ;;  %352 = vmatpush3.bf16.msra.mxu1 %v335_v49 }
  0x5a   :  { %159 = vmatmul.mubr.f32.vlgmr.msra.gmra.mrb[0].mxu0 %v54_v50  ;;  %169 = vmatmul.mubr.f32.vlgmr.msra.gmra.mrb[0].mxu1 %v58_v51 }
  0x5b   :  { %163 = vmatprep.mubr.f32.mxu0 %v57_v52  ;;  %173 = vmatprep.mubr.f32.mxu1 %v61_v53 }
  0x5e   :  { %164 = vmatmul.mubr.f32.gmra.mrb[2].mxu0 %v56_v54  ;;  %174 = vmatmul.mubr.f32.gmra.mrb[2].mxu1 %v60_v55 }
 0x12d   :  { %v293_v56 = vpop.f32.mrb[0].mxu0  ;;  %v299_v57 = vpop.f32.mrb[0].mxu1 }
 0x12e   :  { %v294_v58 = vpop.f32.mrb[1].mxu0  ;;  %v300_v59 = vpop.f32.mrb[1].mxu1 }
 0x12f   :  { %v295_v60 = vadd.f32 %v294_v58, %v293_v56  ;;  %v301_v61 = vadd.f32 %v300_v59, %v299_v57 }
 0x131   :  { %v296_v62 = vpop.f32.mrb[2].mxu0  ;;  %v302_v63 = vpop.f32.mrb[2].mxu1  ;;  %v180_v4 = vsel %vm179_vm0, %v295_v60, 0.0  ;;  %v183_v7 = vsel %vm179_vm0, %v301_v61, 0.0 }
 0x132   :  { %v297_v0 = vpop.f32.mrb[3].mxu0  ;;  %v303_v1 = vpop.f32.mrb[3].mxu1 }
 0x133   :  { %v298_v2 = vadd.f32 %v297_v0, %v296_v62  ;;  %v304_v3 = vadd.f32 %v303_v1, %v302_v63 }
 0x135   :  { %v181_v5 = vsel %vm179_vm0, %v298_v2, 0.0  ;;  %v185_v8 = vsel %vm179_vm0, %v304_v3, 0.0 }
 0x136   :  { %v182_v6 = vadd.f32 %v181_v5, %v180_v4 }
 0x138   :  { %v184_v9 = vadd.f32 %v183_v7, %v182_v6 }
 0x13a   :  { %v186_v10 = vadd.f32 %v185_v8, %v184_v9 }
 0x13c   :  { %v187_v11 = vrot.slane %v186_v10, 4 }
 0x13e   :  { %v188_v12 = vadd.f32 %v187_v11, %v186_v10 }
 0x140   :  { %v189_v13 = vrot.slane %v188_v12, 2 }
 0x142   :  { %v190_v14 = vadd.f32 %v189_v13, %v188_v12 }
 0x144   :  { %v191_v15 = vrot.slane %v190_v14, 1 }
 0x146   :  { %v192_v16 = vadd.f32 %v191_v15, %v190_v14 }
 0x148   :  { %v194_v17 = vmul.f32 0.03125, %v192_v16 }
 0x14a   :  { %v195_v18 = vsub.f32 %v295_v60, %v194_v17  ;;  %v196_v19 = vsub.f32 %v298_v2, %v194_v17  ;;  %v197_v20 = vsub.f32 %v301_v61, %v194_v17  ;;  %v198_v21 = vsub.f32 %v304_v3, %v194_v17 }
 0x14c   :  { %v199_v22 = vmul.f32 %v195_v18, %v195_v18  ;;  %v200_v23 = vmul.f32 %v196_v19, %v196_v19  ;;  %v201_v24 = vmul.f32 %v197_v20, %v197_v20  ;;  %v202_v25 = vmul.f32 %v198_v21, %v198_v21 }
 0x14e   :  { %v203_v26 = vsel %vm179_vm0, %v199_v22, 0.0  ;;  %v204_v27 = vsel %vm179_vm0, %v200_v23, 0.0  ;;  %v206_v29 = vsel %vm179_vm0, %v201_v24, 0.0  ;;  %v208_v31 = vsel %vm179_vm0, %v202_v25, 0.0 }
 0x14f   :  { %v205_v28 = vadd.f32 %v204_v27, %v203_v26 }
 0x151   :  { %v207_v30 = vadd.f32 %v206_v29, %v205_v28 }
 0x153   :  { %v209_v32 = vadd.f32 %v208_v31, %v207_v30 }
 0x155   :  { %v210_v33 = vrot.slane %v209_v32, 4 }
 0x157   :  { %v211_v34 = vadd.f32 %v210_v33, %v209_v32 }
 0x159   :  { %v212_v35 = vrot.slane %v211_v34, 2 }
 0x15b   :  { %v213_v36 = vadd.f32 %v212_v35, %v211_v34 }
 0x15d   :  { %v214_v37 = vrot.slane %v213_v36, 1 }
 0x15f   :  { %v215_v38 = vadd.f32 %v214_v37, %v213_v36 }
 0x161   :  { %v216_v39 = vmul.f32 0.03125, %v215_v38 }
 0x163   :  { %v217_v40 = vadd.f32 1e-05, %v216_v39 }
 0x165   :  { %358 = vrsqrt.f32 %v217_v40 }
 0x16f   :  { %v359_v41 = vpop.eup %358 }
 0x170   :  { %v219_v43 = vmul.f32 %v359_v41, %v195_v18  ;;  %v220_v44 = vmul.f32 %v359_v41, %v196_v19  ;;  %v221_v45 = vmul.f32 %v359_v41, %v197_v20  ;;  %v222_v46 = vmul.f32 %v359_v41, %v198_v21 }
 0x172   :  { %v230_v48 = vmul.f32 %v259_v42, %v219_v43  ;;  %v231_v49 = vmul.f32 %v259_v42, %v220_v44  ;;  %v232_v50 = vmul.f32 %v259_v42, %v221_v45  ;;  %v233_v51 = vmul.f32 %v259_v42, %v222_v46 }
 0x174   :  { %v241_v52 = vadd.f32 %v260_v47, %v230_v48  ;;  %v242_v53 = vadd.f32 %v260_v47, %v231_v49  ;;  %v243_v54 = vadd.f32 %v260_v47, %v232_v50  ;;  %v244_v55 = vadd.f32 %v260_v47, %v233_v51 }
 0x176   :  { %v245_v56 = vmax.f32 %v241_v52, 0.0  ;;  %v246_v57 = vmax.f32 %v242_v53, 0.0  ;;  %v247_v58 = vmax.f32 %v243_v54, 0.0  ;;  %v248_v59 = vmax.f32 %v244_v55, 0.0 }
 0x178   :  { %249 = vst.msk [vmem:[%s555_s4] sm:$0xff] %vm179_vm0, %v245_v56  ;;  %250 = vst.msk [vmem:[%s555_s4 + $0x8] sm:$0xff] %vm179_vm0, %v246_v57 }
 0x179   :  { %251 = vst.msk [vmem:[%s555_s4 + $0x10] sm:$0xff] %vm179_vm0, %v247_v58  ;;  %252 = vst.msk [vmem:[%s555_s4 + $0x18] sm:$0xff] %vm179_vm0, %v248_v59 }
 0x17a   :  { %257 = vsyncpa [#allocation3], 1 }
 0x17b   :  { %258 = vsyncpa [#allocation5], 1 }

// kernel: generator_forward.6
= control target key start
LH: loop header
LB: loop body
LE: loop exit
PB: predicated region body
PF: predicated region fallthrough
CT: control target
= control target key end

     0   :  { %vm435_vm0 = vcmask 130048   ;;  %s1508_s1 = inlined_call_operand.vmem [shape: f32[512,16], index: 1, kind: input, shape index: {}]   ;;  %s1509_s0 = inlined_call_operand.vmem [shape: f32[128,512], index: 0, kind: input, shape index: {}]   ;;  %s1510_s2 = inlined_call_operand.vmem [shape: f32[1,16], index: 2, kind: input, shape index: {}]   ;;  %s1511_s3 = inlined_call_operand.vmem [shape: f32[1,16], index: 3, kind: input, shape index: {}]   ;;  %s1512_s4 = inlined_call_operand.vmem [shape: f32[128,16], index: 4, kind: output, shape index: {}]  }
   0x1   :  { %v97_v0 = vld [vmem:[%s1508_s1 + $0x80] sm:$0xff]  ;;  %v98_v1 = vld [vmem:[%s1508_s1 + $0x88] sm:$0xff]  ;;  %v99_v11 = vld [vmem:[%s1508_s1 + $0x90] sm:$0xff] }
   0x2   :  { %v129_v2 = vld [vmem:[%s1508_s1 + $0x180] sm:$0xff]  ;;  %v807_v3 = vpack.c.bf16 %v98_v1, %v97_v0  ;;  %v130_v4 = vld [vmem:[%s1508_s1 + $0x188] sm:$0xff]  ;;  %v100_v13 = vld [vmem:[%s1508_s1 + $0x98] sm:$0xff] }
   0x3   :  { %v81_v5 = vld [vmem:[%s1508_s1] sm:$0xff]  ;;  %v82_v6 = vld [vmem:[%s1508_s1 + $0x8] sm:$0xff]  ;;  %v839_v7 = vpack.c.bf16 %v130_v4, %v129_v2  ;;  %v131_v14 = vld [vmem:[%s1508_s1 + $0x190] sm:$0xff]  ;;  %v811_v16 = vpack.c.bf16 %v100_v13, %v99_v11 }
   0x4   :  { %v809_v8 = vpack.c.bf16 %v82_v6, %v81_v5  ;;  %v113_v9 = vld [vmem:[%s1508_s1 + $0x100] sm:$0xff]  ;;  %v114_v10 = vld [vmem:[%s1508_s1 + $0x108] sm:$0xff]  ;;  %808 = vmatprep.subr.bf16.mxu0 %v807_v3  ;;  %v132_v15 = vld [vmem:[%s1508_s1 + $0x198] sm:$0xff] }
   0x5   :  { %v841_v12 = vpack.c.bf16 %v114_v10, %v113_v9  ;;  %840 = vmatprep.subr.bf16.mxu1 %v839_v7  ;;  %v843_v17 = vpack.c.bf16 %v132_v15, %v131_v14  ;;  %v83_v18 = vld [vmem:[%s1508_s1 + $0x10] sm:$0xff]  ;;  %v84_v19 = vld [vmem:[%s1508_s1 + $0x18] sm:$0xff]  ;;  %v101_v23 = vld [vmem:[%s1508_s1 + $0xa0] sm:$0xff] }
   0x6   :  { %810 = vmatpush3.bf16.msra.mxu0 %v809_v8  ;;  %v115_v20 = vld [vmem:[%s1508_s1 + $0x110] sm:$0xff]  ;;  %v813_v21 = vpack.c.bf16 %v84_v19, %v83_v18  ;;  %v116_v22 = vld [vmem:[%s1508_s1 + $0x118] sm:$0xff]  ;;  %v102_v24 = vld [vmem:[%s1508_s1 + $0xa8] sm:$0xff] }
   0x7   :  { %842 = vmatpush3.bf16.msra.mxu1 %v841_v12  ;;  %812 = vmatprep.subr.bf16.mxu0 %v811_v16  ;;  %v845_v25 = vpack.c.bf16 %v116_v22, %v115_v20  ;;  %v815_v26 = vpack.c.bf16 %v102_v24, %v101_v23  ;;  %v133_v27 = vld [vmem:[%s1508_s1 + $0x1a0] sm:$0xff]  ;;  %v134_v28 = vld [vmem:[%s1508_s1 + $0x1a8] sm:$0xff]  ;;  %v103_v35 = vld [vmem:[%s1508_s1 + $0xb0] sm:$0xff] }
   0x8   :  { %844 = vmatprep.subr.bf16.mxu1 %v843_v17  ;;  %v85_v29 = vld [vmem:[%s1508_s1 + $0x20] sm:$0xff]  ;;  %v847_v30 = vpack.c.bf16 %v134_v28, %v133_v27  ;;  %v86_v31 = vld [vmem:[%s1508_s1 + $0x28] sm:$0xff]  ;;  %v104_v36 = vld [vmem:[%s1508_s1 + $0xb8] sm:$0xff] }
   0x9   :  { %v117_v32 = vld [vmem:[%s1508_s1 + $0x120] sm:$0xff]  ;;  %v118_v33 = vld [vmem:[%s1508_s1 + $0x128] sm:$0xff]  ;;  %v817_v34 = vpack.c.bf16 %v86_v31, %v85_v29  ;;  %v135_v37 = vld [vmem:[%s1508_s1 + $0x1b0] sm:$0xff]  ;;  %v819_v39 = vpack.c.bf16 %v104_v36, %v103_v35 }
   0xa   :  { %814 = vmatpush3.bf16.msra.mxu0 %v813_v21  ;;  %v849_v38 = vpack.c.bf16 %v118_v33, %v117_v32  ;;  %v136_v40 = vld [vmem:[%s1508_s1 + $0x1b8] sm:$0xff]  ;;  %v87_v41 = vld [vmem:[%s1508_s1 + $0x30] sm:$0xff]  ;;  %v105_v46 = vld [vmem:[%s1508_s1 + $0xc0] sm:$0xff] }
   0xb   :  { %846 = vmatpush3.bf16.msra.mxu1 %v845_v25  ;;  %816 = vmatprep.subr.bf16.mxu0 %v815_v26  ;;  %v88_v42 = vld [vmem:[%s1508_s1 + $0x38] sm:$0xff]  ;;  %v851_v43 = vpack.c.bf16 %v136_v40, %v135_v37  ;;  %v119_v44 = vld [vmem:[%s1508_s1 + $0x130] sm:$0xff]  ;;  %v106_v47 = vld [vmem:[%s1508_s1 + $0xc8] sm:$0xff] }
   0xc   :  { %848 = vmatprep.subr.bf16.mxu1 %v847_v30  ;;  %v120_v45 = vld [vmem:[%s1508_s1 + $0x138] sm:$0xff]  ;;  %v137_v48 = vld [vmem:[%s1508_s1 + $0x1c0] sm:$0xff]  ;;  %v138_v49 = vld [vmem:[%s1508_s1 + $0x1c8] sm:$0xff]  ;;  %v821_v50 = vpack.c.bf16 %v88_v42, %v87_v41  ;;  %v823_v52 = vpack.c.bf16 %v106_v47, %v105_v46 }
   0xd   :  { %v853_v51 = vpack.c.bf16 %v120_v45, %v119_v44  ;;  %v89_v53 = vld [vmem:[%s1508_s1 + $0x40] sm:$0xff]  ;;  %v90_v54 = vld [vmem:[%s1508_s1 + $0x48] sm:$0xff]  ;;  %v855_v56 = vpack.c.bf16 %v138_v49, %v137_v48  ;;  %v107_v58 = vld [vmem:[%s1508_s1 + $0xd0] sm:$0xff] }
   0xe   :  { %818 = vmatpush3.bf16.msra.mxu0 %v817_v34  ;;  %v121_v55 = vld [vmem:[%s1508_s1 + $0x140] sm:$0xff]  ;;  %v122_v57 = vld [vmem:[%s1508_s1 + $0x148] sm:$0xff]  ;;  %v108_v59 = vld [vmem:[%s1508_s1 + $0xd8] sm:$0xff]  ;;  %v825_v62 = vpack.c.bf16 %v90_v54, %v89_v53 }
   0xf   :  { %850 = vmatpush3.bf16.msra.mxu1 %v849_v38  ;;  %820 = vmatprep.subr.bf16.mxu0 %v819_v39  ;;  %v139_v60 = vld [vmem:[%s1508_s1 + $0x1d0] sm:$0xff]  ;;  %v140_v61 = vld [vmem:[%s1508_s1 + $0x1d8] sm:$0xff]  ;;  %v857_v63 = vpack.c.bf16 %v122_v57, %v121_v55  ;;  %v827_v0 = vpack.c.bf16 %v108_v59, %v107_v58  ;;  %v109_v6 = vld [vmem:[%s1508_s1 + $0xe0] sm:$0xff] }
  0x10   :  { %852 = vmatprep.subr.bf16.mxu1 %v851_v43  ;;  %v91_v1 = vld [vmem:[%s1508_s1 + $0x50] sm:$0xff]  ;;  %v92_v2 = vld [vmem:[%s1508_s1 + $0x58] sm:$0xff]  ;;  %v859_v4 = vpack.c.bf16 %v140_v61, %v139_v60  ;;  %v110_v7 = vld [vmem:[%s1508_s1 + $0xe8] sm:$0xff] }
  0x11   :  { %v123_v3 = vld [vmem:[%s1508_s1 + $0x150] sm:$0xff]  ;;  %v124_v5 = vld [vmem:[%s1508_s1 + $0x158] sm:$0xff]  ;;  %v141_v8 = vld [vmem:[%s1508_s1 + $0x1e0] sm:$0xff]  ;;  %v829_v10 = vpack.c.bf16 %v92_v2, %v91_v1  ;;  %v831_v14 = vpack.c.bf16 %v110_v7, %v109_v6 }
  0x12   :  { %822 = vmatpush3.bf16.msra.mxu0 %v821_v50  ;;  %v142_v9 = vld [vmem:[%s1508_s1 + $0x1e8] sm:$0xff]  ;;  %v93_v11 = vld [vmem:[%s1508_s1 + $0x60] sm:$0xff]  ;;  %v861_v13 = vpack.c.bf16 %v124_v5, %v123_v3  ;;  %v20_v17 = vld [vmem:[%s1509_s0 + $0x18] sm:$0xff] }
  0x13   :  { %854 = vmatpush3.bf16.msra.mxu1 %v853_v51  ;;  %824 = vmatprep.subr.bf16.mxu0 %v823_v52  ;;  %v94_v12 = vld [vmem:[%s1508_s1 + $0x68] sm:$0xff]  ;;  %v125_v15 = vld [vmem:[%s1508_s1 + $0x160] sm:$0xff]  ;;  %v863_v18 = vpack.c.bf16 %v142_v9, %v141_v8  ;;  %v111_v20 = vld [vmem:[%s1508_s1 + $0xf0] sm:$0xff] }
  0x14   :  { %856 = vmatprep.subr.bf16.mxu1 %v855_v56  ;;  %v18_v16 = vld [vmem:[%s1509_s0 + $0x8] sm:$0xff]  ;;  %v112_v21 = vld [vmem:[%s1508_s1 + $0xf8] sm:$0xff]  ;;  %v143_v22 = vld [vmem:[%s1508_s1 + $0x1f0] sm:$0xff]  ;;  %354 = vmatprep.mubr.f32.mxu1 %v20_v17  ;;  %v833_v24 = vpack.c.bf16 %v94_v12, %v93_v11 }
  0x15   :  { %v126_v19 = vld [vmem:[%s1508_s1 + $0x168] sm:$0xff]  ;;  %209 = vmatprep.mubr.f32.mxu0 %v18_v16  ;;  %v144_v23 = vld [vmem:[%s1508_s1 + $0x1f8] sm:$0xff]  ;;  %v835_v26 = vpack.c.bf16 %v112_v21, %v111_v20  ;;  %v95_v27 = vld [vmem:[%s1508_s1 + $0x70] sm:$0xff] }
  0x16   :  { %826 = vmatpush3.bf16.msra.mxu0 %v825_v62  ;;  %v865_v25 = vpack.c.bf16 %v126_v19, %v125_v15  ;;  %v96_v28 = vld [vmem:[%s1508_s1 + $0x78] sm:$0xff]  ;;  %v867_v29 = vpack.c.bf16 %v144_v23, %v143_v22  ;;  %v127_v30 = vld [vmem:[%s1508_s1 + $0x170] sm:$0xff]  ;;  %v17_v34 = vld [vmem:[%s1509_s0] sm:$0xff] }
  0x17   :  { %858 = vmatpush3.bf16.msra.mxu1 %v857_v63  ;;  %828 = vmatprep.subr.bf16.mxu0 %v827_v0  ;;  %v128_v31 = vld [vmem:[%s1508_s1 + $0x178] sm:$0xff]  ;;  %v837_v32 = vpack.c.bf16 %v96_v28, %v95_v27  ;;  %v19_v35 = vld [vmem:[%s1509_s0 + $0x10] sm:$0xff]  ;;  %v22_v36 = vld [vmem:[%s1509_s0 + $0x28] sm:$0xff] }
  0x18   :  { %860 = vmatprep.subr.bf16.mxu1 %v859_v4  ;;  %v869_v33 = vpack.c.bf16 %v128_v31, %v127_v30  ;;  %v24_v37 = vld [vmem:[%s1509_s0 + $0x38] sm:$0xff]  ;;  %v21_v38 = vld [vmem:[%s1509_s0 + $0x20] sm:$0xff]  ;;  %v23_v39 = vld [vmem:[%s1509_s0 + $0x30] sm:$0xff] }
  0x19   :  { %v26_v40 = vld [vmem:[%s1509_s0 + $0x48] sm:$0xff]  ;;  %v28_v41 = vld [vmem:[%s1509_s0 + $0x58] sm:$0xff]  ;;  %v25_v42 = vld [vmem:[%s1509_s0 + $0x40] sm:$0xff] }
  0x1a   :  { %830 = vmatpush3.bf16.msra.mxu0 %v829_v10  ;;  %v27_v43 = vld [vmem:[%s1509_s0 + $0x50] sm:$0xff]  ;;  %v30_v44 = vld [vmem:[%s1509_s0 + $0x68] sm:$0xff]  ;;  %v32_v45 = vld [vmem:[%s1509_s0 + $0x78] sm:$0xff] }
  0x1b   :  { %862 = vmatpush3.bf16.msra.mxu1 %v861_v13  ;;  %832 = vmatprep.subr.bf16.mxu0 %v831_v14  ;;  %v29_v46 = vld [vmem:[%s1509_s0 + $0x60] sm:$0xff]  ;;  %v31_v47 = vld [vmem:[%s1509_s0 + $0x70] sm:$0xff]  ;;  %v34_v48 = vld [vmem:[%s1509_s0 + $0x88] sm:$0xff] }
  0x1c   :  { %864 = vmatprep.subr.bf16.mxu1 %v863_v18  ;;  %v36_v49 = vld [vmem:[%s1509_s0 + $0x98] sm:$0xff]  ;;  %v33_v50 = vld [vmem:[%s1509_s0 + $0x80] sm:$0xff]  ;;  %v35_v51 = vld [vmem:[%s1509_s0 + $0x90] sm:$0xff] }
  0x1d   :  { %v38_v52 = vld [vmem:[%s1509_s0 + $0xa8] sm:$0xff]  ;;  %v40_v53 = vld [vmem:[%s1509_s0 + $0xb8] sm:$0xff]  ;;  %v37_v54 = vld [vmem:[%s1509_s0 + $0xa0] sm:$0xff] }
  0x1e   :  { %834 = vmatpush3.bf16.msra.mxu0 %v833_v24  ;;  %v39_v55 = vld [vmem:[%s1509_s0 + $0xb0] sm:$0xff]  ;;  %v42_v56 = vld [vmem:[%s1509_s0 + $0xc8] sm:$0xff]  ;;  %v44_v57 = vld [vmem:[%s1509_s0 + $0xd8] sm:$0xff] }
  0x1f   :  { %866 = vmatpush3.bf16.msra.mxu1 %v865_v25  ;;  %836 = vmatprep.subr.bf16.mxu0 %v835_v26  ;;  %v41_v58 = vld [vmem:[%s1509_s0 + $0xc0] sm:$0xff]  ;;  %v43_v59 = vld [vmem:[%s1509_s0 + $0xd0] sm:$0xff]  ;;  %v46_v60 = vld [vmem:[%s1509_s0 + $0xe8] sm:$0xff] }
  0x20   :  { %868 = vmatprep.subr.bf16.mxu1 %v867_v29  ;;  %v48_v61 = vld [vmem:[%s1509_s0 + $0xf8] sm:$0xff]  ;;  %v45_v62 = vld [vmem:[%s1509_s0 + $0xe0] sm:$0xff]  ;;  %v47_v63 = vld [vmem:[%s1509_s0 + $0xf0] sm:$0xff] }
  0x21   :  { %v50_v0 = vld [vmem:[%s1509_s0 + $0x108] sm:$0xff]  ;;  %v52_v1 = vld [vmem:[%s1509_s0 + $0x118] sm:$0xff]  ;;  %v49_v2 = vld [vmem:[%s1509_s0 + $0x100] sm:$0xff] }
  0x22   :  { %838 = vmatpush3.bf16.msra.mxu0 %v837_v32  ;;  %v51_v3 = vld [vmem:[%s1509_s0 + $0x110] sm:$0xff]  ;;  %v54_v4 = vld [vmem:[%s1509_s0 + $0x128] sm:$0xff]  ;;  %v56_v5 = vld [vmem:[%s1509_s0 + $0x138] sm:$0xff] }
  0x23   :  { %870 = vmatpush3.bf16.msra.mxu1 %v869_v33  ;;  %v53_v6 = vld [vmem:[%s1509_s0 + $0x120] sm:$0xff]  ;;  %v55_v7 = vld [vmem:[%s1509_s0 + $0x130] sm:$0xff]  ;;  %v58_v8 = vld [vmem:[%s1509_s0 + $0x148] sm:$0xff] }
  0x24   :  { %v60_v9 = vld [vmem:[%s1509_s0 + $0x158] sm:$0xff]  ;;  %v57_v10 = vld [vmem:[%s1509_s0 + $0x140] sm:$0xff]  ;;  %v59_v11 = vld [vmem:[%s1509_s0 + $0x150] sm:$0xff] }
  0x25   :  { %210 = vmatmul.mubr.f32.vlgmr.msra.gmra.mrb[0].mxu0 %v17_v34  ;;  %v62_v12 = vld [vmem:[%s1509_s0 + $0x168] sm:$0xff]  ;;  %v64_v13 = vld [vmem:[%s1509_s0 + $0x178] sm:$0xff]  ;;  %v61_v14 = vld [vmem:[%s1509_s0 + $0x160] sm:$0xff] }
  0x26   :  { %355 = vmatmul.mubr.f32.vlgmr.msra.gmra.mrb[0].mxu1 %v19_v35  ;;  %214 = vmatprep.mubr.f32.mxu0 %v22_v36  ;;  %v63_v15 = vld [vmem:[%s1509_s0 + $0x170] sm:$0xff]  ;;  %v66_v16 = vld [vmem:[%s1509_s0 + $0x188] sm:$0xff]  ;;  %v68_v17 = vld [vmem:[%s1509_s0 + $0x198] sm:$0xff] }
  0x27   :  { %359 = vmatprep.mubr.f32.mxu1 %v24_v37  ;;  %v65_v18 = vld [vmem:[%s1509_s0 + $0x180] sm:$0xff]  ;;  %v67_v19 = vld [vmem:[%s1509_s0 + $0x190] sm:$0xff]  ;;  %v70_v20 = vld [vmem:[%s1509_s0 + $0x1a8] sm:$0xff] }
  0x28   :  { %v72_v21 = vld [vmem:[%s1509_s0 + $0x1b8] sm:$0xff]  ;;  %v69_v22 = vld [vmem:[%s1509_s0 + $0x1a0] sm:$0xff]  ;;  %v71_v23 = vld [vmem:[%s1509_s0 + $0x1b0] sm:$0xff] }
  0x29   :  { %215 = vmatmul.mubr.f32.gmra.mrb[2].mxu0 %v21_v38  ;;  %v74_v24 = vld [vmem:[%s1509_s0 + $0x1c8] sm:$0xff]  ;;  %v76_v25 = vld [vmem:[%s1509_s0 + $0x1d8] sm:$0xff]  ;;  %v73_v26 = vld [vmem:[%s1509_s0 + $0x1c0] sm:$0xff] }
  0x2a   :  { %360 = vmatmul.mubr.f32.gmra.mrb[2].mxu1 %v23_v39  ;;  %219 = vmatprep.mubr.f32.mxu0 %v26_v40  ;;  %v75_v27 = vld [vmem:[%s1509_s0 + $0x1d0] sm:$0xff]  ;;  %v78_v28 = vld [vmem:[%s1509_s0 + $0x1e8] sm:$0xff]  ;;  %v80_v29 = vld [vmem:[%s1509_s0 + $0x1f8] sm:$0xff] }
  0x2b   :  { %364 = vmatprep.mubr.f32.mxu1 %v28_v41  ;;  %v77_v30 = vld [vmem:[%s1509_s0 + $0x1e0] sm:$0xff]  ;;  %v79_v31 = vld [vmem:[%s1509_s0 + $0x1f0] sm:$0xff] }
  0x2d   :  { %220 = vmatmul.mubr.f32.gmra.mrb[4].mxu0 %v25_v42 }
  0x2e   :  { %365 = vmatmul.mubr.f32.gmra.mrb[4].mxu1 %v27_v43  ;;  %224 = vmatprep.mubr.f32.mxu0 %v30_v44 }
  0x2f   :  { %369 = vmatprep.mubr.f32.mxu1 %v32_v45 }
  0x31   :  { %225 = vmatmul.mubr.f32.gmra.mrb[6].mxu0 %v29_v46 }
  0x32   :  { %370 = vmatmul.mubr.f32.gmra.mrb[6].mxu1 %v31_v47  ;;  %229 = vmatprep.mubr.f32.mxu0 %v34_v48 }
  0x33   :  { %374 = vmatprep.mubr.f32.mxu1 %v36_v49 }
  0x35   :  { %230 = vmatmul.mubr.f32.gmra.mrb[8].mxu0 %v33_v50 }
  0x36   :  { %375 = vmatmul.mubr.f32.gmra.mrb[8].mxu1 %v35_v51  ;;  %234 = vmatprep.mubr.f32.mxu0 %v38_v52 }
  0x37   :  { %379 = vmatprep.mubr.f32.mxu1 %v40_v53 }
  0x39   :  { %235 = vmatmul.mubr.f32.gmra.mrb[10].mxu0 %v37_v54 }
  0x3a   :  { %380 = vmatmul.mubr.f32.gmra.mrb[10].mxu1 %v39_v55  ;;  %239 = vmatprep.mubr.f32.mxu0 %v42_v56 }
  0x3b   :  { %384 = vmatprep.mubr.f32.mxu1 %v44_v57 }
  0x3d   :  { %240 = vmatmul.mubr.f32.gmra.mrb[12].mxu0 %v41_v58 }
  0x3e   :  { %385 = vmatmul.mubr.f32.gmra.mrb[12].mxu1 %v43_v59  ;;  %244 = vmatprep.mubr.f32.mxu0 %v46_v60 }
  0x3f   :  { %389 = vmatprep.mubr.f32.mxu1 %v48_v61 }
  0x41   :  { %245 = vmatmul.mubr.f32.gmra.mrb[14].mxu0 %v45_v62 }
  0x42   :  { %390 = vmatmul.mubr.f32.gmra.mrb[14].mxu1 %v47_v63  ;;  %249 = vmatprep.mubr.f32.mxu0 %v50_v0 }
  0x43   :  { %394 = vmatprep.mubr.f32.mxu1 %v52_v1 }
  0x45   :  { %250 = vmatmul.mubr.f32.gmra.mrb[16].mxu0 %v49_v2 }
  0x46   :  { %395 = vmatmul.mubr.f32.gmra.mrb[16].mxu1 %v51_v3  ;;  %254 = vmatprep.mubr.f32.mxu0 %v54_v4 }
  0x47   :  { %399 = vmatprep.mubr.f32.mxu1 %v56_v5 }
  0x49   :  { %255 = vmatmul.mubr.f32.gmra.mrb[18].mxu0 %v53_v6 }
  0x4a   :  { %400 = vmatmul.mubr.f32.gmra.mrb[18].mxu1 %v55_v7  ;;  %259 = vmatprep.mubr.f32.mxu0 %v58_v8 }
  0x4b   :  { %404 = vmatprep.mubr.f32.mxu1 %v60_v9 }
  0x4d   :  { %260 = vmatmul.mubr.f32.gmra.mrb[20].mxu0 %v57_v10 }
  0x4e   :  { %405 = vmatmul.mubr.f32.gmra.mrb[20].mxu1 %v59_v11  ;;  %264 = vmatprep.mubr.f32.mxu0 %v62_v12 }
  0x4f   :  { %409 = vmatprep.mubr.f32.mxu1 %v64_v13 }
  0x51   :  { %265 = vmatmul.mubr.f32.gmra.mrb[22].mxu0 %v61_v14 }
  0x52   :  { %410 = vmatmul.mubr.f32.gmra.mrb[22].mxu1 %v63_v15  ;;  %269 = vmatprep.mubr.f32.mxu0 %v66_v16 }
  0x53   :  { %414 = vmatprep.mubr.f32.mxu1 %v68_v17 }
  0x55   :  { %270 = vmatmul.mubr.f32.gmra.mrb[24].mxu0 %v65_v18 }
  0x56   :  { %415 = vmatmul.mubr.f32.gmra.mrb[24].mxu1 %v67_v19  ;;  %274 = vmatprep.mubr.f32.mxu0 %v70_v20 }
  0x57   :  { %419 = vmatprep.mubr.f32.mxu1 %v72_v21 }
  0x59   :  { %275 = vmatmul.mubr.f32.gmra.mrb[26].mxu0 %v69_v22 }
  0x5a   :  { %420 = vmatmul.mubr.f32.gmra.mrb[26].mxu1 %v71_v23  ;;  %279 = vmatprep.mubr.f32.mxu0 %v74_v24 }
  0x5b   :  { %424 = vmatprep.mubr.f32.mxu1 %v76_v25 }
  0x5d   :  { %280 = vmatmul.mubr.f32.gmra.mrb[28].mxu0 %v73_v26 }
  0x5e   :  { %425 = vmatmul.mubr.f32.gmra.mrb[28].mxu1 %v75_v27  ;;  %284 = vmatprep.mubr.f32.mxu0 %v78_v28 }
  0x5f   :  { %429 = vmatprep.mubr.f32.mxu1 %v80_v29 }
  0x61   :  { %285 = vmatmul.mubr.f32.gmra.mrb[30].mxu0 %v77_v30 }
  0x62   :  { %430 = vmatmul.mubr.f32.gmra.mrb[30].mxu1 %v79_v31 }
  0xf8   :  { %v679_v32 = vpop.f32.mrb[0].mxu0 }
  0xf9   :  { %v759_v33 = vpop.f32.mrb[0].mxu1  ;;  %v680_v34 = vpop.f32.mrb[1].mxu0 }
  0xfa   :  { %v681_v35 = vadd.f32 %v680_v34, %v679_v32  ;;  %v760_v36 = vpop.f32.mrb[1].mxu1 }
  0xfb   :  { %v761_v37 = vadd.f32 %v760_v36, %v759_v33 }
  0xfc   :  { %v682_v38 = vpop.f32.mrb[2].mxu0 }
  0xfd   :  { %v1282_v39 = vadd.f32 %v761_v37, %v681_v35  ;;  %v762_v40 = vpop.f32.mrb[2].mxu1  ;;  %v683_v41 = vpop.f32.mrb[3].mxu0 }
  0xfe   :  { %v684_v42 = vadd.f32 %v683_v41, %v682_v38  ;;  %v763_v43 = vpop.f32.mrb[3].mxu1 }
  0xff   :  { %v764_v44 = vadd.f32 %v763_v43, %v762_v40  ;;  %v436_v51 = vsel %vm435_vm0, %v1282_v39, 0.0 }
 0x100   :  { %v685_v45 = vpop.f32.mrb[4].mxu0 }
 0x101   :  { %v1284_v46 = vadd.f32 %v764_v44, %v684_v42  ;;  %v765_v47 = vpop.f32.mrb[4].mxu1  ;;  %v686_v48 = vpop.f32.mrb[5].mxu0 }
 0x102   :  { %v687_v49 = vadd.f32 %v686_v48, %v685_v45  ;;  %v766_v50 = vpop.f32.mrb[5].mxu1 }
 0x103   :  { %v437_v52 = vsel %vm435_vm0, %v1284_v46, 0.0  ;;  %v767_v53 = vadd.f32 %v766_v50, %v765_v47 }
 0x104   :  { %v438_v54 = vadd.f32 %v437_v52, %v436_v51  ;;  %v688_v55 = vpop.f32.mrb[6].mxu0 }
 0x105   :  { %v1290_v56 = vadd.f32 %v767_v53, %v687_v49  ;;  %v768_v57 = vpop.f32.mrb[6].mxu1  ;;  %v689_v58 = vpop.f32.mrb[7].mxu0 }
 0x106   :  { %v690_v59 = vadd.f32 %v689_v58, %v688_v55  ;;  %v769_v60 = vpop.f32.mrb[7].mxu1 }
 0x107   :  { %v439_v61 = vsel %vm435_vm0, %v1290_v56, 0.0  ;;  %v770_v62 = vadd.f32 %v769_v60, %v768_v57 }
 0x108   :  { %v440_v63 = vadd.f32 %v439_v61, %v438_v54  ;;  %v691_v0 = vpop.f32.mrb[8].mxu0 }
 0x109   :  { %v1294_v1 = vadd.f32 %v770_v62, %v690_v59  ;;  %v771_v2 = vpop.f32.mrb[8].mxu1  ;;  %v692_v3 = vpop.f32.mrb[9].mxu0 }
 0x10a   :  { %v693_v4 = vadd.f32 %v692_v3, %v691_v0  ;;  %v772_v5 = vpop.f32.mrb[9].mxu1 }
 0x10b   :  { %v441_v6 = vsel %vm435_vm0, %v1294_v1, 0.0  ;;  %v773_v7 = vadd.f32 %v772_v5, %v771_v2 }
 0x10c   :  { %v442_v8 = vadd.f32 %v441_v6, %v440_v63  ;;  %v694_v9 = vpop.f32.mrb[10].mxu0 }
 0x10d   :  { %v1298_v10 = vadd.f32 %v773_v7, %v693_v4  ;;  %v774_v11 = vpop.f32.mrb[10].mxu1  ;;  %v695_v12 = vpop.f32.mrb[11].mxu0 }
 0x10e   :  { %v696_v13 = vadd.f32 %v695_v12, %v694_v9  ;;  %v775_v14 = vpop.f32.mrb[11].mxu1 }
 0x10f   :  { %v443_v15 = vsel %vm435_vm0, %v1298_v10, 0.0  ;;  %v776_v16 = vadd.f32 %v775_v14, %v774_v11 }
 0x110   :  { %v444_v17 = vadd.f32 %v443_v15, %v442_v8  ;;  %v697_v18 = vpop.f32.mrb[12].mxu0 }
 0x111   :  { %v1302_v19 = vadd.f32 %v776_v16, %v696_v13  ;;  %v777_v20 = vpop.f32.mrb[12].mxu1  ;;  %v698_v21 = vpop.f32.mrb[13].mxu0 }
 0x112   :  { %v699_v22 = vadd.f32 %v698_v21, %v697_v18  ;;  %v778_v23 = vpop.f32.mrb[13].mxu1 }
 0x113   :  { %v445_v24 = vsel %vm435_vm0, %v1302_v19, 0.0  ;;  %v779_v25 = vadd.f32 %v778_v23, %v777_v20 }
 0x114   :  { %v446_v26 = vadd.f32 %v445_v24, %v444_v17  ;;  %v700_v27 = vpop.f32.mrb[14].mxu0 }
 0x115   :  { %v1306_v28 = vadd.f32 %v779_v25, %v699_v22  ;;  %v780_v29 = vpop.f32.mrb[14].mxu1  ;;  %v701_v30 = vpop.f32.mrb[15].mxu0 }
 0x116   :  { %v702_v31 = vadd.f32 %v701_v30, %v700_v27  ;;  %v781_v32 = vpop.f32.mrb[15].mxu1 }
 0x117   :  { %v447_v33 = vsel %vm435_vm0, %v1306_v28, 0.0  ;;  %v782_v34 = vadd.f32 %v781_v32, %v780_v29 }
 0x118   :  { %v448_v35 = vadd.f32 %v447_v33, %v446_v26  ;;  %v703_v36 = vpop.f32.mrb[16].mxu0 }
 0x119   :  { %v1310_v37 = vadd.f32 %v782_v34, %v702_v31  ;;  %v783_v38 = vpop.f32.mrb[16].mxu1  ;;  %v704_v40 = vpop.f32.mrb[17].mxu0 }
 0x11a   :  { %v705_v41 = vadd.f32 %v704_v40, %v703_v36  ;;  %v784_v42 = vpop.f32.mrb[17].mxu1 }
 0x11b   :  { %v449_v43 = vsel %vm435_vm0, %v1310_v37, 0.0  ;;  %v785_v44 = vadd.f32 %v784_v42, %v783_v38 }
 0x11c   :  { %v450_v45 = vadd.f32 %v449_v43, %v448_v35  ;;  %v706_v47 = vpop.f32.mrb[18].mxu0 }
 0x11d   :  { %v1314_v48 = vadd.f32 %v785_v44, %v705_v41  ;;  %v786_v49 = vpop.f32.mrb[18].mxu1  ;;  %v707_v50 = vpop.f32.mrb[19].mxu0 }
 0x11e   :  { %v708_v51 = vadd.f32 %v707_v50, %v706_v47  ;;  %v787_v52 = vpop.f32.mrb[19].mxu1 }
 0x11f   :  { %v451_v53 = vsel %vm435_vm0, %v1314_v48, 0.0  ;;  %v788_v54 = vadd.f32 %v787_v52, %v786_v49 }
 0x120   :  { %v452_v55 = vadd.f32 %v451_v53, %v450_v45  ;;  %v709_v57 = vpop.f32.mrb[20].mxu0 }
 0x121   :  { %v1318_v58 = vadd.f32 %v788_v54, %v708_v51  ;;  %v789_v59 = vpop.f32.mrb[20].mxu1  ;;  %v710_v60 = vpop.f32.mrb[21].mxu0 }
 0x122   :  { %v711_v61 = vadd.f32 %v710_v60, %v709_v57  ;;  %v790_v62 = vpop.f32.mrb[21].mxu1 }
 0x123   :  { %v453_v63 = vsel %vm435_vm0, %v1318_v58, 0.0  ;;  %v791_v0 = vadd.f32 %v790_v62, %v789_v59 }
 0x124   :  { %v454_v2 = vadd.f32 %v453_v63, %v452_v55  ;;  %v712_v3 = vpop.f32.mrb[22].mxu0 }
 0x125   :  { %v1322_v4 = vadd.f32 %v791_v0, %v711_v61  ;;  %v792_v5 = vpop.f32.mrb[22].mxu1  ;;  %v713_v6 = vpop.f32.mrb[23].mxu0 }
 0x126   :  { %v714_v7 = vadd.f32 %v713_v6, %v712_v3  ;;  %v793_v8 = vpop.f32.mrb[23].mxu1 }
 0x127   :  { %v455_v9 = vsel %vm435_vm0, %v1322_v4, 0.0  ;;  %v794_v11 = vadd.f32 %v793_v8, %v792_v5 }
 0x128   :  { %v456_v12 = vadd.f32 %v455_v9, %v454_v2  ;;  %v715_v13 = vpop.f32.mrb[24].mxu0 }
 0x129   :  { %v412_v14 = vadd.f32 %v794_v11, %v714_v7  ;;  %v795_v15 = vpop.f32.mrb[24].mxu1  ;;  %v716_v16 = vpop.f32.mrb[25].mxu0 }
 0x12a   :  { %v717_v17 = vadd.f32 %v716_v16, %v715_v13  ;;  %v796_v18 = vpop.f32.mrb[25].mxu1 }
 0x12b   :  { %v457_v20 = vsel %vm435_vm0, %v412_v14, 0.0  ;;  %v797_v21 = vadd.f32 %v796_v18, %v795_v15 }
 0x12c   :  { %v458_v22 = vadd.f32 %v457_v20, %v456_v12  ;;  %v718_v23 = vpop.f32.mrb[26].mxu0 }
 0x12d   :  { %v417_v24 = vadd.f32 %v797_v21, %v717_v17  ;;  %v798_v25 = vpop.f32.mrb[26].mxu1  ;;  %v719_v26 = vpop.f32.mrb[27].mxu0 }
 0x12e   :  { %v720_v27 = vadd.f32 %v719_v26, %v718_v23  ;;  %v799_v29 = vpop.f32.mrb[27].mxu1 }
 0x12f   :  { %v459_v30 = vsel %vm435_vm0, %v417_v24, 0.0  ;;  %v800_v31 = vadd.f32 %v799_v29, %v798_v25 }
 0x130   :  { %v460_v32 = vadd.f32 %v459_v30, %v458_v22  ;;  %v721_v33 = vpop.f32.mrb[28].mxu0 }
 0x131   :  { %v422_v34 = vadd.f32 %v800_v31, %v720_v27  ;;  %v801_v35 = vpop.f32.mrb[28].mxu1  ;;  %v722_v36 = vpop.f32.mrb[29].mxu0 }
 0x132   :  { %v723_v38 = vadd.f32 %v722_v36, %v721_v33  ;;  %v802_v40 = vpop.f32.mrb[29].mxu1 }
 0x133   :  { %v461_v41 = vsel %vm435_vm0, %v422_v34, 0.0  ;;  %v803_v42 = vadd.f32 %v802_v40, %v801_v35 }
 0x134   :  { %v462_v43 = vadd.f32 %v461_v41, %v460_v32  ;;  %v724_v44 = vpop.f32.mrb[30].mxu0 }
 0x135   :  { %v427_v45 = vadd.f32 %v803_v42, %v723_v38  ;;  %v804_v47 = vpop.f32.mrb[30].mxu1  ;;  %v725_v49 = vpop.f32.mrb[31].mxu0 }
 0x136   :  { %v726_v50 = vadd.f32 %v725_v49, %v724_v44  ;;  %v805_v51 = vpop.f32.mrb[31].mxu1 }
 0x137   :  { %v463_v52 = vsel %vm435_vm0, %v427_v45, 0.0  ;;  %v806_v53 = vadd.f32 %v805_v51, %v804_v47 }
 0x138   :  { %v464_v54 = vadd.f32 %v463_v52, %v462_v43 }
 0x139   :  { %v432_v55 = vadd.f32 %v806_v53, %v726_v50 }
 0x13b   :  { %v465_v57 = vsel %vm435_vm0, %v432_v55, 0.0 }
 0x13c   :  { %v466_v59 = vadd.f32 %v465_v57, %v464_v54 }
 0x13e   :  { %v467_v60 = vrot.slane %v466_v59, 4 }
 0x140   :  { %v468_v61 = vadd.f32 %v467_v60, %v466_v59 }
 0x142   :  { %v469_v62 = vrot.slane %v468_v61, 2 }
 0x144   :  { %v470_v63 = vadd.f32 %v469_v62, %v468_v61 }
 0x146   :  { %v471_v0 = vrot.slane %v470_v63, 1 }
 0x148   :  { %v472_v2 = vadd.f32 %v471_v0, %v470_v63 }
 0x14a   :  { %v474_v3 = vmul.f32 0.0078125, %v472_v2 }
 0x14c   :  { %v1332_v5 = vsub.f32 %v1282_v39, %v474_v3  ;;  %v1335_v6 = vsub.f32 %v1284_v46, %v474_v3  ;;  %v1338_v7 = vsub.f32 %v1290_v56, %v474_v3  ;;  %v1341_v8 = vsub.f32 %v1294_v1, %v474_v3 }
 0x14d   :  { %v1344_v9 = vsub.f32 %v1298_v10, %v474_v3  ;;  %v1347_v11 = vsub.f32 %v1302_v19, %v474_v3  ;;  %v1350_v12 = vsub.f32 %v1306_v28, %v474_v3  ;;  %v1353_v39 = vsub.f32 %v1310_v37, %v474_v3 }
 0x14e   :  { %v1356_v46 = vsub.f32 %v1314_v48, %v474_v3  ;;  %v1359_v56 = vsub.f32 %v1318_v58, %v474_v3  ;;  %v1362_v1 = vsub.f32 %v1322_v4, %v474_v3  ;;  %v1364_v10 = vsub.f32 %v412_v14, %v474_v3 }
 0x14f   :  { %v1366_v13 = vsub.f32 %v417_v24, %v474_v3  ;;  %v1368_v19 = vsub.f32 %v422_v34, %v474_v3  ;;  %v1370_v28 = vsub.f32 %v427_v45, %v474_v3  ;;  %v1372_v15 = vsub.f32 %v432_v55, %v474_v3 }
 0x150   :  { %v491_v37 = vmul.f32 %v1332_v5, %v1332_v5  ;;  %v492_v48 = vmul.f32 %v1335_v6, %v1335_v6  ;;  %v493_v58 = vmul.f32 %v1338_v7, %v1338_v7  ;;  %v494_v4 = vmul.f32 %v1341_v8, %v1341_v8 }
 0x151   :  { %v495_v18 = vmul.f32 %v1344_v9, %v1344_v9  ;;  %v496_v22 = vmul.f32 %v1347_v11, %v1347_v11  ;;  %v497_v25 = vmul.f32 %v1350_v12, %v1350_v12  ;;  %v498_v29 = vmul.f32 %v1353_v39, %v1353_v39 }
 0x152   :  { %v507_v14 = vsel %vm435_vm0, %v491_v37, 0.0  ;;  %v508_v16 = vsel %vm435_vm0, %v492_v48, 0.0  ;;  %v510_v20 = vsel %vm435_vm0, %v493_v58, 0.0  ;;  %v512_v23 = vsel %vm435_vm0, %v494_v4, 0.0 }
 0x153   :  { %v509_v17 = vadd.f32 %v508_v16, %v507_v14  ;;  %v514_v26 = vsel %vm435_vm0, %v495_v18, 0.0  ;;  %v516_v30 = vsel %vm435_vm0, %v496_v22, 0.0  ;;  %v499_v32 = vmul.f32 %v1356_v46, %v1356_v46 }
 0x154   :  { %v518_v33 = vsel %vm435_vm0, %v497_v25, 0.0  ;;  %v500_v35 = vmul.f32 %v1359_v56, %v1359_v56  ;;  %v520_v36 = vsel %vm435_vm0, %v498_v29, 0.0  ;;  %v501_v40 = vmul.f32 %v1362_v1, %v1362_v1  ;;  %v645_v29 = vld [vmem:[%s1510_s2] ss:$0 sm:$0xff] }
 0x155   :  { %v511_v21 = vadd.f32 %v510_v20, %v509_v17  ;;  %v522_v41 = vsel %vm435_vm0, %v499_v32, 0.0  ;;  %v502_v43 = vmul.f32 %v1364_v10, %v1364_v10  ;;  %v503_v47 = vmul.f32 %v1366_v13, %v1366_v13 }
 0x156   :  { %v524_v44 = vsel %vm435_vm0, %v500_v35, 0.0  ;;  %v526_v49 = vsel %vm435_vm0, %v501_v40, 0.0  ;;  %v504_v51 = vmul.f32 %v1368_v19, %v1368_v19  ;;  %v505_v54 = vmul.f32 %v1370_v28, %v1370_v28 }
 0x157   :  { %v513_v24 = vadd.f32 %v512_v23, %v511_v21  ;;  %v528_v52 = vsel %vm435_vm0, %v502_v43, 0.0  ;;  %v530_v55 = vsel %vm435_vm0, %v503_v47, 0.0  ;;  %v506_v59 = vmul.f32 %v1372_v15, %v1372_v15 }
 0x158   :  { %v532_v60 = vsel %vm435_vm0, %v504_v51, 0.0  ;;  %v534_v62 = vsel %vm435_vm0, %v505_v54, 0.0 }
 0x159   :  { %v515_v27 = vadd.f32 %v514_v26, %v513_v24  ;;  %v536_v0 = vsel %vm435_vm0, %v506_v59, 0.0 }
 0x15b   :  { %v517_v31 = vadd.f32 %v516_v30, %v515_v27 }
 0x15d   :  { %v519_v34 = vadd.f32 %v518_v33, %v517_v31 }
 0x15f   :  { %v521_v38 = vadd.f32 %v520_v36, %v519_v34 }
 0x161   :  { %v523_v42 = vadd.f32 %v522_v41, %v521_v38 }
 0x163   :  { %v525_v45 = vadd.f32 %v524_v44, %v523_v42 }
 0x165   :  { %v527_v50 = vadd.f32 %v526_v49, %v525_v45 }
 0x167   :  { %v529_v53 = vadd.f32 %v528_v52, %v527_v50 }
 0x169   :  { %v531_v57 = vadd.f32 %v530_v55, %v529_v53 }
 0x16b   :  { %v533_v61 = vadd.f32 %v532_v60, %v531_v57 }
 0x16d   :  { %v535_v63 = vadd.f32 %v534_v62, %v533_v61 }
 0x16f   :  { %v537_v2 = vadd.f32 %v536_v0, %v535_v63 }
 0x171   :  { %v538_v3 = vrot.slane %v537_v2, 4 }
 0x173   :  { %v539_v37 = vadd.f32 %v538_v3, %v537_v2 }
 0x175   :  { %v540_v48 = vrot.slane %v539_v37, 2 }
 0x177   :  { %v541_v58 = vadd.f32 %v540_v48, %v539_v37 }
 0x179   :  { %v542_v4 = vrot.slane %v541_v58, 1 }
 0x17b   :  { %v543_v14 = vadd.f32 %v542_v4, %v541_v58 }
 0x17d   :  { %v544_v16 = vmul.f32 0.0078125, %v543_v14 }
 0x17f   :  { %v545_v17 = vadd.f32 1e-05, %v544_v16 }
 0x181   :  { %871 = vrsqrt.f32 %v545_v17 }
 0x18b   :  { %v872_v18 = vpop.eup %871 }
 0x18c   :  { %v547_v20 = vmul.f32 %v872_v18, %v1332_v5  ;;  %v548_v21 = vmul.f32 %v872_v18, %v1335_v6  ;;  %v549_v22 = vmul.f32 %v872_v18, %v1338_v7  ;;  %v550_v23 = vmul.f32 %v872_v18, %v1341_v8 }
 0x18d   :  { %v551_v24 = vmul.f32 %v872_v18, %v1344_v9  ;;  %v552_v25 = vmul.f32 %v872_v18, %v1347_v11  ;;  %v553_v26 = vmul.f32 %v872_v18, %v1350_v12  ;;  %v554_v27 = vmul.f32 %v872_v18, %v1353_v39 }
 0x18e   :  { %v555_v5 = vmul.f32 %v872_v18, %v1356_v46  ;;  %v556_v6 = vmul.f32 %v872_v18, %v1359_v56  ;;  %v557_v7 = vmul.f32 %v872_v18, %v1362_v1  ;;  %v558_v8 = vmul.f32 %v872_v18, %v1364_v10  ;;  %v646_v1 = vld [vmem:[%s1511_s3] ss:$0 sm:$0xff] }
 0x18f   :  { %v559_v9 = vmul.f32 %v872_v18, %v1366_v13  ;;  %v560_v11 = vmul.f32 %v872_v18, %v1368_v19  ;;  %v561_v12 = vmul.f32 %v872_v18, %v1370_v28  ;;  %v562_v39 = vmul.f32 %v872_v18, %v1372_v15 }
 0x190   :  { %v570_v30 = vmul.f32 %v645_v29, %v547_v20  ;;  %v571_v31 = vmul.f32 %v645_v29, %v548_v21  ;;  %v572_v32 = vmul.f32 %v645_v29, %v549_v22  ;;  %v573_v33 = vmul.f32 %v645_v29, %v550_v23 }
 0x191   :  { %v574_v34 = vmul.f32 %v645_v29, %v551_v24  ;;  %v575_v46 = vmul.f32 %v645_v29, %v552_v25  ;;  %v576_v35 = vmul.f32 %v645_v29, %v553_v26  ;;  %v577_v56 = vmul.f32 %v645_v29, %v554_v27 }
 0x192   :  { %v578_v10 = vmul.f32 %v645_v29, %v555_v5  ;;  %v579_v13 = vmul.f32 %v645_v29, %v556_v6  ;;  %v580_v36 = vmul.f32 %v645_v29, %v557_v7  ;;  %v581_v19 = vmul.f32 %v645_v29, %v558_v8 }
 0x193   :  { %v582_v38 = vmul.f32 %v645_v29, %v559_v9  ;;  %v583_v28 = vmul.f32 %v645_v29, %v560_v11  ;;  %v584_v40 = vmul.f32 %v645_v29, %v561_v12  ;;  %v585_v15 = vmul.f32 %v645_v29, %v562_v39 }
 0x194   :  { %v593_v41 = vadd.f32 %v646_v1, %v570_v30  ;;  %v594_v42 = vadd.f32 %v646_v1, %v571_v31  ;;  %v595_v43 = vadd.f32 %v646_v1, %v572_v32  ;;  %v596_v44 = vadd.f32 %v646_v1, %v573_v33 }
 0x195   :  { %v597_v45 = vadd.f32 %v646_v1, %v574_v34  ;;  %v598_v47 = vadd.f32 %v646_v1, %v575_v46  ;;  %v599_v49 = vadd.f32 %v646_v1, %v576_v35  ;;  %v600_v50 = vadd.f32 %v646_v1, %v577_v56 }
 0x196   :  { %v601_v51 = vadd.f32 %v646_v1, %v578_v10  ;;  %v602_v52 = vadd.f32 %v646_v1, %v579_v13  ;;  %v603_v53 = vadd.f32 %v646_v1, %v580_v36  ;;  %v604_v54 = vadd.f32 %v646_v1, %v581_v19 }
 0x197   :  { %v605_v55 = vadd.f32 %v646_v1, %v582_v38  ;;  %v606_v57 = vadd.f32 %v646_v1, %v583_v28  ;;  %v607_v59 = vadd.f32 %v646_v1, %v584_v40  ;;  %v608_v60 = vadd.f32 %v646_v1, %v585_v15 }
 0x198   :  { %v609_v61 = vmax.f32 %v593_v41, 0.0  ;;  %v610_v62 = vmax.f32 %v594_v42, 0.0  ;;  %v611_v63 = vmax.f32 %v595_v43, 0.0  ;;  %v612_v0 = vmax.f32 %v596_v44, 0.0 }
 0x199   :  { %v613_v2 = vmax.f32 %v597_v45, 0.0  ;;  %v614_v3 = vmax.f32 %v598_v47, 0.0  ;;  %v615_v37 = vmax.f32 %v599_v49, 0.0  ;;  %v616_v48 = vmax.f32 %v600_v50, 0.0 }
 0x19a   :  { %v617_v58 = vmax.f32 %v601_v51, 0.0  ;;  %v618_v4 = vmax.f32 %v602_v52, 0.0  ;;  %v619_v14 = vmax.f32 %v603_v53, 0.0  ;;  %v620_v16 = vmax.f32 %v604_v54, 0.0  ;;  %625 = vst.msk [vmem:[%s1512_s4] sm:$0xff] %vm435_vm0, %v609_v61  ;;  %626 = vst.msk [vmem:[%s1512_s4 + $0x8] sm:$0xff] %vm435_vm0, %v610_v62 }
 0x19b   :  { %627 = vst.msk [vmem:[%s1512_s4 + $0x10] sm:$0xff] %vm435_vm0, %v611_v63  ;;  %628 = vst.msk [vmem:[%s1512_s4 + $0x18] sm:$0xff] %vm435_vm0, %v612_v0  ;;  %v621_v17 = vmax.f32 %v605_v55, 0.0  ;;  %v622_v18 = vmax.f32 %v606_v57, 0.0  ;;  %v623_v20 = vmax.f32 %v607_v59, 0.0  ;;  %v624_v21 = vmax.f32 %v608_v60, 0.0 }
 0x19c   :  { %629 = vst.msk [vmem:[%s1512_s4 + $0x20] sm:$0xff] %vm435_vm0, %v613_v2  ;;  %630 = vst.msk [vmem:[%s1512_s4 + $0x28] sm:$0xff] %vm435_vm0, %v614_v3 }
 0x19d   :  { %631 = vst.msk [vmem:[%s1512_s4 + $0x30] sm:$0xff] %vm435_vm0, %v615_v37  ;;  %632 = vst.msk [vmem:[%s1512_s4 + $0x38] sm:$0xff] %vm435_vm0, %v616_v48 }
 0x19e   :  { %633 = vst.msk [vmem:[%s1512_s4 + $0x40] sm:$0xff] %vm435_vm0, %v617_v58  ;;  %634 = vst.msk [vmem:[%s1512_s4 + $0x48] sm:$0xff] %vm435_vm0, %v618_v4 }
 0x19f   :  { %635 = vst.msk [vmem:[%s1512_s4 + $0x50] sm:$0xff] %vm435_vm0, %v619_v14  ;;  %636 = vst.msk [vmem:[%s1512_s4 + $0x58] sm:$0xff] %vm435_vm0, %v620_v16 }
 0x1a0   :  { %637 = vst.msk [vmem:[%s1512_s4 + $0x60] sm:$0xff] %vm435_vm0, %v621_v17  ;;  %638 = vst.msk [vmem:[%s1512_s4 + $0x68] sm:$0xff] %vm435_vm0, %v622_v18 }
 0x1a1   :  { %639 = vst.msk [vmem:[%s1512_s4 + $0x70] sm:$0xff] %vm435_vm0, %v623_v20  ;;  %640 = vst.msk [vmem:[%s1512_s4 + $0x78] sm:$0xff] %vm435_vm0, %v624_v21 }

// kernel: generator_forward.7
= control target key start
LH: loop header
LB: loop body
LE: loop exit
PB: predicated region body
PF: predicated region fallthrough
CT: control target
= control target key end

     0   :  { %v1385_v0 = vmov 0.0|0.0   ;;  %vm562_vm0 = vcmask 64512   ;;  %s3729_s1 = inlined_call_operand.vmem [shape: f32[256,8], index: 1, kind: input, shape index: {}]   ;;  %s3730_s0 = inlined_call_operand.vmem [shape: f32[512,256], index: 0, kind: input, shape index: {}]   ;;  %s3731_s2 = inlined_call_operand.vmem [shape: f32[1,8], index: 2, kind: input, shape index: {}]   ;;  %s3732_s3 = inlined_call_operand.vmem [shape: f32[1,8], index: 3, kind: input, shape index: {}]   ;;  %s3733_s4 = inlined_call_operand.vmem [shape: f32[512,8], index: 4, kind: output, shape index: {}]  }
   0x1   :  { %1302 = vmatprep.subr.bf16.mxu0 %v1385_v0  ;;  %v145_v1 = vld [vmem:[%s3729_s1] sm:$0xff]  ;;  %v146_v2 = vld [vmem:[%s3729_s1 + $0x8] sm:$0xff]  ;;  %v147_v3 = vld [vmem:[%s3729_s1 + $0x10] sm:$0xff]  ;;  %1350 = vmatprep.subr.bf16.mxu1 %v1385_v0 }
   0x2   :  { %v1303_v4 = vpack.c.bf16 %v146_v2, %v145_v1  ;;  %v148_v5 = vld [vmem:[%s3729_s1 + $0x18] sm:$0xff]  ;;  %v149_v7 = vld [vmem:[%s3729_s1 + $0x20] sm:$0xff]  ;;  %v150_v8 = vld [vmem:[%s3729_s1 + $0x28] sm:$0xff] }
   0x3   :  { %v1306_v6 = vpack.c.bf16 %v148_v5, %v147_v3  ;;  %v1309_v9 = vpack.c.bf16 %v150_v8, %v149_v7  ;;  %v151_v10 = vld [vmem:[%s3729_s1 + $0x30] sm:$0xff]  ;;  %v152_v11 = vld [vmem:[%s3729_s1 + $0x38] sm:$0xff]  ;;  %v18_v12 = vld [vmem:[%s3730_s0 + $0x8] sm:$0xff] }
   0x4   :  { %1304 = vmatpush1.bf16.msra.mxu0 %v1303_v4  ;;  %1366 = vmatpush1.bf16.msra.mxu1 %v1303_v4  ;;  %v1312_v13 = vpack.c.bf16 %v152_v11, %v151_v10  ;;  %v153_v14 = vld [vmem:[%s3729_s1 + $0x40] sm:$0xff]  ;;  %v154_v15 = vld [vmem:[%s3729_s1 + $0x48] sm:$0xff]  ;;  %v155_v17 = vld [vmem:[%s3729_s1 + $0x50] sm:$0xff] }
   0x5   :  { %1305 = vmatprep.subr.bf16.mxu0 %v1385_v0  ;;  %1351 = vmatprep.subr.bf16.mxu1 %v1385_v0  ;;  %v1315_v16 = vpack.c.bf16 %v154_v15, %v153_v14  ;;  %v156_v18 = vld [vmem:[%s3729_s1 + $0x58] sm:$0xff]  ;;  %v157_v20 = vld [vmem:[%s3729_s1 + $0x60] sm:$0xff]  ;;  %v158_v21 = vld [vmem:[%s3729_s1 + $0x68] sm:$0xff] }
   0x6   :  { %241 = vmatprep.mubr.f32.mxu0 %v18_v12  ;;  %v1318_v19 = vpack.c.bf16 %v156_v18, %v155_v17  ;;  %v82_v22 = vld [vmem:[%s3730_s0 + $0x208] sm:$0xff]  ;;  %v1321_v23 = vpack.c.bf16 %v158_v21, %v157_v20  ;;  %v159_v24 = vld [vmem:[%s3729_s1 + $0x70] sm:$0xff]  ;;  %v160_v25 = vld [vmem:[%s3729_s1 + $0x78] sm:$0xff] }
   0x7   :  { %401 = vmatprep.mubr.f32.mxu1 %v82_v22  ;;  %v1324_v26 = vpack.c.bf16 %v160_v25, %v159_v24  ;;  %v161_v27 = vld [vmem:[%s3729_s1 + $0x80] sm:$0xff]  ;;  %v162_v28 = vld [vmem:[%s3729_s1 + $0x88] sm:$0xff]  ;;  %v163_v30 = vld [vmem:[%s3729_s1 + $0x90] sm:$0xff] }
   0x8   :  { %1307 = vmatpush1.bf16.msra.mxu0 %v1306_v6  ;;  %1367 = vmatpush1.bf16.msra.mxu1 %v1306_v6  ;;  %v1327_v29 = vpack.c.bf16 %v162_v28, %v161_v27  ;;  %v164_v31 = vld [vmem:[%s3729_s1 + $0x98] sm:$0xff]  ;;  %v165_v33 = vld [vmem:[%s3729_s1 + $0xa0] sm:$0xff]  ;;  %v166_v34 = vld [vmem:[%s3729_s1 + $0xa8] sm:$0xff] }
   0x9   :  { %1308 = vmatprep.subr.bf16.mxu0 %v1385_v0  ;;  %1352 = vmatprep.subr.bf16.mxu1 %v1385_v0  ;;  %v1330_v32 = vpack.c.bf16 %v164_v31, %v163_v30  ;;  %v1333_v35 = vpack.c.bf16 %v166_v34, %v165_v33  ;;  %v167_v36 = vld [vmem:[%s3729_s1 + $0xb0] sm:$0xff]  ;;  %v168_v37 = vld [vmem:[%s3729_s1 + $0xb8] sm:$0xff]  ;;  %v169_v39 = vld [vmem:[%s3729_s1 + $0xc0] sm:$0xff] }
   0xa   :  { %v1336_v38 = vpack.c.bf16 %v168_v37, %v167_v36  ;;  %v170_v40 = vld [vmem:[%s3729_s1 + $0xc8] sm:$0xff]  ;;  %v171_v42 = vld [vmem:[%s3729_s1 + $0xd0] sm:$0xff]  ;;  %v172_v43 = vld [vmem:[%s3729_s1 + $0xd8] sm:$0xff] }
   0xb   :  { %v1339_v41 = vpack.c.bf16 %v170_v40, %v169_v39  ;;  %v1342_v44 = vpack.c.bf16 %v172_v43, %v171_v42  ;;  %v173_v45 = vld [vmem:[%s3729_s1 + $0xe0] sm:$0xff]  ;;  %v174_v46 = vld [vmem:[%s3729_s1 + $0xe8] sm:$0xff]  ;;  %v175_v48 = vld [vmem:[%s3729_s1 + $0xf0] sm:$0xff] }
   0xc   :  { %1310 = vmatpush1.bf16.msra.mxu0 %v1309_v9  ;;  %1368 = vmatpush1.bf16.msra.mxu1 %v1309_v9  ;;  %v1345_v47 = vpack.c.bf16 %v174_v46, %v173_v45  ;;  %v176_v49 = vld [vmem:[%s3729_s1 + $0xf8] sm:$0xff]  ;;  %v17_v51 = vld [vmem:[%s3730_s0] sm:$0xff]  ;;  %v19_v55 = vld [vmem:[%s3730_s0 + $0x10] sm:$0xff] }
   0xd   :  { %1311 = vmatprep.subr.bf16.mxu0 %v1385_v0  ;;  %1353 = vmatprep.subr.bf16.mxu1 %v1385_v0  ;;  %v1348_v50 = vpack.c.bf16 %v176_v49, %v175_v48  ;;  %v20_v52 = vld [vmem:[%s3730_s0 + $0x18] sm:$0xff]  ;;  %v81_v53 = vld [vmem:[%s3730_s0 + $0x200] sm:$0xff]  ;;  %v22_v56 = vld [vmem:[%s3730_s0 + $0x28] sm:$0xff] }
   0xe   :  { %v84_v54 = vld [vmem:[%s3730_s0 + $0x218] sm:$0xff]  ;;  %v83_v57 = vld [vmem:[%s3730_s0 + $0x210] sm:$0xff]  ;;  %v86_v58 = vld [vmem:[%s3730_s0 + $0x228] sm:$0xff] }
   0xf   :  { %v21_v59 = vld [vmem:[%s3730_s0 + $0x20] sm:$0xff]  ;;  %v24_v60 = vld [vmem:[%s3730_s0 + $0x38] sm:$0xff]  ;;  %v23_v63 = vld [vmem:[%s3730_s0 + $0x30] sm:$0xff] }
  0x10   :  { %1313 = vmatpush1.bf16.msra.mxu0 %v1312_v13  ;;  %1369 = vmatpush1.bf16.msra.mxu1 %v1312_v13  ;;  %v85_v61 = vld [vmem:[%s3730_s0 + $0x220] sm:$0xff]  ;;  %v88_v62 = vld [vmem:[%s3730_s0 + $0x238] sm:$0xff]  ;;  %v87_v1 = vld [vmem:[%s3730_s0 + $0x230] sm:$0xff] }
  0x11   :  { %1314 = vmatprep.subr.bf16.mxu0 %v1385_v0  ;;  %1354 = vmatprep.subr.bf16.mxu1 %v1385_v0  ;;  %v90_v2 = vld [vmem:[%s3730_s0 + $0x248] sm:$0xff]  ;;  %v25_v3 = vld [vmem:[%s3730_s0 + $0x40] sm:$0xff]  ;;  %v28_v4 = vld [vmem:[%s3730_s0 + $0x58] sm:$0xff] }
  0x12   :  { %v89_v5 = vld [vmem:[%s3730_s0 + $0x240] sm:$0xff]  ;;  %v92_v6 = vld [vmem:[%s3730_s0 + $0x258] sm:$0xff]  ;;  %v27_v7 = vld [vmem:[%s3730_s0 + $0x50] sm:$0xff] }
  0x13   :  { %v30_v8 = vld [vmem:[%s3730_s0 + $0x68] sm:$0xff]  ;;  %v91_v9 = vld [vmem:[%s3730_s0 + $0x250] sm:$0xff]  ;;  %v29_v11 = vld [vmem:[%s3730_s0 + $0x60] sm:$0xff] }
  0x14   :  { %1316 = vmatpush1.bf16.msra.mxu0 %v1315_v16  ;;  %1370 = vmatpush1.bf16.msra.mxu1 %v1315_v16  ;;  %v94_v10 = vld [vmem:[%s3730_s0 + $0x268] sm:$0xff]  ;;  %v32_v12 = vld [vmem:[%s3730_s0 + $0x78] sm:$0xff]  ;;  %v93_v13 = vld [vmem:[%s3730_s0 + $0x260] sm:$0xff] }
  0x15   :  { %1317 = vmatprep.subr.bf16.mxu0 %v1385_v0  ;;  %1355 = vmatprep.subr.bf16.mxu1 %v1385_v0  ;;  %v96_v14 = vld [vmem:[%s3730_s0 + $0x278] sm:$0xff]  ;;  %v31_v15 = vld [vmem:[%s3730_s0 + $0x70] sm:$0xff]  ;;  %v34_v16 = vld [vmem:[%s3730_s0 + $0x88] sm:$0xff] }
  0x16   :  { %v95_v17 = vld [vmem:[%s3730_s0 + $0x270] sm:$0xff]  ;;  %v98_v18 = vld [vmem:[%s3730_s0 + $0x288] sm:$0xff]  ;;  %v36_v20 = vld [vmem:[%s3730_s0 + $0x98] sm:$0xff] }
  0x17   :  { %v97_v21 = vld [vmem:[%s3730_s0 + $0x280] sm:$0xff]  ;;  %v100_v22 = vld [vmem:[%s3730_s0 + $0x298] sm:$0xff]  ;;  %v38_v24 = vld [vmem:[%s3730_s0 + $0xa8] sm:$0xff] }
  0x18   :  { %1319 = vmatpush1.bf16.msra.mxu0 %v1318_v19  ;;  %1371 = vmatpush1.bf16.msra.mxu1 %v1318_v19  ;;  %v33_v19 = vld [vmem:[%s3730_s0 + $0x80] sm:$0xff]  ;;  %v99_v25 = vld [vmem:[%s3730_s0 + $0x290] sm:$0xff]  ;;  %v40_v28 = vld [vmem:[%s3730_s0 + $0xb8] sm:$0xff] }
  0x19   :  { %1320 = vmatprep.subr.bf16.mxu0 %v1385_v0  ;;  %1356 = vmatprep.subr.bf16.mxu1 %v1385_v0  ;;  %v37_v27 = vld [vmem:[%s3730_s0 + $0xa0] sm:$0xff]  ;;  %v104_v30 = vld [vmem:[%s3730_s0 + $0x2b8] sm:$0xff]  ;;  %v39_v31 = vld [vmem:[%s3730_s0 + $0xb0] sm:$0xff] }
  0x1a   :  { %v103_v33 = vld [vmem:[%s3730_s0 + $0x2b0] sm:$0xff]  ;;  %v106_v34 = vld [vmem:[%s3730_s0 + $0x2c8] sm:$0xff]  ;;  %v44_v36 = vld [vmem:[%s3730_s0 + $0xd8] sm:$0xff] }
  0x1b   :  { %v105_v37 = vld [vmem:[%s3730_s0 + $0x2c0] sm:$0xff]  ;;  %v43_v39 = vld [vmem:[%s3730_s0 + $0xd0] sm:$0xff]  ;;  %v46_v40 = vld [vmem:[%s3730_s0 + $0xe8] sm:$0xff] }
  0x1c   :  { %1322 = vmatpush1.bf16.msra.mxu0 %v1321_v23  ;;  %1372 = vmatpush1.bf16.msra.mxu1 %v1321_v23  ;;  %v35_v23 = vld [vmem:[%s3730_s0 + $0x90] sm:$0xff]  ;;  %v110_v42 = vld [vmem:[%s3730_s0 + $0x2e8] sm:$0xff]  ;;  %v45_v43 = vld [vmem:[%s3730_s0 + $0xe0] sm:$0xff] }
  0x1d   :  { %1323 = vmatprep.subr.bf16.mxu0 %v1385_v0  ;;  %1357 = vmatprep.subr.bf16.mxu1 %v1385_v0  ;;  %v109_v45 = vld [vmem:[%s3730_s0 + $0x2e0] sm:$0xff]  ;;  %v112_v46 = vld [vmem:[%s3730_s0 + $0x2f8] sm:$0xff]  ;;  %v50_v48 = vld [vmem:[%s3730_s0 + $0x108] sm:$0xff] }
  0x1e   :  { %v111_v49 = vld [vmem:[%s3730_s0 + $0x2f0] sm:$0xff] }
  0x20   :  { %1325 = vmatpush1.bf16.msra.mxu0 %v1324_v26  ;;  %1373 = vmatpush1.bf16.msra.mxu1 %v1324_v26  ;;  %v102_v26 = vld [vmem:[%s3730_s0 + $0x2a8] sm:$0xff] }
  0x21   :  { %1326 = vmatprep.subr.bf16.mxu0 %v1385_v0  ;;  %1358 = vmatprep.subr.bf16.mxu1 %v1385_v0 }
  0x24   :  { %1328 = vmatpush1.bf16.msra.mxu0 %v1327_v29  ;;  %1374 = vmatpush1.bf16.msra.mxu1 %v1327_v29  ;;  %v101_v29 = vld [vmem:[%s3730_s0 + $0x2a0] sm:$0xff] }
  0x25   :  { %1329 = vmatprep.subr.bf16.mxu0 %v1385_v0  ;;  %1359 = vmatprep.subr.bf16.mxu1 %v1385_v0 }
  0x28   :  { %1331 = vmatpush1.bf16.msra.mxu0 %v1330_v32  ;;  %1375 = vmatpush1.bf16.msra.mxu1 %v1330_v32  ;;  %v42_v32 = vld [vmem:[%s3730_s0 + $0xc8] sm:$0xff] }
  0x29   :  { %1332 = vmatprep.subr.bf16.mxu0 %v1385_v0  ;;  %1360 = vmatprep.subr.bf16.mxu1 %v1385_v0 }
  0x2c   :  { %1334 = vmatpush1.bf16.msra.mxu0 %v1333_v35  ;;  %1376 = vmatpush1.bf16.msra.mxu1 %v1333_v35  ;;  %v41_v35 = vld [vmem:[%s3730_s0 + $0xc0] sm:$0xff] }
  0x2d   :  { %1335 = vmatprep.subr.bf16.mxu0 %v1385_v0  ;;  %1361 = vmatprep.subr.bf16.mxu1 %v1385_v0 }
  0x30   :  { %1337 = vmatpush1.bf16.msra.mxu0 %v1336_v38  ;;  %1377 = vmatpush1.bf16.msra.mxu1 %v1336_v38  ;;  %v108_v38 = vld [vmem:[%s3730_s0 + $0x2d8] sm:$0xff] }
  0x31   :  { %1338 = vmatprep.subr.bf16.mxu0 %v1385_v0  ;;  %1362 = vmatprep.subr.bf16.mxu1 %v1385_v0 }
  0x34   :  { %1340 = vmatpush1.bf16.msra.mxu0 %v1339_v41  ;;  %1378 = vmatpush1.bf16.msra.mxu1 %v1339_v41  ;;  %v107_v41 = vld [vmem:[%s3730_s0 + $0x2d0] sm:$0xff] }
  0x35   :  { %1341 = vmatprep.subr.bf16.mxu0 %v1385_v0  ;;  %1363 = vmatprep.subr.bf16.mxu1 %v1385_v0 }
  0x38   :  { %1343 = vmatpush1.bf16.msra.mxu0 %v1342_v44  ;;  %1379 = vmatpush1.bf16.msra.mxu1 %v1342_v44  ;;  %v48_v44 = vld [vmem:[%s3730_s0 + $0xf8] sm:$0xff] }
  0x39   :  { %1344 = vmatprep.subr.bf16.mxu0 %v1385_v0  ;;  %1364 = vmatprep.subr.bf16.mxu1 %v1385_v0 }
  0x3c   :  { %1346 = vmatpush1.bf16.msra.mxu0 %v1345_v47  ;;  %1380 = vmatpush1.bf16.msra.mxu1 %v1345_v47  ;;  %v47_v47 = vld [vmem:[%s3730_s0 + $0xf0] sm:$0xff] }
  0x3d   :  { %1347 = vmatprep.subr.bf16.mxu0 %v1385_v0  ;;  %1365 = vmatprep.subr.bf16.mxu1 %v1385_v0  ;;  %v26_v0 = vld [vmem:[%s3730_s0 + $0x48] sm:$0xff] }
  0x40   :  { %1349 = vmatpush1.bf16.msra.mxu0 %v1348_v50  ;;  %1381 = vmatpush1.bf16.msra.mxu1 %v1348_v50  ;;  %v114_v50 = vld [vmem:[%s3730_s0 + $0x308] sm:$0xff] }
  0x43   :  { %242 = vmatmul.mubr.f32.vlgmr.msra.gmra.mrb[0].mxu0 %v17_v51  ;;  %402 = vmatmul.mubr.f32.vlgmr.msra.gmra.mrb[0].mxu1 %v81_v53  ;;  %v49_v51 = vld [vmem:[%s3730_s0 + $0x100] sm:$0xff] }
  0x44   :  { %246 = vmatprep.mubr.f32.mxu0 %v20_v52  ;;  %406 = vmatprep.mubr.f32.mxu1 %v84_v54  ;;  %v52_v52 = vld [vmem:[%s3730_s0 + $0x118] sm:$0xff]  ;;  %v113_v53 = vld [vmem:[%s3730_s0 + $0x300] sm:$0xff] }
  0x45   :  { %v116_v54 = vld [vmem:[%s3730_s0 + $0x318] sm:$0xff] }
  0x47   :  { %247 = vmatmul.mubr.f32.gmra.mrb[2].mxu0 %v19_v55  ;;  %407 = vmatmul.mubr.f32.gmra.mrb[2].mxu1 %v83_v57  ;;  %v51_v55 = vld [vmem:[%s3730_s0 + $0x110] sm:$0xff] }
  0x48   :  { %251 = vmatprep.mubr.f32.mxu0 %v22_v56  ;;  %411 = vmatprep.mubr.f32.mxu1 %v86_v58  ;;  %v54_v56 = vld [vmem:[%s3730_s0 + $0x128] sm:$0xff]  ;;  %v115_v57 = vld [vmem:[%s3730_s0 + $0x310] sm:$0xff] }
  0x49   :  { %v118_v58 = vld [vmem:[%s3730_s0 + $0x328] sm:$0xff] }
  0x4b   :  { %252 = vmatmul.mubr.f32.gmra.mrb[4].mxu0 %v21_v59  ;;  %412 = vmatmul.mubr.f32.gmra.mrb[4].mxu1 %v85_v61  ;;  %v53_v59 = vld [vmem:[%s3730_s0 + $0x120] sm:$0xff] }
  0x4c   :  { %256 = vmatprep.mubr.f32.mxu0 %v24_v60  ;;  %416 = vmatprep.mubr.f32.mxu1 %v88_v62  ;;  %v56_v60 = vld [vmem:[%s3730_s0 + $0x138] sm:$0xff]  ;;  %v117_v61 = vld [vmem:[%s3730_s0 + $0x320] sm:$0xff] }
  0x4d   :  { %v120_v62 = vld [vmem:[%s3730_s0 + $0x338] sm:$0xff] }
  0x4f   :  { %257 = vmatmul.mubr.f32.gmra.mrb[6].mxu0 %v23_v63  ;;  %417 = vmatmul.mubr.f32.gmra.mrb[6].mxu1 %v87_v1  ;;  %v55_v63 = vld [vmem:[%s3730_s0 + $0x130] sm:$0xff] }
  0x50   :  { %261 = vmatprep.mubr.f32.mxu0 %v26_v0  ;;  %421 = vmatprep.mubr.f32.mxu1 %v90_v2  ;;  %v58_v0 = vld [vmem:[%s3730_s0 + $0x148] sm:$0xff]  ;;  %v119_v1 = vld [vmem:[%s3730_s0 + $0x330] sm:$0xff] }
  0x51   :  { %v122_v2 = vld [vmem:[%s3730_s0 + $0x348] sm:$0xff] }
  0x53   :  { %262 = vmatmul.mubr.f32.gmra.mrb[8].mxu0 %v25_v3  ;;  %422 = vmatmul.mubr.f32.gmra.mrb[8].mxu1 %v89_v5  ;;  %v57_v3 = vld [vmem:[%s3730_s0 + $0x140] sm:$0xff] }
  0x54   :  { %266 = vmatprep.mubr.f32.mxu0 %v28_v4  ;;  %426 = vmatprep.mubr.f32.mxu1 %v92_v6  ;;  %v60_v4 = vld [vmem:[%s3730_s0 + $0x158] sm:$0xff]  ;;  %v121_v5 = vld [vmem:[%s3730_s0 + $0x340] sm:$0xff] }
  0x55   :  { %v124_v6 = vld [vmem:[%s3730_s0 + $0x358] sm:$0xff] }
  0x57   :  { %267 = vmatmul.mubr.f32.gmra.mrb[10].mxu0 %v27_v7  ;;  %427 = vmatmul.mubr.f32.gmra.mrb[10].mxu1 %v91_v9  ;;  %v59_v7 = vld [vmem:[%s3730_s0 + $0x150] sm:$0xff] }
  0x58   :  { %271 = vmatprep.mubr.f32.mxu0 %v30_v8  ;;  %431 = vmatprep.mubr.f32.mxu1 %v94_v10  ;;  %v62_v8 = vld [vmem:[%s3730_s0 + $0x168] sm:$0xff]  ;;  %v123_v9 = vld [vmem:[%s3730_s0 + $0x350] sm:$0xff] }
  0x59   :  { %v126_v10 = vld [vmem:[%s3730_s0 + $0x368] sm:$0xff] }
  0x5b   :  { %272 = vmatmul.mubr.f32.gmra.mrb[12].mxu0 %v29_v11  ;;  %432 = vmatmul.mubr.f32.gmra.mrb[12].mxu1 %v93_v13  ;;  %v61_v11 = vld [vmem:[%s3730_s0 + $0x160] sm:$0xff] }
  0x5c   :  { %276 = vmatprep.mubr.f32.mxu0 %v32_v12  ;;  %436 = vmatprep.mubr.f32.mxu1 %v96_v14  ;;  %v64_v12 = vld [vmem:[%s3730_s0 + $0x178] sm:$0xff]  ;;  %v125_v13 = vld [vmem:[%s3730_s0 + $0x360] sm:$0xff] }
  0x5d   :  { %v128_v14 = vld [vmem:[%s3730_s0 + $0x378] sm:$0xff] }
  0x5f   :  { %277 = vmatmul.mubr.f32.gmra.mrb[14].mxu0 %v31_v15  ;;  %437 = vmatmul.mubr.f32.gmra.mrb[14].mxu1 %v95_v17  ;;  %v63_v15 = vld [vmem:[%s3730_s0 + $0x170] sm:$0xff] }
  0x60   :  { %281 = vmatprep.mubr.f32.mxu0 %v34_v16  ;;  %441 = vmatprep.mubr.f32.mxu1 %v98_v18  ;;  %v66_v16 = vld [vmem:[%s3730_s0 + $0x188] sm:$0xff]  ;;  %v127_v17 = vld [vmem:[%s3730_s0 + $0x370] sm:$0xff] }
  0x61   :  { %v130_v18 = vld [vmem:[%s3730_s0 + $0x388] sm:$0xff] }
  0x63   :  { %282 = vmatmul.mubr.f32.gmra.mrb[16].mxu0 %v33_v19  ;;  %442 = vmatmul.mubr.f32.gmra.mrb[16].mxu1 %v97_v21  ;;  %v65_v19 = vld [vmem:[%s3730_s0 + $0x180] sm:$0xff] }
  0x64   :  { %286 = vmatprep.mubr.f32.mxu0 %v36_v20  ;;  %446 = vmatprep.mubr.f32.mxu1 %v100_v22  ;;  %v68_v20 = vld [vmem:[%s3730_s0 + $0x198] sm:$0xff]  ;;  %v129_v21 = vld [vmem:[%s3730_s0 + $0x380] sm:$0xff] }
  0x65   :  { %v132_v22 = vld [vmem:[%s3730_s0 + $0x398] sm:$0xff] }
  0x67   :  { %287 = vmatmul.mubr.f32.gmra.mrb[18].mxu0 %v35_v23  ;;  %447 = vmatmul.mubr.f32.gmra.mrb[18].mxu1 %v99_v25  ;;  %v67_v23 = vld [vmem:[%s3730_s0 + $0x190] sm:$0xff] }
  0x68   :  { %291 = vmatprep.mubr.f32.mxu0 %v38_v24  ;;  %451 = vmatprep.mubr.f32.mxu1 %v102_v26  ;;  %v70_v24 = vld [vmem:[%s3730_s0 + $0x1a8] sm:$0xff]  ;;  %v131_v25 = vld [vmem:[%s3730_s0 + $0x390] sm:$0xff] }
  0x69   :  { %v134_v26 = vld [vmem:[%s3730_s0 + $0x3a8] sm:$0xff] }
  0x6b   :  { %292 = vmatmul.mubr.f32.gmra.mrb[20].mxu0 %v37_v27  ;;  %452 = vmatmul.mubr.f32.gmra.mrb[20].mxu1 %v101_v29  ;;  %v69_v27 = vld [vmem:[%s3730_s0 + $0x1a0] sm:$0xff] }
  0x6c   :  { %296 = vmatprep.mubr.f32.mxu0 %v40_v28  ;;  %456 = vmatprep.mubr.f32.mxu1 %v104_v30  ;;  %v72_v28 = vld [vmem:[%s3730_s0 + $0x1b8] sm:$0xff]  ;;  %v133_v29 = vld [vmem:[%s3730_s0 + $0x3a0] sm:$0xff] }
  0x6d   :  { %v136_v30 = vld [vmem:[%s3730_s0 + $0x3b8] sm:$0xff] }
  0x6f   :  { %297 = vmatmul.mubr.f32.gmra.mrb[22].mxu0 %v39_v31  ;;  %457 = vmatmul.mubr.f32.gmra.mrb[22].mxu1 %v103_v33  ;;  %v71_v31 = vld [vmem:[%s3730_s0 + $0x1b0] sm:$0xff] }
  0x70   :  { %301 = vmatprep.mubr.f32.mxu0 %v42_v32  ;;  %461 = vmatprep.mubr.f32.mxu1 %v106_v34  ;;  %v74_v32 = vld [vmem:[%s3730_s0 + $0x1c8] sm:$0xff]  ;;  %v135_v33 = vld [vmem:[%s3730_s0 + $0x3b0] sm:$0xff] }
  0x71   :  { %v138_v34 = vld [vmem:[%s3730_s0 + $0x3c8] sm:$0xff] }
  0x73   :  { %302 = vmatmul.mubr.f32.gmra.mrb[24].mxu0 %v41_v35  ;;  %462 = vmatmul.mubr.f32.gmra.mrb[24].mxu1 %v105_v37  ;;  %v73_v35 = vld [vmem:[%s3730_s0 + $0x1c0] sm:$0xff] }
  0x74   :  { %306 = vmatprep.mubr.f32.mxu0 %v44_v36  ;;  %466 = vmatprep.mubr.f32.mxu1 %v108_v38  ;;  %v76_v36 = vld [vmem:[%s3730_s0 + $0x1d8] sm:$0xff]  ;;  %v137_v37 = vld [vmem:[%s3730_s0 + $0x3c0] sm:$0xff] }
  0x75   :  { %v140_v38 = vld [vmem:[%s3730_s0 + $0x3d8] sm:$0xff] }
  0x77   :  { %307 = vmatmul.mubr.f32.gmra.mrb[26].mxu0 %v43_v39  ;;  %467 = vmatmul.mubr.f32.gmra.mrb[26].mxu1 %v107_v41  ;;  %v75_v39 = vld [vmem:[%s3730_s0 + $0x1d0] sm:$0xff] }
  0x78   :  { %311 = vmatprep.mubr.f32.mxu0 %v46_v40  ;;  %471 = vmatprep.mubr.f32.mxu1 %v110_v42  ;;  %v78_v40 = vld [vmem:[%s3730_s0 + $0x1e8] sm:$0xff]  ;;  %v139_v41 = vld [vmem:[%s3730_s0 + $0x3d0] sm:$0xff] }
  0x79   :  { %v142_v42 = vld [vmem:[%s3730_s0 + $0x3e8] sm:$0xff] }
  0x7b   :  { %312 = vmatmul.mubr.f32.gmra.mrb[28].mxu0 %v45_v43  ;;  %472 = vmatmul.mubr.f32.gmra.mrb[28].mxu1 %v109_v45  ;;  %v77_v43 = vld [vmem:[%s3730_s0 + $0x1e0] sm:$0xff] }
  0x7c   :  { %316 = vmatprep.mubr.f32.mxu0 %v48_v44  ;;  %476 = vmatprep.mubr.f32.mxu1 %v112_v46  ;;  %v80_v44 = vld [vmem:[%s3730_s0 + $0x1f8] sm:$0xff]  ;;  %v141_v45 = vld [vmem:[%s3730_s0 + $0x3e0] sm:$0xff] }
  0x7d   :  { %v144_v46 = vld [vmem:[%s3730_s0 + $0x3f8] sm:$0xff] }
  0x7f   :  { %317 = vmatmul.mubr.f32.gmra.mrb[30].mxu0 %v47_v47  ;;  %477 = vmatmul.mubr.f32.gmra.mrb[30].mxu1 %v111_v49  ;;  %v79_v47 = vld [vmem:[%s3730_s0 + $0x1f0] sm:$0xff] }
  0x80   :  { %321 = vmatprep.mubr.f32.mxu0 %v50_v48  ;;  %481 = vmatprep.mubr.f32.mxu1 %v114_v50  ;;  %v143_v48 = vld [vmem:[%s3730_s0 + $0x3f0] sm:$0xff] }
  0x83   :  { %322 = vmatmul.mubr.f32.gmra.mrb[32].mxu0 %v49_v51  ;;  %482 = vmatmul.mubr.f32.gmra.mrb[32].mxu1 %v113_v53 }
  0x84   :  { %326 = vmatprep.mubr.f32.mxu0 %v52_v52  ;;  %486 = vmatprep.mubr.f32.mxu1 %v116_v54 }
  0x87   :  { %327 = vmatmul.mubr.f32.gmra.mrb[34].mxu0 %v51_v55  ;;  %487 = vmatmul.mubr.f32.gmra.mrb[34].mxu1 %v115_v57 }
  0x88   :  { %331 = vmatprep.mubr.f32.mxu0 %v54_v56  ;;  %491 = vmatprep.mubr.f32.mxu1 %v118_v58 }
  0x8b   :  { %332 = vmatmul.mubr.f32.gmra.mrb[36].mxu0 %v53_v59  ;;  %492 = vmatmul.mubr.f32.gmra.mrb[36].mxu1 %v117_v61 }
  0x8c   :  { %336 = vmatprep.mubr.f32.mxu0 %v56_v60  ;;  %496 = vmatprep.mubr.f32.mxu1 %v120_v62 }
  0x8f   :  { %337 = vmatmul.mubr.f32.gmra.mrb[38].mxu0 %v55_v63  ;;  %497 = vmatmul.mubr.f32.gmra.mrb[38].mxu1 %v119_v1 }
  0x90   :  { %341 = vmatprep.mubr.f32.mxu0 %v58_v0  ;;  %501 = vmatprep.mubr.f32.mxu1 %v122_v2 }
  0x93   :  { %342 = vmatmul.mubr.f32.gmra.mrb[40].mxu0 %v57_v3  ;;  %502 = vmatmul.mubr.f32.gmra.mrb[40].mxu1 %v121_v5 }
  0x94   :  { %346 = vmatprep.mubr.f32.mxu0 %v60_v4  ;;  %506 = vmatprep.mubr.f32.mxu1 %v124_v6 }
  0x97   :  { %347 = vmatmul.mubr.f32.gmra.mrb[42].mxu0 %v59_v7  ;;  %507 = vmatmul.mubr.f32.gmra.mrb[42].mxu1 %v123_v9 }
  0x98   :  { %351 = vmatprep.mubr.f32.mxu0 %v62_v8  ;;  %511 = vmatprep.mubr.f32.mxu1 %v126_v10 }
  0x9b   :  { %352 = vmatmul.mubr.f32.gmra.mrb[44].mxu0 %v61_v11  ;;  %512 = vmatmul.mubr.f32.gmra.mrb[44].mxu1 %v125_v13 }
  0x9c   :  { %356 = vmatprep.mubr.f32.mxu0 %v64_v12  ;;  %516 = vmatprep.mubr.f32.mxu1 %v128_v14 }
  0x9f   :  { %357 = vmatmul.mubr.f32.gmra.mrb[46].mxu0 %v63_v15  ;;  %517 = vmatmul.mubr.f32.gmra.mrb[46].mxu1 %v127_v17 }
  0xa0   :  { %361 = vmatprep.mubr.f32.mxu0 %v66_v16  ;;  %521 = vmatprep.mubr.f32.mxu1 %v130_v18 }
  0xa3   :  { %362 = vmatmul.mubr.f32.gmra.mrb[48].mxu0 %v65_v19  ;;  %522 = vmatmul.mubr.f32.gmra.mrb[48].mxu1 %v129_v21 }
  0xa4   :  { %366 = vmatprep.mubr.f32.mxu0 %v68_v20  ;;  %526 = vmatprep.mubr.f32.mxu1 %v132_v22 }
  0xa7   :  { %367 = vmatmul.mubr.f32.gmra.mrb[50].mxu0 %v67_v23  ;;  %527 = vmatmul.mubr.f32.gmra.mrb[50].mxu1 %v131_v25 }
  0xa8   :  { %371 = vmatprep.mubr.f32.mxu0 %v70_v24  ;;  %531 = vmatprep.mubr.f32.mxu1 %v134_v26 }
  0xab   :  { %372 = vmatmul.mubr.f32.gmra.mrb[52].mxu0 %v69_v27  ;;  %532 = vmatmul.mubr.f32.gmra.mrb[52].mxu1 %v133_v29 }
  0xac   :  { %376 = vmatprep.mubr.f32.mxu0 %v72_v28  ;;  %536 = vmatprep.mubr.f32.mxu1 %v136_v30 }
  0xaf   :  { %377 = vmatmul.mubr.f32.gmra.mrb[54].mxu0 %v71_v31  ;;  %537 = vmatmul.mubr.f32.gmra.mrb[54].mxu1 %v135_v33 }
  0xb0   :  { %381 = vmatprep.mubr.f32.mxu0 %v74_v32  ;;  %541 = vmatprep.mubr.f32.mxu1 %v138_v34 }
  0xb3   :  { %382 = vmatmul.mubr.f32.gmra.mrb[56].mxu0 %v73_v35  ;;  %542 = vmatmul.mubr.f32.gmra.mrb[56].mxu1 %v137_v37 }
  0xb4   :  { %386 = vmatprep.mubr.f32.mxu0 %v76_v36  ;;  %546 = vmatprep.mubr.f32.mxu1 %v140_v38 }
  0xb7   :  { %387 = vmatmul.mubr.f32.gmra.mrb[58].mxu0 %v75_v39  ;;  %547 = vmatmul.mubr.f32.gmra.mrb[58].mxu1 %v139_v41 }
  0xb8   :  { %391 = vmatprep.mubr.f32.mxu0 %v78_v40  ;;  %551 = vmatprep.mubr.f32.mxu1 %v142_v42 }
  0xbb   :  { %392 = vmatmul.mubr.f32.gmra.mrb[60].mxu0 %v77_v43  ;;  %552 = vmatmul.mubr.f32.gmra.mrb[60].mxu1 %v141_v45 }
  0xbc   :  { %396 = vmatprep.mubr.f32.mxu0 %v80_v44  ;;  %556 = vmatprep.mubr.f32.mxu1 %v144_v46 }
  0xbf   :  { %397 = vmatmul.mubr.f32.gmra.mrb[62].mxu0 %v79_v47  ;;  %557 = vmatmul.mubr.f32.gmra.mrb[62].mxu1 %v143_v48 }
 0x116   :  { %v1923_v49 = vpop.f32.mrb[0].mxu0  ;;  %v1925_v51 = vpop.f32.mrb[0].mxu1 }
 0x117   :  { %v245_v50 = vpop.f32.mrb[1].mxu0  ;;  %v405_v52 = vpop.f32.mrb[1].mxu1  ;;  %v563_v54 = vsel %vm562_vm0, %v1923_v49, 0.0 }
 0x11a   :  { %v1927_v53 = vpop.f32.mrb[2].mxu0  ;;  %v1933_v57 = vpop.f32.mrb[2].mxu1 }
 0x11b   :  { %v564_v55 = vsel %vm562_vm0, %v1927_v53, 0.0  ;;  %v250_v56 = vpop.f32.mrb[3].mxu0  ;;  %v410_v59 = vpop.f32.mrb[3].mxu1 }
 0x11c   :  { %v565_v58 = vadd.f32 %v564_v55, %v563_v54 }
 0x11e   :  { %v1935_v60 = vpop.f32.mrb[4].mxu0  ;;  %v1939_v63 = vpop.f32.mrb[4].mxu1 }
 0x11f   :  { %v566_v61 = vsel %vm562_vm0, %v1935_v60, 0.0  ;;  %v255_v62 = vpop.f32.mrb[5].mxu0  ;;  %v415_v1 = vpop.f32.mrb[5].mxu1 }
 0x120   :  { %v567_v0 = vadd.f32 %v566_v61, %v565_v58 }
 0x122   :  { %v1941_v2 = vpop.f32.mrb[6].mxu0  ;;  %v1945_v5 = vpop.f32.mrb[6].mxu1 }
 0x123   :  { %v568_v3 = vsel %vm562_vm0, %v1941_v2, 0.0  ;;  %v260_v4 = vpop.f32.mrb[7].mxu0  ;;  %v420_v7 = vpop.f32.mrb[7].mxu1 }
 0x124   :  { %v569_v6 = vadd.f32 %v568_v3, %v567_v0 }
 0x126   :  { %v1947_v8 = vpop.f32.mrb[8].mxu0  ;;  %v1951_v11 = vpop.f32.mrb[8].mxu1 }
 0x127   :  { %v570_v9 = vsel %vm562_vm0, %v1947_v8, 0.0  ;;  %v265_v10 = vpop.f32.mrb[9].mxu0  ;;  %v425_v13 = vpop.f32.mrb[9].mxu1 }
 0x128   :  { %v571_v12 = vadd.f32 %v570_v9, %v569_v6 }
 0x12a   :  { %v1953_v14 = vpop.f32.mrb[10].mxu0  ;;  %v1957_v17 = vpop.f32.mrb[10].mxu1 }
 0x12b   :  { %v572_v15 = vsel %vm562_vm0, %v1953_v14, 0.0  ;;  %v270_v16 = vpop.f32.mrb[11].mxu0  ;;  %v430_v19 = vpop.f32.mrb[11].mxu1 }
 0x12c   :  { %v573_v18 = vadd.f32 %v572_v15, %v571_v12 }
 0x12e   :  { %v1959_v20 = vpop.f32.mrb[12].mxu0  ;;  %v1963_v23 = vpop.f32.mrb[12].mxu1 }
 0x12f   :  { %v574_v21 = vsel %vm562_vm0, %v1959_v20, 0.0  ;;  %v275_v22 = vpop.f32.mrb[13].mxu0  ;;  %v435_v25 = vpop.f32.mrb[13].mxu1 }
 0x130   :  { %v575_v24 = vadd.f32 %v574_v21, %v573_v18 }
 0x132   :  { %v1965_v26 = vpop.f32.mrb[14].mxu0  ;;  %v1969_v29 = vpop.f32.mrb[14].mxu1 }
 0x133   :  { %v576_v27 = vsel %vm562_vm0, %v1965_v26, 0.0  ;;  %v280_v28 = vpop.f32.mrb[15].mxu0  ;;  %v440_v31 = vpop.f32.mrb[15].mxu1 }
 0x134   :  { %v577_v30 = vadd.f32 %v576_v27, %v575_v24 }
 0x136   :  { %v1971_v32 = vpop.f32.mrb[16].mxu0  ;;  %v1975_v35 = vpop.f32.mrb[16].mxu1 }
 0x137   :  { %v578_v33 = vsel %vm562_vm0, %v1971_v32, 0.0  ;;  %v285_v34 = vpop.f32.mrb[17].mxu0  ;;  %v445_v37 = vpop.f32.mrb[17].mxu1 }
 0x138   :  { %v579_v36 = vadd.f32 %v578_v33, %v577_v30 }
 0x13a   :  { %v1977_v38 = vpop.f32.mrb[18].mxu0  ;;  %v1981_v41 = vpop.f32.mrb[18].mxu1 }
 0x13b   :  { %v580_v39 = vsel %vm562_vm0, %v1977_v38, 0.0  ;;  %v290_v40 = vpop.f32.mrb[19].mxu0  ;;  %v450_v43 = vpop.f32.mrb[19].mxu1 }
 0x13c   :  { %v581_v42 = vadd.f32 %v580_v39, %v579_v36 }
 0x13e   :  { %v1983_v44 = vpop.f32.mrb[20].mxu0  ;;  %v1987_v47 = vpop.f32.mrb[20].mxu1 }
 0x13f   :  { %v582_v45 = vsel %vm562_vm0, %v1983_v44, 0.0  ;;  %v295_v46 = vpop.f32.mrb[21].mxu0  ;;  %v455_v50 = vpop.f32.mrb[21].mxu1 }
 0x140   :  { %v583_v48 = vadd.f32 %v582_v45, %v581_v42 }
 0x142   :  { %v1989_v52 = vpop.f32.mrb[22].mxu0  ;;  %v1993_v56 = vpop.f32.mrb[22].mxu1 }
 0x143   :  { %v584_v54 = vsel %vm562_vm0, %v1989_v52, 0.0  ;;  %v300_v55 = vpop.f32.mrb[23].mxu0  ;;  %v460_v59 = vpop.f32.mrb[23].mxu1 }
 0x144   :  { %v585_v58 = vadd.f32 %v584_v54, %v583_v48 }
 0x146   :  { %v1995_v61 = vpop.f32.mrb[24].mxu0  ;;  %v1999_v1 = vpop.f32.mrb[24].mxu1 }
 0x147   :  { %v586_v62 = vsel %vm562_vm0, %v1995_v61, 0.0  ;;  %v305_v0 = vpop.f32.mrb[25].mxu0  ;;  %v465_v4 = vpop.f32.mrb[25].mxu1 }
 0x148   :  { %v587_v3 = vadd.f32 %v586_v62, %v585_v58 }
 0x14a   :  { %v2001_v6 = vpop.f32.mrb[26].mxu0  ;;  %v2005_v10 = vpop.f32.mrb[26].mxu1 }
 0x14b   :  { %v588_v7 = vsel %vm562_vm0, %v2001_v6, 0.0  ;;  %v310_v9 = vpop.f32.mrb[27].mxu0  ;;  %v470_v13 = vpop.f32.mrb[27].mxu1 }
 0x14c   :  { %v589_v12 = vadd.f32 %v588_v7, %v587_v3 }
 0x14e   :  { %v2007_v15 = vpop.f32.mrb[28].mxu0  ;;  %v2011_v19 = vpop.f32.mrb[28].mxu1 }
 0x14f   :  { %v590_v16 = vsel %vm562_vm0, %v2007_v15, 0.0  ;;  %v315_v18 = vpop.f32.mrb[29].mxu0  ;;  %v475_v22 = vpop.f32.mrb[29].mxu1 }
 0x150   :  { %v591_v21 = vadd.f32 %v590_v16, %v589_v12 }
 0x152   :  { %v2013_v24 = vpop.f32.mrb[30].mxu0  ;;  %v2017_v28 = vpop.f32.mrb[30].mxu1 }
 0x153   :  { %v592_v25 = vsel %vm562_vm0, %v2013_v24, 0.0  ;;  %v320_v27 = vpop.f32.mrb[31].mxu0  ;;  %v480_v31 = vpop.f32.mrb[31].mxu1 }
 0x154   :  { %v593_v30 = vadd.f32 %v592_v25, %v591_v21 }
 0x156   :  { %v2019_v33 = vpop.f32.mrb[32].mxu0  ;;  %v2023_v37 = vpop.f32.mrb[32].mxu1 }
 0x157   :  { %v594_v34 = vsel %vm562_vm0, %v2019_v33, 0.0  ;;  %v325_v36 = vpop.f32.mrb[33].mxu0  ;;  %v485_v40 = vpop.f32.mrb[33].mxu1 }
 0x158   :  { %v595_v39 = vadd.f32 %v594_v34, %v593_v30 }
 0x15a   :  { %v2025_v42 = vpop.f32.mrb[34].mxu0  ;;  %v2029_v46 = vpop.f32.mrb[34].mxu1 }
 0x15b   :  { %v596_v43 = vsel %vm562_vm0, %v2025_v42, 0.0  ;;  %v330_v45 = vpop.f32.mrb[35].mxu0  ;;  %v490_v50 = vpop.f32.mrb[35].mxu1 }
 0x15c   :  { %v597_v48 = vadd.f32 %v596_v43, %v595_v39 }
 0x15e   :  { %v2031_v54 = vpop.f32.mrb[36].mxu0  ;;  %v2035_v59 = vpop.f32.mrb[36].mxu1 }
 0x15f   :  { %v598_v55 = vsel %vm562_vm0, %v2031_v54, 0.0  ;;  %v335_v58 = vpop.f32.mrb[37].mxu0  ;;  %v495_v0 = vpop.f32.mrb[37].mxu1 }
 0x160   :  { %v599_v62 = vadd.f32 %v598_v55, %v597_v48 }
 0x162   :  { %v2037_v3 = vpop.f32.mrb[38].mxu0  ;;  %v2041_v9 = vpop.f32.mrb[38].mxu1 }
 0x163   :  { %3774 = vst [vmem:[#allocation2_spill] sm:$0xff] %v2037_v3  ;;  %v600_v4 = vsel %vm562_vm0, %v2037_v3, 0.0  ;;  %v340_v7 = vpop.f32.mrb[39].mxu0  ;;  %v500_v13 = vpop.f32.mrb[39].mxu1 }
 0x164   :  { %v601_v12 = vadd.f32 %v600_v4, %v599_v62 }
 0x166   :  { %v2043_v16 = vpop.f32.mrb[40].mxu0  ;;  %v2047_v22 = vpop.f32.mrb[40].mxu1 }
 0x167   :  { %3775 = vst [vmem:[#allocation3_spill] sm:$0xff] %v2043_v16  ;;  %v602_v18 = vsel %vm562_vm0, %v2043_v16, 0.0  ;;  %v345_v21 = vpop.f32.mrb[41].mxu0  ;;  %v505_v27 = vpop.f32.mrb[41].mxu1 }
 0x168   :  { %v603_v25 = vadd.f32 %v602_v18, %v601_v12 }
 0x16a   :  { %v2049_v30 = vpop.f32.mrb[42].mxu0  ;;  %v2053_v36 = vpop.f32.mrb[42].mxu1 }
 0x16b   :  { %3776 = vst [vmem:[#allocation4_spill] sm:$0xff] %v2049_v30  ;;  %v604_v31 = vsel %vm562_vm0, %v2049_v30, 0.0  ;;  %v350_v34 = vpop.f32.mrb[43].mxu0  ;;  %v510_v40 = vpop.f32.mrb[43].mxu1 }
 0x16c   :  { %v605_v39 = vadd.f32 %v604_v31, %v603_v25 }
 0x16e   :  { %v2055_v43 = vpop.f32.mrb[44].mxu0  ;;  %v2059_v50 = vpop.f32.mrb[44].mxu1 }
 0x16f   :  { %3777 = vst [vmem:[#allocation5_spill] sm:$0xff] %v2055_v43  ;;  %v606_v45 = vsel %vm562_vm0, %v2055_v43, 0.0  ;;  %v355_v48 = vpop.f32.mrb[45].mxu0  ;;  %v515_v58 = vpop.f32.mrb[45].mxu1 }
 0x170   :  { %v607_v55 = vadd.f32 %v606_v45, %v605_v39 }
 0x172   :  { %v2061_v62 = vpop.f32.mrb[46].mxu0  ;;  %v2065_v7 = vpop.f32.mrb[46].mxu1 }
 0x173   :  { %3778 = vst [vmem:[#allocation6_spill] sm:$0xff] %v2061_v62  ;;  %v608_v0 = vsel %vm562_vm0, %v2061_v62, 0.0  ;;  %v360_v4 = vpop.f32.mrb[47].mxu0  ;;  %v520_v13 = vpop.f32.mrb[47].mxu1 }
 0x174   :  { %v609_v12 = vadd.f32 %v608_v0, %v607_v55 }
 0x176   :  { %v2067_v18 = vpop.f32.mrb[48].mxu0  ;;  %v2071_v27 = vpop.f32.mrb[48].mxu1 }
 0x177   :  { %3779 = vst [vmem:[#allocation7_spill] sm:$0xff] %v2067_v18  ;;  %v610_v21 = vsel %vm562_vm0, %v2067_v18, 0.0  ;;  %v365_v25 = vpop.f32.mrb[49].mxu0  ;;  %v525_v34 = vpop.f32.mrb[49].mxu1 }
 0x178   :  { %v611_v31 = vadd.f32 %v610_v21, %v609_v12 }
 0x17a   :  { %v2073_v39 = vpop.f32.mrb[50].mxu0  ;;  %v2077_v48 = vpop.f32.mrb[50].mxu1 }
 0x17b   :  { %3780 = vst [vmem:[#allocation8_spill] sm:$0xff] %v2073_v39  ;;  %v612_v40 = vsel %vm562_vm0, %v2073_v39, 0.0  ;;  %v370_v45 = vpop.f32.mrb[51].mxu0  ;;  %3781 = vst [vmem:[#allocation9_spill] sm:$0xff] %v2077_v48  ;;  %v530_v58 = vpop.f32.mrb[51].mxu1 }
 0x17c   :  { %v613_v55 = vadd.f32 %v612_v40, %v611_v31 }
 0x17e   :  { %v2079_v0 = vpop.f32.mrb[52].mxu0  ;;  %v2083_v25 = vpop.f32.mrb[52].mxu1 }
 0x17f   :  { %3782 = vst [vmem:[#allocation10_spill] sm:$0xff] %v2079_v0  ;;  %v614_v4 = vsel %vm562_vm0, %v2079_v0, 0.0  ;;  %v375_v13 = vpop.f32.mrb[53].mxu0  ;;  %3783 = vst [vmem:[#allocation11_spill] sm:$0xff] %v2083_v25  ;;  %v535_v21 = vpop.f32.mrb[53].mxu1 }
 0x180   :  { %v615_v12 = vadd.f32 %v614_v4, %v613_v55 }
 0x182   :  { %v2085_v34 = vpop.f32.mrb[54].mxu0  ;;  %v2089_v18 = vpop.f32.mrb[54].mxu1 }
 0x183   :  { %3784 = vst [vmem:[#allocation12_spill] sm:$0xff] %v2085_v34  ;;  %v616_v39 = vsel %vm562_vm0, %v2085_v34, 0.0  ;;  %v380_v45 = vpop.f32.mrb[55].mxu0  ;;  %3785 = vst [vmem:[#allocation13_spill] sm:$0xff] %v2089_v18  ;;  %v540_v40 = vpop.f32.mrb[55].mxu1 }
 0x184   :  { %v617_v31 = vadd.f32 %v616_v39, %v615_v12 }
 0x186   :  { %v2091_v58 = vpop.f32.mrb[56].mxu0  ;;  %v2095_v62 = vpop.f32.mrb[56].mxu1 }
 0x187   :  { %3786 = vst [vmem:[#allocation14_spill] sm:$0xff] %v2091_v58  ;;  %v618_v0 = vsel %vm562_vm0, %v2091_v58, 0.0  ;;  %v385_v13 = vpop.f32.mrb[57].mxu0  ;;  %3787 = vst [vmem:[#allocation15_spill] sm:$0xff] %v2095_v62  ;;  %v545_v4 = vpop.f32.mrb[57].mxu1 }
 0x188   :  { %v619_v55 = vadd.f32 %v618_v0, %v617_v31 }
 0x18a   :  { %v2097_v21 = vpop.f32.mrb[58].mxu0  ;;  %v2101_v43 = vpop.f32.mrb[58].mxu1 }
 0x18b   :  { %3788 = vst [vmem:[#allocation16_spill] sm:$0xff] %v2097_v21  ;;  %v620_v34 = vsel %vm562_vm0, %v2097_v21, 0.0  ;;  %v390_v45 = vpop.f32.mrb[59].mxu0  ;;  %v550_v12 = vpop.f32.mrb[59].mxu1 }
 0x18c   :  { %v621_v39 = vadd.f32 %v620_v34, %v619_v55  ;;  %v626_v12 = vsel %vm562_vm0, %v1925_v51, 0.0 }
 0x18e   :  { %v2103_v40 = vpop.f32.mrb[60].mxu0  ;;  %v2107_v30 = vpop.f32.mrb[60].mxu1 }
 0x18f   :  { %3789 = vst [vmem:[#allocation17_spill] sm:$0xff] %v2103_v40  ;;  %v622_v58 = vsel %vm562_vm0, %v2103_v40, 0.0  ;;  %v395_v13 = vpop.f32.mrb[61].mxu0  ;;  %v555_v31 = vpop.f32.mrb[61].mxu1 }
 0x190   :  { %v623_v0 = vadd.f32 %v622_v58, %v621_v39  ;;  %v628_v13 = vsel %vm562_vm0, %v1933_v57, 0.0  ;;  %v630_v58 = vsel %vm562_vm0, %v1939_v63, 0.0  ;;  %v632_v31 = vsel %vm562_vm0, %v1945_v5, 0.0 }
 0x192   :  { %v2109_v4 = vpop.f32.mrb[62].mxu0  ;;  %v2113_v16 = vpop.f32.mrb[62].mxu1 }
 0x193   :  { %v624_v21 = vsel %vm562_vm0, %v2109_v4, 0.0  ;;  %v400_v45 = vpop.f32.mrb[63].mxu0  ;;  %v560_v55 = vpop.f32.mrb[63].mxu1 }
 0x194   :  { %v625_v34 = vadd.f32 %v624_v21, %v623_v0  ;;  %v634_v21 = vsel %vm562_vm0, %v1951_v11, 0.0  ;;  %v636_v55 = vsel %vm562_vm0, %v1957_v17, 0.0 }
 0x196   :  { %v627_v3 = vadd.f32 %v626_v12, %v625_v34  ;;  %v638_v12 = vsel %vm562_vm0, %v1963_v23, 0.0 }
 0x198   :  { %v629_v40 = vadd.f32 %v628_v13, %v627_v3  ;;  %v640_v13 = vsel %vm562_vm0, %v1969_v29, 0.0 }
 0x19a   :  { %v631_v39 = vadd.f32 %v630_v58, %v629_v40  ;;  %v642_v58 = vsel %vm562_vm0, %v1975_v35, 0.0 }
 0x19c   :  { %v633_v45 = vadd.f32 %v632_v31, %v631_v39  ;;  %v644_v31 = vsel %vm562_vm0, %v1981_v41, 0.0 }
 0x19e   :  { %v635_v0 = vadd.f32 %v634_v21, %v633_v45  ;;  %v646_v21 = vsel %vm562_vm0, %v1987_v47, 0.0 }
 0x1a0   :  { %v637_v34 = vadd.f32 %v636_v55, %v635_v0  ;;  %v648_v55 = vsel %vm562_vm0, %v1993_v56, 0.0 }
 0x1a2   :  { %v639_v3 = vadd.f32 %v638_v12, %v637_v34  ;;  %v650_v12 = vsel %vm562_vm0, %v1999_v1, 0.0 }
 0x1a4   :  { %v641_v40 = vadd.f32 %v640_v13, %v639_v3  ;;  %v652_v13 = vsel %vm562_vm0, %v2005_v10, 0.0 }
 0x1a6   :  { %v643_v39 = vadd.f32 %v642_v58, %v641_v40  ;;  %v654_v58 = vsel %vm562_vm0, %v2011_v19, 0.0 }
 0x1a8   :  { %v645_v45 = vadd.f32 %v644_v31, %v643_v39  ;;  %v656_v31 = vsel %vm562_vm0, %v2017_v28, 0.0 }
 0x1aa   :  { %v647_v0 = vadd.f32 %v646_v21, %v645_v45  ;;  %v658_v21 = vsel %vm562_vm0, %v2023_v37, 0.0 }
 0x1ac   :  { %v649_v34 = vadd.f32 %v648_v55, %v647_v0  ;;  %v660_v55 = vsel %vm562_vm0, %v2029_v46, 0.0 }
 0x1ae   :  { %v651_v3 = vadd.f32 %v650_v12, %v649_v34  ;;  %v662_v12 = vsel %vm562_vm0, %v2035_v59, 0.0 }
 0x1b0   :  { %v653_v40 = vadd.f32 %v652_v13, %v651_v3  ;;  %v664_v13 = vsel %vm562_vm0, %v2041_v9, 0.0 }
 0x1b2   :  { %v655_v39 = vadd.f32 %v654_v58, %v653_v40  ;;  %v666_v58 = vsel %vm562_vm0, %v2047_v22, 0.0 }
 0x1b4   :  { %v657_v45 = vadd.f32 %v656_v31, %v655_v39  ;;  %v668_v31 = vsel %vm562_vm0, %v2053_v36, 0.0 }
 0x1b6   :  { %v659_v0 = vadd.f32 %v658_v21, %v657_v45  ;;  %v670_v21 = vsel %vm562_vm0, %v2059_v50, 0.0 }
 0x1b8   :  { %v661_v34 = vadd.f32 %v660_v55, %v659_v0  ;;  %v672_v55 = vsel %vm562_vm0, %v2065_v7, 0.0 }
 0x1ba   :  { %v663_v3 = vadd.f32 %v662_v12, %v661_v34  ;;  %v674_v12 = vsel %vm562_vm0, %v2071_v27, 0.0 }
 0x1bc   :  { %v665_v40 = vadd.f32 %v664_v13, %v663_v3  ;;  %v676_v13 = vsel %vm562_vm0, %v2077_v48, 0.0 }
 0x1be   :  { %v667_v39 = vadd.f32 %v666_v58, %v665_v40  ;;  %v678_v58 = vsel %vm562_vm0, %v2083_v25, 0.0 }
 0x1c0   :  { %v669_v45 = vadd.f32 %v668_v31, %v667_v39  ;;  %v680_v31 = vsel %vm562_vm0, %v2089_v18, 0.0 }
 0x1c2   :  { %v671_v0 = vadd.f32 %v670_v21, %v669_v45  ;;  %v682_v21 = vsel %vm562_vm0, %v2095_v62, 0.0 }
 0x1c4   :  { %v673_v34 = vadd.f32 %v672_v55, %v671_v0  ;;  %v684_v55 = vsel %vm562_vm0, %v2101_v43, 0.0 }
 0x1c6   :  { %v675_v3 = vadd.f32 %v674_v12, %v673_v34  ;;  %v686_v12 = vsel %vm562_vm0, %v2107_v30, 0.0 }
 0x1c8   :  { %v677_v40 = vadd.f32 %v676_v13, %v675_v3  ;;  %v688_v3 = vsel %vm562_vm0, %v2113_v16, 0.0 }
 0x1ca   :  { %v679_v39 = vadd.f32 %v678_v58, %v677_v40 }
 0x1cc   :  { %v681_v45 = vadd.f32 %v680_v31, %v679_v39 }
 0x1ce   :  { %v683_v0 = vadd.f32 %v682_v21, %v681_v45 }
 0x1d0   :  { %v685_v34 = vadd.f32 %v684_v55, %v683_v0 }
 0x1d2   :  { %v687_v13 = vadd.f32 %v686_v12, %v685_v34  ;;  %v3797_v34 = vld [vmem:[#allocation4_spill] sm:$0xff]  ;;  %v3799_v12 = vld [vmem:[#allocation5_spill] sm:$0xff] }
 0x1d4   :  { %v689_v40 = vadd.f32 %v688_v3, %v687_v13  ;;  %v3800_v3 = vld [vmem:[#allocation6_spill] sm:$0xff]  ;;  %v3802_v13 = vld [vmem:[#allocation7_spill] sm:$0xff] }
 0x1d6   :  { %v690_v58 = vrot.slane %v689_v40, 4 }
 0x1d8   :  { %v691_v25 = vadd.f32 %v690_v58, %v689_v40  ;;  %v3804_v58 = vld [vmem:[#allocation8_spill] sm:$0xff] }
 0x1da   :  { %v692_v18 = vrot.slane %v691_v25, 2 }
 0x1dc   :  { %v693_v39 = vadd.f32 %v692_v18, %v691_v25  ;;  %v3795_v25 = vld [vmem:[#allocation3_spill] sm:$0xff] }
 0x1de   :  { %v694_v31 = vrot.slane %v693_v39, 1 }
 0x1e0   :  { %v695_v48 = vadd.f32 %v694_v31, %v693_v39  ;;  %v3805_v31 = vld [vmem:[#allocation10_spill] sm:$0xff] }
 0x1e2   :  { %v2179_v62 = vmul.f32 0.001953125, %v695_v48  ;;  %v3794_v48 = vld [vmem:[#allocation2_spill] sm:$0xff] }
 0x1e4   :  { %v2183_v45 = vsub.f32 %v1923_v49, %v2179_v62  ;;  %v2187_v21 = vsub.f32 %v1927_v53, %v2179_v62  ;;  %v2191_v0 = vsub.f32 %v1935_v60, %v2179_v62  ;;  %v2195_v55 = vsub.f32 %v1941_v2, %v2179_v62 }
 0x1e5   :  { %v2199_v18 = vsub.f32 %v1947_v8, %v2179_v62  ;;  %v2203_v49 = vsub.f32 %v1953_v14, %v2179_v62  ;;  %v2207_v53 = vsub.f32 %v1959_v20, %v2179_v62  ;;  %v2211_v60 = vsub.f32 %v1965_v26, %v2179_v62 }
 0x1e6   :  { %3790 = vst [vmem:[#allocation18_spill] sm:$0xff] %v2183_v45  ;;  %3791 = vst [vmem:[#allocation19_spill] sm:$0xff] %v2187_v21  ;;  %v2215_v2 = vsub.f32 %v1971_v32, %v2179_v62  ;;  %v2219_v8 = vsub.f32 %v1977_v38, %v2179_v62  ;;  %v2223_v14 = vsub.f32 %v1983_v44, %v2179_v62 }
 0x1e7   :  { %3792 = vst [vmem:[#allocation20_spill] sm:$0xff] %v2191_v0  ;;  %3793 = vst [vmem:[#allocation21_spill] sm:$0xff] %v2195_v55  ;;  %v2227_v20 = vsub.f32 %v1989_v52, %v2179_v62  ;;  %v2231_v26 = vsub.f32 %v1995_v61, %v2179_v62  ;;  %v2235_v32 = vsub.f32 %v2001_v6, %v2179_v62 }
 0x1e8   :  { %v2239_v38 = vsub.f32 %v2007_v15, %v2179_v62  ;;  %v2243_v44 = vsub.f32 %v2013_v24, %v2179_v62  ;;  %v2247_v52 = vsub.f32 %v2019_v33, %v2179_v62  ;;  %v2251_v61 = vsub.f32 %v2025_v42, %v2179_v62 }
 0x1e9   :  { %v2255_v6 = vsub.f32 %v2031_v54, %v2179_v62  ;;  %v2259_v15 = vsub.f32 %v3794_v48, %v2179_v62  ;;  %v2263_v24 = vsub.f32 %v3795_v25, %v2179_v62  ;;  %v2267_v33 = vsub.f32 %v3797_v34, %v2179_v62  ;;  %v3806_v25 = vld [vmem:[#allocation12_spill] sm:$0xff] }
 0x1ea   :  { %v2271_v42 = vsub.f32 %v3799_v12, %v2179_v62  ;;  %v2275_v54 = vsub.f32 %v3800_v3, %v2179_v62  ;;  %v2279_v40 = vsub.f32 %v3802_v13, %v2179_v62  ;;  %v2283_v39 = vsub.f32 %v3804_v58, %v2179_v62  ;;  %v3807_v12 = vld [vmem:[#allocation14_spill] sm:$0xff] }
 0x1eb   :  { %3796 = vst [vmem:[#allocation2_spill] sm:$0xff] %v2263_v24  ;;  %3798 = vst [vmem:[#allocation3_spill] sm:$0xff] %v2267_v33  ;;  %v2287_v48 = vsub.f32 %v3805_v31, %v2179_v62  ;;  %v2291_v34 = vsub.f32 %v3806_v25, %v2179_v62  ;;  %v2295_v3 = vsub.f32 %v3807_v12, %v2179_v62 }
 0x1ec   :  { %3801 = vst [vmem:[#allocation4_spill] sm:$0xff] %v2275_v54  ;;  %3803 = vst [vmem:[#allocation5_spill] sm:$0xff] %v2279_v40  ;;  %v3808_v54 = vld [vmem:[#allocation16_spill] sm:$0xff]  ;;  %v3809_v40 = vld [vmem:[#allocation17_spill] sm:$0xff]  ;;  %v2307_v31 = vsub.f32 %v2109_v4, %v2179_v62  ;;  %v2311_v25 = vsub.f32 %v1925_v51, %v2179_v62  ;;  %v2315_v12 = vsub.f32 %v1933_v57, %v2179_v62 }
 0x1ed   :  { %v2299_v13 = vsub.f32 %v3808_v54, %v2179_v62  ;;  %v2303_v58 = vsub.f32 %v3809_v40, %v2179_v62  ;;  %v2319_v54 = vsub.f32 %v1939_v63, %v2179_v62  ;;  %v2323_v40 = vsub.f32 %v1945_v5, %v2179_v62 }
 0x1ee   :  { %v2327_v4 = vsub.f32 %v1951_v11, %v2179_v62  ;;  %v2331_v51 = vsub.f32 %v1957_v17, %v2179_v62  ;;  %v2335_v57 = vsub.f32 %v1963_v23, %v2179_v62  ;;  %v2339_v63 = vsub.f32 %v1969_v29, %v2179_v62 }
 0x1ef   :  { %v2343_v5 = vsub.f32 %v1975_v35, %v2179_v62  ;;  %v2347_v11 = vsub.f32 %v1981_v41, %v2179_v62  ;;  %v2351_v17 = vsub.f32 %v1987_v47, %v2179_v62  ;;  %v2355_v23 = vsub.f32 %v1993_v56, %v2179_v62 }
 0x1f0   :  { %v2359_v29 = vsub.f32 %v1999_v1, %v2179_v62  ;;  %v2363_v35 = vsub.f32 %v2005_v10, %v2179_v62  ;;  %v2367_v41 = vsub.f32 %v2011_v19, %v2179_v62  ;;  %v2371_v47 = vsub.f32 %v2017_v28, %v2179_v62 }
 0x1f1   :  { %v2375_v56 = vsub.f32 %v2023_v37, %v2179_v62  ;;  %v2379_v1 = vsub.f32 %v2029_v46, %v2179_v62  ;;  %v2383_v10 = vsub.f32 %v2035_v59, %v2179_v62  ;;  %v2387_v19 = vsub.f32 %v2041_v9, %v2179_v62 }
 0x1f2   :  { %v2391_v28 = vsub.f32 %v2047_v22, %v2179_v62  ;;  %v2395_v37 = vsub.f32 %v2053_v36, %v2179_v62  ;;  %v2399_v46 = vsub.f32 %v2059_v50, %v2179_v62  ;;  %v2403_v59 = vsub.f32 %v2065_v7, %v2179_v62 }
 0x1f3   :  { %3810 = vst [vmem:[#allocation6_spill] sm:$0xff] %v2375_v56  ;;  %3811 = vst [vmem:[#allocation7_spill] sm:$0xff] %v2379_v1  ;;  %v2407_v9 = vsub.f32 %v2071_v27, %v2179_v62  ;;  %v2427_v27 = vsub.f32 %v2101_v43, %v2179_v62  ;;  %v765_v43 = vmul.f32 %v2195_v55, %v2195_v55 }
 0x1f4   :  { %3812 = vst [vmem:[#allocation8_spill] sm:$0xff] %v2383_v10  ;;  %3813 = vst [vmem:[#allocation10_spill] sm:$0xff] %v2387_v19  ;;  %v3819_v19 = vld [vmem:[#allocation9_spill] sm:$0xff]  ;;  %v768_v55 = vmul.f32 %v2207_v53, %v2207_v53 }
 0x1f5   :  { %3814 = vst [vmem:[#allocation12_spill] sm:$0xff] %v2391_v28  ;;  %3815 = vst [vmem:[#allocation14_spill] sm:$0xff] %v2395_v37  ;;  %v2411_v22 = vsub.f32 %v3819_v19, %v2179_v62  ;;  %v3821_v28 = vld [vmem:[#allocation11_spill] sm:$0xff]  ;;  %v3823_v37 = vld [vmem:[#allocation13_spill] sm:$0xff]  ;;  %v2431_v19 = vsub.f32 %v2107_v30, %v2179_v62 }
 0x1f6   :  { %3816 = vst [vmem:[#allocation16_spill] sm:$0xff] %v2399_v46  ;;  %3817 = vst [vmem:[#allocation17_spill] sm:$0xff] %v2403_v59  ;;  %v2415_v36 = vsub.f32 %v3821_v28, %v2179_v62  ;;  %v2419_v50 = vsub.f32 %v3823_v37, %v2179_v62  ;;  %v3825_v46 = vld [vmem:[#allocation15_spill] sm:$0xff]  ;;  %v2435_v28 = vsub.f32 %v2113_v16, %v2179_v62 }
 0x1f7   :  { %3818 = vst [vmem:[#allocation22_spill] sm:$0xff] %v2407_v9  ;;  %3820 = vst [vmem:[#allocation9_spill] sm:$0xff] %v2411_v22  ;;  %v2423_v7 = vsub.f32 %v3825_v46, %v2179_v62  ;;  %v762_v37 = vmul.f32 %v2183_v45, %v2183_v45  ;;  %v764_v46 = vmul.f32 %v2191_v0, %v2191_v0 }
 0x1f8   :  { %3822 = vst [vmem:[#allocation11_spill] sm:$0xff] %v2415_v36  ;;  %3824 = vst [vmem:[#allocation13_spill] sm:$0xff] %v2419_v50  ;;  %v763_v50 = vmul.f32 %v2187_v21, %v2187_v21  ;;  %v766_v16 = vmul.f32 %v2199_v18, %v2199_v18  ;;  %v767_v21 = vmul.f32 %v2203_v49, %v2203_v49 }
 0x1f9   :  { %3826 = vst [vmem:[#allocation15_spill] sm:$0xff] %v2423_v7  ;;  %3827 = vst [vmem:[#allocation23_spill] sm:$0xff] %v2427_v27  ;;  %v826_v27 = vsel %vm562_vm0, %v762_v37, 0.0  ;;  %v829_v62 = vsel %vm562_vm0, %v764_v46, 0.0  ;;  %v837_v46 = vsel %vm562_vm0, %v768_v55, 0.0  ;;  %v774_v55 = vmul.f32 %v2231_v26, %v2231_v26 }
 0x1fa   :  { %3828 = vst [vmem:[#allocation24_spill] sm:$0xff] %v2431_v19  ;;  %3829 = vst [vmem:[#allocation25_spill] sm:$0xff] %v2435_v28  ;;  %v827_v30 = vsel %vm562_vm0, %v763_v50, 0.0  ;;  %v831_v28 = vsel %vm562_vm0, %v765_v43, 0.0  ;;  %v833_v37 = vsel %vm562_vm0, %v766_v16, 0.0  ;;  %v769_v50 = vmul.f32 %v2211_v60, %v2211_v60 }
 0x1fb   :  { %v828_v19 = vadd.f32 %v827_v30, %v826_v27  ;;  %v835_v27 = vsel %vm562_vm0, %v767_v21, 0.0  ;;  %v773_v21 = vmul.f32 %v2227_v20, %v2227_v20 }
 0x1fd   :  { %v830_v45 = vadd.f32 %v829_v62, %v828_v19  ;;  %v770_v19 = vmul.f32 %v2215_v2, %v2215_v2 }
 0x1ff   :  { %v832_v0 = vadd.f32 %v831_v28, %v830_v45  ;;  %v771_v45 = vmul.f32 %v2219_v8, %v2219_v8  ;;  %v839_v28 = vsel %vm562_vm0, %v769_v50, 0.0  ;;  %v841_v16 = vsel %vm562_vm0, %v770_v19, 0.0 }
 0x200   :  { %v775_v50 = vmul.f32 %v2235_v32, %v2235_v32  ;;  %v776_v19 = vmul.f32 %v2239_v38, %v2239_v38 }
 0x201   :  { %v834_v7 = vadd.f32 %v833_v37, %v832_v0  ;;  %v772_v0 = vmul.f32 %v2223_v14, %v2223_v14 }
 0x203   :  { %v836_v30 = vadd.f32 %v835_v27, %v834_v7  ;;  %v843_v7 = vsel %vm562_vm0, %v771_v45, 0.0  ;;  %v777_v45 = vmul.f32 %v2243_v44, %v2243_v44 }
 0x205   :  { %v838_v62 = vadd.f32 %v837_v46, %v836_v30  ;;  %v845_v30 = vsel %vm562_vm0, %v772_v0, 0.0  ;;  %v778_v0 = vmul.f32 %v2247_v52, %v2247_v52 }
 0x207   :  { %v840_v43 = vadd.f32 %v839_v28, %v838_v62  ;;  %v847_v62 = vsel %vm562_vm0, %v773_v21, 0.0  ;;  %v779_v21 = vmul.f32 %v2251_v61, %v2251_v61 }
 0x209   :  { %v842_v37 = vadd.f32 %v841_v16, %v840_v43  ;;  %v849_v43 = vsel %vm562_vm0, %v774_v55, 0.0  ;;  %v780_v55 = vmul.f32 %v2255_v6, %v2255_v6 }
 0x20b   :  { %v844_v27 = vadd.f32 %v843_v7, %v842_v37  ;;  %v851_v37 = vsel %vm562_vm0, %v775_v50, 0.0  ;;  %v781_v50 = vmul.f32 %v2259_v15, %v2259_v15 }
 0x20d   :  { %v846_v46 = vadd.f32 %v845_v30, %v844_v27  ;;  %v853_v27 = vsel %vm562_vm0, %v776_v19, 0.0  ;;  %v782_v19 = vmul.f32 %v2263_v24, %v2263_v24 }
 0x20f   :  { %v848_v28 = vadd.f32 %v847_v62, %v846_v46  ;;  %v855_v46 = vsel %vm562_vm0, %v777_v45, 0.0  ;;  %v783_v45 = vmul.f32 %v2267_v33, %v2267_v33 }
 0x211   :  { %v850_v16 = vadd.f32 %v849_v43, %v848_v28  ;;  %v857_v28 = vsel %vm562_vm0, %v778_v0, 0.0  ;;  %v784_v0 = vmul.f32 %v2271_v42, %v2271_v42 }
 0x213   :  { %v852_v7 = vadd.f32 %v851_v37, %v850_v16  ;;  %v859_v16 = vsel %vm562_vm0, %v779_v21, 0.0  ;;  %v3830_v21 = vld [vmem:[#allocation4_spill] sm:$0xff] }
 0x215   :  { %v854_v30 = vadd.f32 %v853_v27, %v852_v7  ;;  %v861_v7 = vsel %vm562_vm0, %v780_v55, 0.0  ;;  %v3831_v55 = vld [vmem:[#allocation5_spill] sm:$0xff] }
 0x217   :  { %v856_v62 = vadd.f32 %v855_v46, %v854_v30  ;;  %v863_v30 = vsel %vm562_vm0, %v781_v50, 0.0  ;;  %v787_v50 = vmul.f32 %v2283_v39, %v2283_v39 }
 0x219   :  { %v858_v43 = vadd.f32 %v857_v28, %v856_v62  ;;  %v865_v62 = vsel %vm562_vm0, %v782_v19, 0.0  ;;  %v788_v19 = vmul.f32 %v2287_v48, %v2287_v48 }
 0x21b   :  { %v860_v37 = vadd.f32 %v859_v16, %v858_v43  ;;  %v785_v43 = vmul.f32 %v3830_v21, %v3830_v21  ;;  %v867_v16 = vsel %vm562_vm0, %v783_v45, 0.0  ;;  %v789_v45 = vmul.f32 %v2291_v34, %v2291_v34 }
 0x21d   :  { %v862_v27 = vadd.f32 %v861_v7, %v860_v37  ;;  %v786_v37 = vmul.f32 %v3831_v55, %v3831_v55  ;;  %v869_v7 = vsel %vm562_vm0, %v784_v0, 0.0  ;;  %v877_v0 = vsel %vm562_vm0, %v788_v19, 0.0 }
 0x21e   :  { %v794_v19 = vmul.f32 %v2311_v25, %v2311_v25 }
 0x21f   :  { %v864_v46 = vadd.f32 %v863_v30, %v862_v27  ;;  %v871_v27 = vsel %vm562_vm0, %v785_v43, 0.0  ;;  %v879_v43 = vsel %vm562_vm0, %v789_v45, 0.0  ;;  %v795_v45 = vmul.f32 %v2315_v12, %v2315_v12 }
 0x221   :  { %v866_v28 = vadd.f32 %v865_v62, %v864_v46  ;;  %v873_v46 = vsel %vm562_vm0, %v786_v37, 0.0  ;;  %v792_v37 = vmul.f32 %v2303_v58, %v2303_v58 }
 0x223   :  { %v868_v24 = vadd.f32 %v867_v16, %v866_v28  ;;  %v875_v28 = vsel %vm562_vm0, %v787_v50, 0.0  ;;  %v793_v50 = vmul.f32 %v2307_v31, %v2307_v31 }
 0x225   :  { %v870_v33 = vadd.f32 %v869_v7, %v868_v24  ;;  %v790_v24 = vmul.f32 %v2295_v3, %v2295_v3 }
 0x227   :  { %v872_v30 = vadd.f32 %v871_v27, %v870_v33  ;;  %v791_v33 = vmul.f32 %v2299_v13, %v2299_v13 }
 0x229   :  { %v874_v62 = vadd.f32 %v873_v46, %v872_v30  ;;  %v881_v30 = vsel %vm562_vm0, %v790_v24, 0.0  ;;  %v796_v24 = vmul.f32 %v2319_v54, %v2319_v54 }
 0x22b   :  { %v876_v16 = vadd.f32 %v875_v28, %v874_v62  ;;  %v883_v62 = vsel %vm562_vm0, %v791_v33, 0.0  ;;  %v797_v33 = vmul.f32 %v2323_v40, %v2323_v40 }
 0x22d   :  { %v878_v7 = vadd.f32 %v877_v0, %v876_v16  ;;  %v885_v16 = vsel %vm562_vm0, %v792_v37, 0.0  ;;  %v798_v37 = vmul.f32 %v2327_v4, %v2327_v4 }
 0x22f   :  { %v880_v27 = vadd.f32 %v879_v43, %v878_v7  ;;  %v887_v7 = vsel %vm562_vm0, %v793_v50, 0.0  ;;  %v799_v50 = vmul.f32 %v2331_v51, %v2331_v51 }
 0x231   :  { %v882_v46 = vadd.f32 %v881_v30, %v880_v27  ;;  %v889_v27 = vsel %vm562_vm0, %v794_v19, 0.0  ;;  %v800_v19 = vmul.f32 %v2335_v57, %v2335_v57 }
 0x233   :  { %v884_v28 = vadd.f32 %v883_v62, %v882_v46  ;;  %v891_v46 = vsel %vm562_vm0, %v795_v45, 0.0  ;;  %v801_v45 = vmul.f32 %v2339_v63, %v2339_v63 }
 0x235   :  { %v886_v0 = vadd.f32 %v885_v16, %v884_v28  ;;  %v893_v28 = vsel %vm562_vm0, %v796_v24, 0.0  ;;  %v802_v24 = vmul.f32 %v2343_v5, %v2343_v5 }
 0x237   :  { %v888_v43 = vadd.f32 %v887_v7, %v886_v0  ;;  %v895_v0 = vsel %vm562_vm0, %v797_v33, 0.0  ;;  %v803_v33 = vmul.f32 %v2347_v11, %v2347_v11 }
 0x239   :  { %v890_v30 = vadd.f32 %v889_v27, %v888_v43  ;;  %v897_v43 = vsel %vm562_vm0, %v798_v37, 0.0  ;;  %v804_v37 = vmul.f32 %v2351_v17, %v2351_v17 }
 0x23b   :  { %v892_v62 = vadd.f32 %v891_v46, %v890_v30  ;;  %v899_v30 = vsel %vm562_vm0, %v799_v50, 0.0  ;;  %v805_v50 = vmul.f32 %v2355_v23, %v2355_v23 }
 0x23d   :  { %v894_v16 = vadd.f32 %v893_v28, %v892_v62  ;;  %v901_v62 = vsel %vm562_vm0, %v800_v19, 0.0  ;;  %v806_v19 = vmul.f32 %v2359_v29, %v2359_v29 }
 0x23f   :  { %v896_v7 = vadd.f32 %v895_v0, %v894_v16  ;;  %v903_v16 = vsel %vm562_vm0, %v801_v45, 0.0  ;;  %v807_v45 = vmul.f32 %v2363_v35, %v2363_v35 }
 0x241   :  { %v898_v27 = vadd.f32 %v897_v43, %v896_v7  ;;  %v905_v7 = vsel %vm562_vm0, %v802_v24, 0.0  ;;  %v808_v24 = vmul.f32 %v2367_v41, %v2367_v41 }
 0x243   :  { %v900_v46 = vadd.f32 %v899_v30, %v898_v27  ;;  %v907_v27 = vsel %vm562_vm0, %v803_v33, 0.0  ;;  %v809_v33 = vmul.f32 %v2371_v47, %v2371_v47 }
 0x245   :  { %v902_v28 = vadd.f32 %v901_v62, %v900_v46  ;;  %v909_v46 = vsel %vm562_vm0, %v804_v37, 0.0  ;;  %v810_v37 = vmul.f32 %v2375_v56, %v2375_v56 }
 0x247   :  { %v904_v0 = vadd.f32 %v903_v16, %v902_v28  ;;  %v911_v28 = vsel %vm562_vm0, %v805_v50, 0.0  ;;  %v811_v50 = vmul.f32 %v2379_v1, %v2379_v1 }
 0x249   :  { %v906_v43 = vadd.f32 %v905_v7, %v904_v0  ;;  %v913_v0 = vsel %vm562_vm0, %v806_v19, 0.0  ;;  %v812_v19 = vmul.f32 %v2383_v10, %v2383_v10 }
 0x24b   :  { %v908_v30 = vadd.f32 %v907_v27, %v906_v43  ;;  %v915_v43 = vsel %vm562_vm0, %v807_v45, 0.0  ;;  %v3832_v45 = vld [vmem:[#allocation10_spill] sm:$0xff] }
 0x24d   :  { %v910_v62 = vadd.f32 %v909_v46, %v908_v30  ;;  %v917_v30 = vsel %vm562_vm0, %v808_v24, 0.0  ;;  %v3833_v24 = vld [vmem:[#allocation12_spill] sm:$0xff] }
 0x24f   :  { %v912_v16 = vadd.f32 %v911_v28, %v910_v62  ;;  %v919_v62 = vsel %vm562_vm0, %v809_v33, 0.0  ;;  %v3834_v33 = vld [vmem:[#allocation14_spill] sm:$0xff] }
 0x251   :  { %v914_v7 = vadd.f32 %v913_v0, %v912_v16  ;;  %v921_v16 = vsel %vm562_vm0, %v810_v37, 0.0  ;;  %v3835_v37 = vld [vmem:[#allocation16_spill] sm:$0xff] }
 0x253   :  { %v916_v27 = vadd.f32 %v915_v43, %v914_v7  ;;  %v813_v7 = vmul.f32 %v3832_v45, %v3832_v45  ;;  %v923_v43 = vsel %vm562_vm0, %v811_v50, 0.0  ;;  %v817_v50 = vmul.f32 %v2403_v59, %v2403_v59 }
 0x255   :  { %v918_v46 = vadd.f32 %v917_v30, %v916_v27  ;;  %v814_v27 = vmul.f32 %v3833_v24, %v3833_v24  ;;  %v925_v30 = vsel %vm562_vm0, %v812_v19, 0.0 }
 0x257   :  { %v920_v28 = vadd.f32 %v919_v62, %v918_v46  ;;  %v815_v46 = vmul.f32 %v3834_v33, %v3834_v33  ;;  %v927_v62 = vsel %vm562_vm0, %v813_v7, 0.0  ;;  %v935_v7 = vsel %vm562_vm0, %v817_v50, 0.0  ;;  %v3838_v50 = vld [vmem:[#allocation23_spill] sm:$0xff] }
 0x259   :  { %v922_v0 = vadd.f32 %v921_v16, %v920_v28  ;;  %v816_v28 = vmul.f32 %v3835_v37, %v3835_v37  ;;  %v929_v16 = vsel %vm562_vm0, %v814_v27, 0.0 }
 0x25b   :  { %v924_v56 = vadd.f32 %v923_v43, %v922_v0  ;;  %v931_v0 = vsel %vm562_vm0, %v815_v46, 0.0  ;;  %v933_v19 = vsel %vm562_vm0, %v816_v28, 0.0  ;;  %v3836_v46 = vld [vmem:[#allocation13_spill] sm:$0xff]  ;;  %v3837_v28 = vld [vmem:[#allocation15_spill] sm:$0xff] }
 0x25d   :  { %v926_v1 = vadd.f32 %v925_v30, %v924_v56  ;;  %v818_v56 = vmul.f32 %v2407_v9, %v2407_v9 }
 0x25f   :  { %v928_v10 = vadd.f32 %v927_v62, %v926_v1  ;;  %v819_v1 = vmul.f32 %v2411_v22, %v2411_v22  ;;  %v937_v27 = vsel %vm562_vm0, %v818_v56, 0.0  ;;  %v3839_v56 = vld [vmem:[#allocation24_spill] sm:$0xff] }
 0x261   :  { %v930_v45 = vadd.f32 %v929_v16, %v928_v10  ;;  %v820_v10 = vmul.f32 %v2415_v36, %v2415_v36 }
 0x263   :  { %v932_v43 = vadd.f32 %v931_v0, %v930_v45  ;;  %v821_v45 = vmul.f32 %v3836_v46, %v3836_v46  ;;  %v939_v0 = vsel %vm562_vm0, %v819_v1, 0.0  ;;  %v3840_v1 = vld [vmem:[#allocation25_spill] sm:$0xff] }
 0x265   :  { %v934_v30 = vadd.f32 %v933_v19, %v932_v43  ;;  %v822_v43 = vmul.f32 %v3837_v28, %v3837_v28  ;;  %v941_v19 = vsel %vm562_vm0, %v820_v10, 0.0 }
 0x267   :  { %v936_v62 = vadd.f32 %v935_v7, %v934_v30  ;;  %v823_v30 = vmul.f32 %v3838_v50, %v3838_v50  ;;  %v943_v7 = vsel %vm562_vm0, %v821_v45, 0.0 }
 0x269   :  { %v938_v16 = vadd.f32 %v937_v27, %v936_v62  ;;  %v824_v62 = vmul.f32 %v3839_v56, %v3839_v56  ;;  %v945_v27 = vsel %vm562_vm0, %v822_v43, 0.0 }
 0x26b   :  { %v940_v9 = vadd.f32 %v939_v0, %v938_v16  ;;  %v825_v16 = vmul.f32 %v3840_v1, %v3840_v1  ;;  %v947_v0 = vsel %vm562_vm0, %v823_v30, 0.0  ;;  %v3841_v1 = vld [vmem:[#allocation18_spill] sm:$0xff]  ;;  %v3842_v30 = vld [vmem:[#allocation19_spill] sm:$0xff] }
 0x26d   :  { %v942_v22 = vadd.f32 %v941_v19, %v940_v9  ;;  %v949_v9 = vsel %vm562_vm0, %v824_v62, 0.0  ;;  %v951_v19 = vsel %vm562_vm0, %v825_v16, 0.0  ;;  %v3843_v62 = vld [vmem:[#allocation20_spill] sm:$0xff]  ;;  %v3844_v16 = vld [vmem:[#allocation21_spill] sm:$0xff] }
 0x26f   :  { %v944_v36 = vadd.f32 %v943_v7, %v942_v22 }
 0x271   :  { %v946_v46 = vadd.f32 %v945_v27, %v944_v36 }
 0x273   :  { %v948_v28 = vadd.f32 %v947_v0, %v946_v46 }
 0x275   :  { %v950_v10 = vadd.f32 %v949_v9, %v948_v28 }
 0x277   :  { %v952_v50 = vadd.f32 %v951_v19, %v950_v10  ;;  %v3845_v10 = vld [vmem:[#allocation2_spill] sm:$0xff]  ;;  %v3846_v19 = vld [vmem:[#allocation3_spill] sm:$0xff] }
 0x279   :  { %v953_v45 = vrot.slane %v952_v50, 4 }
 0x27b   :  { %v954_v22 = vadd.f32 %v953_v45, %v952_v50 }
 0x27d   :  { %v955_v7 = vrot.slane %v954_v22, 2 }
 0x27f   :  { %v956_v59 = vadd.f32 %v955_v7, %v954_v22  ;;  %v3847_v7 = vld [vmem:[#allocation6_spill] sm:$0xff] }
 0x281   :  { %v957_v56 = vrot.slane %v956_v59, 1 }
 0x283   :  { %v958_v37 = vadd.f32 %v957_v56, %v956_v59 }
 0x285   :  { %v959_v43 = vmul.f32 0.001953125, %v958_v37 }
 0x287   :  { %v960_v36 = vadd.f32 1e-05, %v959_v43  ;;  %v3848_v43 = vld [vmem:[#allocation7_spill] sm:$0xff] }
 0x289   :  { %1383 = vrsqrt.f32 %v960_v36  ;;  %v3849_v36 = vld [vmem:[#allocation8_spill] sm:$0xff] }
 0x293   :  { %v2629_v27 = vpop.eup %1383 }
 0x294   :  { %v2633_v46 = vmul.f32 %v2629_v27, %v3841_v1  ;;  %v2637_v28 = vmul.f32 %v2629_v27, %v3842_v30  ;;  %v2641_v50 = vmul.f32 %v2629_v27, %v3843_v62  ;;  %v2645_v59 = vmul.f32 %v2629_v27, %v3844_v16  ;;  %v3850_v30 = vld [vmem:[#allocation10_spill] sm:$0xff]  ;;  %v3854_v16 = vld [vmem:[#allocation16_spill] sm:$0xff] }
 0x295   :  { %v2649_v37 = vmul.f32 %v2629_v27, %v2199_v18  ;;  %v2653_v56 = vmul.f32 %v2629_v27, %v2203_v49  ;;  %v2657_v1 = vmul.f32 %v2629_v27, %v2207_v53  ;;  %v2661_v0 = vmul.f32 %v2629_v27, %v2211_v60 }
 0x296   :  { %v2665_v9 = vmul.f32 %v2629_v27, %v2215_v2  ;;  %v2669_v18 = vmul.f32 %v2629_v27, %v2219_v8  ;;  %v2673_v49 = vmul.f32 %v2629_v27, %v2223_v14  ;;  %v2677_v53 = vmul.f32 %v2629_v27, %v2227_v20 }
 0x297   :  { %v2681_v60 = vmul.f32 %v2629_v27, %v2231_v26  ;;  %v2685_v2 = vmul.f32 %v2629_v27, %v2235_v32  ;;  %v2689_v8 = vmul.f32 %v2629_v27, %v2239_v38  ;;  %v2693_v14 = vmul.f32 %v2629_v27, %v2243_v44 }
 0x298   :  { %v2697_v20 = vmul.f32 %v2629_v27, %v2247_v52  ;;  %v2701_v26 = vmul.f32 %v2629_v27, %v2251_v61  ;;  %v2705_v32 = vmul.f32 %v2629_v27, %v2255_v6  ;;  %v2709_v38 = vmul.f32 %v2629_v27, %v2259_v15 }
 0x299   :  { %v2713_v44 = vmul.f32 %v2629_v27, %v3845_v10  ;;  %v2717_v52 = vmul.f32 %v2629_v27, %v3846_v19  ;;  %v2721_v61 = vmul.f32 %v2629_v27, %v2271_v42  ;;  %v2725_v6 = vmul.f32 %v2629_v27, %v3830_v21  ;;  %v3856_v19 = vld [vmem:[#allocation17_spill] sm:$0xff] }
 0x29a   :  { %v2729_v15 = vmul.f32 %v2629_v27, %v3831_v55  ;;  %v2733_v45 = vmul.f32 %v2629_v27, %v2283_v39  ;;  %v2737_v22 = vmul.f32 %v2629_v27, %v2287_v48  ;;  %v2741_v42 = vmul.f32 %v2629_v27, %v2291_v34 }
 0x29b   :  { %v2745_v21 = vmul.f32 %v2629_v27, %v2295_v3  ;;  %v2749_v55 = vmul.f32 %v2629_v27, %v2299_v13  ;;  %v2753_v39 = vmul.f32 %v2629_v27, %v2303_v58  ;;  %v2757_v48 = vmul.f32 %v2629_v27, %v2307_v31 }
 0x29c   :  { %v2761_v34 = vmul.f32 %v2629_v27, %v2311_v25  ;;  %v2765_v3 = vmul.f32 %v2629_v27, %v2315_v12  ;;  %v2769_v13 = vmul.f32 %v2629_v27, %v2319_v54  ;;  %v2773_v58 = vmul.f32 %v2629_v27, %v2323_v40 }
 0x29d   :  { %v2777_v31 = vmul.f32 %v2629_v27, %v2327_v4  ;;  %v2781_v25 = vmul.f32 %v2629_v27, %v2331_v51  ;;  %v2785_v12 = vmul.f32 %v2629_v27, %v2335_v57  ;;  %v2789_v54 = vmul.f32 %v2629_v27, %v2339_v63 }
 0x29e   :  { %v2793_v40 = vmul.f32 %v2629_v27, %v2343_v5  ;;  %v2797_v4 = vmul.f32 %v2629_v27, %v2347_v11  ;;  %v2801_v51 = vmul.f32 %v2629_v27, %v2351_v17  ;;  %v2805_v57 = vmul.f32 %v2629_v27, %v2355_v23 }
 0x29f   :  { %v2809_v63 = vmul.f32 %v2629_v27, %v2359_v29  ;;  %v2813_v5 = vmul.f32 %v2629_v27, %v2363_v35  ;;  %v2817_v11 = vmul.f32 %v2629_v27, %v2367_v41  ;;  %v2821_v17 = vmul.f32 %v2629_v27, %v2371_v47 }
 0x2a0   :  { %v2825_v23 = vmul.f32 %v2629_v27, %v3847_v7  ;;  %v2829_v29 = vmul.f32 %v2629_v27, %v3848_v43  ;;  %v2833_v35 = vmul.f32 %v2629_v27, %v3849_v36  ;;  %v2837_v41 = vmul.f32 %v2629_v27, %v3850_v30  ;;  %v2858_v43 = vld [vmem:[%s3731_s2] ss:$0 sm:$0xff]  ;;  %v3860_v30 = vld [vmem:[#allocation9_spill] sm:$0xff] }
 0x2a1   :  { %v2841_v47 = vmul.f32 %v2629_v27, %v3833_v24  ;;  %v2845_v62 = vmul.f32 %v2629_v27, %v3834_v33  ;;  %v2849_v10 = vmul.f32 %v2629_v27, %v3854_v16  ;;  %v2853_v7 = vmul.f32 %v2629_v27, %v3856_v19  ;;  %v3858_v36 = vld [vmem:[#allocation22_spill] sm:$0xff] }
 0x2a2   :  { %3851 = vst [vmem:[#allocation4_spill] sm:$0xff] %v2837_v41  ;;  %v2862_v24 = vmul.f32 %v2629_v27, %v3858_v36  ;;  %v2866_v33 = vmul.f32 %v2629_v27, %v3860_v30  ;;  %v3865_v41 = vld [vmem:[#allocation23_spill] sm:$0xff] }
 0x2a3   :  { %3852 = vst [vmem:[#allocation5_spill] sm:$0xff] %v2841_v47  ;;  %3853 = vst [vmem:[#allocation12_spill] sm:$0xff] %v2845_v62  ;;  %v3862_v62 = vld [vmem:[#allocation11_spill] sm:$0xff]  ;;  %v2882_v36 = vmul.f32 %v2629_v27, %v3865_v41  ;;  %v2902_v41 = vmul.f32 %v2858_v43, %v2641_v50  ;;  %v2922_v50 = vmul.f32 %v2858_v43, %v2661_v0 }
 0x2a4   :  { %3855 = vst [vmem:[#allocation14_spill] sm:$0xff] %v2849_v10  ;;  %3857 = vst [vmem:[#allocation18_spill] sm:$0xff] %v2853_v7  ;;  %v2870_v16 = vmul.f32 %v2629_v27, %v3862_v62  ;;  %v3863_v10 = vld [vmem:[#allocation13_spill] sm:$0xff]  ;;  %v3864_v7 = vld [vmem:[#allocation15_spill] sm:$0xff]  ;;  %v2942_v0 = vmul.f32 %v2858_v43, %v2681_v60  ;;  %v2962_v60 = vmul.f32 %v2858_v43, %v2701_v26 }
 0x2a5   :  { %3859 = vst [vmem:[#allocation19_spill] sm:$0xff] %v2862_v24  ;;  %3861 = vst [vmem:[#allocation20_spill] sm:$0xff] %v2866_v33  ;;  %v2874_v19 = vmul.f32 %v2629_v27, %v3863_v10  ;;  %v2878_v47 = vmul.f32 %v2629_v27, %v3864_v7  ;;  %v3866_v24 = vld [vmem:[#allocation24_spill] sm:$0xff]  ;;  %v3867_v33 = vld [vmem:[#allocation25_spill] sm:$0xff]  ;;  %v2894_v10 = vmul.f32 %v2858_v43, %v2633_v46 }
 0x2a6   :  { %v2886_v30 = vmul.f32 %v2629_v27, %v3866_v24  ;;  %v2890_v62 = vmul.f32 %v2629_v27, %v3867_v33  ;;  %v2898_v7 = vmul.f32 %v2858_v43, %v2637_v28  ;;  %v2906_v24 = vmul.f32 %v2858_v43, %v2645_v59 }
 0x2a7   :  { %v2910_v27 = vmul.f32 %v2858_v43, %v2649_v37  ;;  %v2914_v46 = vmul.f32 %v2858_v43, %v2653_v56  ;;  %v2918_v28 = vmul.f32 %v2858_v43, %v2657_v1  ;;  %v2926_v59 = vmul.f32 %v2858_v43, %v2665_v9 }
 0x2a8   :  { %v2930_v37 = vmul.f32 %v2858_v43, %v2669_v18  ;;  %v2934_v56 = vmul.f32 %v2858_v43, %v2673_v49  ;;  %v2938_v1 = vmul.f32 %v2858_v43, %v2677_v53  ;;  %v2946_v9 = vmul.f32 %v2858_v43, %v2685_v2 }
 0x2a9   :  { %v2950_v18 = vmul.f32 %v2858_v43, %v2689_v8  ;;  %v2954_v49 = vmul.f32 %v2858_v43, %v2693_v14  ;;  %v2958_v53 = vmul.f32 %v2858_v43, %v2697_v20  ;;  %v2966_v2 = vmul.f32 %v2858_v43, %v2705_v32  ;;  %v3872_v33 = vld [vmem:[#allocation4_spill] sm:$0xff] }
 0x2aa   :  { %v2970_v8 = vmul.f32 %v2858_v43, %v2709_v38  ;;  %v2974_v14 = vmul.f32 %v2858_v43, %v2713_v44  ;;  %v2978_v20 = vmul.f32 %v2858_v43, %v2717_v52  ;;  %v2982_v26 = vmul.f32 %v2858_v43, %v2721_v61 }
 0x2ab   :  { %v2986_v32 = vmul.f32 %v2858_v43, %v2725_v6  ;;  %v2990_v38 = vmul.f32 %v2858_v43, %v2729_v15  ;;  %v2994_v44 = vmul.f32 %v2858_v43, %v2733_v45  ;;  %v2998_v52 = vmul.f32 %v2858_v43, %v2737_v22 }
 0x2ac   :  { %v3002_v61 = vmul.f32 %v2858_v43, %v2741_v42  ;;  %v3006_v6 = vmul.f32 %v2858_v43, %v2745_v21  ;;  %v3010_v15 = vmul.f32 %v2858_v43, %v2749_v55  ;;  %v3014_v45 = vmul.f32 %v2858_v43, %v2753_v39 }
 0x2ad   :  { %v3018_v22 = vmul.f32 %v2858_v43, %v2757_v48  ;;  %v3022_v42 = vmul.f32 %v2858_v43, %v2761_v34  ;;  %v3026_v21 = vmul.f32 %v2858_v43, %v2765_v3  ;;  %v3030_v55 = vmul.f32 %v2858_v43, %v2769_v13 }
 0x2ae   :  { %v3034_v39 = vmul.f32 %v2858_v43, %v2773_v58  ;;  %v3038_v48 = vmul.f32 %v2858_v43, %v2777_v31  ;;  %v3042_v34 = vmul.f32 %v2858_v43, %v2781_v25  ;;  %v3046_v3 = vmul.f32 %v2858_v43, %v2785_v12 }
 0x2af   :  { %v3050_v13 = vmul.f32 %v2858_v43, %v2789_v54  ;;  %v3054_v58 = vmul.f32 %v2858_v43, %v2793_v40  ;;  %v3058_v31 = vmul.f32 %v2858_v43, %v2797_v4  ;;  %v3062_v25 = vmul.f32 %v2858_v43, %v2801_v51 }
 0x2b0   :  { %v3066_v12 = vmul.f32 %v2858_v43, %v2805_v57  ;;  %v3070_v54 = vmul.f32 %v2858_v43, %v2809_v63  ;;  %v3074_v40 = vmul.f32 %v2858_v43, %v2813_v5  ;;  %v3078_v4 = vmul.f32 %v2858_v43, %v2817_v11 }
 0x2b1   :  { %v3082_v51 = vmul.f32 %v2858_v43, %v2821_v17  ;;  %v3086_v57 = vmul.f32 %v2858_v43, %v2825_v23  ;;  %v3090_v63 = vmul.f32 %v2858_v43, %v2829_v29  ;;  %v3094_v5 = vmul.f32 %v2858_v43, %v2833_v35 }
 0x2b2   :  { %3868 = vst [vmem:[#allocation21_spill] sm:$0xff] %v3078_v4  ;;  %v3098_v11 = vmul.f32 %v2858_v43, %v3872_v33  ;;  %v3874_v4 = vld [vmem:[#allocation5_spill] sm:$0xff]  ;;  %v3119_v33 = vld [vmem:[%s3732_s3] ss:$0 sm:$0xff] }
 0x2b3   :  { %3869 = vst [vmem:[#allocation2_spill] sm:$0xff] %v3082_v51  ;;  %3870 = vst [vmem:[#allocation3_spill] sm:$0xff] %v3086_v57  ;;  %v3102_v17 = vmul.f32 %v2858_v43, %v3874_v4  ;;  %v3876_v51 = vld [vmem:[#allocation12_spill] sm:$0xff]  ;;  %v3877_v57 = vld [vmem:[#allocation14_spill] sm:$0xff] }
 0x2b4   :  { %3871 = vst [vmem:[#allocation6_spill] sm:$0xff] %v3090_v63  ;;  %3873 = vst [vmem:[#allocation7_spill] sm:$0xff] %v3098_v11  ;;  %v3106_v23 = vmul.f32 %v2858_v43, %v3876_v51  ;;  %v3110_v29 = vmul.f32 %v2858_v43, %v3877_v57  ;;  %v3878_v63 = vld [vmem:[#allocation18_spill] sm:$0xff]  ;;  %v3880_v11 = vld [vmem:[#allocation19_spill] sm:$0xff]  ;;  %v3131_v57 = vmul.f32 %v2858_v43, %v2870_v16 }
 0x2b5   :  { %3875 = vst [vmem:[#allocation8_spill] sm:$0xff] %v3102_v17  ;;  %v3114_v35 = vmul.f32 %v2858_v43, %v3878_v63  ;;  %v3123_v4 = vmul.f32 %v2858_v43, %v3880_v11  ;;  %v3881_v17 = vld [vmem:[#allocation20_spill] sm:$0xff]  ;;  %v3135_v63 = vmul.f32 %v2858_v43, %v2874_v19  ;;  %v3143_v11 = vmul.f32 %v2858_v43, %v2882_v36 }
 0x2b6   :  { %v3127_v51 = vmul.f32 %v2858_v43, %v3881_v17  ;;  %v3147_v17 = vmul.f32 %v2858_v43, %v2886_v30  ;;  %v3151_v16 = vmul.f32 %v2858_v43, %v2890_v62  ;;  %v3155_v19 = vadd.f32 %v3119_v33, %v2894_v10 }
 0x2b7   :  { %3879 = vst [vmem:[#allocation10_spill] sm:$0xff] %v3114_v35  ;;  %v3139_v35 = vmul.f32 %v2858_v43, %v2878_v47  ;;  %v3159_v47 = vadd.f32 %v3119_v33, %v2898_v7  ;;  %v3163_v36 = vadd.f32 %v3119_v33, %v2902_v41  ;;  %v3167_v30 = vadd.f32 %v3119_v33, %v2906_v24 }
 0x2b8   :  { %v3171_v43 = vadd.f32 %v3119_v33, %v2910_v27  ;;  %v3175_v62 = vadd.f32 %v3119_v33, %v2914_v46  ;;  %v3179_v10 = vadd.f32 %v3119_v33, %v2918_v28  ;;  %v3183_v7 = vadd.f32 %v3119_v33, %v2922_v50 }
 0x2b9   :  { %v3187_v41 = vadd.f32 %v3119_v33, %v2926_v59  ;;  %v3191_v24 = vadd.f32 %v3119_v33, %v2930_v37  ;;  %v3195_v27 = vadd.f32 %v3119_v33, %v2934_v56  ;;  %v3199_v46 = vadd.f32 %v3119_v33, %v2938_v1 }
 0x2ba   :  { %v3203_v28 = vadd.f32 %v3119_v33, %v2942_v0  ;;  %v3207_v50 = vadd.f32 %v3119_v33, %v2946_v9  ;;  %v3211_v59 = vadd.f32 %v3119_v33, %v2950_v18  ;;  %v3215_v37 = vadd.f32 %v3119_v33, %v2954_v49 }
 0x2bb   :  { %v3219_v56 = vadd.f32 %v3119_v33, %v2958_v53  ;;  %v3223_v1 = vadd.f32 %v3119_v33, %v2962_v60  ;;  %v3227_v0 = vadd.f32 %v3119_v33, %v2966_v2  ;;  %v3231_v9 = vadd.f32 %v3119_v33, %v2970_v8 }
 0x2bc   :  { %v3235_v18 = vadd.f32 %v3119_v33, %v2974_v14  ;;  %v3239_v49 = vadd.f32 %v3119_v33, %v2978_v20  ;;  %v3243_v53 = vadd.f32 %v3119_v33, %v2982_v26  ;;  %v3247_v60 = vadd.f32 %v3119_v33, %v2986_v32 }
 0x2bd   :  { %v3251_v2 = vadd.f32 %v3119_v33, %v2990_v38  ;;  %v3255_v8 = vadd.f32 %v3119_v33, %v2994_v44  ;;  %v3259_v14 = vadd.f32 %v3119_v33, %v2998_v52  ;;  %v3263_v20 = vadd.f32 %v3119_v33, %v3002_v61 }
 0x2be   :  { %v3267_v26 = vadd.f32 %v3119_v33, %v3006_v6  ;;  %v3271_v32 = vadd.f32 %v3119_v33, %v3010_v15  ;;  %v3275_v38 = vadd.f32 %v3119_v33, %v3014_v45  ;;  %v3279_v44 = vadd.f32 %v3119_v33, %v3018_v22 }
 0x2bf   :  { %v3283_v52 = vadd.f32 %v3119_v33, %v3022_v42  ;;  %v3287_v61 = vadd.f32 %v3119_v33, %v3026_v21  ;;  %v3291_v6 = vadd.f32 %v3119_v33, %v3030_v55  ;;  %v3295_v15 = vadd.f32 %v3119_v33, %v3034_v39 }
 0x2c0   :  { %v3299_v45 = vadd.f32 %v3119_v33, %v3038_v48  ;;  %v3303_v22 = vadd.f32 %v3119_v33, %v3042_v34  ;;  %v3307_v42 = vadd.f32 %v3119_v33, %v3046_v3  ;;  %v3311_v21 = vadd.f32 %v3119_v33, %v3050_v13 }
 0x2c1   :  { %v3315_v55 = vadd.f32 %v3119_v33, %v3054_v58  ;;  %v3319_v39 = vadd.f32 %v3119_v33, %v3058_v31  ;;  %v3323_v48 = vadd.f32 %v3119_v33, %v3062_v25  ;;  %v3327_v34 = vadd.f32 %v3119_v33, %v3066_v12  ;;  %v3886_v58 = vld [vmem:[#allocation21_spill] sm:$0xff] }
 0x2c2   :  { %v3331_v3 = vadd.f32 %v3119_v33, %v3070_v54  ;;  %v3335_v13 = vadd.f32 %v3119_v33, %v3074_v40  ;;  %v3339_v31 = vadd.f32 %v3119_v33, %v3886_v58  ;;  %v3355_v40 = vadd.f32 %v3119_v33, %v3094_v5 }
 0x2c3   :  { %3882 = vst [vmem:[#allocation16_spill] sm:$0xff] %v3319_v39  ;;  %3883 = vst [vmem:[#allocation17_spill] sm:$0xff] %v3323_v48  ;;  %v3888_v39 = vld [vmem:[#allocation2_spill] sm:$0xff]  ;;  %v3889_v48 = vld [vmem:[#allocation3_spill] sm:$0xff] }
 0x2c4   :  { %3884 = vst [vmem:[#allocation22_spill] sm:$0xff] %v3327_v34  ;;  %3885 = vst [vmem:[#allocation9_spill] sm:$0xff] %v3335_v13  ;;  %v3343_v25 = vadd.f32 %v3119_v33, %v3888_v39  ;;  %v3347_v12 = vadd.f32 %v3119_v33, %v3889_v48  ;;  %v3890_v34 = vld [vmem:[#allocation6_spill] sm:$0xff]  ;;  %v3892_v13 = vld [vmem:[#allocation7_spill] sm:$0xff]  ;;  %v3367_v48 = vadd.f32 %v3119_v33, %v3106_v23 }
 0x2c5   :  { %3887 = vst [vmem:[#allocation11_spill] sm:$0xff] %v3339_v31  ;;  %v3351_v54 = vadd.f32 %v3119_v33, %v3890_v34  ;;  %v3359_v58 = vadd.f32 %v3119_v33, %v3892_v13  ;;  %v3893_v31 = vld [vmem:[#allocation8_spill] sm:$0xff]  ;;  %v3371_v34 = vadd.f32 %v3119_v33, %v3110_v29  ;;  %v3379_v13 = vadd.f32 %v3119_v33, %v3123_v4 }
 0x2c6   :  { %v3363_v39 = vadd.f32 %v3119_v33, %v3893_v31  ;;  %v3383_v31 = vadd.f32 %v3119_v33, %v3127_v51  ;;  %v3387_v23 = vadd.f32 %v3119_v33, %v3131_v57  ;;  %v3391_v29 = vadd.f32 %v3119_v33, %v3135_v63 }
 0x2c7   :  { %3891 = vst [vmem:[#allocation13_spill] sm:$0xff] %v3351_v54  ;;  %v3894_v54 = vld [vmem:[#allocation10_spill] sm:$0xff]  ;;  %v3399_v4 = vadd.f32 %v3119_v33, %v3143_v11  ;;  %v3403_v51 = vadd.f32 %v3119_v33, %v3147_v17  ;;  %v3407_v57 = vadd.f32 %v3119_v33, %v3151_v16  ;;  %v1169_v63 = vmax.f32 %v3159_v47, 0.0 }
 0x2c8   :  { %v3375_v5 = vadd.f32 %v3119_v33, %v3894_v54  ;;  %3895 = vst [vmem:[#allocation15_spill] sm:$0xff] %v3387_v23  ;;  %3896 = vst [vmem:[#allocation23_spill] sm:$0xff] %v3391_v29  ;;  %v3395_v54 = vadd.f32 %v3119_v33, %v3139_v35  ;;  %v1168_v23 = vmax.f32 %v3155_v19, 0.0  ;;  %v1170_v29 = vmax.f32 %v3163_v36, 0.0 }
 0x2c9   :  { %3898 = vst [vmem:[#allocation25_spill] sm:$0xff] %v3399_v4  ;;  %3899 = vst [vmem:[#allocation4_spill] sm:$0xff] %v3403_v51  ;;  %v1171_v35 = vmax.f32 %v3167_v30, 0.0  ;;  %v1173_v11 = vmax.f32 %v3175_v62, 0.0  ;;  %v1174_v4 = vmax.f32 %v3179_v10, 0.0  ;;  %v1175_v17 = vmax.f32 %v3183_v7, 0.0 }
 0x2ca   :  { %3897 = vst [vmem:[#allocation24_spill] sm:$0xff] %v3395_v54  ;;  %v1172_v54 = vmax.f32 %v3171_v43, 0.0  ;;  %v1176_v51 = vmax.f32 %v3187_v41, 0.0  ;;  %v1177_v33 = vmax.f32 %v3191_v24, 0.0  ;;  %v1178_v16 = vmax.f32 %v3195_v27, 0.0  ;;  %1232 = vst.msk [vmem:[%s3733_s4] sm:$0xff] %vm562_vm0, %v1168_v23 }
 0x2cb   :  { %v1179_v19 = vmax.f32 %v3199_v46, 0.0  ;;  %1233 = vst.msk [vmem:[%s3733_s4 + $0x8] sm:$0xff] %vm562_vm0, %v1169_v63  ;;  %1234 = vst.msk [vmem:[%s3733_s4 + $0x10] sm:$0xff] %vm562_vm0, %v1170_v29  ;;  %v1180_v47 = vmax.f32 %v3203_v28, 0.0  ;;  %v1181_v36 = vmax.f32 %v3207_v50, 0.0  ;;  %v1182_v30 = vmax.f32 %v3211_v59, 0.0 }
 0x2cc   :  { %1235 = vst.msk [vmem:[%s3733_s4 + $0x18] sm:$0xff] %vm562_vm0, %v1171_v35  ;;  %v1183_v43 = vmax.f32 %v3215_v37, 0.0  ;;  %1236 = vst.msk [vmem:[%s3733_s4 + $0x20] sm:$0xff] %vm562_vm0, %v1172_v54  ;;  %v1184_v62 = vmax.f32 %v3219_v56, 0.0  ;;  %v1185_v10 = vmax.f32 %v3223_v1, 0.0  ;;  %v1186_v7 = vmax.f32 %v3227_v0, 0.0 }
 0x2cd   :  { %1237 = vst.msk [vmem:[%s3733_s4 + $0x28] sm:$0xff] %vm562_vm0, %v1173_v11  ;;  %1238 = vst.msk [vmem:[%s3733_s4 + $0x30] sm:$0xff] %vm562_vm0, %v1174_v4  ;;  %v1187_v41 = vmax.f32 %v3231_v9, 0.0  ;;  %v1188_v24 = vmax.f32 %v3235_v18, 0.0  ;;  %v1189_v27 = vmax.f32 %v3239_v49, 0.0  ;;  %v1190_v46 = vmax.f32 %v3243_v53, 0.0 }
 0x2ce   :  { %1239 = vst.msk [vmem:[%s3733_s4 + $0x38] sm:$0xff] %vm562_vm0, %v1175_v17  ;;  %1240 = vst.msk [vmem:[%s3733_s4 + $0x40] sm:$0xff] %vm562_vm0, %v1176_v51  ;;  %v1191_v28 = vmax.f32 %v3247_v60, 0.0  ;;  %v1192_v50 = vmax.f32 %v3251_v2, 0.0  ;;  %v1193_v59 = vmax.f32 %v3255_v8, 0.0  ;;  %v1194_v37 = vmax.f32 %v3259_v14, 0.0 }
 0x2cf   :  { %1241 = vst.msk [vmem:[%s3733_s4 + $0x48] sm:$0xff] %vm562_vm0, %v1177_v33  ;;  %1242 = vst.msk [vmem:[%s3733_s4 + $0x50] sm:$0xff] %vm562_vm0, %v1178_v16  ;;  %v1195_v56 = vmax.f32 %v3263_v20, 0.0  ;;  %v1196_v1 = vmax.f32 %v3267_v26, 0.0  ;;  %v1197_v0 = vmax.f32 %v3271_v32, 0.0  ;;  %v1198_v9 = vmax.f32 %v3275_v38, 0.0 }
 0x2d0   :  { %1243 = vst.msk [vmem:[%s3733_s4 + $0x58] sm:$0xff] %vm562_vm0, %v1179_v19  ;;  %1244 = vst.msk [vmem:[%s3733_s4 + $0x60] sm:$0xff] %vm562_vm0, %v1180_v47  ;;  %v1199_v18 = vmax.f32 %v3279_v44, 0.0  ;;  %v1200_v49 = vmax.f32 %v3283_v52, 0.0  ;;  %v1201_v53 = vmax.f32 %v3287_v61, 0.0  ;;  %v1202_v60 = vmax.f32 %v3291_v6, 0.0 }
 0x2d1   :  { %1245 = vst.msk [vmem:[%s3733_s4 + $0x68] sm:$0xff] %vm562_vm0, %v1181_v36  ;;  %1246 = vst.msk [vmem:[%s3733_s4 + $0x70] sm:$0xff] %vm562_vm0, %v1182_v30  ;;  %v1203_v2 = vmax.f32 %v3295_v15, 0.0  ;;  %v1204_v8 = vmax.f32 %v3299_v45, 0.0  ;;  %v1205_v14 = vmax.f32 %v3303_v22, 0.0  ;;  %v1206_v20 = vmax.f32 %v3307_v42, 0.0 }
 0x2d2   :  { %1247 = vst.msk [vmem:[%s3733_s4 + $0x78] sm:$0xff] %vm562_vm0, %v1183_v43  ;;  %1248 = vst.msk [vmem:[%s3733_s4 + $0x80] sm:$0xff] %vm562_vm0, %v1184_v62  ;;  %v1207_v26 = vmax.f32 %v3311_v21, 0.0  ;;  %v1208_v32 = vmax.f32 %v3315_v55, 0.0  ;;  %v3900_v38 = vld [vmem:[#allocation16_spill] sm:$0xff]  ;;  %v3901_v52 = vld [vmem:[#allocation17_spill] sm:$0xff] }
 0x2d3   :  { %1249 = vst.msk [vmem:[%s3733_s4 + $0x88] sm:$0xff] %vm562_vm0, %v1185_v10  ;;  %1250 = vst.msk [vmem:[%s3733_s4 + $0x90] sm:$0xff] %vm562_vm0, %v1186_v7  ;;  %v1209_v44 = vmax.f32 %v3900_v38, 0.0  ;;  %v1210_v61 = vmax.f32 %v3901_v52, 0.0  ;;  %v3902_v6 = vld [vmem:[#allocation22_spill] sm:$0xff]  ;;  %v1212_v45 = vmax.f32 %v3331_v3, 0.0 }
 0x2d4   :  { %1251 = vst.msk [vmem:[%s3733_s4 + $0x98] sm:$0xff] %vm562_vm0, %v1187_v41  ;;  %1252 = vst.msk [vmem:[%s3733_s4 + $0xa0] sm:$0xff] %vm562_vm0, %v1188_v24  ;;  %v1211_v15 = vmax.f32 %v3902_v6, 0.0  ;;  %v3903_v22 = vld [vmem:[#allocation9_spill] sm:$0xff]  ;;  %v3904_v21 = vld [vmem:[#allocation11_spill] sm:$0xff]  ;;  %v1215_v23 = vmax.f32 %v3343_v25, 0.0 }
 0x2d5   :  { %1253 = vst.msk [vmem:[%s3733_s4 + $0xa8] sm:$0xff] %vm562_vm0, %v1189_v27  ;;  %1254 = vst.msk [vmem:[%s3733_s4 + $0xb0] sm:$0xff] %vm562_vm0, %v1190_v46  ;;  %v1213_v42 = vmax.f32 %v3903_v22, 0.0  ;;  %v1214_v55 = vmax.f32 %v3904_v21, 0.0  ;;  %v1216_v3 = vmax.f32 %v3347_v12, 0.0  ;;  %v3905_v25 = vld [vmem:[#allocation13_spill] sm:$0xff] }
 0x2d6   :  { %1255 = vst.msk [vmem:[%s3733_s4 + $0xb8] sm:$0xff] %vm562_vm0, %v1191_v28  ;;  %1256 = vst.msk [vmem:[%s3733_s4 + $0xc0] sm:$0xff] %vm562_vm0, %v1192_v50  ;;  %v1217_v29 = vmax.f32 %v3905_v25, 0.0  ;;  %v1218_v54 = vmax.f32 %v3355_v40, 0.0  ;;  %v1219_v4 = vmax.f32 %v3359_v58, 0.0  ;;  %v1220_v12 = vmax.f32 %v3363_v39, 0.0 }
 0x2d7   :  { %1257 = vst.msk [vmem:[%s3733_s4 + $0xc8] sm:$0xff] %vm562_vm0, %v1193_v59  ;;  %1258 = vst.msk [vmem:[%s3733_s4 + $0xd0] sm:$0xff] %vm562_vm0, %v1194_v37  ;;  %v1221_v40 = vmax.f32 %v3367_v48, 0.0  ;;  %v1222_v58 = vmax.f32 %v3371_v34, 0.0  ;;  %v1223_v51 = vmax.f32 %v3375_v5, 0.0  ;;  %v1224_v39 = vmax.f32 %v3379_v13, 0.0 }
 0x2d8   :  { %1259 = vst.msk [vmem:[%s3733_s4 + $0xd8] sm:$0xff] %vm562_vm0, %v1195_v56  ;;  %1260 = vst.msk [vmem:[%s3733_s4 + $0xe0] sm:$0xff] %vm562_vm0, %v1196_v1  ;;  %v1225_v48 = vmax.f32 %v3383_v31, 0.0  ;;  %v3906_v34 = vld [vmem:[#allocation15_spill] sm:$0xff]  ;;  %v3908_v13 = vld [vmem:[#allocation24_spill] sm:$0xff]  ;;  %v1231_v19 = vmax.f32 %v3407_v57, 0.0 }
 0x2d9   :  { %1261 = vst.msk [vmem:[%s3733_s4 + $0xe8] sm:$0xff] %vm562_vm0, %v1197_v0  ;;  %1262 = vst.msk [vmem:[%s3733_s4 + $0xf0] sm:$0xff] %vm562_vm0, %v1198_v9  ;;  %v1226_v5 = vmax.f32 %v3906_v34, 0.0  ;;  %v3907_v63 = vld [vmem:[#allocation23_spill] sm:$0xff]  ;;  %v1228_v31 = vmax.f32 %v3908_v13, 0.0  ;;  %v3909_v11 = vld [vmem:[#allocation25_spill] sm:$0xff] }
 0x2da   :  { %1263 = vst.msk [vmem:[%s3733_s4 + $0xf8] sm:$0xff] %vm562_vm0, %v1199_v18  ;;  %1264 = vst.msk [vmem:[%s3733_s4 + $0x100] sm:$0xff] %vm562_vm0, %v1200_v49  ;;  %v1227_v35 = vmax.f32 %v3907_v63, 0.0  ;;  %v1229_v17 = vmax.f32 %v3909_v11, 0.0  ;;  %v3910_v33 = vld [vmem:[#allocation4_spill] sm:$0xff] }
 0x2db   :  { %1265 = vst.msk [vmem:[%s3733_s4 + $0x108] sm:$0xff] %vm562_vm0, %v1201_v53  ;;  %1266 = vst.msk [vmem:[%s3733_s4 + $0x110] sm:$0xff] %vm562_vm0, %v1202_v60  ;;  %v1230_v16 = vmax.f32 %v3910_v33, 0.0 }
 0x2dc   :  { %1267 = vst.msk [vmem:[%s3733_s4 + $0x118] sm:$0xff] %vm562_vm0, %v1203_v2  ;;  %1268 = vst.msk [vmem:[%s3733_s4 + $0x120] sm:$0xff] %vm562_vm0, %v1204_v8 }
 0x2dd   :  { %1269 = vst.msk [vmem:[%s3733_s4 + $0x128] sm:$0xff] %vm562_vm0, %v1205_v14  ;;  %1270 = vst.msk [vmem:[%s3733_s4 + $0x130] sm:$0xff] %vm562_vm0, %v1206_v20 }
 0x2de   :  { %1271 = vst.msk [vmem:[%s3733_s4 + $0x138] sm:$0xff] %vm562_vm0, %v1207_v26  ;;  %1272 = vst.msk [vmem:[%s3733_s4 + $0x140] sm:$0xff] %vm562_vm0, %v1208_v32 }
 0x2df   :  { %1273 = vst.msk [vmem:[%s3733_s4 + $0x148] sm:$0xff] %vm562_vm0, %v1209_v44  ;;  %1274 = vst.msk [vmem:[%s3733_s4 + $0x150] sm:$0xff] %vm562_vm0, %v1210_v61 }
 0x2e0   :  { %1275 = vst.msk [vmem:[%s3733_s4 + $0x158] sm:$0xff] %vm562_vm0, %v1211_v15  ;;  %1276 = vst.msk [vmem:[%s3733_s4 + $0x160] sm:$0xff] %vm562_vm0, %v1212_v45 }
 0x2e1   :  { %1277 = vst.msk [vmem:[%s3733_s4 + $0x168] sm:$0xff] %vm562_vm0, %v1213_v42  ;;  %1278 = vst.msk [vmem:[%s3733_s4 + $0x170] sm:$0xff] %vm562_vm0, %v1214_v55 }
 0x2e2   :  { %1279 = vst.msk [vmem:[%s3733_s4 + $0x178] sm:$0xff] %vm562_vm0, %v1215_v23  ;;  %1280 = vst.msk [vmem:[%s3733_s4 + $0x180] sm:$0xff] %vm562_vm0, %v1216_v3 }
 0x2e3   :  { %1281 = vst.msk [vmem:[%s3733_s4 + $0x188] sm:$0xff] %vm562_vm0, %v1217_v29  ;;  %1282 = vst.msk [vmem:[%s3733_s4 + $0x190] sm:$0xff] %vm562_vm0, %v1218_v54 }
 0x2e4   :  { %1283 = vst.msk [vmem:[%s3733_s4 + $0x198] sm:$0xff] %vm562_vm0, %v1219_v4  ;;  %1284 = vst.msk [vmem:[%s3733_s4 + $0x1a0] sm:$0xff] %vm562_vm0, %v1220_v12 }
 0x2e5   :  { %1285 = vst.msk [vmem:[%s3733_s4 + $0x1a8] sm:$0xff] %vm562_vm0, %v1221_v40  ;;  %1286 = vst.msk [vmem:[%s3733_s4 + $0x1b0] sm:$0xff] %vm562_vm0, %v1222_v58 }
 0x2e6   :  { %1287 = vst.msk [vmem:[%s3733_s4 + $0x1b8] sm:$0xff] %vm562_vm0, %v1223_v51  ;;  %1288 = vst.msk [vmem:[%s3733_s4 + $0x1c0] sm:$0xff] %vm562_vm0, %v1224_v39 }
 0x2e7   :  { %1289 = vst.msk [vmem:[%s3733_s4 + $0x1c8] sm:$0xff] %vm562_vm0, %v1225_v48  ;;  %1290 = vst.msk [vmem:[%s3733_s4 + $0x1d0] sm:$0xff] %vm562_vm0, %v1226_v5 }
 0x2e8   :  { %1291 = vst.msk [vmem:[%s3733_s4 + $0x1d8] sm:$0xff] %vm562_vm0, %v1227_v35  ;;  %1292 = vst.msk [vmem:[%s3733_s4 + $0x1e0] sm:$0xff] %vm562_vm0, %v1228_v31 }
 0x2e9   :  { %1293 = vst.msk [vmem:[%s3733_s4 + $0x1e8] sm:$0xff] %vm562_vm0, %v1229_v17  ;;  %1294 = vst.msk [vmem:[%s3733_s4 + $0x1f0] sm:$0xff] %vm562_vm0, %v1230_v16 }
 0x2ea   :  { %1295 = vst.msk [vmem:[%s3733_s4 + $0x1f8] sm:$0xff] %vm562_vm0, %v1231_v19 }

// kernel: generator_forward.8
= control target key start
LH: loop header
LB: loop body
LE: loop exit
PB: predicated region body
PF: predicated region fallthrough
CT: control target
= control target key end

     0   :  { %vm90_vm0 = vcmask 588800   ;;  %vm668_vm1 = vcmask 64512   ;;  %s3801_s1 = inlined_call_operand.vmem [shape: f32[72,8], index: 1, kind: input, shape index: {}]   ;;  %s3802_s0 = inlined_call_operand.vmem [shape: f32[512,72], index: 0, kind: input, shape index: {}]   ;;  %s3803_s2 = inlined_call_operand.vmem [shape: f32[1,8], index: 2, kind: input, shape index: {}]   ;;  %s3804_s3 = inlined_call_operand.vmem [shape: f32[1,8], index: 3, kind: input, shape index: {}]   ;;  %s3805_s4 = inlined_call_operand.vmem [shape: f32[512,8], index: 4, kind: output, shape index: {}]  }
   0x1   :  { %v81_v0 = vld [vmem:[%s3801_s1] sm:$0xff]  ;;  %v82_v1 = vld [vmem:[%s3801_s1 + $0x8] sm:$0xff]  ;;  %v83_v2 = vld [vmem:[%s3801_s1 + $0x10] sm:$0xff] }
   0x2   :  { %v1659_v3 = vpack.c.bf16 %v82_v1, %v81_v0  ;;  %v84_v4 = vld [vmem:[%s3801_s1 + $0x18] sm:$0xff]  ;;  %v85_v6 = vld [vmem:[%s3801_s1 + $0x20] sm:$0xff]  ;;  %v86_v7 = vld [vmem:[%s3801_s1 + $0x28] sm:$0xff] }
   0x3   :  { %v1663_v5 = vpack.c.bf16 %v84_v4, %v83_v2  ;;  %v17_v8 = vld [vmem:[%s3802_s0] sm:$0xff]  ;;  %v1667_v9 = vpack.c.bf16 %v86_v7, %v85_v6  ;;  %v87_v10 = vld [vmem:[%s3801_s1 + $0x30] sm:$0xff]  ;;  %v88_v11 = vld [vmem:[%s3801_s1 + $0x38] sm:$0xff] }
   0x4   :  { %1660 = vmatprep.subr.bf16.mxu0 %v1659_v3  ;;  %1675 = vmatprep.subr.bf16.mxu1 %v1659_v3  ;;  %v1671_v12 = vpack.c.bf16 %v88_v11, %v87_v10  ;;  %v49_v13 = vld [vmem:[%s3802_s0 + $0x100] sm:$0xff]  ;;  %v18_v15 = vld [vmem:[%s3802_s0 + $0x8] sm:$0xff]  ;;  %v19_v16 = vld [vmem:[%s3802_s0 + $0x10] sm:$0xff] }
   0x5   :  { %1662 = vmatpush3.bf16.msra.mxu0 %v1659_v3  ;;  %1563 = vmatprep.mubr.msk.f32.mxu0 %vm90_vm0, %v17_v8  ;;  %v89_v14 = vld [vmem:[%s3801_s1 + $0x40] sm:$0xff]  ;;  %v50_v17 = vld [vmem:[%s3802_s0 + $0x108] sm:$0xff]  ;;  %v51_v18 = vld [vmem:[%s3802_s0 + $0x110] sm:$0xff] }
   0x6   :  { %1664 = vmatprep.subr.bf16.mxu0 %v1663_v5  ;;  %1680 = vmatpush3.bf16.msra.mxu1 %v1659_v3  ;;  %v20_v19 = vld [vmem:[%s3802_s0 + $0x18] sm:$0xff]  ;;  %v21_v20 = vld [vmem:[%s3802_s0 + $0x20] sm:$0xff]  ;;  %v22_v23 = vld [vmem:[%s3802_s0 + $0x28] sm:$0xff] }
   0x7   :  { %1676 = vmatprep.subr.bf16.mxu1 %v1663_v5  ;;  %1611 = vmatprep.mubr.msk.f32.mxu1 %vm90_vm0, %v49_v13  ;;  %v52_v21 = vld [vmem:[%s3802_s0 + $0x118] sm:$0xff]  ;;  %v53_v22 = vld [vmem:[%s3802_s0 + $0x120] sm:$0xff]  ;;  %v23_v24 = vld [vmem:[%s3802_s0 + $0x30] sm:$0xff] }
   0x8   :  { %v54_v25 = vld [vmem:[%s3802_s0 + $0x128] sm:$0xff]  ;;  %v55_v26 = vld [vmem:[%s3802_s0 + $0x130] sm:$0xff]  ;;  %v24_v27 = vld [vmem:[%s3802_s0 + $0x38] sm:$0xff] }
   0x9   :  { %1666 = vmatpush3.bf16.msra.mxu0 %v1663_v5  ;;  %v25_v28 = vld [vmem:[%s3802_s0 + $0x40] sm:$0xff]  ;;  %v56_v29 = vld [vmem:[%s3802_s0 + $0x138] sm:$0xff]  ;;  %v26_v31 = vld [vmem:[%s3802_s0 + $0x48] sm:$0xff] }
   0xa   :  { %1668 = vmatprep.subr.bf16.mxu0 %v1667_v9  ;;  %1681 = vmatpush3.bf16.msra.mxu1 %v1663_v5  ;;  %v57_v30 = vld [vmem:[%s3802_s0 + $0x140] sm:$0xff]  ;;  %v27_v32 = vld [vmem:[%s3802_s0 + $0x50] sm:$0xff]  ;;  %v58_v33 = vld [vmem:[%s3802_s0 + $0x148] sm:$0xff] }
   0xb   :  { %1677 = vmatprep.subr.bf16.mxu1 %v1667_v9  ;;  %v59_v34 = vld [vmem:[%s3802_s0 + $0x150] sm:$0xff]  ;;  %v28_v35 = vld [vmem:[%s3802_s0 + $0x58] sm:$0xff]  ;;  %v29_v36 = vld [vmem:[%s3802_s0 + $0x60] sm:$0xff] }
   0xc   :  { %v60_v37 = vld [vmem:[%s3802_s0 + $0x158] sm:$0xff]  ;;  %v61_v38 = vld [vmem:[%s3802_s0 + $0x160] sm:$0xff]  ;;  %v30_v39 = vld [vmem:[%s3802_s0 + $0x68] sm:$0xff] }
   0xd   :  { %1670 = vmatpush3.bf16.msra.mxu0 %v1667_v9  ;;  %v31_v40 = vld [vmem:[%s3802_s0 + $0x70] sm:$0xff]  ;;  %v62_v41 = vld [vmem:[%s3802_s0 + $0x168] sm:$0xff]  ;;  %v32_v43 = vld [vmem:[%s3802_s0 + $0x78] sm:$0xff] }
   0xe   :  { %1672 = vmatprep.subr.bf16.mxu0 %v1671_v12  ;;  %1682 = vmatpush3.bf16.msra.mxu1 %v1667_v9  ;;  %v63_v42 = vld [vmem:[%s3802_s0 + $0x170] sm:$0xff]  ;;  %v33_v44 = vld [vmem:[%s3802_s0 + $0x80] sm:$0xff]  ;;  %v64_v45 = vld [vmem:[%s3802_s0 + $0x178] sm:$0xff] }
   0xf   :  { %1678 = vmatprep.subr.bf16.mxu1 %v1671_v12  ;;  %v65_v46 = vld [vmem:[%s3802_s0 + $0x180] sm:$0xff]  ;;  %v34_v47 = vld [vmem:[%s3802_s0 + $0x88] sm:$0xff]  ;;  %v35_v48 = vld [vmem:[%s3802_s0 + $0x90] sm:$0xff] }
  0x10   :  { %v66_v49 = vld [vmem:[%s3802_s0 + $0x188] sm:$0xff]  ;;  %v67_v50 = vld [vmem:[%s3802_s0 + $0x190] sm:$0xff]  ;;  %v36_v51 = vld [vmem:[%s3802_s0 + $0x98] sm:$0xff] }
  0x11   :  { %1674 = vmatpush3.bf16.msra.mxu0 %v1671_v12  ;;  %v37_v52 = vld [vmem:[%s3802_s0 + $0xa0] sm:$0xff]  ;;  %v68_v53 = vld [vmem:[%s3802_s0 + $0x198] sm:$0xff]  ;;  %v38_v55 = vld [vmem:[%s3802_s0 + $0xa8] sm:$0xff] }
  0x12   :  { %1561 = vmatprep.subr.mxu0 %v89_v14  ;;  %1683 = vmatpush3.bf16.msra.mxu1 %v1671_v12  ;;  %v69_v54 = vld [vmem:[%s3802_s0 + $0x1a0] sm:$0xff]  ;;  %v39_v56 = vld [vmem:[%s3802_s0 + $0xb0] sm:$0xff]  ;;  %v70_v57 = vld [vmem:[%s3802_s0 + $0x1a8] sm:$0xff] }
  0x13   :  { %1679 = vmatprep.subr.mxu1 %v89_v14  ;;  %v71_v58 = vld [vmem:[%s3802_s0 + $0x1b0] sm:$0xff]  ;;  %v40_v59 = vld [vmem:[%s3802_s0 + $0xb8] sm:$0xff]  ;;  %v41_v60 = vld [vmem:[%s3802_s0 + $0xc0] sm:$0xff] }
  0x14   :  { %v72_v61 = vld [vmem:[%s3802_s0 + $0x1b8] sm:$0xff]  ;;  %v73_v62 = vld [vmem:[%s3802_s0 + $0x1c0] sm:$0xff]  ;;  %v42_v63 = vld [vmem:[%s3802_s0 + $0xc8] sm:$0xff] }
  0x15   :  { %1562 = vmatpush3.msra.mxu0 %v89_v14  ;;  %v43_v0 = vld [vmem:[%s3802_s0 + $0xd0] sm:$0xff]  ;;  %v74_v1 = vld [vmem:[%s3802_s0 + $0x1c8] sm:$0xff]  ;;  %v44_v3 = vld [vmem:[%s3802_s0 + $0xd8] sm:$0xff] }
  0x16   :  { %1564 = vmatmul.mubr.msk.f32.vlgmr.msra.gmra.mrb[0].mxu0 %vm90_vm0, %v18_v15  ;;  %1684 = vmatpush3.msra.mxu1 %v89_v14  ;;  %v75_v2 = vld [vmem:[%s3802_s0 + $0x1d0] sm:$0xff]  ;;  %v45_v4 = vld [vmem:[%s3802_s0 + $0xe0] sm:$0xff]  ;;  %v76_v5 = vld [vmem:[%s3802_s0 + $0x1d8] sm:$0xff] }
  0x17   :  { %1566 = vmatprep.mubr.msk.f32.mxu0 %vm90_vm0, %v19_v16  ;;  %1612 = vmatmul.mubr.msk.f32.vlgmr.msra.gmra.mrb[0].mxu1 %vm90_vm0, %v50_v17  ;;  %v77_v6 = vld [vmem:[%s3802_s0 + $0x1e0] sm:$0xff]  ;;  %v46_v7 = vld [vmem:[%s3802_s0 + $0xe8] sm:$0xff]  ;;  %v47_v8 = vld [vmem:[%s3802_s0 + $0xf0] sm:$0xff] }
  0x18   :  { %1614 = vmatprep.mubr.msk.f32.mxu1 %vm90_vm0, %v51_v18  ;;  %v78_v9 = vld [vmem:[%s3802_s0 + $0x1e8] sm:$0xff]  ;;  %v79_v10 = vld [vmem:[%s3802_s0 + $0x1f0] sm:$0xff]  ;;  %v48_v11 = vld [vmem:[%s3802_s0 + $0xf8] sm:$0xff] }
  0x19   :  { %v80_v12 = vld [vmem:[%s3802_s0 + $0x1f8] sm:$0xff] }
  0x1a   :  { %1567 = vmatmul.mubr.msk.f32.gmra.mrb[2].mxu0 %vm90_vm0, %v20_v19 }
  0x1b   :  { %1569 = vmatprep.mubr.msk.f32.mxu0 %vm90_vm0, %v21_v20  ;;  %1615 = vmatmul.mubr.msk.f32.gmra.mrb[2].mxu1 %vm90_vm0, %v52_v21 }
  0x1c   :  { %1617 = vmatprep.mubr.msk.f32.mxu1 %vm90_vm0, %v53_v22 }
  0x1e   :  { %1570 = vmatmul.mubr.msk.f32.gmra.mrb[4].mxu0 %vm90_vm0, %v22_v23 }
  0x1f   :  { %1572 = vmatprep.mubr.msk.f32.mxu0 %vm90_vm0, %v23_v24  ;;  %1618 = vmatmul.mubr.msk.f32.gmra.mrb[4].mxu1 %vm90_vm0, %v54_v25 }
  0x20   :  { %1620 = vmatprep.mubr.msk.f32.mxu1 %vm90_vm0, %v55_v26 }
  0x22   :  { %1573 = vmatmul.mubr.msk.f32.gmra.mrb[6].mxu0 %vm90_vm0, %v24_v27 }
  0x23   :  { %1575 = vmatprep.mubr.msk.f32.mxu0 %vm90_vm0, %v25_v28  ;;  %1621 = vmatmul.mubr.msk.f32.gmra.mrb[6].mxu1 %vm90_vm0, %v56_v29 }
  0x24   :  { %1623 = vmatprep.mubr.msk.f32.mxu1 %vm90_vm0, %v57_v30 }
  0x26   :  { %1576 = vmatmul.mubr.msk.f32.gmra.mrb[8].mxu0 %vm90_vm0, %v26_v31 }
  0x27   :  { %1578 = vmatprep.mubr.msk.f32.mxu0 %vm90_vm0, %v27_v32  ;;  %1624 = vmatmul.mubr.msk.f32.gmra.mrb[8].mxu1 %vm90_vm0, %v58_v33 }
  0x28   :  { %1626 = vmatprep.mubr.msk.f32.mxu1 %vm90_vm0, %v59_v34 }
  0x2a   :  { %1579 = vmatmul.mubr.msk.f32.gmra.mrb[10].mxu0 %vm90_vm0, %v28_v35 }
  0x2b   :  { %1581 = vmatprep.mubr.msk.f32.mxu0 %vm90_vm0, %v29_v36  ;;  %1627 = vmatmul.mubr.msk.f32.gmra.mrb[10].mxu1 %vm90_vm0, %v60_v37 }
  0x2c   :  { %1629 = vmatprep.mubr.msk.f32.mxu1 %vm90_vm0, %v61_v38 }
  0x2e   :  { %1582 = vmatmul.mubr.msk.f32.gmra.mrb[12].mxu0 %vm90_vm0, %v30_v39 }
  0x2f   :  { %1584 = vmatprep.mubr.msk.f32.mxu0 %vm90_vm0, %v31_v40  ;;  %1630 = vmatmul.mubr.msk.f32.gmra.mrb[12].mxu1 %vm90_vm0, %v62_v41 }
  0x30   :  { %1632 = vmatprep.mubr.msk.f32.mxu1 %vm90_vm0, %v63_v42 }
  0x32   :  { %1585 = vmatmul.mubr.msk.f32.gmra.mrb[14].mxu0 %vm90_vm0, %v32_v43 }
  0x33   :  { %1587 = vmatprep.mubr.msk.f32.mxu0 %vm90_vm0, %v33_v44  ;;  %1633 = vmatmul.mubr.msk.f32.gmra.mrb[14].mxu1 %vm90_vm0, %v64_v45 }
  0x34   :  { %1635 = vmatprep.mubr.msk.f32.mxu1 %vm90_vm0, %v65_v46 }
  0x36   :  { %1588 = vmatmul.mubr.msk.f32.gmra.mrb[16].mxu0 %vm90_vm0, %v34_v47 }
  0x37   :  { %1590 = vmatprep.mubr.msk.f32.mxu0 %vm90_vm0, %v35_v48  ;;  %1636 = vmatmul.mubr.msk.f32.gmra.mrb[16].mxu1 %vm90_vm0, %v66_v49 }
  0x38   :  { %1638 = vmatprep.mubr.msk.f32.mxu1 %vm90_vm0, %v67_v50 }
  0x3a   :  { %1591 = vmatmul.mubr.msk.f32.gmra.mrb[18].mxu0 %vm90_vm0, %v36_v51 }
  0x3b   :  { %1593 = vmatprep.mubr.msk.f32.mxu0 %vm90_vm0, %v37_v52  ;;  %1639 = vmatmul.mubr.msk.f32.gmra.mrb[18].mxu1 %vm90_vm0, %v68_v53 }
  0x3c   :  { %1641 = vmatprep.mubr.msk.f32.mxu1 %vm90_vm0, %v69_v54 }
  0x3e   :  { %1594 = vmatmul.mubr.msk.f32.gmra.mrb[20].mxu0 %vm90_vm0, %v38_v55 }
  0x3f   :  { %1596 = vmatprep.mubr.msk.f32.mxu0 %vm90_vm0, %v39_v56  ;;  %1642 = vmatmul.mubr.msk.f32.gmra.mrb[20].mxu1 %vm90_vm0, %v70_v57 }
  0x40   :  { %1644 = vmatprep.mubr.msk.f32.mxu1 %vm90_vm0, %v71_v58 }
  0x42   :  { %1597 = vmatmul.mubr.msk.f32.gmra.mrb[22].mxu0 %vm90_vm0, %v40_v59 }
  0x43   :  { %1599 = vmatprep.mubr.msk.f32.mxu0 %vm90_vm0, %v41_v60  ;;  %1645 = vmatmul.mubr.msk.f32.gmra.mrb[22].mxu1 %vm90_vm0, %v72_v61 }
  0x44   :  { %1647 = vmatprep.mubr.msk.f32.mxu1 %vm90_vm0, %v73_v62 }
  0x46   :  { %1600 = vmatmul.mubr.msk.f32.gmra.mrb[24].mxu0 %vm90_vm0, %v42_v63 }
  0x47   :  { %1602 = vmatprep.mubr.msk.f32.mxu0 %vm90_vm0, %v43_v0  ;;  %1648 = vmatmul.mubr.msk.f32.gmra.mrb[24].mxu1 %vm90_vm0, %v74_v1 }
  0x48   :  { %1650 = vmatprep.mubr.msk.f32.mxu1 %vm90_vm0, %v75_v2 }
  0x4a   :  { %1603 = vmatmul.mubr.msk.f32.gmra.mrb[26].mxu0 %vm90_vm0, %v44_v3 }
  0x4b   :  { %1605 = vmatprep.mubr.msk.f32.mxu0 %vm90_vm0, %v45_v4  ;;  %1651 = vmatmul.mubr.msk.f32.gmra.mrb[26].mxu1 %vm90_vm0, %v76_v5 }
  0x4c   :  { %1653 = vmatprep.mubr.msk.f32.mxu1 %vm90_vm0, %v77_v6 }
  0x4e   :  { %1606 = vmatmul.mubr.msk.f32.gmra.mrb[28].mxu0 %vm90_vm0, %v46_v7 }
  0x4f   :  { %1608 = vmatprep.mubr.msk.f32.mxu0 %vm90_vm0, %v47_v8  ;;  %1654 = vmatmul.mubr.msk.f32.gmra.mrb[28].mxu1 %vm90_vm0, %v78_v9 }
  0x50   :  { %1656 = vmatprep.mubr.msk.f32.mxu1 %vm90_vm0, %v79_v10 }
  0x52   :  { %1609 = vmatmul.mubr.msk.f32.gmra.mrb[30].mxu0 %vm90_vm0, %v48_v11 }
  0x53   :  { %1657 = vmatmul.mubr.msk.f32.gmra.mrb[30].mxu1 %vm90_vm0, %v80_v12 }
  0xe9   :  { %v1995_v13 = vpop.f32.mrb[0].mxu0 }
  0xea   :  { %v670_v14 = vsel %vm668_vm1, %v1995_v13, 0.0  ;;  %v1999_v15 = vpop.f32.mrb[1].mxu0  ;;  %v2001_v16 = vpop.f32.mrb[0].mxu1 }
  0xeb   :  { %v669_v17 = vsel %vm668_vm1, %v1999_v15, 0.0  ;;  %v2005_v18 = vpop.f32.mrb[1].mxu1 }
  0xec   :  { %v671_v19 = vadd.f32 %v670_v14, %v669_v17 }
  0xed   :  { %v2007_v20 = vpop.f32.mrb[2].mxu0 }
  0xee   :  { %v2009_v21 = vpop.f32.mrb[3].mxu0  ;;  %v2011_v22 = vpop.f32.mrb[2].mxu1  ;;  %v674_v26 = vsel %vm668_vm1, %v2007_v20, 0.0 }
  0xef   :  { %v672_v23 = vsel %vm668_vm1, %v2009_v21, 0.0  ;;  %v2015_v24 = vpop.f32.mrb[3].mxu1 }
  0xf0   :  { %v673_v25 = vadd.f32 %v672_v23, %v671_v19 }
  0xf1   :  { %v2019_v27 = vpop.f32.mrb[4].mxu0 }
  0xf2   :  { %v2021_v28 = vpop.f32.mrb[5].mxu0  ;;  %v675_v29 = vadd.f32 %v674_v26, %v673_v25  ;;  %v2023_v30 = vpop.f32.mrb[4].mxu1  ;;  %v678_v34 = vsel %vm668_vm1, %v2019_v27, 0.0 }
  0xf3   :  { %v676_v31 = vsel %vm668_vm1, %v2021_v28, 0.0  ;;  %v2027_v32 = vpop.f32.mrb[5].mxu1 }
  0xf4   :  { %v677_v33 = vadd.f32 %v676_v31, %v675_v29 }
  0xf5   :  { %v2031_v35 = vpop.f32.mrb[6].mxu0 }
  0xf6   :  { %v2033_v36 = vpop.f32.mrb[7].mxu0  ;;  %v679_v37 = vadd.f32 %v678_v34, %v677_v33  ;;  %v2035_v38 = vpop.f32.mrb[6].mxu1  ;;  %v682_v42 = vsel %vm668_vm1, %v2031_v35, 0.0 }
  0xf7   :  { %v680_v39 = vsel %vm668_vm1, %v2033_v36, 0.0  ;;  %v2039_v40 = vpop.f32.mrb[7].mxu1 }
  0xf8   :  { %v681_v41 = vadd.f32 %v680_v39, %v679_v37 }
  0xf9   :  { %v2043_v43 = vpop.f32.mrb[8].mxu0 }
  0xfa   :  { %v2045_v44 = vpop.f32.mrb[9].mxu0  ;;  %v683_v45 = vadd.f32 %v682_v42, %v681_v41  ;;  %v2047_v46 = vpop.f32.mrb[8].mxu1  ;;  %v686_v50 = vsel %vm668_vm1, %v2043_v43, 0.0 }
  0xfb   :  { %v684_v47 = vsel %vm668_vm1, %v2045_v44, 0.0  ;;  %v2051_v48 = vpop.f32.mrb[9].mxu1 }
  0xfc   :  { %v685_v49 = vadd.f32 %v684_v47, %v683_v45 }
  0xfd   :  { %v2055_v51 = vpop.f32.mrb[10].mxu0 }
  0xfe   :  { %v2057_v52 = vpop.f32.mrb[11].mxu0  ;;  %v687_v53 = vadd.f32 %v686_v50, %v685_v49  ;;  %v2059_v54 = vpop.f32.mrb[10].mxu1  ;;  %v690_v58 = vsel %vm668_vm1, %v2055_v51, 0.0 }
  0xff   :  { %v688_v55 = vsel %vm668_vm1, %v2057_v52, 0.0  ;;  %v2063_v56 = vpop.f32.mrb[11].mxu1 }
 0x100   :  { %v689_v57 = vadd.f32 %v688_v55, %v687_v53 }
 0x101   :  { %v2067_v59 = vpop.f32.mrb[12].mxu0 }
 0x102   :  { %v2069_v60 = vpop.f32.mrb[13].mxu0  ;;  %v691_v61 = vadd.f32 %v690_v58, %v689_v57  ;;  %v2071_v62 = vpop.f32.mrb[12].mxu1  ;;  %v694_v2 = vsel %vm668_vm1, %v2067_v59, 0.0 }
 0x103   :  { %v692_v63 = vsel %vm668_vm1, %v2069_v60, 0.0  ;;  %v2075_v0 = vpop.f32.mrb[13].mxu1 }
 0x104   :  { %v693_v1 = vadd.f32 %v692_v63, %v691_v61 }
 0x105   :  { %v2079_v3 = vpop.f32.mrb[14].mxu0 }
 0x106   :  { %v2081_v4 = vpop.f32.mrb[15].mxu0  ;;  %v695_v5 = vadd.f32 %v694_v2, %v693_v1  ;;  %v2083_v6 = vpop.f32.mrb[14].mxu1  ;;  %v698_v10 = vsel %vm668_vm1, %v2079_v3, 0.0 }
 0x107   :  { %v696_v7 = vsel %vm668_vm1, %v2081_v4, 0.0  ;;  %v2087_v8 = vpop.f32.mrb[15].mxu1 }
 0x108   :  { %v697_v9 = vadd.f32 %v696_v7, %v695_v5 }
 0x109   :  { %v2091_v11 = vpop.f32.mrb[16].mxu0 }
 0x10a   :  { %v2093_v12 = vpop.f32.mrb[17].mxu0  ;;  %v699_v14 = vadd.f32 %v698_v10, %v697_v9  ;;  %v2095_v17 = vpop.f32.mrb[16].mxu1  ;;  %v702_v26 = vsel %vm668_vm1, %v2091_v11, 0.0 }
 0x10b   :  { %v700_v19 = vsel %vm668_vm1, %v2093_v12, 0.0  ;;  %v2099_v23 = vpop.f32.mrb[17].mxu1 }
 0x10c   :  { %v701_v25 = vadd.f32 %v700_v19, %v699_v14 }
 0x10d   :  { %v2103_v29 = vpop.f32.mrb[18].mxu0 }
 0x10e   :  { %3847 = vst [vmem:[#allocation2_spill] sm:$0xff] %v2103_v29  ;;  %v2105_v31 = vpop.f32.mrb[19].mxu0  ;;  %v703_v33 = vadd.f32 %v702_v26, %v701_v25  ;;  %v2107_v34 = vpop.f32.mrb[18].mxu1  ;;  %v706_v42 = vsel %vm668_vm1, %v2103_v29, 0.0 }
 0x10f   :  { %v704_v37 = vsel %vm668_vm1, %v2105_v31, 0.0  ;;  %v2111_v39 = vpop.f32.mrb[19].mxu1 }
 0x110   :  { %v705_v41 = vadd.f32 %v704_v37, %v703_v33 }
 0x111   :  { %v2115_v45 = vpop.f32.mrb[20].mxu0 }
 0x112   :  { %3848 = vst [vmem:[#allocation3_spill] sm:$0xff] %v2115_v45  ;;  %v2117_v47 = vpop.f32.mrb[21].mxu0  ;;  %v707_v49 = vadd.f32 %v706_v42, %v705_v41  ;;  %v2119_v50 = vpop.f32.mrb[20].mxu1  ;;  %v710_v58 = vsel %vm668_vm1, %v2115_v45, 0.0 }
 0x113   :  { %3849 = vst [vmem:[#allocation4_spill] sm:$0xff] %v2117_v47  ;;  %v708_v53 = vsel %vm668_vm1, %v2117_v47, 0.0  ;;  %v2123_v55 = vpop.f32.mrb[21].mxu1  ;;  %v734_v47 = vsel %vm668_vm1, %v2001_v16, 0.0 }
 0x114   :  { %v709_v57 = vadd.f32 %v708_v53, %v707_v49 }
 0x115   :  { %v2127_v61 = vpop.f32.mrb[22].mxu0 }
 0x116   :  { %3850 = vst [vmem:[#allocation5_spill] sm:$0xff] %v2127_v61  ;;  %v2129_v63 = vpop.f32.mrb[23].mxu0  ;;  %v711_v1 = vadd.f32 %v710_v58, %v709_v57  ;;  %v2131_v2 = vpop.f32.mrb[22].mxu1  ;;  %v714_v10 = vsel %vm668_vm1, %v2127_v61, 0.0 }
 0x117   :  { %3851 = vst [vmem:[#allocation6_spill] sm:$0xff] %v2129_v63  ;;  %v712_v5 = vsel %vm668_vm1, %v2129_v63, 0.0  ;;  %v2135_v7 = vpop.f32.mrb[23].mxu1 }
 0x118   :  { %v713_v9 = vadd.f32 %v712_v5, %v711_v1 }
 0x119   :  { %v2139_v14 = vpop.f32.mrb[24].mxu0 }
 0x11a   :  { %3852 = vst [vmem:[#allocation7_spill] sm:$0xff] %v2139_v14  ;;  %v2141_v19 = vpop.f32.mrb[25].mxu0  ;;  %v715_v25 = vadd.f32 %v714_v10, %v713_v9  ;;  %v2143_v26 = vpop.f32.mrb[24].mxu1  ;;  %v718_v42 = vsel %vm668_vm1, %v2139_v14, 0.0 }
 0x11b   :  { %3853 = vst [vmem:[#allocation8_spill] sm:$0xff] %v2141_v19  ;;  %3854 = vst [vmem:[#allocation9_spill] sm:$0xff] %v2143_v26  ;;  %v716_v33 = vsel %vm668_vm1, %v2141_v19, 0.0  ;;  %v2147_v37 = vpop.f32.mrb[25].mxu1 }
 0x11c   :  { %v717_v41 = vadd.f32 %v716_v33, %v715_v25 }
 0x11d   :  { %v2151_v49 = vpop.f32.mrb[26].mxu0 }
 0x11e   :  { %3855 = vst [vmem:[#allocation10_spill] sm:$0xff] %v2151_v49  ;;  %v2153_v53 = vpop.f32.mrb[27].mxu0  ;;  %v719_v57 = vadd.f32 %v718_v42, %v717_v41  ;;  %v2155_v58 = vpop.f32.mrb[26].mxu1  ;;  %v722_v10 = vsel %vm668_vm1, %v2151_v49, 0.0 }
 0x11f   :  { %3856 = vst [vmem:[#allocation11_spill] sm:$0xff] %v2153_v53  ;;  %3857 = vst [vmem:[#allocation12_spill] sm:$0xff] %v2155_v58  ;;  %v720_v1 = vsel %vm668_vm1, %v2153_v53, 0.0  ;;  %v2159_v5 = vpop.f32.mrb[27].mxu1 }
 0x120   :  { %3858 = vst [vmem:[#allocation13_spill] sm:$0xff] %v2159_v5  ;;  %v721_v9 = vadd.f32 %v720_v1, %v719_v57 }
 0x121   :  { %v2163_v25 = vpop.f32.mrb[28].mxu0 }
 0x122   :  { %3859 = vst [vmem:[#allocation14_spill] sm:$0xff] %v2163_v25  ;;  %v2165_v33 = vpop.f32.mrb[29].mxu0  ;;  %v723_v14 = vadd.f32 %v722_v10, %v721_v9  ;;  %v2167_v19 = vpop.f32.mrb[28].mxu1  ;;  %v726_v53 = vsel %vm668_vm1, %v2163_v25, 0.0 }
 0x123   :  { %3860 = vst [vmem:[#allocation15_spill] sm:$0xff] %v2165_v33  ;;  %v724_v41 = vsel %vm668_vm1, %v2165_v33, 0.0  ;;  %v2171_v42 = vpop.f32.mrb[29].mxu1 }
 0x124   :  { %3861 = vst [vmem:[#allocation16_spill] sm:$0xff] %v2171_v42  ;;  %v725_v61 = vadd.f32 %v724_v41, %v723_v14  ;;  %v732_v14 = vsel %vm668_vm1, %v2005_v18, 0.0 }
 0x125   :  { %v2175_v57 = vpop.f32.mrb[30].mxu0 }
 0x126   :  { %3862 = vst [vmem:[#allocation17_spill] sm:$0xff] %v2175_v57  ;;  %v2177_v1 = vpop.f32.mrb[31].mxu0  ;;  %v727_v49 = vadd.f32 %v726_v53, %v725_v61  ;;  %v2179_v63 = vpop.f32.mrb[30].mxu1  ;;  %v730_v33 = vsel %vm668_vm1, %v2175_v57, 0.0  ;;  %v736_v61 = vsel %vm668_vm1, %v2015_v24, 0.0 }
 0x127   :  { %3863 = vst [vmem:[#allocation18_spill] sm:$0xff] %v2177_v1  ;;  %v728_v9 = vsel %vm668_vm1, %v2177_v1, 0.0  ;;  %v2183_v10 = vpop.f32.mrb[31].mxu1  ;;  %v738_v1 = vsel %vm668_vm1, %v2011_v22, 0.0 }
 0x128   :  { %v729_v45 = vadd.f32 %v728_v9, %v727_v49  ;;  %v740_v49 = vsel %vm668_vm1, %v2027_v32, 0.0 }
 0x12a   :  { %v731_v41 = vadd.f32 %v730_v33, %v729_v45  ;;  %v742_v45 = vsel %vm668_vm1, %v2023_v30, 0.0  ;;  %v744_v33 = vsel %vm668_vm1, %v2039_v40, 0.0 }
 0x12c   :  { %v733_v25 = vadd.f32 %v732_v14, %v731_v41 }
 0x12e   :  { %v735_v53 = vadd.f32 %v734_v47, %v733_v25  ;;  %v746_v47 = vsel %vm668_vm1, %v2035_v38, 0.0  ;;  %v748_v25 = vsel %vm668_vm1, %v2051_v48, 0.0 }
 0x130   :  { %v737_v29 = vadd.f32 %v736_v61, %v735_v53 }
 0x132   :  { %v739_v9 = vadd.f32 %v738_v1, %v737_v29  ;;  %v750_v29 = vsel %vm668_vm1, %v2047_v46, 0.0  ;;  %v752_v1 = vsel %vm668_vm1, %v2063_v56, 0.0 }
 0x134   :  { %v741_v57 = vadd.f32 %v740_v49, %v739_v9 }
 0x136   :  { %v743_v14 = vadd.f32 %v742_v45, %v741_v57  ;;  %v754_v57 = vsel %vm668_vm1, %v2059_v54, 0.0  ;;  %v756_v45 = vsel %vm668_vm1, %v2075_v0, 0.0 }
 0x138   :  { %v745_v41 = vadd.f32 %v744_v33, %v743_v14 }
 0x13a   :  { %v747_v61 = vadd.f32 %v746_v47, %v745_v41  ;;  %v758_v41 = vsel %vm668_vm1, %v2071_v62, 0.0  ;;  %v760_v47 = vsel %vm668_vm1, %v2087_v8, 0.0 }
 0x13c   :  { %v749_v53 = vadd.f32 %v748_v25, %v747_v61 }
 0x13e   :  { %v751_v49 = vadd.f32 %v750_v29, %v749_v53  ;;  %v762_v53 = vsel %vm668_vm1, %v2083_v6, 0.0  ;;  %v764_v29 = vsel %vm668_vm1, %v2099_v23, 0.0 }
 0x140   :  { %v753_v9 = vadd.f32 %v752_v1, %v751_v49 }
 0x142   :  { %v755_v33 = vadd.f32 %v754_v57, %v753_v9  ;;  %v766_v9 = vsel %vm668_vm1, %v2095_v17, 0.0  ;;  %v768_v57 = vsel %vm668_vm1, %v2111_v39, 0.0 }
 0x144   :  { %v757_v14 = vadd.f32 %v756_v45, %v755_v33 }
 0x146   :  { %v759_v25 = vadd.f32 %v758_v41, %v757_v14  ;;  %v770_v14 = vsel %vm668_vm1, %v2107_v34, 0.0  ;;  %v772_v41 = vsel %vm668_vm1, %v2123_v55, 0.0 }
 0x148   :  { %v761_v61 = vadd.f32 %v760_v47, %v759_v25 }
 0x14a   :  { %v763_v1 = vadd.f32 %v762_v53, %v761_v61  ;;  %v774_v61 = vsel %vm668_vm1, %v2119_v50, 0.0  ;;  %v776_v53 = vsel %vm668_vm1, %v2135_v7, 0.0 }
 0x14c   :  { %v765_v49 = vadd.f32 %v764_v29, %v763_v1 }
 0x14e   :  { %v767_v45 = vadd.f32 %v766_v9, %v765_v49  ;;  %v778_v49 = vsel %vm668_vm1, %v2131_v2, 0.0  ;;  %v780_v9 = vsel %vm668_vm1, %v2147_v37, 0.0 }
 0x150   :  { %v769_v33 = vadd.f32 %v768_v57, %v767_v45 }
 0x152   :  { %v771_v47 = vadd.f32 %v770_v14, %v769_v33  ;;  %v782_v33 = vsel %vm668_vm1, %v2143_v26, 0.0  ;;  %v784_v14 = vsel %vm668_vm1, %v2159_v5, 0.0 }
 0x154   :  { %v773_v25 = vadd.f32 %v772_v41, %v771_v47 }
 0x156   :  { %v775_v29 = vadd.f32 %v774_v61, %v773_v25  ;;  %v786_v25 = vsel %vm668_vm1, %v2155_v58, 0.0  ;;  %v788_v61 = vsel %vm668_vm1, %v2171_v42, 0.0 }
 0x158   :  { %v777_v1 = vadd.f32 %v776_v53, %v775_v29 }
 0x15a   :  { %v779_v57 = vadd.f32 %v778_v49, %v777_v1  ;;  %v790_v1 = vsel %vm668_vm1, %v2167_v19, 0.0  ;;  %v792_v49 = vsel %vm668_vm1, %v2183_v10, 0.0 }
 0x15c   :  { %v781_v45 = vadd.f32 %v780_v9, %v779_v57 }
 0x15e   :  { %v783_v41 = vadd.f32 %v782_v33, %v781_v45  ;;  %v794_v45 = vsel %vm668_vm1, %v2179_v63, 0.0 }
 0x160   :  { %v785_v47 = vadd.f32 %v784_v14, %v783_v41 }
 0x162   :  { %v787_v53 = vadd.f32 %v786_v25, %v785_v47 }
 0x164   :  { %v789_v29 = vadd.f32 %v788_v61, %v787_v53 }
 0x166   :  { %v791_v9 = vadd.f32 %v790_v1, %v789_v29  ;;  %v3872_v1 = vld [vmem:[#allocation6_spill] sm:$0xff] }
 0x168   :  { %v793_v57 = vadd.f32 %v792_v49, %v791_v9  ;;  %v3874_v49 = vld [vmem:[#allocation5_spill] sm:$0xff]  ;;  %v3875_v9 = vld [vmem:[#allocation8_spill] sm:$0xff] }
 0x16a   :  { %v795_v33 = vadd.f32 %v794_v45, %v793_v57  ;;  %v3877_v45 = vld [vmem:[#allocation7_spill] sm:$0xff] }
 0x16c   :  { %v796_v14 = vrot.slane %v795_v33, 4 }
 0x16e   :  { %v797_v41 = vadd.f32 %v796_v14, %v795_v33  ;;  %v3879_v14 = vld [vmem:[#allocation11_spill] sm:$0xff] }
 0x170   :  { %v798_v58 = vrot.slane %v797_v41, 2 }
 0x172   :  { %v799_v5 = vadd.f32 %v798_v58, %v797_v41  ;;  %v3868_v58 = vld [vmem:[#allocation2_spill] sm:$0xff] }
 0x174   :  { %v800_v26 = vrot.slane %v799_v5, 1 }
 0x176   :  { %v801_v42 = vadd.f32 %v800_v26, %v799_v5  ;;  %v3869_v5 = vld [vmem:[#allocation4_spill] sm:$0xff] }
 0x178   :  { %v2251_v47 = vmul.f32 0.001953125, %v801_v42  ;;  %v3870_v42 = vld [vmem:[#allocation3_spill] sm:$0xff] }
 0x17a   :  { %v2255_v25 = vsub.f32 %v1999_v15, %v2251_v47  ;;  %v2259_v61 = vsub.f32 %v1995_v13, %v2251_v47  ;;  %v2263_v53 = vsub.f32 %v2009_v21, %v2251_v47  ;;  %v2267_v29 = vsub.f32 %v2007_v20, %v2251_v47 }
 0x17b   :  { %v2271_v26 = vsub.f32 %v2021_v28, %v2251_v47  ;;  %v2275_v15 = vsub.f32 %v2019_v27, %v2251_v47  ;;  %v2279_v13 = vsub.f32 %v2033_v36, %v2251_v47  ;;  %v2283_v21 = vsub.f32 %v2031_v35, %v2251_v47 }
 0x17c   :  { %3864 = vst [vmem:[#allocation19_spill] sm:$0xff] %v2255_v25  ;;  %3865 = vst [vmem:[#allocation20_spill] sm:$0xff] %v2259_v61  ;;  %v2287_v20 = vsub.f32 %v2045_v44, %v2251_v47  ;;  %v2291_v28 = vsub.f32 %v2043_v43, %v2251_v47  ;;  %v2295_v27 = vsub.f32 %v2057_v52, %v2251_v47 }
 0x17d   :  { %3866 = vst [vmem:[#allocation21_spill] sm:$0xff] %v2263_v53  ;;  %3867 = vst [vmem:[#allocation22_spill] sm:$0xff] %v2267_v29  ;;  %v2299_v36 = vsub.f32 %v2055_v51, %v2251_v47  ;;  %v2303_v35 = vsub.f32 %v2069_v60, %v2251_v47  ;;  %v2307_v44 = vsub.f32 %v2067_v59, %v2251_v47 }
 0x17e   :  { %v2311_v43 = vsub.f32 %v2081_v4, %v2251_v47  ;;  %v2315_v52 = vsub.f32 %v2079_v3, %v2251_v47  ;;  %v2319_v51 = vsub.f32 %v2093_v12, %v2251_v47  ;;  %v2323_v60 = vsub.f32 %v2091_v11, %v2251_v47 }
 0x17f   :  { %v2327_v59 = vsub.f32 %v2105_v31, %v2251_v47  ;;  %v2331_v4 = vsub.f32 %v3868_v58, %v2251_v47  ;;  %v2335_v3 = vsub.f32 %v3869_v5, %v2251_v47  ;;  %v2339_v12 = vsub.f32 %v3870_v42, %v2251_v47  ;;  %v3880_v58 = vld [vmem:[#allocation10_spill] sm:$0xff]  ;;  %v3881_v42 = vld [vmem:[#allocation15_spill] sm:$0xff] }
 0x180   :  { %v2343_v11 = vsub.f32 %v3872_v1, %v2251_v47  ;;  %v2347_v31 = vsub.f32 %v3874_v49, %v2251_v47  ;;  %v2351_v57 = vsub.f32 %v3875_v9, %v2251_v47  ;;  %v2355_v33 = vsub.f32 %v3877_v45, %v2251_v47  ;;  %v3882_v49 = vld [vmem:[#allocation14_spill] sm:$0xff] }
 0x181   :  { %3871 = vst [vmem:[#allocation2_spill] sm:$0xff] %v2339_v12  ;;  %v2359_v41 = vsub.f32 %v3879_v14, %v2251_v47  ;;  %v2363_v5 = vsub.f32 %v3880_v58, %v2251_v47  ;;  %v2367_v1 = vsub.f32 %v3881_v42, %v2251_v47  ;;  %v2371_v9 = vsub.f32 %v3882_v49, %v2251_v47 }
 0x182   :  { %3873 = vst [vmem:[#allocation4_spill] sm:$0xff] %v2343_v11  ;;  %3876 = vst [vmem:[#allocation3_spill] sm:$0xff] %v2351_v57  ;;  %v3883_v57 = vld [vmem:[#allocation18_spill] sm:$0xff]  ;;  %v2383_v58 = vsub.f32 %v2005_v18, %v2251_v47  ;;  %v2387_v42 = vsub.f32 %v2001_v16, %v2251_v47  ;;  %v2391_v49 = vsub.f32 %v2015_v24, %v2251_v47 }
 0x183   :  { %3878 = vst [vmem:[#allocation6_spill] sm:$0xff] %v2355_v33  ;;  %v2375_v45 = vsub.f32 %v3883_v57, %v2251_v47  ;;  %v3884_v33 = vld [vmem:[#allocation17_spill] sm:$0xff]  ;;  %v2395_v57 = vsub.f32 %v2011_v22, %v2251_v47  ;;  %v2403_v18 = vsub.f32 %v2023_v30, %v2251_v47  ;;  %v2407_v16 = vsub.f32 %v2039_v40, %v2251_v47 }
 0x184   :  { %v2379_v14 = vsub.f32 %v3884_v33, %v2251_v47  ;;  %v2399_v33 = vsub.f32 %v2027_v32, %v2251_v47  ;;  %v2411_v24 = vsub.f32 %v2035_v38, %v2251_v47  ;;  %v2415_v22 = vsub.f32 %v2051_v48, %v2251_v47 }
 0x185   :  { %v2419_v32 = vsub.f32 %v2047_v46, %v2251_v47  ;;  %v2423_v30 = vsub.f32 %v2063_v56, %v2251_v47  ;;  %v2427_v40 = vsub.f32 %v2059_v54, %v2251_v47  ;;  %v2431_v38 = vsub.f32 %v2075_v0, %v2251_v47 }
 0x186   :  { %v2435_v48 = vsub.f32 %v2071_v62, %v2251_v47  ;;  %v2439_v46 = vsub.f32 %v2087_v8, %v2251_v47  ;;  %v2443_v56 = vsub.f32 %v2083_v6, %v2251_v47  ;;  %v2447_v54 = vsub.f32 %v2099_v23, %v2251_v47 }
 0x187   :  { %v2451_v0 = vsub.f32 %v2095_v17, %v2251_v47  ;;  %v2455_v62 = vsub.f32 %v2111_v39, %v2251_v47  ;;  %v2459_v8 = vsub.f32 %v2107_v34, %v2251_v47  ;;  %v2463_v6 = vsub.f32 %v2123_v55, %v2251_v47 }
 0x188   :  { %3885 = vst [vmem:[#allocation5_spill] sm:$0xff] %v2447_v54  ;;  %v2467_v23 = vsub.f32 %v2119_v50, %v2251_v47  ;;  %v2471_v17 = vsub.f32 %v2135_v7, %v2251_v47  ;;  %v2475_v39 = vsub.f32 %v2131_v2, %v2251_v47  ;;  %v2479_v34 = vsub.f32 %v2147_v37, %v2251_v47 }
 0x189   :  { %3886 = vst [vmem:[#allocation8_spill] sm:$0xff] %v2451_v0  ;;  %3887 = vst [vmem:[#allocation7_spill] sm:$0xff] %v2455_v62  ;;  %v2499_v37 = vsub.f32 %v2167_v19, %v2251_v47  ;;  %v871_v19 = vmul.f32 %v2267_v29, %v2267_v29  ;;  %v874_v29 = vmul.f32 %v2279_v13, %v2279_v13 }
 0x18a   :  { %3888 = vst [vmem:[#allocation11_spill] sm:$0xff] %v2459_v8  ;;  %3889 = vst [vmem:[#allocation10_spill] sm:$0xff] %v2463_v6  ;;  %v3894_v8 = vld [vmem:[#allocation9_spill] sm:$0xff] }
 0x18b   :  { %3890 = vst [vmem:[#allocation15_spill] sm:$0xff] %v2467_v23  ;;  %3891 = vst [vmem:[#allocation14_spill] sm:$0xff] %v2471_v17  ;;  %v2483_v55 = vsub.f32 %v3894_v8, %v2251_v47  ;;  %v3896_v6 = vld [vmem:[#allocation13_spill] sm:$0xff]  ;;  %v3898_v23 = vld [vmem:[#allocation12_spill] sm:$0xff]  ;;  %v2503_v8 = vsub.f32 %v2183_v10, %v2251_v47 }
 0x18c   :  { %3892 = vst [vmem:[#allocation18_spill] sm:$0xff] %v2475_v39  ;;  %3893 = vst [vmem:[#allocation17_spill] sm:$0xff] %v2479_v34  ;;  %v2487_v50 = vsub.f32 %v3896_v6, %v2251_v47  ;;  %v2491_v7 = vsub.f32 %v3898_v23, %v2251_v47  ;;  %v3900_v17 = vld [vmem:[#allocation16_spill] sm:$0xff]  ;;  %v2507_v6 = vsub.f32 %v2179_v63, %v2251_v47 }
 0x18d   :  { %3895 = vst [vmem:[#allocation9_spill] sm:$0xff] %v2483_v55  ;;  %v2495_v2 = vsub.f32 %v3900_v17, %v2251_v47  ;;  %3902 = vst [vmem:[#allocation23_spill] sm:$0xff] %v2499_v37  ;;  %v868_v23 = vmul.f32 %v2255_v25, %v2255_v25  ;;  %v870_v17 = vmul.f32 %v2263_v53, %v2263_v53 }
 0x18e   :  { %3897 = vst [vmem:[#allocation13_spill] sm:$0xff] %v2487_v50  ;;  %3899 = vst [vmem:[#allocation12_spill] sm:$0xff] %v2491_v7  ;;  %v869_v7 = vmul.f32 %v2259_v61, %v2259_v61  ;;  %v872_v63 = vmul.f32 %v2271_v26, %v2271_v26  ;;  %v873_v61 = vmul.f32 %v2275_v15, %v2275_v15 }
 0x18f   :  { %3901 = vst [vmem:[#allocation16_spill] sm:$0xff] %v2495_v2  ;;  %3903 = vst [vmem:[#allocation24_spill] sm:$0xff] %v2503_v8  ;;  %v932_v37 = vsel %vm668_vm1, %v868_v23, 0.0  ;;  %v935_v47 = vsel %vm668_vm1, %v870_v17, 0.0  ;;  %v943_v17 = vsel %vm668_vm1, %v874_v29, 0.0  ;;  %v880_v29 = vmul.f32 %v2303_v35, %v2303_v35 }
 0x190   :  { %3904 = vst [vmem:[#allocation25_spill] sm:$0xff] %v2507_v6  ;;  %v933_v10 = vsel %vm668_vm1, %v869_v7, 0.0  ;;  %v937_v6 = vsel %vm668_vm1, %v871_v19, 0.0  ;;  %v939_v23 = vsel %vm668_vm1, %v872_v63, 0.0  ;;  %v875_v7 = vmul.f32 %v2283_v21, %v2283_v21 }
 0x191   :  { %v934_v8 = vadd.f32 %v933_v10, %v932_v37  ;;  %v941_v37 = vsel %vm668_vm1, %v873_v61, 0.0  ;;  %v879_v61 = vmul.f32 %v2299_v36, %v2299_v36 }
 0x193   :  { %v936_v25 = vadd.f32 %v935_v47, %v934_v8  ;;  %v876_v8 = vmul.f32 %v2287_v20, %v2287_v20 }
 0x195   :  { %v938_v53 = vadd.f32 %v937_v6, %v936_v25  ;;  %v877_v25 = vmul.f32 %v2291_v28, %v2291_v28  ;;  %v945_v6 = vsel %vm668_vm1, %v875_v7, 0.0  ;;  %v947_v63 = vsel %vm668_vm1, %v876_v8, 0.0 }
 0x196   :  { %v881_v7 = vmul.f32 %v2307_v44, %v2307_v44  ;;  %v882_v8 = vmul.f32 %v2311_v43, %v2311_v43 }
 0x197   :  { %v940_v2 = vadd.f32 %v939_v23, %v938_v53  ;;  %v878_v53 = vmul.f32 %v2295_v27, %v2295_v27 }
 0x199   :  { %v942_v10 = vadd.f32 %v941_v37, %v940_v2  ;;  %v949_v2 = vsel %vm668_vm1, %v877_v25, 0.0  ;;  %v883_v25 = vmul.f32 %v2315_v52, %v2315_v52 }
 0x19b   :  { %v944_v47 = vadd.f32 %v943_v17, %v942_v10  ;;  %v951_v10 = vsel %vm668_vm1, %v878_v53, 0.0  ;;  %v884_v53 = vmul.f32 %v2319_v51, %v2319_v51 }
 0x19d   :  { %v946_v19 = vadd.f32 %v945_v6, %v944_v47  ;;  %v953_v47 = vsel %vm668_vm1, %v879_v61, 0.0  ;;  %v885_v61 = vmul.f32 %v2323_v60, %v2323_v60 }
 0x19f   :  { %v948_v23 = vadd.f32 %v947_v63, %v946_v19  ;;  %v955_v19 = vsel %vm668_vm1, %v880_v29, 0.0  ;;  %v886_v29 = vmul.f32 %v2327_v59, %v2327_v59 }
 0x1a1   :  { %v950_v37 = vadd.f32 %v949_v2, %v948_v23  ;;  %v957_v23 = vsel %vm668_vm1, %v881_v7, 0.0  ;;  %v887_v7 = vmul.f32 %v2331_v4, %v2331_v4 }
 0x1a3   :  { %v952_v17 = vadd.f32 %v951_v10, %v950_v37  ;;  %v959_v37 = vsel %vm668_vm1, %v882_v8, 0.0  ;;  %v888_v8 = vmul.f32 %v2335_v3, %v2335_v3 }
 0x1a5   :  { %v954_v6 = vadd.f32 %v953_v47, %v952_v17  ;;  %v961_v17 = vsel %vm668_vm1, %v883_v25, 0.0  ;;  %v889_v25 = vmul.f32 %v2339_v12, %v2339_v12 }
 0x1a7   :  { %v956_v63 = vadd.f32 %v955_v19, %v954_v6  ;;  %v963_v6 = vsel %vm668_vm1, %v884_v53, 0.0  ;;  %v890_v53 = vmul.f32 %v2343_v11, %v2343_v11 }
 0x1a9   :  { %v958_v2 = vadd.f32 %v957_v23, %v956_v63  ;;  %v965_v63 = vsel %vm668_vm1, %v885_v61, 0.0  ;;  %v891_v61 = vmul.f32 %v2347_v31, %v2347_v31 }
 0x1ab   :  { %v960_v10 = vadd.f32 %v959_v37, %v958_v2  ;;  %v967_v2 = vsel %vm668_vm1, %v886_v29, 0.0  ;;  %v3905_v29 = vld [vmem:[#allocation3_spill] sm:$0xff] }
 0x1ad   :  { %v962_v47 = vadd.f32 %v961_v17, %v960_v10  ;;  %v969_v10 = vsel %vm668_vm1, %v887_v7, 0.0  ;;  %v3906_v7 = vld [vmem:[#allocation6_spill] sm:$0xff] }
 0x1af   :  { %v964_v19 = vadd.f32 %v963_v6, %v962_v47  ;;  %v971_v47 = vsel %vm668_vm1, %v888_v8, 0.0  ;;  %v894_v8 = vmul.f32 %v2359_v41, %v2359_v41 }
 0x1b1   :  { %v966_v23 = vadd.f32 %v965_v63, %v964_v19  ;;  %v973_v19 = vsel %vm668_vm1, %v889_v25, 0.0  ;;  %v895_v25 = vmul.f32 %v2363_v5, %v2363_v5 }
 0x1b3   :  { %v968_v37 = vadd.f32 %v967_v2, %v966_v23  ;;  %v892_v23 = vmul.f32 %v3905_v29, %v3905_v29  ;;  %v975_v2 = vsel %vm668_vm1, %v890_v53, 0.0  ;;  %v896_v53 = vmul.f32 %v2367_v1, %v2367_v1 }
 0x1b5   :  { %v970_v17 = vadd.f32 %v969_v10, %v968_v37  ;;  %v893_v37 = vmul.f32 %v3906_v7, %v3906_v7  ;;  %v977_v10 = vsel %vm668_vm1, %v891_v61, 0.0  ;;  %v985_v61 = vsel %vm668_vm1, %v895_v25, 0.0 }
 0x1b6   :  { %v901_v25 = vmul.f32 %v2387_v42, %v2387_v42 }
 0x1b7   :  { %v972_v6 = vadd.f32 %v971_v47, %v970_v17  ;;  %v979_v17 = vsel %vm668_vm1, %v892_v23, 0.0  ;;  %v987_v23 = vsel %vm668_vm1, %v896_v53, 0.0  ;;  %v902_v53 = vmul.f32 %v2391_v49, %v2391_v49 }
 0x1b9   :  { %v974_v63 = vadd.f32 %v973_v19, %v972_v6  ;;  %v981_v6 = vsel %vm668_vm1, %v893_v37, 0.0  ;;  %v899_v37 = vmul.f32 %v2379_v14, %v2379_v14 }
 0x1bb   :  { %v976_v12 = vadd.f32 %v975_v2, %v974_v63  ;;  %v983_v63 = vsel %vm668_vm1, %v894_v8, 0.0  ;;  %v900_v8 = vmul.f32 %v2383_v58, %v2383_v58 }
 0x1bd   :  { %v978_v11 = vadd.f32 %v977_v10, %v976_v12  ;;  %v897_v12 = vmul.f32 %v2371_v9, %v2371_v9 }
 0x1bf   :  { %v980_v47 = vadd.f32 %v979_v17, %v978_v11  ;;  %v898_v11 = vmul.f32 %v2375_v45, %v2375_v45 }
 0x1c1   :  { %v982_v19 = vadd.f32 %v981_v6, %v980_v47  ;;  %v989_v47 = vsel %vm668_vm1, %v897_v12, 0.0  ;;  %v903_v12 = vmul.f32 %v2395_v57, %v2395_v57 }
 0x1c3   :  { %v984_v2 = vadd.f32 %v983_v63, %v982_v19  ;;  %v991_v19 = vsel %vm668_vm1, %v898_v11, 0.0  ;;  %v904_v11 = vmul.f32 %v2399_v33, %v2399_v33 }
 0x1c5   :  { %v986_v10 = vadd.f32 %v985_v61, %v984_v2  ;;  %v993_v2 = vsel %vm668_vm1, %v899_v37, 0.0  ;;  %v905_v37 = vmul.f32 %v2403_v18, %v2403_v18 }
 0x1c7   :  { %v988_v17 = vadd.f32 %v987_v23, %v986_v10  ;;  %v995_v10 = vsel %vm668_vm1, %v900_v8, 0.0  ;;  %v906_v8 = vmul.f32 %v2407_v16, %v2407_v16 }
 0x1c9   :  { %v990_v6 = vadd.f32 %v989_v47, %v988_v17  ;;  %v997_v17 = vsel %vm668_vm1, %v901_v25, 0.0  ;;  %v907_v25 = vmul.f32 %v2411_v24, %v2411_v24 }
 0x1cb   :  { %v992_v63 = vadd.f32 %v991_v19, %v990_v6  ;;  %v999_v6 = vsel %vm668_vm1, %v902_v53, 0.0  ;;  %v908_v53 = vmul.f32 %v2415_v22, %v2415_v22 }
 0x1cd   :  { %v994_v61 = vadd.f32 %v993_v2, %v992_v63  ;;  %v1001_v63 = vsel %vm668_vm1, %v903_v12, 0.0  ;;  %v909_v12 = vmul.f32 %v2419_v32, %v2419_v32 }
 0x1cf   :  { %v996_v23 = vadd.f32 %v995_v10, %v994_v61  ;;  %v1003_v61 = vsel %vm668_vm1, %v904_v11, 0.0  ;;  %v910_v11 = vmul.f32 %v2423_v30, %v2423_v30 }
 0x1d1   :  { %v998_v47 = vadd.f32 %v997_v17, %v996_v23  ;;  %v1005_v23 = vsel %vm668_vm1, %v905_v37, 0.0  ;;  %v911_v37 = vmul.f32 %v2427_v40, %v2427_v40 }
 0x1d3   :  { %v1000_v19 = vadd.f32 %v999_v6, %v998_v47  ;;  %v1007_v47 = vsel %vm668_vm1, %v906_v8, 0.0  ;;  %v912_v8 = vmul.f32 %v2431_v38, %v2431_v38 }
 0x1d5   :  { %v1002_v2 = vadd.f32 %v1001_v63, %v1000_v19  ;;  %v1009_v19 = vsel %vm668_vm1, %v907_v25, 0.0  ;;  %v913_v25 = vmul.f32 %v2435_v48, %v2435_v48 }
 0x1d7   :  { %v1004_v10 = vadd.f32 %v1003_v61, %v1002_v2  ;;  %v1011_v2 = vsel %vm668_vm1, %v908_v53, 0.0  ;;  %v914_v53 = vmul.f32 %v2439_v46, %v2439_v46 }
 0x1d9   :  { %v1006_v17 = vadd.f32 %v1005_v23, %v1004_v10  ;;  %v1013_v10 = vsel %vm668_vm1, %v909_v12, 0.0  ;;  %v915_v12 = vmul.f32 %v2443_v56, %v2443_v56 }
 0x1db   :  { %v1008_v6 = vadd.f32 %v1007_v47, %v1006_v17  ;;  %v1015_v17 = vsel %vm668_vm1, %v910_v11, 0.0  ;;  %v916_v11 = vmul.f32 %v2447_v54, %v2447_v54 }
 0x1dd   :  { %v1010_v63 = vadd.f32 %v1009_v19, %v1008_v6  ;;  %v1017_v6 = vsel %vm668_vm1, %v911_v37, 0.0  ;;  %v917_v37 = vmul.f32 %v2451_v0, %v2451_v0 }
 0x1df   :  { %v1012_v61 = vadd.f32 %v1011_v2, %v1010_v63  ;;  %v1019_v63 = vsel %vm668_vm1, %v912_v8, 0.0  ;;  %v918_v8 = vmul.f32 %v2455_v62, %v2455_v62 }
 0x1e1   :  { %v1014_v23 = vadd.f32 %v1013_v10, %v1012_v61  ;;  %v1021_v61 = vsel %vm668_vm1, %v913_v25, 0.0  ;;  %v3907_v25 = vld [vmem:[#allocation11_spill] sm:$0xff] }
 0x1e3   :  { %v1016_v47 = vadd.f32 %v1015_v17, %v1014_v23  ;;  %v1023_v23 = vsel %vm668_vm1, %v914_v53, 0.0  ;;  %v3908_v53 = vld [vmem:[#allocation10_spill] sm:$0xff] }
 0x1e5   :  { %v1018_v19 = vadd.f32 %v1017_v6, %v1016_v47  ;;  %v1025_v47 = vsel %vm668_vm1, %v915_v12, 0.0  ;;  %v3909_v12 = vld [vmem:[#allocation15_spill] sm:$0xff] }
 0x1e7   :  { %v1020_v2 = vadd.f32 %v1019_v63, %v1018_v19  ;;  %v1027_v19 = vsel %vm668_vm1, %v916_v11, 0.0  ;;  %v3910_v11 = vld [vmem:[#allocation14_spill] sm:$0xff] }
 0x1e9   :  { %v1022_v10 = vadd.f32 %v1021_v61, %v1020_v2  ;;  %v919_v2 = vmul.f32 %v3907_v25, %v3907_v25  ;;  %v1029_v61 = vsel %vm668_vm1, %v917_v37, 0.0  ;;  %v923_v37 = vmul.f32 %v2475_v39, %v2475_v39 }
 0x1eb   :  { %v1024_v17 = vadd.f32 %v1023_v23, %v1022_v10  ;;  %v920_v10 = vmul.f32 %v3908_v53, %v3908_v53  ;;  %v1031_v23 = vsel %vm668_vm1, %v918_v8, 0.0 }
 0x1ed   :  { %v1026_v6 = vadd.f32 %v1025_v47, %v1024_v17  ;;  %v921_v17 = vmul.f32 %v3909_v12, %v3909_v12  ;;  %v1033_v47 = vsel %vm668_vm1, %v919_v2, 0.0  ;;  %v1041_v2 = vsel %vm668_vm1, %v923_v37, 0.0  ;;  %v3913_v37 = vld [vmem:[#allocation23_spill] sm:$0xff] }
 0x1ef   :  { %v1028_v63 = vadd.f32 %v1027_v19, %v1026_v6  ;;  %v922_v6 = vmul.f32 %v3910_v11, %v3910_v11  ;;  %v1035_v19 = vsel %vm668_vm1, %v920_v10, 0.0 }
 0x1f1   :  { %v1030_v54 = vadd.f32 %v1029_v61, %v1028_v63  ;;  %v1037_v63 = vsel %vm668_vm1, %v921_v17, 0.0  ;;  %v1039_v8 = vsel %vm668_vm1, %v922_v6, 0.0  ;;  %v3911_v17 = vld [vmem:[#allocation12_spill] sm:$0xff] }
 0x1f2   :  { %v3912_v6 = vld [vmem:[#allocation16_spill] sm:$0xff] }
 0x1f3   :  { %v1032_v0 = vadd.f32 %v1031_v23, %v1030_v54  ;;  %v924_v54 = vmul.f32 %v2479_v34, %v2479_v34 }
 0x1f5   :  { %v1034_v62 = vadd.f32 %v1033_v47, %v1032_v0  ;;  %v925_v0 = vmul.f32 %v2483_v55, %v2483_v55  ;;  %v1043_v10 = vsel %vm668_vm1, %v924_v54, 0.0  ;;  %v3914_v54 = vld [vmem:[#allocation24_spill] sm:$0xff] }
 0x1f7   :  { %v1036_v25 = vadd.f32 %v1035_v19, %v1034_v62  ;;  %v926_v62 = vmul.f32 %v2487_v50, %v2487_v50 }
 0x1f9   :  { %v1038_v61 = vadd.f32 %v1037_v63, %v1036_v25  ;;  %v927_v25 = vmul.f32 %v3911_v17, %v3911_v17  ;;  %v1045_v63 = vsel %vm668_vm1, %v925_v0, 0.0  ;;  %v3915_v0 = vld [vmem:[#allocation25_spill] sm:$0xff] }
 0x1fb   :  { %v1040_v23 = vadd.f32 %v1039_v8, %v1038_v61  ;;  %v928_v61 = vmul.f32 %v3912_v6, %v3912_v6  ;;  %v1047_v8 = vsel %vm668_vm1, %v926_v62, 0.0 }
 0x1fd   :  { %v1042_v47 = vadd.f32 %v1041_v2, %v1040_v23  ;;  %v929_v23 = vmul.f32 %v3913_v37, %v3913_v37  ;;  %v1049_v2 = vsel %vm668_vm1, %v927_v25, 0.0 }
 0x1ff   :  { %v1044_v19 = vadd.f32 %v1043_v10, %v1042_v47  ;;  %v930_v47 = vmul.f32 %v3914_v54, %v3914_v54  ;;  %v1051_v10 = vsel %vm668_vm1, %v928_v61, 0.0 }
 0x201   :  { %v1046_v34 = vadd.f32 %v1045_v63, %v1044_v19  ;;  %v931_v19 = vmul.f32 %v3915_v0, %v3915_v0  ;;  %v1053_v63 = vsel %vm668_vm1, %v929_v23, 0.0  ;;  %v3916_v0 = vld [vmem:[#allocation19_spill] sm:$0xff]  ;;  %v3917_v23 = vld [vmem:[#allocation20_spill] sm:$0xff] }
 0x203   :  { %v1048_v55 = vadd.f32 %v1047_v8, %v1046_v34  ;;  %v1055_v34 = vsel %vm668_vm1, %v930_v47, 0.0  ;;  %v1057_v8 = vsel %vm668_vm1, %v931_v19, 0.0  ;;  %v3918_v47 = vld [vmem:[#allocation21_spill] sm:$0xff]  ;;  %v3919_v19 = vld [vmem:[#allocation22_spill] sm:$0xff] }
 0x205   :  { %v1050_v50 = vadd.f32 %v1049_v2, %v1048_v55 }
 0x207   :  { %v1052_v17 = vadd.f32 %v1051_v10, %v1050_v50 }
 0x209   :  { %v1054_v6 = vadd.f32 %v1053_v63, %v1052_v17 }
 0x20b   :  { %v1056_v62 = vadd.f32 %v1055_v34, %v1054_v6 }
 0x20d   :  { %v1058_v37 = vadd.f32 %v1057_v8, %v1056_v62  ;;  %v3920_v62 = vld [vmem:[#allocation2_spill] sm:$0xff]  ;;  %v3921_v8 = vld [vmem:[#allocation4_spill] sm:$0xff] }
 0x20f   :  { %v1059_v25 = vrot.slane %v1058_v37, 4 }
 0x211   :  { %v1060_v55 = vadd.f32 %v1059_v25, %v1058_v37 }
 0x213   :  { %v1061_v2 = vrot.slane %v1060_v55, 2 }
 0x215   :  { %v1062_v39 = vadd.f32 %v1061_v2, %v1060_v55  ;;  %v3922_v2 = vld [vmem:[#allocation5_spill] sm:$0xff] }
 0x217   :  { %v1063_v54 = vrot.slane %v1062_v39, 1 }
 0x219   :  { %v1064_v11 = vadd.f32 %v1063_v54, %v1062_v39 }
 0x21b   :  { %v1065_v61 = vmul.f32 0.001953125, %v1064_v11 }
 0x21d   :  { %v1066_v50 = vadd.f32 1e-05, %v1065_v61  ;;  %v3923_v61 = vld [vmem:[#allocation8_spill] sm:$0xff] }
 0x21f   :  { %1685 = vrsqrt.f32 %v1066_v50  ;;  %v3924_v50 = vld [vmem:[#allocation7_spill] sm:$0xff] }
 0x229   :  { %v2701_v10 = vpop.eup %1685 }
 0x22a   :  { %v2705_v17 = vmul.f32 %v2701_v10, %v3916_v0  ;;  %v2709_v6 = vmul.f32 %v2701_v10, %v3917_v23  ;;  %v2713_v37 = vmul.f32 %v2701_v10, %v3918_v47  ;;  %v2717_v39 = vmul.f32 %v2701_v10, %v3919_v19  ;;  %v3925_v23 = vld [vmem:[#allocation11_spill] sm:$0xff]  ;;  %v3929_v19 = vld [vmem:[#allocation14_spill] sm:$0xff] }
 0x22b   :  { %v2721_v11 = vmul.f32 %v2701_v10, %v2271_v26  ;;  %v2725_v54 = vmul.f32 %v2701_v10, %v2275_v15  ;;  %v2729_v0 = vmul.f32 %v2701_v10, %v2279_v13  ;;  %v2733_v63 = vmul.f32 %v2701_v10, %v2283_v21 }
 0x22c   :  { %v2737_v34 = vmul.f32 %v2701_v10, %v2287_v20  ;;  %v2741_v26 = vmul.f32 %v2701_v10, %v2291_v28  ;;  %v2745_v15 = vmul.f32 %v2701_v10, %v2295_v27  ;;  %v2749_v13 = vmul.f32 %v2701_v10, %v2299_v36 }
 0x22d   :  { %v2753_v21 = vmul.f32 %v2701_v10, %v2303_v35  ;;  %v2757_v20 = vmul.f32 %v2701_v10, %v2307_v44  ;;  %v2761_v28 = vmul.f32 %v2701_v10, %v2311_v43  ;;  %v2765_v27 = vmul.f32 %v2701_v10, %v2315_v52 }
 0x22e   :  { %v2769_v36 = vmul.f32 %v2701_v10, %v2319_v51  ;;  %v2773_v35 = vmul.f32 %v2701_v10, %v2323_v60  ;;  %v2777_v44 = vmul.f32 %v2701_v10, %v2327_v59  ;;  %v2781_v43 = vmul.f32 %v2701_v10, %v2331_v4 }
 0x22f   :  { %v2785_v52 = vmul.f32 %v2701_v10, %v2335_v3  ;;  %v2789_v51 = vmul.f32 %v2701_v10, %v3920_v62  ;;  %v2793_v60 = vmul.f32 %v2701_v10, %v3921_v8  ;;  %v2797_v59 = vmul.f32 %v2701_v10, %v2347_v31  ;;  %v3931_v8 = vld [vmem:[#allocation18_spill] sm:$0xff] }
 0x230   :  { %v2801_v4 = vmul.f32 %v2701_v10, %v3905_v29  ;;  %v2805_v3 = vmul.f32 %v2701_v10, %v3906_v7  ;;  %v2809_v25 = vmul.f32 %v2701_v10, %v2359_v41  ;;  %v2813_v55 = vmul.f32 %v2701_v10, %v2363_v5 }
 0x231   :  { %v2817_v31 = vmul.f32 %v2701_v10, %v2367_v1  ;;  %v2821_v29 = vmul.f32 %v2701_v10, %v2371_v9  ;;  %v2825_v7 = vmul.f32 %v2701_v10, %v2375_v45  ;;  %v2829_v41 = vmul.f32 %v2701_v10, %v2379_v14 }
 0x232   :  { %v2833_v5 = vmul.f32 %v2701_v10, %v2383_v58  ;;  %v2837_v1 = vmul.f32 %v2701_v10, %v2387_v42  ;;  %v2841_v9 = vmul.f32 %v2701_v10, %v2391_v49  ;;  %v2845_v45 = vmul.f32 %v2701_v10, %v2395_v57 }
 0x233   :  { %v2849_v14 = vmul.f32 %v2701_v10, %v2399_v33  ;;  %v2853_v58 = vmul.f32 %v2701_v10, %v2403_v18  ;;  %v2857_v42 = vmul.f32 %v2701_v10, %v2407_v16  ;;  %v2861_v49 = vmul.f32 %v2701_v10, %v2411_v24 }
 0x234   :  { %v2865_v57 = vmul.f32 %v2701_v10, %v2415_v22  ;;  %v2869_v33 = vmul.f32 %v2701_v10, %v2419_v32  ;;  %v2873_v18 = vmul.f32 %v2701_v10, %v2423_v30  ;;  %v2877_v16 = vmul.f32 %v2701_v10, %v2427_v40 }
 0x235   :  { %v2881_v24 = vmul.f32 %v2701_v10, %v2431_v38  ;;  %v2885_v22 = vmul.f32 %v2701_v10, %v2435_v48  ;;  %v2889_v32 = vmul.f32 %v2701_v10, %v2439_v46  ;;  %v2893_v30 = vmul.f32 %v2701_v10, %v2443_v56 }
 0x236   :  { %v2897_v40 = vmul.f32 %v2701_v10, %v3922_v2  ;;  %v2901_v38 = vmul.f32 %v2701_v10, %v3923_v61  ;;  %v2905_v48 = vmul.f32 %v2701_v10, %v3924_v50  ;;  %v2909_v46 = vmul.f32 %v2701_v10, %v3925_v23  ;;  %v2930_v61 = vld [vmem:[%s3803_s2] ss:$0 sm:$0xff]  ;;  %v3933_v50 = vld [vmem:[#allocation17_spill] sm:$0xff] }
 0x237   :  { %v2913_v56 = vmul.f32 %v2701_v10, %v3908_v53  ;;  %v2917_v47 = vmul.f32 %v2701_v10, %v3909_v12  ;;  %v2921_v62 = vmul.f32 %v2701_v10, %v3929_v19  ;;  %v2925_v2 = vmul.f32 %v2701_v10, %v3931_v8  ;;  %v3935_v23 = vld [vmem:[#allocation9_spill] sm:$0xff] }
 0x238   :  { %3926 = vst [vmem:[#allocation3_spill] sm:$0xff] %v2909_v46  ;;  %v2934_v53 = vmul.f32 %v2701_v10, %v3933_v50  ;;  %v2938_v12 = vmul.f32 %v2701_v10, %v3935_v23  ;;  %v3940_v46 = vld [vmem:[#allocation23_spill] sm:$0xff] }
 0x239   :  { %3927 = vst [vmem:[#allocation6_spill] sm:$0xff] %v2913_v56  ;;  %3928 = vst [vmem:[#allocation10_spill] sm:$0xff] %v2917_v47  ;;  %v3937_v47 = vld [vmem:[#allocation13_spill] sm:$0xff]  ;;  %v2954_v50 = vmul.f32 %v2701_v10, %v3940_v46  ;;  %v2974_v46 = vmul.f32 %v2930_v61, %v2713_v37  ;;  %v2994_v37 = vmul.f32 %v2930_v61, %v2733_v63 }
 0x23a   :  { %3930 = vst [vmem:[#allocation15_spill] sm:$0xff] %v2921_v62  ;;  %3932 = vst [vmem:[#allocation19_spill] sm:$0xff] %v2925_v2  ;;  %v2942_v19 = vmul.f32 %v2701_v10, %v3937_v47  ;;  %v3938_v62 = vld [vmem:[#allocation12_spill] sm:$0xff]  ;;  %v3014_v63 = vmul.f32 %v2930_v61, %v2753_v21  ;;  %v3034_v21 = vmul.f32 %v2930_v61, %v2773_v35 }
 0x23b   :  { %3934 = vst [vmem:[#allocation20_spill] sm:$0xff] %v2934_v53  ;;  %3936 = vst [vmem:[#allocation21_spill] sm:$0xff] %v2938_v12  ;;  %v2946_v8 = vmul.f32 %v2701_v10, %v3938_v62  ;;  %v3939_v2 = vld [vmem:[#allocation16_spill] sm:$0xff]  ;;  %v3942_v12 = vld [vmem:[#allocation25_spill] sm:$0xff]  ;;  %v2966_v62 = vmul.f32 %v2930_v61, %v2705_v17  ;;  %v2986_v17 = vmul.f32 %v2930_v61, %v2725_v54 }
 0x23c   :  { %v2950_v56 = vmul.f32 %v2701_v10, %v3939_v2  ;;  %v3941_v53 = vld [vmem:[#allocation24_spill] sm:$0xff]  ;;  %v2962_v47 = vmul.f32 %v2701_v10, %v3942_v12  ;;  %v2970_v2 = vmul.f32 %v2930_v61, %v2709_v6  ;;  %v2990_v6 = vmul.f32 %v2930_v61, %v2729_v0 }
 0x23d   :  { %v2958_v23 = vmul.f32 %v2701_v10, %v3941_v53  ;;  %v2978_v53 = vmul.f32 %v2930_v61, %v2717_v39  ;;  %v2982_v10 = vmul.f32 %v2930_v61, %v2721_v11  ;;  %v2998_v39 = vmul.f32 %v2930_v61, %v2737_v34 }
 0x23e   :  { %v3002_v11 = vmul.f32 %v2930_v61, %v2741_v26  ;;  %v3006_v54 = vmul.f32 %v2930_v61, %v2745_v15  ;;  %v3010_v0 = vmul.f32 %v2930_v61, %v2749_v13  ;;  %v3018_v34 = vmul.f32 %v2930_v61, %v2757_v20 }
 0x23f   :  { %v3022_v26 = vmul.f32 %v2930_v61, %v2761_v28  ;;  %v3026_v15 = vmul.f32 %v2930_v61, %v2765_v27  ;;  %v3030_v13 = vmul.f32 %v2930_v61, %v2769_v36  ;;  %v3038_v20 = vmul.f32 %v2930_v61, %v2777_v44  ;;  %v3947_v12 = vld [vmem:[#allocation3_spill] sm:$0xff] }
 0x240   :  { %v3042_v28 = vmul.f32 %v2930_v61, %v2781_v43  ;;  %v3046_v27 = vmul.f32 %v2930_v61, %v2785_v52  ;;  %v3050_v36 = vmul.f32 %v2930_v61, %v2789_v51  ;;  %v3054_v35 = vmul.f32 %v2930_v61, %v2793_v60 }
 0x241   :  { %v3058_v44 = vmul.f32 %v2930_v61, %v2797_v59  ;;  %v3062_v43 = vmul.f32 %v2930_v61, %v2801_v4  ;;  %v3066_v52 = vmul.f32 %v2930_v61, %v2805_v3  ;;  %v3070_v51 = vmul.f32 %v2930_v61, %v2809_v25 }
 0x242   :  { %v3074_v60 = vmul.f32 %v2930_v61, %v2813_v55  ;;  %v3078_v59 = vmul.f32 %v2930_v61, %v2817_v31  ;;  %v3082_v4 = vmul.f32 %v2930_v61, %v2821_v29  ;;  %v3086_v3 = vmul.f32 %v2930_v61, %v2825_v7 }
 0x243   :  { %v3090_v25 = vmul.f32 %v2930_v61, %v2829_v41  ;;  %v3094_v55 = vmul.f32 %v2930_v61, %v2833_v5  ;;  %v3098_v31 = vmul.f32 %v2930_v61, %v2837_v1  ;;  %v3102_v29 = vmul.f32 %v2930_v61, %v2841_v9 }
 0x244   :  { %v3106_v7 = vmul.f32 %v2930_v61, %v2845_v45  ;;  %v3110_v41 = vmul.f32 %v2930_v61, %v2849_v14  ;;  %v3114_v5 = vmul.f32 %v2930_v61, %v2853_v58  ;;  %v3118_v1 = vmul.f32 %v2930_v61, %v2857_v42 }
 0x245   :  { %v3122_v9 = vmul.f32 %v2930_v61, %v2861_v49  ;;  %v3126_v45 = vmul.f32 %v2930_v61, %v2865_v57  ;;  %v3130_v14 = vmul.f32 %v2930_v61, %v2869_v33  ;;  %v3134_v58 = vmul.f32 %v2930_v61, %v2873_v18 }
 0x246   :  { %v3138_v42 = vmul.f32 %v2930_v61, %v2877_v16  ;;  %v3142_v49 = vmul.f32 %v2930_v61, %v2881_v24  ;;  %v3146_v57 = vmul.f32 %v2930_v61, %v2885_v22  ;;  %v3150_v33 = vmul.f32 %v2930_v61, %v2889_v32 }
 0x247   :  { %v3154_v18 = vmul.f32 %v2930_v61, %v2893_v30  ;;  %v3158_v16 = vmul.f32 %v2930_v61, %v2897_v40  ;;  %v3162_v24 = vmul.f32 %v2930_v61, %v2901_v38  ;;  %v3166_v22 = vmul.f32 %v2930_v61, %v2905_v48 }
 0x248   :  { %3943 = vst [vmem:[#allocation22_spill] sm:$0xff] %v3150_v33  ;;  %v3170_v32 = vmul.f32 %v2930_v61, %v3947_v12  ;;  %v3949_v33 = vld [vmem:[#allocation6_spill] sm:$0xff] }
 0x249   :  { %3944 = vst [vmem:[#allocation2_spill] sm:$0xff] %v3154_v18  ;;  %3945 = vst [vmem:[#allocation4_spill] sm:$0xff] %v3158_v16  ;;  %v3174_v30 = vmul.f32 %v2930_v61, %v3949_v33  ;;  %v3951_v18 = vld [vmem:[#allocation10_spill] sm:$0xff]  ;;  %v3952_v16 = vld [vmem:[#allocation15_spill] sm:$0xff] }
 0x24a   :  { %3946 = vst [vmem:[#allocation5_spill] sm:$0xff] %v3162_v24  ;;  %3948 = vst [vmem:[#allocation8_spill] sm:$0xff] %v3170_v32  ;;  %v3178_v40 = vmul.f32 %v2930_v61, %v3951_v18  ;;  %v3182_v38 = vmul.f32 %v2930_v61, %v3952_v16  ;;  %v3953_v24 = vld [vmem:[#allocation19_spill] sm:$0xff]  ;;  %v3191_v12 = vld [vmem:[%s3804_s3] ss:$0 sm:$0xff]  ;;  %v3203_v16 = vmul.f32 %v2930_v61, %v2942_v19 }
 0x24b   :  { %3950 = vst [vmem:[#allocation7_spill] sm:$0xff] %v3174_v30  ;;  %v3186_v48 = vmul.f32 %v2930_v61, %v3953_v24  ;;  %v3955_v32 = vld [vmem:[#allocation20_spill] sm:$0xff]  ;;  %v3956_v30 = vld [vmem:[#allocation21_spill] sm:$0xff]  ;;  %v3207_v24 = vmul.f32 %v2930_v61, %v2946_v8  ;;  %v3223_v19 = vmul.f32 %v2930_v61, %v2962_v47  ;;  %v3227_v8 = vadd.f32 %v3191_v12, %v2966_v62 }
 0x24c   :  { %v3195_v33 = vmul.f32 %v2930_v61, %v3955_v32  ;;  %v3199_v18 = vmul.f32 %v2930_v61, %v3956_v30  ;;  %v3215_v32 = vmul.f32 %v2930_v61, %v2954_v50  ;;  %v3219_v30 = vmul.f32 %v2930_v61, %v2958_v23 }
 0x24d   :  { %3954 = vst [vmem:[#allocation11_spill] sm:$0xff] %v3186_v48  ;;  %v3211_v48 = vmul.f32 %v2930_v61, %v2950_v56  ;;  %v3231_v56 = vadd.f32 %v3191_v12, %v2970_v2  ;;  %v3235_v50 = vadd.f32 %v3191_v12, %v2974_v46  ;;  %v3239_v23 = vadd.f32 %v3191_v12, %v2978_v53 }
 0x24e   :  { %v3243_v61 = vadd.f32 %v3191_v12, %v2982_v10  ;;  %v3247_v47 = vadd.f32 %v3191_v12, %v2986_v17  ;;  %v3251_v62 = vadd.f32 %v3191_v12, %v2990_v6  ;;  %v3255_v2 = vadd.f32 %v3191_v12, %v2994_v37 }
 0x24f   :  { %v3259_v46 = vadd.f32 %v3191_v12, %v2998_v39  ;;  %v3263_v53 = vadd.f32 %v3191_v12, %v3002_v11  ;;  %v3267_v10 = vadd.f32 %v3191_v12, %v3006_v54  ;;  %v3271_v17 = vadd.f32 %v3191_v12, %v3010_v0 }
 0x250   :  { %v3275_v6 = vadd.f32 %v3191_v12, %v3014_v63  ;;  %v3279_v37 = vadd.f32 %v3191_v12, %v3018_v34  ;;  %v3283_v39 = vadd.f32 %v3191_v12, %v3022_v26  ;;  %v3287_v11 = vadd.f32 %v3191_v12, %v3026_v15 }
 0x251   :  { %v3291_v54 = vadd.f32 %v3191_v12, %v3030_v13  ;;  %v3295_v0 = vadd.f32 %v3191_v12, %v3034_v21  ;;  %v3299_v63 = vadd.f32 %v3191_v12, %v3038_v20  ;;  %v3303_v34 = vadd.f32 %v3191_v12, %v3042_v28 }
 0x252   :  { %v3307_v26 = vadd.f32 %v3191_v12, %v3046_v27  ;;  %v3311_v15 = vadd.f32 %v3191_v12, %v3050_v36  ;;  %v3315_v13 = vadd.f32 %v3191_v12, %v3054_v35  ;;  %v3319_v21 = vadd.f32 %v3191_v12, %v3058_v44 }
 0x253   :  { %v3323_v20 = vadd.f32 %v3191_v12, %v3062_v43  ;;  %v3327_v28 = vadd.f32 %v3191_v12, %v3066_v52  ;;  %v3331_v27 = vadd.f32 %v3191_v12, %v3070_v51  ;;  %v3335_v36 = vadd.f32 %v3191_v12, %v3074_v60 }
 0x254   :  { %v3339_v35 = vadd.f32 %v3191_v12, %v3078_v59  ;;  %v3343_v44 = vadd.f32 %v3191_v12, %v3082_v4  ;;  %v3347_v43 = vadd.f32 %v3191_v12, %v3086_v3  ;;  %v3351_v52 = vadd.f32 %v3191_v12, %v3090_v25 }
 0x255   :  { %v3355_v51 = vadd.f32 %v3191_v12, %v3094_v55  ;;  %v3359_v60 = vadd.f32 %v3191_v12, %v3098_v31  ;;  %v3363_v59 = vadd.f32 %v3191_v12, %v3102_v29  ;;  %v3367_v4 = vadd.f32 %v3191_v12, %v3106_v7 }
 0x256   :  { %v3371_v3 = vadd.f32 %v3191_v12, %v3110_v41  ;;  %v3375_v25 = vadd.f32 %v3191_v12, %v3114_v5  ;;  %v3379_v55 = vadd.f32 %v3191_v12, %v3118_v1  ;;  %v3383_v31 = vadd.f32 %v3191_v12, %v3122_v9 }
 0x257   :  { %v3387_v29 = vadd.f32 %v3191_v12, %v3126_v45  ;;  %v3391_v7 = vadd.f32 %v3191_v12, %v3130_v14  ;;  %v3395_v41 = vadd.f32 %v3191_v12, %v3134_v58  ;;  %v3399_v5 = vadd.f32 %v3191_v12, %v3138_v42  ;;  %v3961_v45 = vld [vmem:[#allocation22_spill] sm:$0xff] }
 0x258   :  { %v3403_v1 = vadd.f32 %v3191_v12, %v3142_v49  ;;  %v3407_v9 = vadd.f32 %v3191_v12, %v3146_v57  ;;  %v3411_v14 = vadd.f32 %v3191_v12, %v3961_v45  ;;  %v3427_v57 = vadd.f32 %v3191_v12, %v3166_v22 }
 0x259   :  { %3957 = vst [vmem:[#allocation14_spill] sm:$0xff] %v3391_v7  ;;  %3958 = vst [vmem:[#allocation18_spill] sm:$0xff] %v3395_v41  ;;  %v3963_v7 = vld [vmem:[#allocation2_spill] sm:$0xff]  ;;  %v3964_v41 = vld [vmem:[#allocation4_spill] sm:$0xff] }
 0x25a   :  { %3959 = vst [vmem:[#allocation17_spill] sm:$0xff] %v3399_v5  ;;  %3960 = vst [vmem:[#allocation9_spill] sm:$0xff] %v3407_v9  ;;  %v3415_v58 = vadd.f32 %v3191_v12, %v3963_v7  ;;  %v3419_v42 = vadd.f32 %v3191_v12, %v3964_v41  ;;  %v3965_v5 = vld [vmem:[#allocation5_spill] sm:$0xff]  ;;  %v3967_v9 = vld [vmem:[#allocation8_spill] sm:$0xff]  ;;  %v3439_v41 = vadd.f32 %v3191_v12, %v3178_v40 }
 0x25b   :  { %3962 = vst [vmem:[#allocation13_spill] sm:$0xff] %v3411_v14  ;;  %v3423_v49 = vadd.f32 %v3191_v12, %v3965_v5  ;;  %v3431_v45 = vadd.f32 %v3191_v12, %v3967_v9  ;;  %v3968_v14 = vld [vmem:[#allocation7_spill] sm:$0xff]  ;;  %v3443_v5 = vadd.f32 %v3191_v12, %v3182_v38  ;;  %v3451_v9 = vadd.f32 %v3191_v12, %v3195_v33 }
 0x25c   :  { %v3435_v7 = vadd.f32 %v3191_v12, %v3968_v14  ;;  %v3455_v14 = vadd.f32 %v3191_v12, %v3199_v18  ;;  %v3459_v40 = vadd.f32 %v3191_v12, %v3203_v16  ;;  %v3463_v38 = vadd.f32 %v3191_v12, %v3207_v24 }
 0x25d   :  { %3966 = vst [vmem:[#allocation12_spill] sm:$0xff] %v3423_v49  ;;  %v3969_v49 = vld [vmem:[#allocation11_spill] sm:$0xff]  ;;  %v3471_v33 = vadd.f32 %v3191_v12, %v3215_v32  ;;  %v3475_v18 = vadd.f32 %v3191_v12, %v3219_v30  ;;  %v3479_v16 = vadd.f32 %v3191_v12, %v3223_v19  ;;  %v1275_v24 = vmax.f32 %v3231_v56, 0.0 }
 0x25e   :  { %v3447_v22 = vadd.f32 %v3191_v12, %v3969_v49  ;;  %3970 = vst [vmem:[#allocation16_spill] sm:$0xff] %v3459_v40  ;;  %3971 = vst [vmem:[#allocation23_spill] sm:$0xff] %v3463_v38  ;;  %v3467_v49 = vadd.f32 %v3191_v12, %v3211_v48  ;;  %v1274_v40 = vmax.f32 %v3227_v8, 0.0  ;;  %v1276_v38 = vmax.f32 %v3235_v50, 0.0 }
 0x25f   :  { %3973 = vst [vmem:[#allocation25_spill] sm:$0xff] %v3471_v33  ;;  %3974 = vst [vmem:[#allocation3_spill] sm:$0xff] %v3475_v18  ;;  %v1277_v48 = vmax.f32 %v3239_v23, 0.0  ;;  %v1279_v32 = vmax.f32 %v3247_v47, 0.0  ;;  %v1280_v33 = vmax.f32 %v3251_v62, 0.0  ;;  %v1281_v30 = vmax.f32 %v3255_v2, 0.0 }
 0x260   :  { %3972 = vst [vmem:[#allocation24_spill] sm:$0xff] %v3467_v49  ;;  %v1278_v49 = vmax.f32 %v3243_v61, 0.0  ;;  %v1282_v18 = vmax.f32 %v3259_v46, 0.0  ;;  %v1283_v12 = vmax.f32 %v3263_v53, 0.0  ;;  %v1284_v19 = vmax.f32 %v3267_v10, 0.0  ;;  %1338 = vst.msk [vmem:[%s3805_s4] sm:$0xff] %vm668_vm1, %v1274_v40 }
 0x261   :  { %v1285_v8 = vmax.f32 %v3271_v17, 0.0  ;;  %1339 = vst.msk [vmem:[%s3805_s4 + $0x8] sm:$0xff] %vm668_vm1, %v1275_v24  ;;  %1340 = vst.msk [vmem:[%s3805_s4 + $0x10] sm:$0xff] %vm668_vm1, %v1276_v38  ;;  %v1286_v56 = vmax.f32 %v3275_v6, 0.0  ;;  %v1287_v50 = vmax.f32 %v3279_v37, 0.0  ;;  %v1288_v23 = vmax.f32 %v3283_v39, 0.0 }
 0x262   :  { %1341 = vst.msk [vmem:[%s3805_s4 + $0x18] sm:$0xff] %vm668_vm1, %v1277_v48  ;;  %v1289_v61 = vmax.f32 %v3287_v11, 0.0  ;;  %1342 = vst.msk [vmem:[%s3805_s4 + $0x20] sm:$0xff] %vm668_vm1, %v1278_v49  ;;  %v1290_v47 = vmax.f32 %v3291_v54, 0.0  ;;  %v1291_v62 = vmax.f32 %v3295_v0, 0.0  ;;  %v1292_v2 = vmax.f32 %v3299_v63, 0.0 }
 0x263   :  { %1343 = vst.msk [vmem:[%s3805_s4 + $0x28] sm:$0xff] %vm668_vm1, %v1279_v32  ;;  %1344 = vst.msk [vmem:[%s3805_s4 + $0x30] sm:$0xff] %vm668_vm1, %v1280_v33  ;;  %v1293_v46 = vmax.f32 %v3303_v34, 0.0  ;;  %v1294_v53 = vmax.f32 %v3307_v26, 0.0  ;;  %v1295_v10 = vmax.f32 %v3311_v15, 0.0  ;;  %v1296_v17 = vmax.f32 %v3315_v13, 0.0 }
 0x264   :  { %1345 = vst.msk [vmem:[%s3805_s4 + $0x38] sm:$0xff] %vm668_vm1, %v1281_v30  ;;  %1346 = vst.msk [vmem:[%s3805_s4 + $0x40] sm:$0xff] %vm668_vm1, %v1282_v18  ;;  %v1297_v6 = vmax.f32 %v3319_v21, 0.0  ;;  %v1298_v37 = vmax.f32 %v3323_v20, 0.0  ;;  %v1299_v39 = vmax.f32 %v3327_v28, 0.0  ;;  %v1300_v11 = vmax.f32 %v3331_v27, 0.0 }
 0x265   :  { %1347 = vst.msk [vmem:[%s3805_s4 + $0x48] sm:$0xff] %vm668_vm1, %v1283_v12  ;;  %1348 = vst.msk [vmem:[%s3805_s4 + $0x50] sm:$0xff] %vm668_vm1, %v1284_v19  ;;  %v1301_v54 = vmax.f32 %v3335_v36, 0.0  ;;  %v1302_v0 = vmax.f32 %v3339_v35, 0.0  ;;  %v1303_v63 = vmax.f32 %v3343_v44, 0.0  ;;  %v1304_v34 = vmax.f32 %v3347_v43, 0.0 }
 0x266   :  { %1349 = vst.msk [vmem:[%s3805_s4 + $0x58] sm:$0xff] %vm668_vm1, %v1285_v8  ;;  %1350 = vst.msk [vmem:[%s3805_s4 + $0x60] sm:$0xff] %vm668_vm1, %v1286_v56  ;;  %v1305_v26 = vmax.f32 %v3351_v52, 0.0  ;;  %v1306_v15 = vmax.f32 %v3355_v51, 0.0  ;;  %v1307_v13 = vmax.f32 %v3359_v60, 0.0  ;;  %v1308_v21 = vmax.f32 %v3363_v59, 0.0 }
 0x267   :  { %1351 = vst.msk [vmem:[%s3805_s4 + $0x68] sm:$0xff] %vm668_vm1, %v1287_v50  ;;  %1352 = vst.msk [vmem:[%s3805_s4 + $0x70] sm:$0xff] %vm668_vm1, %v1288_v23  ;;  %v1309_v20 = vmax.f32 %v3367_v4, 0.0  ;;  %v1310_v28 = vmax.f32 %v3371_v3, 0.0  ;;  %v1311_v27 = vmax.f32 %v3375_v25, 0.0  ;;  %v1312_v36 = vmax.f32 %v3379_v55, 0.0 }
 0x268   :  { %1353 = vst.msk [vmem:[%s3805_s4 + $0x78] sm:$0xff] %vm668_vm1, %v1289_v61  ;;  %1354 = vst.msk [vmem:[%s3805_s4 + $0x80] sm:$0xff] %vm668_vm1, %v1290_v47  ;;  %v1313_v35 = vmax.f32 %v3383_v31, 0.0  ;;  %v1314_v44 = vmax.f32 %v3387_v29, 0.0  ;;  %v3975_v43 = vld [vmem:[#allocation14_spill] sm:$0xff]  ;;  %v3977_v59 = vld [vmem:[#allocation17_spill] sm:$0xff] }
 0x269   :  { %1355 = vst.msk [vmem:[%s3805_s4 + $0x88] sm:$0xff] %vm668_vm1, %v1291_v62  ;;  %1356 = vst.msk [vmem:[%s3805_s4 + $0x90] sm:$0xff] %vm668_vm1, %v1292_v2  ;;  %v1315_v52 = vmax.f32 %v3975_v43, 0.0  ;;  %v3976_v51 = vld [vmem:[#allocation18_spill] sm:$0xff]  ;;  %v1317_v4 = vmax.f32 %v3977_v59, 0.0  ;;  %v1318_v3 = vmax.f32 %v3403_v1, 0.0 }
 0x26a   :  { %1357 = vst.msk [vmem:[%s3805_s4 + $0x98] sm:$0xff] %vm668_vm1, %v1293_v46  ;;  %1358 = vst.msk [vmem:[%s3805_s4 + $0xa0] sm:$0xff] %vm668_vm1, %v1294_v53  ;;  %v1316_v60 = vmax.f32 %v3976_v51, 0.0  ;;  %v3978_v25 = vld [vmem:[#allocation9_spill] sm:$0xff]  ;;  %v1321_v40 = vmax.f32 %v3415_v58, 0.0  ;;  %v1322_v1 = vmax.f32 %v3419_v42, 0.0 }
 0x26b   :  { %1359 = vst.msk [vmem:[%s3805_s4 + $0xa8] sm:$0xff] %vm668_vm1, %v1295_v10  ;;  %1360 = vst.msk [vmem:[%s3805_s4 + $0xb0] sm:$0xff] %vm668_vm1, %v1296_v17  ;;  %v1319_v55 = vmax.f32 %v3978_v25, 0.0  ;;  %v3979_v31 = vld [vmem:[#allocation13_spill] sm:$0xff]  ;;  %v3980_v58 = vld [vmem:[#allocation12_spill] sm:$0xff]  ;;  %v1324_v49 = vmax.f32 %v3427_v57, 0.0 }
 0x26c   :  { %1361 = vst.msk [vmem:[%s3805_s4 + $0xb8] sm:$0xff] %vm668_vm1, %v1297_v6  ;;  %1362 = vst.msk [vmem:[%s3805_s4 + $0xc0] sm:$0xff] %vm668_vm1, %v1298_v37  ;;  %v1320_v29 = vmax.f32 %v3979_v31, 0.0  ;;  %v1323_v38 = vmax.f32 %v3980_v58, 0.0  ;;  %v1325_v33 = vmax.f32 %v3431_v45, 0.0  ;;  %v1326_v42 = vmax.f32 %v3435_v7, 0.0 }
 0x26d   :  { %1363 = vst.msk [vmem:[%s3805_s4 + $0xc8] sm:$0xff] %vm668_vm1, %v1299_v39  ;;  %1364 = vst.msk [vmem:[%s3805_s4 + $0xd0] sm:$0xff] %vm668_vm1, %v1300_v11  ;;  %v1327_v57 = vmax.f32 %v3439_v41, 0.0  ;;  %v1328_v45 = vmax.f32 %v3443_v5, 0.0  ;;  %v1329_v18 = vmax.f32 %v3447_v22, 0.0  ;;  %v1330_v7 = vmax.f32 %v3451_v9, 0.0 }
 0x26e   :  { %1365 = vst.msk [vmem:[%s3805_s4 + $0xd8] sm:$0xff] %vm668_vm1, %v1301_v54  ;;  %1366 = vst.msk [vmem:[%s3805_s4 + $0xe0] sm:$0xff] %vm668_vm1, %v1302_v0  ;;  %v1331_v41 = vmax.f32 %v3455_v14, 0.0  ;;  %v3981_v5 = vld [vmem:[#allocation16_spill] sm:$0xff]  ;;  %v3982_v24 = vld [vmem:[#allocation23_spill] sm:$0xff]  ;;  %v1337_v8 = vmax.f32 %v3479_v16, 0.0 }
 0x26f   :  { %1367 = vst.msk [vmem:[%s3805_s4 + $0xe8] sm:$0xff] %vm668_vm1, %v1303_v63  ;;  %1368 = vst.msk [vmem:[%s3805_s4 + $0xf0] sm:$0xff] %vm668_vm1, %v1304_v34  ;;  %v1332_v22 = vmax.f32 %v3981_v5, 0.0  ;;  %v1333_v48 = vmax.f32 %v3982_v24, 0.0  ;;  %v3983_v9 = vld [vmem:[#allocation24_spill] sm:$0xff]  ;;  %v3984_v32 = vld [vmem:[#allocation25_spill] sm:$0xff] }
 0x270   :  { %1369 = vst.msk [vmem:[%s3805_s4 + $0xf8] sm:$0xff] %vm668_vm1, %v1305_v26  ;;  %1370 = vst.msk [vmem:[%s3805_s4 + $0x100] sm:$0xff] %vm668_vm1, %v1306_v15  ;;  %v1334_v14 = vmax.f32 %v3983_v9, 0.0  ;;  %v1335_v30 = vmax.f32 %v3984_v32, 0.0  ;;  %v3985_v12 = vld [vmem:[#allocation3_spill] sm:$0xff] }
 0x271   :  { %1371 = vst.msk [vmem:[%s3805_s4 + $0x108] sm:$0xff] %vm668_vm1, %v1307_v13  ;;  %1372 = vst.msk [vmem:[%s3805_s4 + $0x110] sm:$0xff] %vm668_vm1, %v1308_v21  ;;  %v1336_v19 = vmax.f32 %v3985_v12, 0.0 }
 0x272   :  { %1373 = vst.msk [vmem:[%s3805_s4 + $0x118] sm:$0xff] %vm668_vm1, %v1309_v20  ;;  %1374 = vst.msk [vmem:[%s3805_s4 + $0x120] sm:$0xff] %vm668_vm1, %v1310_v28 }
 0x273   :  { %1375 = vst.msk [vmem:[%s3805_s4 + $0x128] sm:$0xff] %vm668_vm1, %v1311_v27  ;;  %1376 = vst.msk [vmem:[%s3805_s4 + $0x130] sm:$0xff] %vm668_vm1, %v1312_v36 }
 0x274   :  { %1377 = vst.msk [vmem:[%s3805_s4 + $0x138] sm:$0xff] %vm668_vm1, %v1313_v35  ;;  %1378 = vst.msk [vmem:[%s3805_s4 + $0x140] sm:$0xff] %vm668_vm1, %v1314_v44 }
 0x275   :  { %1379 = vst.msk [vmem:[%s3805_s4 + $0x148] sm:$0xff] %vm668_vm1, %v1315_v52  ;;  %1380 = vst.msk [vmem:[%s3805_s4 + $0x150] sm:$0xff] %vm668_vm1, %v1316_v60 }
 0x276   :  { %1381 = vst.msk [vmem:[%s3805_s4 + $0x158] sm:$0xff] %vm668_vm1, %v1317_v4  ;;  %1382 = vst.msk [vmem:[%s3805_s4 + $0x160] sm:$0xff] %vm668_vm1, %v1318_v3 }
 0x277   :  { %1383 = vst.msk [vmem:[%s3805_s4 + $0x168] sm:$0xff] %vm668_vm1, %v1319_v55  ;;  %1384 = vst.msk [vmem:[%s3805_s4 + $0x170] sm:$0xff] %vm668_vm1, %v1320_v29 }
 0x278   :  { %1385 = vst.msk [vmem:[%s3805_s4 + $0x178] sm:$0xff] %vm668_vm1, %v1321_v40  ;;  %1386 = vst.msk [vmem:[%s3805_s4 + $0x180] sm:$0xff] %vm668_vm1, %v1322_v1 }
 0x279   :  { %1387 = vst.msk [vmem:[%s3805_s4 + $0x188] sm:$0xff] %vm668_vm1, %v1323_v38  ;;  %1388 = vst.msk [vmem:[%s3805_s4 + $0x190] sm:$0xff] %vm668_vm1, %v1324_v49 }
 0x27a   :  { %1389 = vst.msk [vmem:[%s3805_s4 + $0x198] sm:$0xff] %vm668_vm1, %v1325_v33  ;;  %1390 = vst.msk [vmem:[%s3805_s4 + $0x1a0] sm:$0xff] %vm668_vm1, %v1326_v42 }
 0x27b   :  { %1391 = vst.msk [vmem:[%s3805_s4 + $0x1a8] sm:$0xff] %vm668_vm1, %v1327_v57  ;;  %1392 = vst.msk [vmem:[%s3805_s4 + $0x1b0] sm:$0xff] %vm668_vm1, %v1328_v45 }
 0x27c   :  { %1393 = vst.msk [vmem:[%s3805_s4 + $0x1b8] sm:$0xff] %vm668_vm1, %v1329_v18  ;;  %1394 = vst.msk [vmem:[%s3805_s4 + $0x1c0] sm:$0xff] %vm668_vm1, %v1330_v7 }
 0x27d   :  { %1395 = vst.msk [vmem:[%s3805_s4 + $0x1c8] sm:$0xff] %vm668_vm1, %v1331_v41  ;;  %1396 = vst.msk [vmem:[%s3805_s4 + $0x1d0] sm:$0xff] %vm668_vm1, %v1332_v22 }
 0x27e   :  { %1397 = vst.msk [vmem:[%s3805_s4 + $0x1d8] sm:$0xff] %vm668_vm1, %v1333_v48  ;;  %1398 = vst.msk [vmem:[%s3805_s4 + $0x1e0] sm:$0xff] %vm668_vm1, %v1334_v14 }
 0x27f   :  { %1399 = vst.msk [vmem:[%s3805_s4 + $0x1e8] sm:$0xff] %vm668_vm1, %v1335_v30  ;;  %1400 = vst.msk [vmem:[%s3805_s4 + $0x1f0] sm:$0xff] %vm668_vm1, %v1336_v19 }
 0x280   :  { %1401 = vst.msk [vmem:[%s3805_s4 + $0x1f8] sm:$0xff] %vm668_vm1, %v1337_v8 }

// kernel: generator_forward.9
= control target key start
LH: loop header
LB: loop body
LE: loop exit
PB: predicated region body
PF: predicated region fallthrough
CT: control target
= control target key end

     0   :  { %vm1884_vm0 = vcmask 23552   ;;  %s5248_s1 = inlined_call_operand.vmem [shape: f32[128,3], index: 1, kind: input, shape index: {}]   ;;  %s5249_s0 = inlined_call_operand.vmem [shape: f32[2048,128], index: 0, kind: input, shape index: {}]   ;;  %s5250_s2 = inlined_call_operand.vmem [shape: f32[2048,3], index: 2, kind: output, shape index: {}]  }
   0x1   :  { %v267_v0 = vld [vmem:[%s5248_s1] sm:$0xff]  ;;  %v268_v1 = vld [vmem:[%s5248_s1 + $0x8] sm:$0xff]  ;;  %v269_v2 = vld [vmem:[%s5248_s1 + $0x10] sm:$0xff] }
   0x2   :  { %v2833_v3 = vpack.c.bf16 %v268_v1, %v267_v0  ;;  %v270_v4 = vld [vmem:[%s5248_s1 + $0x18] sm:$0xff]  ;;  %v271_v6 = vld [vmem:[%s5248_s1 + $0x20] sm:$0xff]  ;;  %v272_v7 = vld [vmem:[%s5248_s1 + $0x28] sm:$0xff] }
   0x3   :  { %v2837_v5 = vpack.c.bf16 %v270_v4, %v269_v2  ;;  %v2841_v8 = vpack.c.bf16 %v272_v7, %v271_v6  ;;  %v11_v9 = vld [vmem:[%s5249_s0] sm:$0xff]  ;;  %v273_v11 = vld [vmem:[%s5248_s1 + $0x30] sm:$0xff]  ;;  %v274_v12 = vld [vmem:[%s5248_s1 + $0x38] sm:$0xff] }
   0x4   :  { %2834 = vmatprep.subr.bf16.mxu0 %v2833_v3  ;;  %2865 = vmatprep.subr.bf16.mxu1 %v2833_v3  ;;  %v139_v10 = vld [vmem:[%s5249_s0 + $0x400] sm:$0xff]  ;;  %v2845_v13 = vpack.c.bf16 %v274_v12, %v273_v11  ;;  %v276_v15 = vld [vmem:[%s5248_s1 + $0x48] sm:$0xff]  ;;  %v277_v17 = vld [vmem:[%s5248_s1 + $0x50] sm:$0xff] }
   0x5   :  { %2836 = vmatpush3.bf16.msra.mxu0 %v2833_v3  ;;  %2873 = vmatpush3.bf16.msra.mxu1 %v2833_v3  ;;  %v275_v14 = vld [vmem:[%s5248_s1 + $0x40] sm:$0xff]  ;;  %v278_v18 = vld [vmem:[%s5248_s1 + $0x58] sm:$0xff]  ;;  %v280_v21 = vld [vmem:[%s5248_s1 + $0x68] sm:$0xff] }
   0x6   :  { %2838 = vmatprep.subr.bf16.mxu0 %v2837_v5  ;;  %2866 = vmatprep.subr.bf16.mxu1 %v2837_v5  ;;  %v2849_v16 = vpack.c.bf16 %v276_v15, %v275_v14  ;;  %v2853_v19 = vpack.c.bf16 %v278_v18, %v277_v17  ;;  %v279_v20 = vld [vmem:[%s5248_s1 + $0x60] sm:$0xff]  ;;  %v281_v23 = vld [vmem:[%s5248_s1 + $0x70] sm:$0xff]  ;;  %v282_v24 = vld [vmem:[%s5248_s1 + $0x78] sm:$0xff] }
   0x7   :  { %2449 = vmatprep.mubr.f32.mxu0 %v11_v9  ;;  %2641 = vmatprep.mubr.f32.mxu1 %v139_v10  ;;  %v2857_v22 = vpack.c.bf16 %v280_v21, %v279_v20  ;;  %v2861_v25 = vpack.c.bf16 %v282_v24, %v281_v23  ;;  %v12_v26 = vld [vmem:[%s5249_s0 + $0x8] sm:$0xff]  ;;  %v13_v28 = vld [vmem:[%s5249_s0 + $0x10] sm:$0xff]  ;;  %v14_v30 = vld [vmem:[%s5249_s0 + $0x18] sm:$0xff] }
   0x8   :  { %v140_v27 = vld [vmem:[%s5249_s0 + $0x408] sm:$0xff]  ;;  %v141_v29 = vld [vmem:[%s5249_s0 + $0x410] sm:$0xff]  ;;  %v142_v31 = vld [vmem:[%s5249_s0 + $0x418] sm:$0xff] }
   0x9   :  { %2840 = vmatpush3.bf16.msra.mxu0 %v2837_v5  ;;  %2874 = vmatpush3.bf16.msra.mxu1 %v2837_v5  ;;  %v15_v32 = vld [vmem:[%s5249_s0 + $0x20] sm:$0xff]  ;;  %v16_v34 = vld [vmem:[%s5249_s0 + $0x28] sm:$0xff]  ;;  %v17_v36 = vld [vmem:[%s5249_s0 + $0x30] sm:$0xff] }
   0xa   :  { %2842 = vmatprep.subr.bf16.mxu0 %v2841_v8  ;;  %2867 = vmatprep.subr.bf16.mxu1 %v2841_v8  ;;  %v143_v33 = vld [vmem:[%s5249_s0 + $0x420] sm:$0xff]  ;;  %v144_v35 = vld [vmem:[%s5249_s0 + $0x428] sm:$0xff]  ;;  %v145_v37 = vld [vmem:[%s5249_s0 + $0x430] sm:$0xff] }
   0xb   :  { %v18_v38 = vld [vmem:[%s5249_s0 + $0x38] sm:$0xff]  ;;  %v19_v40 = vld [vmem:[%s5249_s0 + $0x40] sm:$0xff]  ;;  %v20_v42 = vld [vmem:[%s5249_s0 + $0x48] sm:$0xff] }
   0xc   :  { %v146_v39 = vld [vmem:[%s5249_s0 + $0x438] sm:$0xff]  ;;  %v147_v41 = vld [vmem:[%s5249_s0 + $0x440] sm:$0xff]  ;;  %v148_v43 = vld [vmem:[%s5249_s0 + $0x448] sm:$0xff] }
   0xd   :  { %2844 = vmatpush3.bf16.msra.mxu0 %v2841_v8  ;;  %2875 = vmatpush3.bf16.msra.mxu1 %v2841_v8  ;;  %v21_v44 = vld [vmem:[%s5249_s0 + $0x50] sm:$0xff]  ;;  %v22_v46 = vld [vmem:[%s5249_s0 + $0x58] sm:$0xff]  ;;  %v23_v48 = vld [vmem:[%s5249_s0 + $0x60] sm:$0xff] }
   0xe   :  { %2846 = vmatprep.subr.bf16.mxu0 %v2845_v13  ;;  %2868 = vmatprep.subr.bf16.mxu1 %v2845_v13  ;;  %v149_v45 = vld [vmem:[%s5249_s0 + $0x450] sm:$0xff]  ;;  %v150_v47 = vld [vmem:[%s5249_s0 + $0x458] sm:$0xff]  ;;  %v151_v49 = vld [vmem:[%s5249_s0 + $0x460] sm:$0xff] }
   0xf   :  { %v24_v50 = vld [vmem:[%s5249_s0 + $0x68] sm:$0xff]  ;;  %v25_v52 = vld [vmem:[%s5249_s0 + $0x70] sm:$0xff]  ;;  %v26_v54 = vld [vmem:[%s5249_s0 + $0x78] sm:$0xff] }
  0x10   :  { %v152_v51 = vld [vmem:[%s5249_s0 + $0x468] sm:$0xff]  ;;  %v153_v53 = vld [vmem:[%s5249_s0 + $0x470] sm:$0xff]  ;;  %v154_v55 = vld [vmem:[%s5249_s0 + $0x478] sm:$0xff] }
  0x11   :  { %2848 = vmatpush3.bf16.msra.mxu0 %v2845_v13  ;;  %2876 = vmatpush3.bf16.msra.mxu1 %v2845_v13  ;;  %v27_v56 = vld [vmem:[%s5249_s0 + $0x80] sm:$0xff]  ;;  %v28_v58 = vld [vmem:[%s5249_s0 + $0x88] sm:$0xff]  ;;  %v29_v60 = vld [vmem:[%s5249_s0 + $0x90] sm:$0xff] }
  0x12   :  { %2850 = vmatprep.subr.bf16.mxu0 %v2849_v16  ;;  %2869 = vmatprep.subr.bf16.mxu1 %v2849_v16  ;;  %v155_v57 = vld [vmem:[%s5249_s0 + $0x480] sm:$0xff]  ;;  %v156_v59 = vld [vmem:[%s5249_s0 + $0x488] sm:$0xff]  ;;  %v157_v61 = vld [vmem:[%s5249_s0 + $0x490] sm:$0xff] }
  0x13   :  { %v30_v62 = vld [vmem:[%s5249_s0 + $0x98] sm:$0xff]  ;;  %v31_v0 = vld [vmem:[%s5249_s0 + $0xa0] sm:$0xff]  ;;  %v32_v2 = vld [vmem:[%s5249_s0 + $0xa8] sm:$0xff] }
  0x14   :  { %v158_v63 = vld [vmem:[%s5249_s0 + $0x498] sm:$0xff]  ;;  %v159_v1 = vld [vmem:[%s5249_s0 + $0x4a0] sm:$0xff]  ;;  %v160_v3 = vld [vmem:[%s5249_s0 + $0x4a8] sm:$0xff] }
  0x15   :  { %2852 = vmatpush3.bf16.msra.mxu0 %v2849_v16  ;;  %2877 = vmatpush3.bf16.msra.mxu1 %v2849_v16  ;;  %v33_v4 = vld [vmem:[%s5249_s0 + $0xb0] sm:$0xff]  ;;  %v34_v6 = vld [vmem:[%s5249_s0 + $0xb8] sm:$0xff]  ;;  %v35_v8 = vld [vmem:[%s5249_s0 + $0xc0] sm:$0xff] }
  0x16   :  { %2854 = vmatprep.subr.bf16.mxu0 %v2853_v19  ;;  %2870 = vmatprep.subr.bf16.mxu1 %v2853_v19  ;;  %v161_v5 = vld [vmem:[%s5249_s0 + $0x4b0] sm:$0xff]  ;;  %v162_v7 = vld [vmem:[%s5249_s0 + $0x4b8] sm:$0xff]  ;;  %v163_v9 = vld [vmem:[%s5249_s0 + $0x4c0] sm:$0xff] }
  0x17   :  { %v36_v10 = vld [vmem:[%s5249_s0 + $0xc8] sm:$0xff]  ;;  %v37_v12 = vld [vmem:[%s5249_s0 + $0xd0] sm:$0xff]  ;;  %v38_v14 = vld [vmem:[%s5249_s0 + $0xd8] sm:$0xff] }
  0x18   :  { %v164_v11 = vld [vmem:[%s5249_s0 + $0x4c8] sm:$0xff]  ;;  %v165_v13 = vld [vmem:[%s5249_s0 + $0x4d0] sm:$0xff]  ;;  %v166_v15 = vld [vmem:[%s5249_s0 + $0x4d8] sm:$0xff] }
  0x19   :  { %2856 = vmatpush3.bf16.msra.mxu0 %v2853_v19  ;;  %2878 = vmatpush3.bf16.msra.mxu1 %v2853_v19  ;;  %v39_v16 = vld [vmem:[%s5249_s0 + $0xe0] sm:$0xff]  ;;  %v40_v18 = vld [vmem:[%s5249_s0 + $0xe8] sm:$0xff]  ;;  %v41_v20 = vld [vmem:[%s5249_s0 + $0xf0] sm:$0xff] }
  0x1a   :  { %2858 = vmatprep.subr.bf16.mxu0 %v2857_v22  ;;  %2871 = vmatprep.subr.bf16.mxu1 %v2857_v22  ;;  %v167_v17 = vld [vmem:[%s5249_s0 + $0x4e0] sm:$0xff]  ;;  %v168_v19 = vld [vmem:[%s5249_s0 + $0x4e8] sm:$0xff]  ;;  %v169_v21 = vld [vmem:[%s5249_s0 + $0x4f0] sm:$0xff] }
  0x1b   :  { %v170_v23 = vld [vmem:[%s5249_s0 + $0x4f8] sm:$0xff]  ;;  %v43_v24 = vld [vmem:[%s5249_s0 + $0x100] sm:$0xff] }
  0x1d   :  { %2860 = vmatpush3.bf16.msra.mxu0 %v2857_v22  ;;  %2879 = vmatpush3.bf16.msra.mxu1 %v2857_v22  ;;  %v42_v22 = vld [vmem:[%s5249_s0 + $0xf8] sm:$0xff] }
  0x1e   :  { %2862 = vmatprep.subr.bf16.mxu0 %v2861_v25  ;;  %2872 = vmatprep.subr.bf16.mxu1 %v2861_v25 }
  0x21   :  { %2864 = vmatpush3.bf16.msra.mxu0 %v2861_v25  ;;  %2880 = vmatpush3.bf16.msra.mxu1 %v2861_v25  ;;  %v171_v25 = vld [vmem:[%s5249_s0 + $0x500] sm:$0xff] }
  0x24   :  { %2450 = vmatmul.mubr.f32.vlgmr.msra.gmra.mrb[0].mxu0 %v12_v26  ;;  %2642 = vmatmul.mubr.f32.vlgmr.msra.gmra.mrb[0].mxu1 %v140_v27  ;;  %v44_v26 = vld [vmem:[%s5249_s0 + $0x108] sm:$0xff] }
  0x25   :  { %2452 = vmatprep.mubr.f32.mxu0 %v13_v28  ;;  %2644 = vmatprep.mubr.f32.mxu1 %v141_v29  ;;  %v172_v27 = vld [vmem:[%s5249_s0 + $0x508] sm:$0xff]  ;;  %v45_v28 = vld [vmem:[%s5249_s0 + $0x110] sm:$0xff] }
  0x26   :  { %v173_v29 = vld [vmem:[%s5249_s0 + $0x510] sm:$0xff] }
  0x28   :  { %2453 = vmatmul.mubr.f32.gmra.mrb[2].mxu0 %v14_v30  ;;  %2645 = vmatmul.mubr.f32.gmra.mrb[2].mxu1 %v142_v31  ;;  %v46_v30 = vld [vmem:[%s5249_s0 + $0x118] sm:$0xff] }
  0x29   :  { %2455 = vmatprep.mubr.f32.mxu0 %v15_v32  ;;  %2647 = vmatprep.mubr.f32.mxu1 %v143_v33  ;;  %v174_v31 = vld [vmem:[%s5249_s0 + $0x518] sm:$0xff]  ;;  %v47_v32 = vld [vmem:[%s5249_s0 + $0x120] sm:$0xff] }
  0x2a   :  { %v175_v33 = vld [vmem:[%s5249_s0 + $0x520] sm:$0xff] }
  0x2c   :  { %2456 = vmatmul.mubr.f32.gmra.mrb[4].mxu0 %v16_v34  ;;  %2648 = vmatmul.mubr.f32.gmra.mrb[4].mxu1 %v144_v35  ;;  %v48_v34 = vld [vmem:[%s5249_s0 + $0x128] sm:$0xff] }
  0x2d   :  { %2458 = vmatprep.mubr.f32.mxu0 %v17_v36  ;;  %2650 = vmatprep.mubr.f32.mxu1 %v145_v37  ;;  %v176_v35 = vld [vmem:[%s5249_s0 + $0x528] sm:$0xff]  ;;  %v49_v36 = vld [vmem:[%s5249_s0 + $0x130] sm:$0xff] }
  0x2e   :  { %v177_v37 = vld [vmem:[%s5249_s0 + $0x530] sm:$0xff] }
  0x30   :  { %2459 = vmatmul.mubr.f32.gmra.mrb[6].mxu0 %v18_v38  ;;  %2651 = vmatmul.mubr.f32.gmra.mrb[6].mxu1 %v146_v39  ;;  %v50_v38 = vld [vmem:[%s5249_s0 + $0x138] sm:$0xff] }
  0x31   :  { %2461 = vmatprep.mubr.f32.mxu0 %v19_v40  ;;  %2653 = vmatprep.mubr.f32.mxu1 %v147_v41  ;;  %v178_v39 = vld [vmem:[%s5249_s0 + $0x538] sm:$0xff]  ;;  %v51_v40 = vld [vmem:[%s5249_s0 + $0x140] sm:$0xff] }
  0x32   :  { %v179_v41 = vld [vmem:[%s5249_s0 + $0x540] sm:$0xff] }
  0x34   :  { %2462 = vmatmul.mubr.f32.gmra.mrb[8].mxu0 %v20_v42  ;;  %2654 = vmatmul.mubr.f32.gmra.mrb[8].mxu1 %v148_v43  ;;  %v52_v42 = vld [vmem:[%s5249_s0 + $0x148] sm:$0xff] }
  0x35   :  { %2464 = vmatprep.mubr.f32.mxu0 %v21_v44  ;;  %2656 = vmatprep.mubr.f32.mxu1 %v149_v45  ;;  %v180_v43 = vld [vmem:[%s5249_s0 + $0x548] sm:$0xff]  ;;  %v53_v44 = vld [vmem:[%s5249_s0 + $0x150] sm:$0xff] }
  0x36   :  { %v181_v45 = vld [vmem:[%s5249_s0 + $0x550] sm:$0xff] }
  0x38   :  { %2465 = vmatmul.mubr.f32.gmra.mrb[10].mxu0 %v22_v46  ;;  %2657 = vmatmul.mubr.f32.gmra.mrb[10].mxu1 %v150_v47  ;;  %v54_v46 = vld [vmem:[%s5249_s0 + $0x158] sm:$0xff] }
  0x39   :  { %2467 = vmatprep.mubr.f32.mxu0 %v23_v48  ;;  %2659 = vmatprep.mubr.f32.mxu1 %v151_v49  ;;  %v182_v47 = vld [vmem:[%s5249_s0 + $0x558] sm:$0xff]  ;;  %v55_v48 = vld [vmem:[%s5249_s0 + $0x160] sm:$0xff] }
  0x3a   :  { %v183_v49 = vld [vmem:[%s5249_s0 + $0x560] sm:$0xff] }
  0x3c   :  { %2468 = vmatmul.mubr.f32.gmra.mrb[12].mxu0 %v24_v50  ;;  %2660 = vmatmul.mubr.f32.gmra.mrb[12].mxu1 %v152_v51  ;;  %v56_v50 = vld [vmem:[%s5249_s0 + $0x168] sm:$0xff] }
  0x3d   :  { %2470 = vmatprep.mubr.f32.mxu0 %v25_v52  ;;  %2662 = vmatprep.mubr.f32.mxu1 %v153_v53  ;;  %v184_v51 = vld [vmem:[%s5249_s0 + $0x568] sm:$0xff]  ;;  %v57_v52 = vld [vmem:[%s5249_s0 + $0x170] sm:$0xff] }
  0x3e   :  { %v185_v53 = vld [vmem:[%s5249_s0 + $0x570] sm:$0xff] }
  0x40   :  { %2471 = vmatmul.mubr.f32.gmra.mrb[14].mxu0 %v26_v54  ;;  %2663 = vmatmul.mubr.f32.gmra.mrb[14].mxu1 %v154_v55  ;;  %v58_v54 = vld [vmem:[%s5249_s0 + $0x178] sm:$0xff] }
  0x41   :  { %2473 = vmatprep.mubr.f32.mxu0 %v27_v56  ;;  %2665 = vmatprep.mubr.f32.mxu1 %v155_v57  ;;  %v186_v55 = vld [vmem:[%s5249_s0 + $0x578] sm:$0xff]  ;;  %v59_v56 = vld [vmem:[%s5249_s0 + $0x180] sm:$0xff] }
  0x42   :  { %v187_v57 = vld [vmem:[%s5249_s0 + $0x580] sm:$0xff] }
  0x44   :  { %2474 = vmatmul.mubr.f32.gmra.mrb[16].mxu0 %v28_v58  ;;  %2666 = vmatmul.mubr.f32.gmra.mrb[16].mxu1 %v156_v59  ;;  %v60_v58 = vld [vmem:[%s5249_s0 + $0x188] sm:$0xff] }
  0x45   :  { %2476 = vmatprep.mubr.f32.mxu0 %v29_v60  ;;  %2668 = vmatprep.mubr.f32.mxu1 %v157_v61  ;;  %v188_v59 = vld [vmem:[%s5249_s0 + $0x588] sm:$0xff]  ;;  %v61_v60 = vld [vmem:[%s5249_s0 + $0x190] sm:$0xff] }
  0x46   :  { %v189_v61 = vld [vmem:[%s5249_s0 + $0x590] sm:$0xff] }
  0x48   :  { %2477 = vmatmul.mubr.f32.gmra.mrb[18].mxu0 %v30_v62  ;;  %2669 = vmatmul.mubr.f32.gmra.mrb[18].mxu1 %v158_v63  ;;  %v62_v62 = vld [vmem:[%s5249_s0 + $0x198] sm:$0xff] }
  0x49   :  { %2479 = vmatprep.mubr.f32.mxu0 %v31_v0  ;;  %2671 = vmatprep.mubr.f32.mxu1 %v159_v1  ;;  %v190_v63 = vld [vmem:[%s5249_s0 + $0x598] sm:$0xff]  ;;  %v63_v0 = vld [vmem:[%s5249_s0 + $0x1a0] sm:$0xff] }
  0x4a   :  { %v191_v1 = vld [vmem:[%s5249_s0 + $0x5a0] sm:$0xff] }
  0x4c   :  { %2480 = vmatmul.mubr.f32.gmra.mrb[20].mxu0 %v32_v2  ;;  %2672 = vmatmul.mubr.f32.gmra.mrb[20].mxu1 %v160_v3  ;;  %v64_v2 = vld [vmem:[%s5249_s0 + $0x1a8] sm:$0xff] }
  0x4d   :  { %2482 = vmatprep.mubr.f32.mxu0 %v33_v4  ;;  %2674 = vmatprep.mubr.f32.mxu1 %v161_v5  ;;  %v192_v3 = vld [vmem:[%s5249_s0 + $0x5a8] sm:$0xff]  ;;  %v65_v4 = vld [vmem:[%s5249_s0 + $0x1b0] sm:$0xff] }
  0x4e   :  { %v193_v5 = vld [vmem:[%s5249_s0 + $0x5b0] sm:$0xff] }
  0x50   :  { %2483 = vmatmul.mubr.f32.gmra.mrb[22].mxu0 %v34_v6  ;;  %2675 = vmatmul.mubr.f32.gmra.mrb[22].mxu1 %v162_v7  ;;  %v66_v6 = vld [vmem:[%s5249_s0 + $0x1b8] sm:$0xff] }
  0x51   :  { %2485 = vmatprep.mubr.f32.mxu0 %v35_v8  ;;  %2677 = vmatprep.mubr.f32.mxu1 %v163_v9  ;;  %v194_v7 = vld [vmem:[%s5249_s0 + $0x5b8] sm:$0xff]  ;;  %v67_v8 = vld [vmem:[%s5249_s0 + $0x1c0] sm:$0xff] }
  0x52   :  { %v195_v9 = vld [vmem:[%s5249_s0 + $0x5c0] sm:$0xff] }
  0x54   :  { %2486 = vmatmul.mubr.f32.gmra.mrb[24].mxu0 %v36_v10  ;;  %2678 = vmatmul.mubr.f32.gmra.mrb[24].mxu1 %v164_v11  ;;  %v68_v10 = vld [vmem:[%s5249_s0 + $0x1c8] sm:$0xff] }
  0x55   :  { %2488 = vmatprep.mubr.f32.mxu0 %v37_v12  ;;  %2680 = vmatprep.mubr.f32.mxu1 %v165_v13  ;;  %v196_v11 = vld [vmem:[%s5249_s0 + $0x5c8] sm:$0xff]  ;;  %v69_v12 = vld [vmem:[%s5249_s0 + $0x1d0] sm:$0xff] }
  0x56   :  { %v197_v13 = vld [vmem:[%s5249_s0 + $0x5d0] sm:$0xff] }
  0x58   :  { %2489 = vmatmul.mubr.f32.gmra.mrb[26].mxu0 %v38_v14  ;;  %2681 = vmatmul.mubr.f32.gmra.mrb[26].mxu1 %v166_v15  ;;  %v70_v14 = vld [vmem:[%s5249_s0 + $0x1d8] sm:$0xff] }
  0x59   :  { %2491 = vmatprep.mubr.f32.mxu0 %v39_v16  ;;  %2683 = vmatprep.mubr.f32.mxu1 %v167_v17  ;;  %v198_v15 = vld [vmem:[%s5249_s0 + $0x5d8] sm:$0xff]  ;;  %v71_v16 = vld [vmem:[%s5249_s0 + $0x1e0] sm:$0xff] }
  0x5a   :  { %v199_v17 = vld [vmem:[%s5249_s0 + $0x5e0] sm:$0xff] }
  0x5c   :  { %2492 = vmatmul.mubr.f32.gmra.mrb[28].mxu0 %v40_v18  ;;  %2684 = vmatmul.mubr.f32.gmra.mrb[28].mxu1 %v168_v19  ;;  %v72_v18 = vld [vmem:[%s5249_s0 + $0x1e8] sm:$0xff] }
  0x5d   :  { %2494 = vmatprep.mubr.f32.mxu0 %v41_v20  ;;  %2686 = vmatprep.mubr.f32.mxu1 %v169_v21  ;;  %v200_v19 = vld [vmem:[%s5249_s0 + $0x5e8] sm:$0xff]  ;;  %v73_v20 = vld [vmem:[%s5249_s0 + $0x1f0] sm:$0xff] }
  0x5e   :  { %v201_v21 = vld [vmem:[%s5249_s0 + $0x5f0] sm:$0xff] }
  0x60   :  { %2495 = vmatmul.mubr.f32.gmra.mrb[30].mxu0 %v42_v22  ;;  %2687 = vmatmul.mubr.f32.gmra.mrb[30].mxu1 %v170_v23  ;;  %v74_v22 = vld [vmem:[%s5249_s0 + $0x1f8] sm:$0xff] }
  0x61   :  { %2497 = vmatprep.mubr.f32.mxu0 %v43_v24  ;;  %2689 = vmatprep.mubr.f32.mxu1 %v171_v25  ;;  %v202_v23 = vld [vmem:[%s5249_s0 + $0x5f8] sm:$0xff]  ;;  %v75_v24 = vld [vmem:[%s5249_s0 + $0x200] sm:$0xff] }
  0x62   :  { %v203_v25 = vld [vmem:[%s5249_s0 + $0x600] sm:$0xff] }
  0x64   :  { %2498 = vmatmul.mubr.f32.gmra.mrb[32].mxu0 %v44_v26  ;;  %2690 = vmatmul.mubr.f32.gmra.mrb[32].mxu1 %v172_v27  ;;  %v76_v26 = vld [vmem:[%s5249_s0 + $0x208] sm:$0xff] }
  0x65   :  { %2500 = vmatprep.mubr.f32.mxu0 %v45_v28  ;;  %2692 = vmatprep.mubr.f32.mxu1 %v173_v29  ;;  %v204_v27 = vld [vmem:[%s5249_s0 + $0x608] sm:$0xff]  ;;  %v77_v28 = vld [vmem:[%s5249_s0 + $0x210] sm:$0xff] }
  0x66   :  { %v205_v29 = vld [vmem:[%s5249_s0 + $0x610] sm:$0xff] }
  0x68   :  { %2501 = vmatmul.mubr.f32.gmra.mrb[34].mxu0 %v46_v30  ;;  %2693 = vmatmul.mubr.f32.gmra.mrb[34].mxu1 %v174_v31  ;;  %v78_v30 = vld [vmem:[%s5249_s0 + $0x218] sm:$0xff] }
  0x69   :  { %2503 = vmatprep.mubr.f32.mxu0 %v47_v32  ;;  %2695 = vmatprep.mubr.f32.mxu1 %v175_v33  ;;  %v206_v31 = vld [vmem:[%s5249_s0 + $0x618] sm:$0xff]  ;;  %v79_v32 = vld [vmem:[%s5249_s0 + $0x220] sm:$0xff] }
  0x6a   :  { %v207_v33 = vld [vmem:[%s5249_s0 + $0x620] sm:$0xff] }
  0x6c   :  { %2504 = vmatmul.mubr.f32.gmra.mrb[36].mxu0 %v48_v34  ;;  %2696 = vmatmul.mubr.f32.gmra.mrb[36].mxu1 %v176_v35  ;;  %v80_v34 = vld [vmem:[%s5249_s0 + $0x228] sm:$0xff] }
  0x6d   :  { %2506 = vmatprep.mubr.f32.mxu0 %v49_v36  ;;  %2698 = vmatprep.mubr.f32.mxu1 %v177_v37  ;;  %v208_v35 = vld [vmem:[%s5249_s0 + $0x628] sm:$0xff]  ;;  %v81_v36 = vld [vmem:[%s5249_s0 + $0x230] sm:$0xff] }
  0x6e   :  { %v209_v37 = vld [vmem:[%s5249_s0 + $0x630] sm:$0xff] }
  0x70   :  { %2507 = vmatmul.mubr.f32.gmra.mrb[38].mxu0 %v50_v38  ;;  %2699 = vmatmul.mubr.f32.gmra.mrb[38].mxu1 %v178_v39  ;;  %v82_v38 = vld [vmem:[%s5249_s0 + $0x238] sm:$0xff] }
  0x71   :  { %2509 = vmatprep.mubr.f32.mxu0 %v51_v40  ;;  %2701 = vmatprep.mubr.f32.mxu1 %v179_v41  ;;  %v210_v39 = vld [vmem:[%s5249_s0 + $0x638] sm:$0xff]  ;;  %v83_v40 = vld [vmem:[%s5249_s0 + $0x240] sm:$0xff] }
  0x72   :  { %v211_v41 = vld [vmem:[%s5249_s0 + $0x640] sm:$0xff] }
  0x74   :  { %2510 = vmatmul.mubr.f32.gmra.mrb[40].mxu0 %v52_v42  ;;  %2702 = vmatmul.mubr.f32.gmra.mrb[40].mxu1 %v180_v43  ;;  %v84_v42 = vld [vmem:[%s5249_s0 + $0x248] sm:$0xff] }
  0x75   :  { %2512 = vmatprep.mubr.f32.mxu0 %v53_v44  ;;  %2704 = vmatprep.mubr.f32.mxu1 %v181_v45  ;;  %v212_v43 = vld [vmem:[%s5249_s0 + $0x648] sm:$0xff]  ;;  %v85_v44 = vld [vmem:[%s5249_s0 + $0x250] sm:$0xff] }
  0x76   :  { %v213_v45 = vld [vmem:[%s5249_s0 + $0x650] sm:$0xff] }
  0x78   :  { %2513 = vmatmul.mubr.f32.gmra.mrb[42].mxu0 %v54_v46  ;;  %2705 = vmatmul.mubr.f32.gmra.mrb[42].mxu1 %v182_v47  ;;  %v86_v46 = vld [vmem:[%s5249_s0 + $0x258] sm:$0xff] }
  0x79   :  { %2515 = vmatprep.mubr.f32.mxu0 %v55_v48  ;;  %2707 = vmatprep.mubr.f32.mxu1 %v183_v49  ;;  %v214_v47 = vld [vmem:[%s5249_s0 + $0x658] sm:$0xff]  ;;  %v87_v48 = vld [vmem:[%s5249_s0 + $0x260] sm:$0xff] }
  0x7a   :  { %v215_v49 = vld [vmem:[%s5249_s0 + $0x660] sm:$0xff] }
  0x7c   :  { %2516 = vmatmul.mubr.f32.gmra.mrb[44].mxu0 %v56_v50  ;;  %2708 = vmatmul.mubr.f32.gmra.mrb[44].mxu1 %v184_v51  ;;  %v88_v50 = vld [vmem:[%s5249_s0 + $0x268] sm:$0xff] }
  0x7d   :  { %2518 = vmatprep.mubr.f32.mxu0 %v57_v52  ;;  %2710 = vmatprep.mubr.f32.mxu1 %v185_v53  ;;  %v216_v51 = vld [vmem:[%s5249_s0 + $0x668] sm:$0xff]  ;;  %v89_v52 = vld [vmem:[%s5249_s0 + $0x270] sm:$0xff] }
  0x7e   :  { %v217_v53 = vld [vmem:[%s5249_s0 + $0x670] sm:$0xff] }
  0x80   :  { %2519 = vmatmul.mubr.f32.gmra.mrb[46].mxu0 %v58_v54  ;;  %2711 = vmatmul.mubr.f32.gmra.mrb[46].mxu1 %v186_v55  ;;  %v90_v54 = vld [vmem:[%s5249_s0 + $0x278] sm:$0xff] }
  0x81   :  { %2521 = vmatprep.mubr.f32.mxu0 %v59_v56  ;;  %2713 = vmatprep.mubr.f32.mxu1 %v187_v57  ;;  %v218_v55 = vld [vmem:[%s5249_s0 + $0x678] sm:$0xff]  ;;  %v91_v56 = vld [vmem:[%s5249_s0 + $0x280] sm:$0xff] }
  0x82   :  { %v219_v57 = vld [vmem:[%s5249_s0 + $0x680] sm:$0xff] }
  0x84   :  { %2522 = vmatmul.mubr.f32.gmra.mrb[48].mxu0 %v60_v58  ;;  %2714 = vmatmul.mubr.f32.gmra.mrb[48].mxu1 %v188_v59  ;;  %v92_v58 = vld [vmem:[%s5249_s0 + $0x288] sm:$0xff] }
  0x85   :  { %2524 = vmatprep.mubr.f32.mxu0 %v61_v60  ;;  %2716 = vmatprep.mubr.f32.mxu1 %v189_v61  ;;  %v220_v59 = vld [vmem:[%s5249_s0 + $0x688] sm:$0xff]  ;;  %v93_v60 = vld [vmem:[%s5249_s0 + $0x290] sm:$0xff] }
  0x86   :  { %v221_v61 = vld [vmem:[%s5249_s0 + $0x690] sm:$0xff] }
  0x88   :  { %2525 = vmatmul.mubr.f32.gmra.mrb[50].mxu0 %v62_v62  ;;  %2717 = vmatmul.mubr.f32.gmra.mrb[50].mxu1 %v190_v63  ;;  %v94_v62 = vld [vmem:[%s5249_s0 + $0x298] sm:$0xff] }
  0x89   :  { %2527 = vmatprep.mubr.f32.mxu0 %v63_v0  ;;  %2719 = vmatprep.mubr.f32.mxu1 %v191_v1  ;;  %v222_v63 = vld [vmem:[%s5249_s0 + $0x698] sm:$0xff]  ;;  %v95_v0 = vld [vmem:[%s5249_s0 + $0x2a0] sm:$0xff] }
  0x8a   :  { %v223_v1 = vld [vmem:[%s5249_s0 + $0x6a0] sm:$0xff] }
  0x8c   :  { %2528 = vmatmul.mubr.f32.gmra.mrb[52].mxu0 %v64_v2  ;;  %2720 = vmatmul.mubr.f32.gmra.mrb[52].mxu1 %v192_v3  ;;  %v96_v2 = vld [vmem:[%s5249_s0 + $0x2a8] sm:$0xff] }
  0x8d   :  { %2530 = vmatprep.mubr.f32.mxu0 %v65_v4  ;;  %2722 = vmatprep.mubr.f32.mxu1 %v193_v5  ;;  %v224_v3 = vld [vmem:[%s5249_s0 + $0x6a8] sm:$0xff]  ;;  %v97_v4 = vld [vmem:[%s5249_s0 + $0x2b0] sm:$0xff] }
  0x8e   :  { %v225_v5 = vld [vmem:[%s5249_s0 + $0x6b0] sm:$0xff] }
  0x90   :  { %2531 = vmatmul.mubr.f32.gmra.mrb[54].mxu0 %v66_v6  ;;  %2723 = vmatmul.mubr.f32.gmra.mrb[54].mxu1 %v194_v7  ;;  %v98_v6 = vld [vmem:[%s5249_s0 + $0x2b8] sm:$0xff] }
  0x91   :  { %2533 = vmatprep.mubr.f32.mxu0 %v67_v8  ;;  %2725 = vmatprep.mubr.f32.mxu1 %v195_v9  ;;  %v226_v7 = vld [vmem:[%s5249_s0 + $0x6b8] sm:$0xff]  ;;  %v99_v8 = vld [vmem:[%s5249_s0 + $0x2c0] sm:$0xff] }
  0x92   :  { %v227_v9 = vld [vmem:[%s5249_s0 + $0x6c0] sm:$0xff] }
  0x94   :  { %2534 = vmatmul.mubr.f32.gmra.mrb[56].mxu0 %v68_v10  ;;  %2726 = vmatmul.mubr.f32.gmra.mrb[56].mxu1 %v196_v11  ;;  %v100_v10 = vld [vmem:[%s5249_s0 + $0x2c8] sm:$0xff] }
  0x95   :  { %2536 = vmatprep.mubr.f32.mxu0 %v69_v12  ;;  %2728 = vmatprep.mubr.f32.mxu1 %v197_v13  ;;  %v228_v11 = vld [vmem:[%s5249_s0 + $0x6c8] sm:$0xff]  ;;  %v101_v12 = vld [vmem:[%s5249_s0 + $0x2d0] sm:$0xff] }
  0x96   :  { %v229_v13 = vld [vmem:[%s5249_s0 + $0x6d0] sm:$0xff] }
  0x98   :  { %2537 = vmatmul.mubr.f32.gmra.mrb[58].mxu0 %v70_v14  ;;  %2729 = vmatmul.mubr.f32.gmra.mrb[58].mxu1 %v198_v15  ;;  %v102_v14 = vld [vmem:[%s5249_s0 + $0x2d8] sm:$0xff] }
  0x99   :  { %2539 = vmatprep.mubr.f32.mxu0 %v71_v16  ;;  %2731 = vmatprep.mubr.f32.mxu1 %v199_v17  ;;  %v230_v15 = vld [vmem:[%s5249_s0 + $0x6d8] sm:$0xff]  ;;  %v103_v16 = vld [vmem:[%s5249_s0 + $0x2e0] sm:$0xff] }
  0x9a   :  { %v231_v17 = vld [vmem:[%s5249_s0 + $0x6e0] sm:$0xff] }
  0x9c   :  { %2540 = vmatmul.mubr.f32.gmra.mrb[60].mxu0 %v72_v18  ;;  %2732 = vmatmul.mubr.f32.gmra.mrb[60].mxu1 %v200_v19  ;;  %v104_v18 = vld [vmem:[%s5249_s0 + $0x2e8] sm:$0xff] }
  0x9d   :  { %2542 = vmatprep.mubr.f32.mxu0 %v73_v20  ;;  %2734 = vmatprep.mubr.f32.mxu1 %v201_v21  ;;  %v232_v19 = vld [vmem:[%s5249_s0 + $0x6e8] sm:$0xff]  ;;  %v105_v20 = vld [vmem:[%s5249_s0 + $0x2f0] sm:$0xff] }
  0x9e   :  { %v233_v21 = vld [vmem:[%s5249_s0 + $0x6f0] sm:$0xff] }
  0xa0   :  { %2543 = vmatmul.mubr.f32.gmra.mrb[62].mxu0 %v74_v22  ;;  %2735 = vmatmul.mubr.f32.gmra.mrb[62].mxu1 %v202_v23  ;;  %v106_v22 = vld [vmem:[%s5249_s0 + $0x2f8] sm:$0xff] }
  0xa1   :  { %2545 = vmatprep.mubr.f32.mxu0 %v75_v24  ;;  %2737 = vmatprep.mubr.f32.mxu1 %v203_v25  ;;  %v234_v23 = vld [vmem:[%s5249_s0 + $0x6f8] sm:$0xff]  ;;  %v107_v24 = vld [vmem:[%s5249_s0 + $0x300] sm:$0xff] }
  0xa2   :  { %v235_v25 = vld [vmem:[%s5249_s0 + $0x700] sm:$0xff] }
  0xa4   :  { %2546 = vmatmul.mubr.f32.gmra.mrb[64].mxu0 %v76_v26  ;;  %2738 = vmatmul.mubr.f32.gmra.mrb[64].mxu1 %v204_v27  ;;  %v108_v26 = vld [vmem:[%s5249_s0 + $0x308] sm:$0xff] }
  0xa5   :  { %2548 = vmatprep.mubr.f32.mxu0 %v77_v28  ;;  %2740 = vmatprep.mubr.f32.mxu1 %v205_v29  ;;  %v236_v27 = vld [vmem:[%s5249_s0 + $0x708] sm:$0xff]  ;;  %v109_v28 = vld [vmem:[%s5249_s0 + $0x310] sm:$0xff] }
  0xa6   :  { %v237_v29 = vld [vmem:[%s5249_s0 + $0x710] sm:$0xff] }
  0xa8   :  { %2549 = vmatmul.mubr.f32.gmra.mrb[66].mxu0 %v78_v30  ;;  %2741 = vmatmul.mubr.f32.gmra.mrb[66].mxu1 %v206_v31  ;;  %v110_v30 = vld [vmem:[%s5249_s0 + $0x318] sm:$0xff] }
  0xa9   :  { %2551 = vmatprep.mubr.f32.mxu0 %v79_v32  ;;  %2743 = vmatprep.mubr.f32.mxu1 %v207_v33  ;;  %v238_v31 = vld [vmem:[%s5249_s0 + $0x718] sm:$0xff]  ;;  %v111_v32 = vld [vmem:[%s5249_s0 + $0x320] sm:$0xff] }
  0xaa   :  { %v239_v33 = vld [vmem:[%s5249_s0 + $0x720] sm:$0xff] }
  0xac   :  { %2552 = vmatmul.mubr.f32.gmra.mrb[68].mxu0 %v80_v34  ;;  %2744 = vmatmul.mubr.f32.gmra.mrb[68].mxu1 %v208_v35  ;;  %v112_v34 = vld [vmem:[%s5249_s0 + $0x328] sm:$0xff] }
  0xad   :  { %2554 = vmatprep.mubr.f32.mxu0 %v81_v36  ;;  %2746 = vmatprep.mubr.f32.mxu1 %v209_v37  ;;  %v240_v35 = vld [vmem:[%s5249_s0 + $0x728] sm:$0xff]  ;;  %v113_v36 = vld [vmem:[%s5249_s0 + $0x330] sm:$0xff] }
  0xae   :  { %v241_v37 = vld [vmem:[%s5249_s0 + $0x730] sm:$0xff] }
  0xb0   :  { %2555 = vmatmul.mubr.f32.gmra.mrb[70].mxu0 %v82_v38  ;;  %2747 = vmatmul.mubr.f32.gmra.mrb[70].mxu1 %v210_v39  ;;  %v114_v38 = vld [vmem:[%s5249_s0 + $0x338] sm:$0xff] }
  0xb1   :  { %2557 = vmatprep.mubr.f32.mxu0 %v83_v40  ;;  %2749 = vmatprep.mubr.f32.mxu1 %v211_v41  ;;  %v242_v39 = vld [vmem:[%s5249_s0 + $0x738] sm:$0xff]  ;;  %v115_v40 = vld [vmem:[%s5249_s0 + $0x340] sm:$0xff] }
  0xb2   :  { %v243_v41 = vld [vmem:[%s5249_s0 + $0x740] sm:$0xff] }
  0xb4   :  { %2558 = vmatmul.mubr.f32.gmra.mrb[72].mxu0 %v84_v42  ;;  %2750 = vmatmul.mubr.f32.gmra.mrb[72].mxu1 %v212_v43  ;;  %v116_v42 = vld [vmem:[%s5249_s0 + $0x348] sm:$0xff] }
  0xb5   :  { %2560 = vmatprep.mubr.f32.mxu0 %v85_v44  ;;  %2752 = vmatprep.mubr.f32.mxu1 %v213_v45  ;;  %v244_v43 = vld [vmem:[%s5249_s0 + $0x748] sm:$0xff]  ;;  %v117_v44 = vld [vmem:[%s5249_s0 + $0x350] sm:$0xff] }
  0xb6   :  { %v245_v45 = vld [vmem:[%s5249_s0 + $0x750] sm:$0xff] }
  0xb8   :  { %2561 = vmatmul.mubr.f32.gmra.mrb[74].mxu0 %v86_v46  ;;  %2753 = vmatmul.mubr.f32.gmra.mrb[74].mxu1 %v214_v47  ;;  %v118_v46 = vld [vmem:[%s5249_s0 + $0x358] sm:$0xff] }
  0xb9   :  { %2563 = vmatprep.mubr.f32.mxu0 %v87_v48  ;;  %2755 = vmatprep.mubr.f32.mxu1 %v215_v49  ;;  %v246_v47 = vld [vmem:[%s5249_s0 + $0x758] sm:$0xff]  ;;  %v119_v48 = vld [vmem:[%s5249_s0 + $0x360] sm:$0xff] }
  0xba   :  { %v247_v49 = vld [vmem:[%s5249_s0 + $0x760] sm:$0xff] }
  0xbc   :  { %2564 = vmatmul.mubr.f32.gmra.mrb[76].mxu0 %v88_v50  ;;  %2756 = vmatmul.mubr.f32.gmra.mrb[76].mxu1 %v216_v51 }
  0xbd   :  { %2566 = vmatprep.mubr.f32.mxu0 %v89_v52  ;;  %2758 = vmatprep.mubr.f32.mxu1 %v217_v53 }
  0xc0   :  { %2567 = vmatmul.mubr.f32.gmra.mrb[78].mxu0 %v90_v54  ;;  %2759 = vmatmul.mubr.f32.gmra.mrb[78].mxu1 %v218_v55  ;;  %v120_v54 = vld [vmem:[%s5249_s0 + $0x368] sm:$0xff] }
  0xc1   :  { %2569 = vmatprep.mubr.f32.mxu0 %v91_v56  ;;  %2761 = vmatprep.mubr.f32.mxu1 %v219_v57  ;;  %v248_v55 = vld [vmem:[%s5249_s0 + $0x768] sm:$0xff]  ;;  %v121_v56 = vld [vmem:[%s5249_s0 + $0x370] sm:$0xff] }
  0xc2   :  { %v249_v57 = vld [vmem:[%s5249_s0 + $0x770] sm:$0xff] }
  0xc4   :  { %2570 = vmatmul.mubr.f32.gmra.mrb[80].mxu0 %v92_v58  ;;  %2762 = vmatmul.mubr.f32.gmra.mrb[80].mxu1 %v220_v59 }
  0xc5   :  { %2572 = vmatprep.mubr.f32.mxu0 %v93_v60  ;;  %2764 = vmatprep.mubr.f32.mxu1 %v221_v61 }
  0xc8   :  { %2573 = vmatmul.mubr.f32.gmra.mrb[82].mxu0 %v94_v62  ;;  %2765 = vmatmul.mubr.f32.gmra.mrb[82].mxu1 %v222_v63  ;;  %v122_v62 = vld [vmem:[%s5249_s0 + $0x378] sm:$0xff] }
  0xc9   :  { %2575 = vmatprep.mubr.f32.mxu0 %v95_v0  ;;  %2767 = vmatprep.mubr.f32.mxu1 %v223_v1  ;;  %v250_v63 = vld [vmem:[%s5249_s0 + $0x778] sm:$0xff]  ;;  %v123_v0 = vld [vmem:[%s5249_s0 + $0x380] sm:$0xff] }
  0xca   :  { %v251_v1 = vld [vmem:[%s5249_s0 + $0x780] sm:$0xff] }
  0xcc   :  { %2576 = vmatmul.mubr.f32.gmra.mrb[84].mxu0 %v96_v2  ;;  %2768 = vmatmul.mubr.f32.gmra.mrb[84].mxu1 %v224_v3 }
  0xcd   :  { %2578 = vmatprep.mubr.f32.mxu0 %v97_v4  ;;  %2770 = vmatprep.mubr.f32.mxu1 %v225_v5 }
  0xd0   :  { %2579 = vmatmul.mubr.f32.gmra.mrb[86].mxu0 %v98_v6  ;;  %2771 = vmatmul.mubr.f32.gmra.mrb[86].mxu1 %v226_v7  ;;  %v124_v6 = vld [vmem:[%s5249_s0 + $0x388] sm:$0xff] }
  0xd1   :  { %2581 = vmatprep.mubr.f32.mxu0 %v99_v8  ;;  %2773 = vmatprep.mubr.f32.mxu1 %v227_v9  ;;  %v252_v7 = vld [vmem:[%s5249_s0 + $0x788] sm:$0xff]  ;;  %v125_v9 = vld [vmem:[%s5249_s0 + $0x390] sm:$0xff] }
  0xd4   :  { %2582 = vmatmul.mubr.f32.gmra.mrb[88].mxu0 %v100_v10  ;;  %2774 = vmatmul.mubr.f32.gmra.mrb[88].mxu1 %v228_v11  ;;  %v253_v10 = vld [vmem:[%s5249_s0 + $0x790] sm:$0xff] }
  0xd5   :  { %2584 = vmatprep.mubr.f32.mxu0 %v101_v12  ;;  %2776 = vmatprep.mubr.f32.mxu1 %v229_v13 }
  0xd8   :  { %2585 = vmatmul.mubr.f32.gmra.mrb[90].mxu0 %v102_v14  ;;  %2777 = vmatmul.mubr.f32.gmra.mrb[90].mxu1 %v230_v15 }
  0xd9   :  { %2587 = vmatprep.mubr.f32.mxu0 %v103_v16  ;;  %2779 = vmatprep.mubr.f32.mxu1 %v231_v17 }
  0xdc   :  { %2588 = vmatmul.mubr.f32.gmra.mrb[92].mxu0 %v104_v18  ;;  %2780 = vmatmul.mubr.f32.gmra.mrb[92].mxu1 %v232_v19  ;;  %v126_v18 = vld [vmem:[%s5249_s0 + $0x398] sm:$0xff] }
  0xdd   :  { %2590 = vmatprep.mubr.f32.mxu0 %v105_v20  ;;  %2782 = vmatprep.mubr.f32.mxu1 %v233_v21  ;;  %v254_v19 = vld [vmem:[%s5249_s0 + $0x798] sm:$0xff]  ;;  %v127_v21 = vld [vmem:[%s5249_s0 + $0x3a0] sm:$0xff] }
  0xe0   :  { %2591 = vmatmul.mubr.f32.gmra.mrb[94].mxu0 %v106_v22  ;;  %2783 = vmatmul.mubr.f32.gmra.mrb[94].mxu1 %v234_v23  ;;  %v255_v22 = vld [vmem:[%s5249_s0 + $0x7a0] sm:$0xff] }
  0xe1   :  { %2593 = vmatprep.mubr.f32.mxu0 %v107_v24  ;;  %2785 = vmatprep.mubr.f32.mxu1 %v235_v25 }
  0xe4   :  { %2594 = vmatmul.mubr.f32.gmra.mrb[96].mxu0 %v108_v26  ;;  %2786 = vmatmul.mubr.f32.gmra.mrb[96].mxu1 %v236_v27 }
  0xe5   :  { %2596 = vmatprep.mubr.f32.mxu0 %v109_v28  ;;  %2788 = vmatprep.mubr.f32.mxu1 %v237_v29 }
  0xe8   :  { %2597 = vmatmul.mubr.f32.gmra.mrb[98].mxu0 %v110_v30  ;;  %2789 = vmatmul.mubr.f32.gmra.mrb[98].mxu1 %v238_v31  ;;  %v128_v30 = vld [vmem:[%s5249_s0 + $0x3a8] sm:$0xff] }
  0xe9   :  { %2599 = vmatprep.mubr.f32.mxu0 %v111_v32  ;;  %2791 = vmatprep.mubr.f32.mxu1 %v239_v33  ;;  %v256_v31 = vld [vmem:[%s5249_s0 + $0x7a8] sm:$0xff]  ;;  %v129_v33 = vld [vmem:[%s5249_s0 + $0x3b0] sm:$0xff] }
  0xec   :  { %2600 = vmatmul.mubr.f32.gmra.mrb[100].mxu0 %v112_v34  ;;  %2792 = vmatmul.mubr.f32.gmra.mrb[100].mxu1 %v240_v35  ;;  %v257_v34 = vld [vmem:[%s5249_s0 + $0x7b0] sm:$0xff] }
  0xed   :  { %2602 = vmatprep.mubr.f32.mxu0 %v113_v36  ;;  %2794 = vmatprep.mubr.f32.mxu1 %v241_v37 }
  0xf0   :  { %2603 = vmatmul.mubr.f32.gmra.mrb[102].mxu0 %v114_v38  ;;  %2795 = vmatmul.mubr.f32.gmra.mrb[102].mxu1 %v242_v39 }
  0xf1   :  { %2605 = vmatprep.mubr.f32.mxu0 %v115_v40  ;;  %2797 = vmatprep.mubr.f32.mxu1 %v243_v41 }
  0xf4   :  { %2606 = vmatmul.mubr.f32.gmra.mrb[104].mxu0 %v116_v42  ;;  %2798 = vmatmul.mubr.f32.gmra.mrb[104].mxu1 %v244_v43  ;;  %v130_v42 = vld [vmem:[%s5249_s0 + $0x3b8] sm:$0xff] }
  0xf5   :  { %2608 = vmatprep.mubr.f32.mxu0 %v117_v44  ;;  %2800 = vmatprep.mubr.f32.mxu1 %v245_v45  ;;  %v258_v43 = vld [vmem:[%s5249_s0 + $0x7b8] sm:$0xff]  ;;  %v131_v45 = vld [vmem:[%s5249_s0 + $0x3c0] sm:$0xff] }
  0xf7   :  { %v2451_v50 = vpop.f32.mrb[0].mxu0  ;;  %v2643_v51 = vpop.f32.mrb[0].mxu1 }
  0xf8   :  { %2881 = vtanh.f32 %v2451_v50  ;;  %v349_v52 = vpop.f32.mrb[1].mxu0  ;;  %2609 = vmatmul.mubr.f32.gmra.mrb[106].mxu0 %v118_v46  ;;  %v989_v53 = vpop.f32.mrb[1].mxu1  ;;  %2801 = vmatmul.mubr.f32.gmra.mrb[106].mxu1 %v246_v47  ;;  %v259_v46 = vld [vmem:[%s5249_s0 + $0x7c0] sm:$0xff] }
  0xf9   :  { %2883 = vtanh.f32 %v2643_v51  ;;  %2611 = vmatprep.mubr.f32.mxu0 %v119_v48  ;;  %2803 = vmatprep.mubr.f32.mxu1 %v247_v49 }
  0xfa   :  { %2885 = vtanh.f32 %v349_v52 }
  0xfb   :  { %2887 = vtanh.f32 %v989_v53  ;;  %v2454_v58 = vpop.f32.mrb[2].mxu0  ;;  %v2646_v59 = vpop.f32.mrb[2].mxu1 }
  0xfc   :  { %2889 = vtanh.f32 %v2454_v58  ;;  %v359_v60 = vpop.f32.mrb[3].mxu0  ;;  %2612 = vmatmul.mubr.f32.gmra.mrb[108].mxu0 %v120_v54  ;;  %v999_v61 = vpop.f32.mrb[3].mxu1  ;;  %2804 = vmatmul.mubr.f32.gmra.mrb[108].mxu1 %v248_v55  ;;  %v132_v54 = vld [vmem:[%s5249_s0 + $0x3c8] sm:$0xff]  ;;  %v261_v58 = vld [vmem:[%s5249_s0 + $0x7d0] sm:$0xff] }
  0xfd   :  { %2891 = vtanh.f32 %v2646_v59  ;;  %2614 = vmatprep.mubr.f32.mxu0 %v121_v56  ;;  %2806 = vmatprep.mubr.f32.mxu1 %v249_v57  ;;  %v260_v55 = vld [vmem:[%s5249_s0 + $0x7c8] sm:$0xff]  ;;  %v133_v57 = vld [vmem:[%s5249_s0 + $0x3d0] sm:$0xff] }
  0xfe   :  { %2893 = vtanh.f32 %v359_v60 }
  0xff   :  { %2895 = vtanh.f32 %v999_v61  ;;  %v2457_v2 = vpop.f32.mrb[4].mxu0  ;;  %v2649_v3 = vpop.f32.mrb[4].mxu1 }
 0x100   :  { %2897 = vtanh.f32 %v2457_v2  ;;  %v369_v4 = vpop.f32.mrb[5].mxu0  ;;  %2615 = vmatmul.mubr.f32.gmra.mrb[110].mxu0 %v122_v62  ;;  %v1009_v5 = vpop.f32.mrb[5].mxu1  ;;  %2807 = vmatmul.mubr.f32.gmra.mrb[110].mxu1 %v250_v63  ;;  %v134_v2 = vld [vmem:[%s5249_s0 + $0x3d8] sm:$0xff] }
 0x101   :  { %2899 = vtanh.f32 %v2649_v3  ;;  %2617 = vmatprep.mubr.f32.mxu0 %v123_v0  ;;  %2809 = vmatprep.mubr.f32.mxu1 %v251_v1  ;;  %v262_v3 = vld [vmem:[%s5249_s0 + $0x7d8] sm:$0xff] }
 0x102   :  { %v2882_v8 = vpop.eup %2881  ;;  %2901 = vtanh.f32 %v369_v4 }
 0x103   :  { %v2884_v11 = vpop.eup %2883  ;;  %1886 = vst.msk [vmem:[%s5250_s2 + $0x8] sm:$0xff] %vm1884_vm0, %v2882_v8  ;;  %2903 = vtanh.f32 %v1009_v5  ;;  %v2460_v12 = vpop.f32.mrb[6].mxu0  ;;  %v135_v5 = vld [vmem:[%s5249_s0 + $0x3e0] sm:$0xff] }
 0x104   :  { %v2652_v13 = vpop.f32.mrb[6].mxu1  ;;  %v2886_v14 = vpop.eup %2885  ;;  %2014 = vst.msk [vmem:[%s5250_s2 + $0x408] sm:$0xff] %vm1884_vm0, %v2884_v11  ;;  %2905 = vtanh.f32 %v2460_v12  ;;  %2618 = vmatmul.mubr.f32.gmra.mrb[112].mxu0 %v124_v6  ;;  %2810 = vmatmul.mubr.f32.gmra.mrb[112].mxu1 %v252_v7  ;;  %v263_v6 = vld [vmem:[%s5249_s0 + $0x7e0] sm:$0xff] }
 0x105   :  { %v379_v15 = vpop.f32.mrb[7].mxu0  ;;  %v1019_v16 = vpop.f32.mrb[7].mxu1  ;;  %1885 = vst.msk [vmem:[%s5250_s2] sm:$0xff] %vm1884_vm0, %v2886_v14  ;;  %2907 = vtanh.f32 %v2652_v13  ;;  %2620 = vmatprep.mubr.f32.mxu0 %v125_v9  ;;  %2812 = vmatprep.mubr.f32.mxu1 %v253_v10  ;;  %v136_v14 = vld [vmem:[%s5249_s0 + $0x3e8] sm:$0xff] }
 0x106   :  { %v2888_v17 = vpop.eup %2887  ;;  %2909 = vtanh.f32 %v379_v15  ;;  %v264_v15 = vld [vmem:[%s5249_s0 + $0x7e8] sm:$0xff] }
 0x107   :  { %v2890_v20 = vpop.eup %2889  ;;  %2013 = vst.msk [vmem:[%s5250_s2 + $0x400] sm:$0xff] %vm1884_vm0, %v2888_v17  ;;  %2911 = vtanh.f32 %v1019_v16  ;;  %v2463_v24 = vpop.f32.mrb[8].mxu0  ;;  %v137_v17 = vld [vmem:[%s5249_s0 + $0x3f0] sm:$0xff] }
 0x108   :  { %v2892_v23 = vpop.eup %2891  ;;  %1888 = vst.msk [vmem:[%s5250_s2 + $0x18] sm:$0xff] %vm1884_vm0, %v2890_v20  ;;  %v2655_v25 = vpop.f32.mrb[8].mxu1  ;;  %2913 = vtanh.f32 %v2463_v24  ;;  %2621 = vmatmul.mubr.f32.gmra.mrb[114].mxu0 %v126_v18  ;;  %2813 = vmatmul.mubr.f32.gmra.mrb[114].mxu1 %v254_v19  ;;  %v265_v18 = vld [vmem:[%s5249_s0 + $0x7f0] sm:$0xff] }
 0x109   :  { %v2894_v26 = vpop.eup %2893  ;;  %2016 = vst.msk [vmem:[%s5250_s2 + $0x418] sm:$0xff] %vm1884_vm0, %v2892_v23  ;;  %v389_v27 = vpop.f32.mrb[9].mxu0  ;;  %2915 = vtanh.f32 %v2655_v25  ;;  %2623 = vmatprep.mubr.f32.mxu0 %v127_v21  ;;  %2815 = vmatprep.mubr.f32.mxu1 %v255_v22 }
 0x10a   :  { %v1029_v28 = vpop.f32.mrb[9].mxu1  ;;  %v2896_v29 = vpop.eup %2895  ;;  %1887 = vst.msk [vmem:[%s5250_s2 + $0x10] sm:$0xff] %vm1884_vm0, %v2894_v26  ;;  %2917 = vtanh.f32 %v389_v27  ;;  %v138_v26 = vld [vmem:[%s5249_s0 + $0x3f8] sm:$0xff] }
 0x10b   :  { %v2898_v32 = vpop.eup %2897  ;;  %2015 = vst.msk [vmem:[%s5250_s2 + $0x410] sm:$0xff] %vm1884_vm0, %v2896_v29  ;;  %2919 = vtanh.f32 %v1029_v28  ;;  %v2466_v36 = vpop.f32.mrb[10].mxu0  ;;  %v266_v27 = vld [vmem:[%s5249_s0 + $0x7f8] sm:$0xff] }
 0x10c   :  { %v2900_v35 = vpop.eup %2899  ;;  %1890 = vst.msk [vmem:[%s5250_s2 + $0x28] sm:$0xff] %vm1884_vm0, %v2898_v32  ;;  %v2658_v37 = vpop.f32.mrb[10].mxu1  ;;  %2921 = vtanh.f32 %v2466_v36  ;;  %2624 = vmatmul.mubr.f32.gmra.mrb[116].mxu0 %v128_v30  ;;  %2816 = vmatmul.mubr.f32.gmra.mrb[116].mxu1 %v256_v31 }
 0x10d   :  { %v2902_v38 = vpop.eup %2901  ;;  %2018 = vst.msk [vmem:[%s5250_s2 + $0x428] sm:$0xff] %vm1884_vm0, %v2900_v35  ;;  %v399_v39 = vpop.f32.mrb[11].mxu0  ;;  %2923 = vtanh.f32 %v2658_v37  ;;  %2626 = vmatprep.mubr.f32.mxu0 %v129_v33  ;;  %2818 = vmatprep.mubr.f32.mxu1 %v257_v34 }
 0x10e   :  { %v1039_v40 = vpop.f32.mrb[11].mxu1  ;;  %v2904_v41 = vpop.eup %2903  ;;  %1889 = vst.msk [vmem:[%s5250_s2 + $0x20] sm:$0xff] %vm1884_vm0, %v2902_v38  ;;  %2925 = vtanh.f32 %v399_v39 }
 0x10f   :  { %v2906_v44 = vpop.eup %2905  ;;  %2017 = vst.msk [vmem:[%s5250_s2 + $0x420] sm:$0xff] %vm1884_vm0, %v2904_v41  ;;  %2927 = vtanh.f32 %v1039_v40  ;;  %v2469_v48 = vpop.f32.mrb[12].mxu0 }
 0x110   :  { %v2908_v47 = vpop.eup %2907  ;;  %1892 = vst.msk [vmem:[%s5250_s2 + $0x38] sm:$0xff] %vm1884_vm0, %v2906_v44  ;;  %v2661_v49 = vpop.f32.mrb[12].mxu1  ;;  %2929 = vtanh.f32 %v2469_v48  ;;  %2627 = vmatmul.mubr.f32.gmra.mrb[118].mxu0 %v130_v42  ;;  %2819 = vmatmul.mubr.f32.gmra.mrb[118].mxu1 %v258_v43 }
 0x111   :  { %v2910_v50 = vpop.eup %2909  ;;  %2020 = vst.msk [vmem:[%s5250_s2 + $0x438] sm:$0xff] %vm1884_vm0, %v2908_v47  ;;  %v409_v51 = vpop.f32.mrb[13].mxu0  ;;  %2931 = vtanh.f32 %v2661_v49  ;;  %2629 = vmatprep.mubr.f32.mxu0 %v131_v45  ;;  %2821 = vmatprep.mubr.f32.mxu1 %v259_v46 }
 0x112   :  { %v1049_v52 = vpop.f32.mrb[13].mxu1  ;;  %v2912_v53 = vpop.eup %2911  ;;  %1891 = vst.msk [vmem:[%s5250_s2 + $0x30] sm:$0xff] %vm1884_vm0, %v2910_v50  ;;  %2933 = vtanh.f32 %v409_v51 }
 0x113   :  { %v2914_v56 = vpop.eup %2913  ;;  %2019 = vst.msk [vmem:[%s5250_s2 + $0x430] sm:$0xff] %vm1884_vm0, %v2912_v53  ;;  %2935 = vtanh.f32 %v1049_v52  ;;  %v2472_v60 = vpop.f32.mrb[14].mxu0 }
 0x114   :  { %v2916_v59 = vpop.eup %2915  ;;  %1894 = vst.msk [vmem:[%s5250_s2 + $0x48] sm:$0xff] %vm1884_vm0, %v2914_v56  ;;  %v2664_v61 = vpop.f32.mrb[14].mxu1  ;;  %2937 = vtanh.f32 %v2472_v60  ;;  %2630 = vmatmul.mubr.f32.gmra.mrb[120].mxu0 %v132_v54  ;;  %2822 = vmatmul.mubr.f32.gmra.mrb[120].mxu1 %v260_v55 }
 0x115   :  { %v2918_v62 = vpop.eup %2917  ;;  %2022 = vst.msk [vmem:[%s5250_s2 + $0x448] sm:$0xff] %vm1884_vm0, %v2916_v59  ;;  %v419_v63 = vpop.f32.mrb[15].mxu0  ;;  %2939 = vtanh.f32 %v2664_v61  ;;  %2632 = vmatprep.mubr.f32.mxu0 %v133_v57  ;;  %2824 = vmatprep.mubr.f32.mxu1 %v261_v58 }
 0x116   :  { %v1059_v0 = vpop.f32.mrb[15].mxu1  ;;  %v2920_v1 = vpop.eup %2919  ;;  %1893 = vst.msk [vmem:[%s5250_s2 + $0x40] sm:$0xff] %vm1884_vm0, %v2918_v62  ;;  %2941 = vtanh.f32 %v419_v63 }
 0x117   :  { %v2922_v4 = vpop.eup %2921  ;;  %2021 = vst.msk [vmem:[%s5250_s2 + $0x440] sm:$0xff] %vm1884_vm0, %v2920_v1  ;;  %2943 = vtanh.f32 %v1059_v0  ;;  %v2475_v8 = vpop.f32.mrb[16].mxu0 }
 0x118   :  { %v2924_v7 = vpop.eup %2923  ;;  %1896 = vst.msk [vmem:[%s5250_s2 + $0x58] sm:$0xff] %vm1884_vm0, %v2922_v4  ;;  %v2667_v9 = vpop.f32.mrb[16].mxu1  ;;  %2945 = vtanh.f32 %v2475_v8  ;;  %2633 = vmatmul.mubr.f32.gmra.mrb[122].mxu0 %v134_v2  ;;  %2825 = vmatmul.mubr.f32.gmra.mrb[122].mxu1 %v262_v3 }
 0x119   :  { %v2926_v10 = vpop.eup %2925  ;;  %2024 = vst.msk [vmem:[%s5250_s2 + $0x458] sm:$0xff] %vm1884_vm0, %v2924_v7  ;;  %v429_v11 = vpop.f32.mrb[17].mxu0  ;;  %2947 = vtanh.f32 %v2667_v9  ;;  %2635 = vmatprep.mubr.f32.mxu0 %v135_v5  ;;  %2827 = vmatprep.mubr.f32.mxu1 %v263_v6 }
 0x11a   :  { %v1069_v12 = vpop.f32.mrb[17].mxu1  ;;  %v2928_v13 = vpop.eup %2927  ;;  %1895 = vst.msk [vmem:[%s5250_s2 + $0x50] sm:$0xff] %vm1884_vm0, %v2926_v10  ;;  %2949 = vtanh.f32 %v429_v11 }
 0x11b   :  { %v2930_v16 = vpop.eup %2929  ;;  %2023 = vst.msk [vmem:[%s5250_s2 + $0x450] sm:$0xff] %vm1884_vm0, %v2928_v13  ;;  %2951 = vtanh.f32 %v1069_v12  ;;  %v2478_v20 = vpop.f32.mrb[18].mxu0 }
 0x11c   :  { %v2932_v19 = vpop.eup %2931  ;;  %1898 = vst.msk [vmem:[%s5250_s2 + $0x68] sm:$0xff] %vm1884_vm0, %v2930_v16  ;;  %v2670_v21 = vpop.f32.mrb[18].mxu1  ;;  %2953 = vtanh.f32 %v2478_v20  ;;  %2636 = vmatmul.mubr.f32.gmra.mrb[124].mxu0 %v136_v14  ;;  %2828 = vmatmul.mubr.f32.gmra.mrb[124].mxu1 %v264_v15 }
 0x11d   :  { %v2934_v22 = vpop.eup %2933  ;;  %2026 = vst.msk [vmem:[%s5250_s2 + $0x468] sm:$0xff] %vm1884_vm0, %v2932_v19  ;;  %v439_v23 = vpop.f32.mrb[19].mxu0  ;;  %2955 = vtanh.f32 %v2670_v21  ;;  %2638 = vmatprep.mubr.f32.mxu0 %v137_v17  ;;  %2830 = vmatprep.mubr.f32.mxu1 %v265_v18 }
 0x11e   :  { %v1079_v24 = vpop.f32.mrb[19].mxu1  ;;  %v2936_v25 = vpop.eup %2935  ;;  %1897 = vst.msk [vmem:[%s5250_s2 + $0x60] sm:$0xff] %vm1884_vm0, %v2934_v22  ;;  %2957 = vtanh.f32 %v439_v23 }
 0x11f   :  { %v2938_v28 = vpop.eup %2937  ;;  %2025 = vst.msk [vmem:[%s5250_s2 + $0x460] sm:$0xff] %vm1884_vm0, %v2936_v25  ;;  %2959 = vtanh.f32 %v1079_v24  ;;  %v2481_v30 = vpop.f32.mrb[20].mxu0 }
 0x120   :  { %v2940_v29 = vpop.eup %2939  ;;  %1900 = vst.msk [vmem:[%s5250_s2 + $0x78] sm:$0xff] %vm1884_vm0, %v2938_v28  ;;  %v2673_v31 = vpop.f32.mrb[20].mxu1  ;;  %2961 = vtanh.f32 %v2481_v30  ;;  %2639 = vmatmul.mubr.f32.gmra.mrb[126].mxu0 %v138_v26  ;;  %2831 = vmatmul.mubr.f32.gmra.mrb[126].mxu1 %v266_v27 }
 0x121   :  { %v2942_v32 = vpop.eup %2941  ;;  %2028 = vst.msk [vmem:[%s5250_s2 + $0x478] sm:$0xff] %vm1884_vm0, %v2940_v29  ;;  %v449_v33 = vpop.f32.mrb[21].mxu0  ;;  %2963 = vtanh.f32 %v2673_v31 }
 0x122   :  { %v1089_v34 = vpop.f32.mrb[21].mxu1  ;;  %v2944_v35 = vpop.eup %2943  ;;  %1899 = vst.msk [vmem:[%s5250_s2 + $0x70] sm:$0xff] %vm1884_vm0, %v2942_v32  ;;  %2965 = vtanh.f32 %v449_v33 }
 0x123   :  { %v2946_v36 = vpop.eup %2945  ;;  %2027 = vst.msk [vmem:[%s5250_s2 + $0x470] sm:$0xff] %vm1884_vm0, %v2944_v35  ;;  %2967 = vtanh.f32 %v1089_v34  ;;  %v2484_v38 = vpop.f32.mrb[22].mxu0 }
 0x124   :  { %v2948_v37 = vpop.eup %2947  ;;  %1902 = vst.msk [vmem:[%s5250_s2 + $0x88] sm:$0xff] %vm1884_vm0, %v2946_v36  ;;  %v2676_v39 = vpop.f32.mrb[22].mxu1  ;;  %2969 = vtanh.f32 %v2484_v38 }
 0x125   :  { %v2950_v40 = vpop.eup %2949  ;;  %2030 = vst.msk [vmem:[%s5250_s2 + $0x488] sm:$0xff] %vm1884_vm0, %v2948_v37  ;;  %v459_v41 = vpop.f32.mrb[23].mxu0  ;;  %2971 = vtanh.f32 %v2676_v39 }
 0x126   :  { %v1099_v42 = vpop.f32.mrb[23].mxu1  ;;  %v2952_v43 = vpop.eup %2951  ;;  %1901 = vst.msk [vmem:[%s5250_s2 + $0x80] sm:$0xff] %vm1884_vm0, %v2950_v40  ;;  %2973 = vtanh.f32 %v459_v41 }
 0x127   :  { %v2954_v44 = vpop.eup %2953  ;;  %2029 = vst.msk [vmem:[%s5250_s2 + $0x480] sm:$0xff] %vm1884_vm0, %v2952_v43  ;;  %2975 = vtanh.f32 %v1099_v42  ;;  %v2487_v46 = vpop.f32.mrb[24].mxu0 }
 0x128   :  { %v2956_v45 = vpop.eup %2955  ;;  %1904 = vst.msk [vmem:[%s5250_s2 + $0x98] sm:$0xff] %vm1884_vm0, %v2954_v44  ;;  %v2679_v47 = vpop.f32.mrb[24].mxu1  ;;  %2977 = vtanh.f32 %v2487_v46 }
 0x129   :  { %v2958_v48 = vpop.eup %2957  ;;  %2032 = vst.msk [vmem:[%s5250_s2 + $0x498] sm:$0xff] %vm1884_vm0, %v2956_v45  ;;  %v469_v49 = vpop.f32.mrb[25].mxu0  ;;  %2979 = vtanh.f32 %v2679_v47 }
 0x12a   :  { %v1109_v50 = vpop.f32.mrb[25].mxu1  ;;  %v2960_v51 = vpop.eup %2959  ;;  %1903 = vst.msk [vmem:[%s5250_s2 + $0x90] sm:$0xff] %vm1884_vm0, %v2958_v48  ;;  %2981 = vtanh.f32 %v469_v49 }
 0x12b   :  { %v2962_v52 = vpop.eup %2961  ;;  %2031 = vst.msk [vmem:[%s5250_s2 + $0x490] sm:$0xff] %vm1884_vm0, %v2960_v51  ;;  %2983 = vtanh.f32 %v1109_v50  ;;  %v2490_v54 = vpop.f32.mrb[26].mxu0 }
 0x12c   :  { %v2964_v53 = vpop.eup %2963  ;;  %1906 = vst.msk [vmem:[%s5250_s2 + $0xa8] sm:$0xff] %vm1884_vm0, %v2962_v52  ;;  %v2682_v55 = vpop.f32.mrb[26].mxu1  ;;  %2985 = vtanh.f32 %v2490_v54 }
 0x12d   :  { %v2966_v56 = vpop.eup %2965  ;;  %2034 = vst.msk [vmem:[%s5250_s2 + $0x4a8] sm:$0xff] %vm1884_vm0, %v2964_v53  ;;  %v479_v57 = vpop.f32.mrb[27].mxu0  ;;  %2987 = vtanh.f32 %v2682_v55 }
 0x12e   :  { %v1119_v58 = vpop.f32.mrb[27].mxu1  ;;  %v2968_v59 = vpop.eup %2967  ;;  %1905 = vst.msk [vmem:[%s5250_s2 + $0xa0] sm:$0xff] %vm1884_vm0, %v2966_v56  ;;  %2989 = vtanh.f32 %v479_v57 }
 0x12f   :  { %v2970_v60 = vpop.eup %2969  ;;  %2033 = vst.msk [vmem:[%s5250_s2 + $0x4a0] sm:$0xff] %vm1884_vm0, %v2968_v59  ;;  %2991 = vtanh.f32 %v1119_v58  ;;  %v2493_v62 = vpop.f32.mrb[28].mxu0 }
 0x130   :  { %v2972_v61 = vpop.eup %2971  ;;  %1908 = vst.msk [vmem:[%s5250_s2 + $0xb8] sm:$0xff] %vm1884_vm0, %v2970_v60  ;;  %v2685_v63 = vpop.f32.mrb[28].mxu1  ;;  %2993 = vtanh.f32 %v2493_v62 }
 0x131   :  { %v2974_v0 = vpop.eup %2973  ;;  %2036 = vst.msk [vmem:[%s5250_s2 + $0x4b8] sm:$0xff] %vm1884_vm0, %v2972_v61  ;;  %v489_v1 = vpop.f32.mrb[29].mxu0  ;;  %2995 = vtanh.f32 %v2685_v63 }
 0x132   :  { %v1129_v2 = vpop.f32.mrb[29].mxu1  ;;  %v2976_v3 = vpop.eup %2975  ;;  %1907 = vst.msk [vmem:[%s5250_s2 + $0xb0] sm:$0xff] %vm1884_vm0, %v2974_v0  ;;  %2997 = vtanh.f32 %v489_v1 }
 0x133   :  { %v2978_v4 = vpop.eup %2977  ;;  %2035 = vst.msk [vmem:[%s5250_s2 + $0x4b0] sm:$0xff] %vm1884_vm0, %v2976_v3  ;;  %2999 = vtanh.f32 %v1129_v2  ;;  %v2496_v6 = vpop.f32.mrb[30].mxu0 }
 0x134   :  { %v2980_v5 = vpop.eup %2979  ;;  %1910 = vst.msk [vmem:[%s5250_s2 + $0xc8] sm:$0xff] %vm1884_vm0, %v2978_v4  ;;  %v2688_v7 = vpop.f32.mrb[30].mxu1  ;;  %3001 = vtanh.f32 %v2496_v6 }
 0x135   :  { %v2982_v8 = vpop.eup %2981  ;;  %2038 = vst.msk [vmem:[%s5250_s2 + $0x4c8] sm:$0xff] %vm1884_vm0, %v2980_v5  ;;  %v499_v9 = vpop.f32.mrb[31].mxu0  ;;  %3003 = vtanh.f32 %v2688_v7 }
 0x136   :  { %v1139_v10 = vpop.f32.mrb[31].mxu1  ;;  %v2984_v11 = vpop.eup %2983  ;;  %1909 = vst.msk [vmem:[%s5250_s2 + $0xc0] sm:$0xff] %vm1884_vm0, %v2982_v8  ;;  %3005 = vtanh.f32 %v499_v9 }
 0x137   :  { %v2986_v12 = vpop.eup %2985  ;;  %2037 = vst.msk [vmem:[%s5250_s2 + $0x4c0] sm:$0xff] %vm1884_vm0, %v2984_v11  ;;  %3007 = vtanh.f32 %v1139_v10  ;;  %v2499_v14 = vpop.f32.mrb[32].mxu0 }
 0x138   :  { %v2988_v13 = vpop.eup %2987  ;;  %1912 = vst.msk [vmem:[%s5250_s2 + $0xd8] sm:$0xff] %vm1884_vm0, %v2986_v12  ;;  %v2691_v15 = vpop.f32.mrb[32].mxu1  ;;  %3009 = vtanh.f32 %v2499_v14 }
 0x139   :  { %v2990_v16 = vpop.eup %2989  ;;  %2040 = vst.msk [vmem:[%s5250_s2 + $0x4d8] sm:$0xff] %vm1884_vm0, %v2988_v13  ;;  %v509_v17 = vpop.f32.mrb[33].mxu0  ;;  %3011 = vtanh.f32 %v2691_v15 }
 0x13a   :  { %v1149_v18 = vpop.f32.mrb[33].mxu1  ;;  %v2992_v19 = vpop.eup %2991  ;;  %1911 = vst.msk [vmem:[%s5250_s2 + $0xd0] sm:$0xff] %vm1884_vm0, %v2990_v16  ;;  %3013 = vtanh.f32 %v509_v17 }
 0x13b   :  { %v2994_v20 = vpop.eup %2993  ;;  %2039 = vst.msk [vmem:[%s5250_s2 + $0x4d0] sm:$0xff] %vm1884_vm0, %v2992_v19  ;;  %3015 = vtanh.f32 %v1149_v18  ;;  %v2502_v22 = vpop.f32.mrb[34].mxu0 }
 0x13c   :  { %v2996_v21 = vpop.eup %2995  ;;  %1914 = vst.msk [vmem:[%s5250_s2 + $0xe8] sm:$0xff] %vm1884_vm0, %v2994_v20  ;;  %v2694_v23 = vpop.f32.mrb[34].mxu1  ;;  %3017 = vtanh.f32 %v2502_v22 }
 0x13d   :  { %v2998_v24 = vpop.eup %2997  ;;  %2042 = vst.msk [vmem:[%s5250_s2 + $0x4e8] sm:$0xff] %vm1884_vm0, %v2996_v21  ;;  %v519_v25 = vpop.f32.mrb[35].mxu0  ;;  %3019 = vtanh.f32 %v2694_v23 }
 0x13e   :  { %v1159_v26 = vpop.f32.mrb[35].mxu1  ;;  %v3000_v27 = vpop.eup %2999  ;;  %1913 = vst.msk [vmem:[%s5250_s2 + $0xe0] sm:$0xff] %vm1884_vm0, %v2998_v24  ;;  %3021 = vtanh.f32 %v519_v25 }
 0x13f   :  { %v3002_v28 = vpop.eup %3001  ;;  %2041 = vst.msk [vmem:[%s5250_s2 + $0x4e0] sm:$0xff] %vm1884_vm0, %v3000_v27  ;;  %3023 = vtanh.f32 %v1159_v26  ;;  %v2505_v30 = vpop.f32.mrb[36].mxu0 }
 0x140   :  { %v3004_v29 = vpop.eup %3003  ;;  %1916 = vst.msk [vmem:[%s5250_s2 + $0xf8] sm:$0xff] %vm1884_vm0, %v3002_v28  ;;  %v2697_v31 = vpop.f32.mrb[36].mxu1  ;;  %3025 = vtanh.f32 %v2505_v30 }
 0x141   :  { %v3006_v32 = vpop.eup %3005  ;;  %2044 = vst.msk [vmem:[%s5250_s2 + $0x4f8] sm:$0xff] %vm1884_vm0, %v3004_v29  ;;  %v529_v33 = vpop.f32.mrb[37].mxu0  ;;  %3027 = vtanh.f32 %v2697_v31 }
 0x142   :  { %v1169_v34 = vpop.f32.mrb[37].mxu1  ;;  %v3008_v35 = vpop.eup %3007  ;;  %1915 = vst.msk [vmem:[%s5250_s2 + $0xf0] sm:$0xff] %vm1884_vm0, %v3006_v32  ;;  %3029 = vtanh.f32 %v529_v33 }
 0x143   :  { %v3010_v36 = vpop.eup %3009  ;;  %2043 = vst.msk [vmem:[%s5250_s2 + $0x4f0] sm:$0xff] %vm1884_vm0, %v3008_v35  ;;  %3031 = vtanh.f32 %v1169_v34  ;;  %v2508_v38 = vpop.f32.mrb[38].mxu0 }
 0x144   :  { %v3012_v37 = vpop.eup %3011  ;;  %1918 = vst.msk [vmem:[%s5250_s2 + $0x108] sm:$0xff] %vm1884_vm0, %v3010_v36  ;;  %v2700_v39 = vpop.f32.mrb[38].mxu1  ;;  %3033 = vtanh.f32 %v2508_v38 }
 0x145   :  { %v3014_v40 = vpop.eup %3013  ;;  %2046 = vst.msk [vmem:[%s5250_s2 + $0x508] sm:$0xff] %vm1884_vm0, %v3012_v37  ;;  %v539_v41 = vpop.f32.mrb[39].mxu0  ;;  %3035 = vtanh.f32 %v2700_v39 }
 0x146   :  { %v1179_v42 = vpop.f32.mrb[39].mxu1  ;;  %v3016_v43 = vpop.eup %3015  ;;  %1917 = vst.msk [vmem:[%s5250_s2 + $0x100] sm:$0xff] %vm1884_vm0, %v3014_v40  ;;  %3037 = vtanh.f32 %v539_v41 }
 0x147   :  { %v3018_v44 = vpop.eup %3017  ;;  %2045 = vst.msk [vmem:[%s5250_s2 + $0x500] sm:$0xff] %vm1884_vm0, %v3016_v43  ;;  %3039 = vtanh.f32 %v1179_v42  ;;  %v2511_v46 = vpop.f32.mrb[40].mxu0 }
 0x148   :  { %v3020_v45 = vpop.eup %3019  ;;  %1920 = vst.msk [vmem:[%s5250_s2 + $0x118] sm:$0xff] %vm1884_vm0, %v3018_v44  ;;  %v2703_v47 = vpop.f32.mrb[40].mxu1  ;;  %3041 = vtanh.f32 %v2511_v46 }
 0x149   :  { %v3022_v48 = vpop.eup %3021  ;;  %2048 = vst.msk [vmem:[%s5250_s2 + $0x518] sm:$0xff] %vm1884_vm0, %v3020_v45  ;;  %v549_v49 = vpop.f32.mrb[41].mxu0  ;;  %3043 = vtanh.f32 %v2703_v47 }
 0x14a   :  { %v1189_v50 = vpop.f32.mrb[41].mxu1  ;;  %v3024_v51 = vpop.eup %3023  ;;  %1919 = vst.msk [vmem:[%s5250_s2 + $0x110] sm:$0xff] %vm1884_vm0, %v3022_v48  ;;  %3045 = vtanh.f32 %v549_v49 }
 0x14b   :  { %v3026_v52 = vpop.eup %3025  ;;  %2047 = vst.msk [vmem:[%s5250_s2 + $0x510] sm:$0xff] %vm1884_vm0, %v3024_v51  ;;  %3047 = vtanh.f32 %v1189_v50  ;;  %v2514_v54 = vpop.f32.mrb[42].mxu0 }
 0x14c   :  { %v3028_v53 = vpop.eup %3027  ;;  %1922 = vst.msk [vmem:[%s5250_s2 + $0x128] sm:$0xff] %vm1884_vm0, %v3026_v52  ;;  %v2706_v55 = vpop.f32.mrb[42].mxu1  ;;  %3049 = vtanh.f32 %v2514_v54 }
 0x14d   :  { %v3030_v56 = vpop.eup %3029  ;;  %2050 = vst.msk [vmem:[%s5250_s2 + $0x528] sm:$0xff] %vm1884_vm0, %v3028_v53  ;;  %v559_v57 = vpop.f32.mrb[43].mxu0  ;;  %3051 = vtanh.f32 %v2706_v55 }
 0x14e   :  { %v1199_v58 = vpop.f32.mrb[43].mxu1  ;;  %v3032_v59 = vpop.eup %3031  ;;  %1921 = vst.msk [vmem:[%s5250_s2 + $0x120] sm:$0xff] %vm1884_vm0, %v3030_v56  ;;  %3053 = vtanh.f32 %v559_v57 }
 0x14f   :  { %v3034_v60 = vpop.eup %3033  ;;  %2049 = vst.msk [vmem:[%s5250_s2 + $0x520] sm:$0xff] %vm1884_vm0, %v3032_v59  ;;  %3055 = vtanh.f32 %v1199_v58  ;;  %v2517_v62 = vpop.f32.mrb[44].mxu0 }
 0x150   :  { %v3036_v61 = vpop.eup %3035  ;;  %1924 = vst.msk [vmem:[%s5250_s2 + $0x138] sm:$0xff] %vm1884_vm0, %v3034_v60  ;;  %v2709_v63 = vpop.f32.mrb[44].mxu1  ;;  %3057 = vtanh.f32 %v2517_v62 }
 0x151   :  { %v3038_v0 = vpop.eup %3037  ;;  %2052 = vst.msk [vmem:[%s5250_s2 + $0x538] sm:$0xff] %vm1884_vm0, %v3036_v61  ;;  %v569_v1 = vpop.f32.mrb[45].mxu0  ;;  %3059 = vtanh.f32 %v2709_v63 }
 0x152   :  { %v1209_v2 = vpop.f32.mrb[45].mxu1  ;;  %v3040_v3 = vpop.eup %3039  ;;  %1923 = vst.msk [vmem:[%s5250_s2 + $0x130] sm:$0xff] %vm1884_vm0, %v3038_v0  ;;  %3061 = vtanh.f32 %v569_v1 }
 0x153   :  { %v3042_v4 = vpop.eup %3041  ;;  %2051 = vst.msk [vmem:[%s5250_s2 + $0x530] sm:$0xff] %vm1884_vm0, %v3040_v3  ;;  %3063 = vtanh.f32 %v1209_v2  ;;  %v2520_v6 = vpop.f32.mrb[46].mxu0 }
 0x154   :  { %v3044_v5 = vpop.eup %3043  ;;  %1926 = vst.msk [vmem:[%s5250_s2 + $0x148] sm:$0xff] %vm1884_vm0, %v3042_v4  ;;  %v2712_v7 = vpop.f32.mrb[46].mxu1  ;;  %3065 = vtanh.f32 %v2520_v6 }
 0x155   :  { %v3046_v8 = vpop.eup %3045  ;;  %2054 = vst.msk [vmem:[%s5250_s2 + $0x548] sm:$0xff] %vm1884_vm0, %v3044_v5  ;;  %v579_v9 = vpop.f32.mrb[47].mxu0  ;;  %3067 = vtanh.f32 %v2712_v7 }
 0x156   :  { %v1219_v10 = vpop.f32.mrb[47].mxu1  ;;  %v3048_v11 = vpop.eup %3047  ;;  %1925 = vst.msk [vmem:[%s5250_s2 + $0x140] sm:$0xff] %vm1884_vm0, %v3046_v8  ;;  %3069 = vtanh.f32 %v579_v9 }
 0x157   :  { %v3050_v12 = vpop.eup %3049  ;;  %2053 = vst.msk [vmem:[%s5250_s2 + $0x540] sm:$0xff] %vm1884_vm0, %v3048_v11  ;;  %3071 = vtanh.f32 %v1219_v10  ;;  %v2523_v14 = vpop.f32.mrb[48].mxu0 }
 0x158   :  { %v3052_v13 = vpop.eup %3051  ;;  %1928 = vst.msk [vmem:[%s5250_s2 + $0x158] sm:$0xff] %vm1884_vm0, %v3050_v12  ;;  %v2715_v15 = vpop.f32.mrb[48].mxu1  ;;  %3073 = vtanh.f32 %v2523_v14 }
 0x159   :  { %v3054_v16 = vpop.eup %3053  ;;  %2056 = vst.msk [vmem:[%s5250_s2 + $0x558] sm:$0xff] %vm1884_vm0, %v3052_v13  ;;  %v589_v17 = vpop.f32.mrb[49].mxu0  ;;  %3075 = vtanh.f32 %v2715_v15 }
 0x15a   :  { %v1229_v18 = vpop.f32.mrb[49].mxu1  ;;  %v3056_v19 = vpop.eup %3055  ;;  %1927 = vst.msk [vmem:[%s5250_s2 + $0x150] sm:$0xff] %vm1884_vm0, %v3054_v16  ;;  %3077 = vtanh.f32 %v589_v17 }
 0x15b   :  { %v3058_v20 = vpop.eup %3057  ;;  %2055 = vst.msk [vmem:[%s5250_s2 + $0x550] sm:$0xff] %vm1884_vm0, %v3056_v19  ;;  %3079 = vtanh.f32 %v1229_v18  ;;  %v2526_v22 = vpop.f32.mrb[50].mxu0 }
 0x15c   :  { %v3060_v21 = vpop.eup %3059  ;;  %1930 = vst.msk [vmem:[%s5250_s2 + $0x168] sm:$0xff] %vm1884_vm0, %v3058_v20  ;;  %v2718_v23 = vpop.f32.mrb[50].mxu1  ;;  %3081 = vtanh.f32 %v2526_v22 }
 0x15d   :  { %v3062_v24 = vpop.eup %3061  ;;  %2058 = vst.msk [vmem:[%s5250_s2 + $0x568] sm:$0xff] %vm1884_vm0, %v3060_v21  ;;  %v599_v25 = vpop.f32.mrb[51].mxu0  ;;  %3083 = vtanh.f32 %v2718_v23 }
 0x15e   :  { %v1239_v26 = vpop.f32.mrb[51].mxu1  ;;  %v3064_v27 = vpop.eup %3063  ;;  %1929 = vst.msk [vmem:[%s5250_s2 + $0x160] sm:$0xff] %vm1884_vm0, %v3062_v24  ;;  %3085 = vtanh.f32 %v599_v25 }
 0x15f   :  { %v3066_v28 = vpop.eup %3065  ;;  %2057 = vst.msk [vmem:[%s5250_s2 + $0x560] sm:$0xff] %vm1884_vm0, %v3064_v27  ;;  %3087 = vtanh.f32 %v1239_v26  ;;  %v2529_v30 = vpop.f32.mrb[52].mxu0 }
 0x160   :  { %v3068_v29 = vpop.eup %3067  ;;  %1932 = vst.msk [vmem:[%s5250_s2 + $0x178] sm:$0xff] %vm1884_vm0, %v3066_v28  ;;  %v2721_v31 = vpop.f32.mrb[52].mxu1  ;;  %3089 = vtanh.f32 %v2529_v30 }
 0x161   :  { %v3070_v32 = vpop.eup %3069  ;;  %2060 = vst.msk [vmem:[%s5250_s2 + $0x578] sm:$0xff] %vm1884_vm0, %v3068_v29  ;;  %v609_v33 = vpop.f32.mrb[53].mxu0  ;;  %3091 = vtanh.f32 %v2721_v31 }
 0x162   :  { %v1249_v34 = vpop.f32.mrb[53].mxu1  ;;  %v3072_v35 = vpop.eup %3071  ;;  %1931 = vst.msk [vmem:[%s5250_s2 + $0x170] sm:$0xff] %vm1884_vm0, %v3070_v32  ;;  %3093 = vtanh.f32 %v609_v33 }
 0x163   :  { %v3074_v36 = vpop.eup %3073  ;;  %2059 = vst.msk [vmem:[%s5250_s2 + $0x570] sm:$0xff] %vm1884_vm0, %v3072_v35  ;;  %3095 = vtanh.f32 %v1249_v34  ;;  %v2532_v38 = vpop.f32.mrb[54].mxu0 }
 0x164   :  { %v3076_v37 = vpop.eup %3075  ;;  %1934 = vst.msk [vmem:[%s5250_s2 + $0x188] sm:$0xff] %vm1884_vm0, %v3074_v36  ;;  %v2724_v39 = vpop.f32.mrb[54].mxu1  ;;  %3097 = vtanh.f32 %v2532_v38 }
 0x165   :  { %v3078_v40 = vpop.eup %3077  ;;  %2062 = vst.msk [vmem:[%s5250_s2 + $0x588] sm:$0xff] %vm1884_vm0, %v3076_v37  ;;  %v619_v41 = vpop.f32.mrb[55].mxu0  ;;  %3099 = vtanh.f32 %v2724_v39 }
 0x166   :  { %v1259_v42 = vpop.f32.mrb[55].mxu1  ;;  %v3080_v43 = vpop.eup %3079  ;;  %1933 = vst.msk [vmem:[%s5250_s2 + $0x180] sm:$0xff] %vm1884_vm0, %v3078_v40  ;;  %3101 = vtanh.f32 %v619_v41 }
 0x167   :  { %v3082_v44 = vpop.eup %3081  ;;  %2061 = vst.msk [vmem:[%s5250_s2 + $0x580] sm:$0xff] %vm1884_vm0, %v3080_v43  ;;  %3103 = vtanh.f32 %v1259_v42  ;;  %v2535_v46 = vpop.f32.mrb[56].mxu0 }
 0x168   :  { %v3084_v45 = vpop.eup %3083  ;;  %1936 = vst.msk [vmem:[%s5250_s2 + $0x198] sm:$0xff] %vm1884_vm0, %v3082_v44  ;;  %v2727_v47 = vpop.f32.mrb[56].mxu1  ;;  %3105 = vtanh.f32 %v2535_v46 }
 0x169   :  { %v3086_v48 = vpop.eup %3085  ;;  %2064 = vst.msk [vmem:[%s5250_s2 + $0x598] sm:$0xff] %vm1884_vm0, %v3084_v45  ;;  %v629_v49 = vpop.f32.mrb[57].mxu0  ;;  %3107 = vtanh.f32 %v2727_v47 }
 0x16a   :  { %v1269_v50 = vpop.f32.mrb[57].mxu1  ;;  %v3088_v51 = vpop.eup %3087  ;;  %1935 = vst.msk [vmem:[%s5250_s2 + $0x190] sm:$0xff] %vm1884_vm0, %v3086_v48  ;;  %3109 = vtanh.f32 %v629_v49 }
 0x16b   :  { %v3090_v52 = vpop.eup %3089  ;;  %2063 = vst.msk [vmem:[%s5250_s2 + $0x590] sm:$0xff] %vm1884_vm0, %v3088_v51  ;;  %3111 = vtanh.f32 %v1269_v50  ;;  %v2538_v54 = vpop.f32.mrb[58].mxu0 }
 0x16c   :  { %v3092_v53 = vpop.eup %3091  ;;  %1938 = vst.msk [vmem:[%s5250_s2 + $0x1a8] sm:$0xff] %vm1884_vm0, %v3090_v52  ;;  %v2730_v55 = vpop.f32.mrb[58].mxu1  ;;  %3113 = vtanh.f32 %v2538_v54 }
 0x16d   :  { %v3094_v56 = vpop.eup %3093  ;;  %2066 = vst.msk [vmem:[%s5250_s2 + $0x5a8] sm:$0xff] %vm1884_vm0, %v3092_v53  ;;  %v639_v57 = vpop.f32.mrb[59].mxu0  ;;  %3115 = vtanh.f32 %v2730_v55 }
 0x16e   :  { %v1279_v58 = vpop.f32.mrb[59].mxu1  ;;  %v3096_v59 = vpop.eup %3095  ;;  %1937 = vst.msk [vmem:[%s5250_s2 + $0x1a0] sm:$0xff] %vm1884_vm0, %v3094_v56  ;;  %3117 = vtanh.f32 %v639_v57 }
 0x16f   :  { %v3098_v60 = vpop.eup %3097  ;;  %2065 = vst.msk [vmem:[%s5250_s2 + $0x5a0] sm:$0xff] %vm1884_vm0, %v3096_v59  ;;  %3119 = vtanh.f32 %v1279_v58  ;;  %v2541_v62 = vpop.f32.mrb[60].mxu0 }
 0x170   :  { %v3100_v61 = vpop.eup %3099  ;;  %1940 = vst.msk [vmem:[%s5250_s2 + $0x1b8] sm:$0xff] %vm1884_vm0, %v3098_v60  ;;  %v2733_v63 = vpop.f32.mrb[60].mxu1  ;;  %3121 = vtanh.f32 %v2541_v62 }
 0x171   :  { %v3102_v0 = vpop.eup %3101  ;;  %2068 = vst.msk [vmem:[%s5250_s2 + $0x5b8] sm:$0xff] %vm1884_vm0, %v3100_v61  ;;  %v649_v1 = vpop.f32.mrb[61].mxu0  ;;  %3123 = vtanh.f32 %v2733_v63 }
 0x172   :  { %v1289_v2 = vpop.f32.mrb[61].mxu1  ;;  %v3104_v3 = vpop.eup %3103  ;;  %1939 = vst.msk [vmem:[%s5250_s2 + $0x1b0] sm:$0xff] %vm1884_vm0, %v3102_v0  ;;  %3125 = vtanh.f32 %v649_v1 }
 0x173   :  { %v3106_v4 = vpop.eup %3105  ;;  %2067 = vst.msk [vmem:[%s5250_s2 + $0x5b0] sm:$0xff] %vm1884_vm0, %v3104_v3  ;;  %3127 = vtanh.f32 %v1289_v2  ;;  %v2544_v6 = vpop.f32.mrb[62].mxu0 }
 0x174   :  { %v3108_v5 = vpop.eup %3107  ;;  %1942 = vst.msk [vmem:[%s5250_s2 + $0x1c8] sm:$0xff] %vm1884_vm0, %v3106_v4  ;;  %v2736_v7 = vpop.f32.mrb[62].mxu1  ;;  %3129 = vtanh.f32 %v2544_v6 }
 0x175   :  { %v3110_v8 = vpop.eup %3109  ;;  %2070 = vst.msk [vmem:[%s5250_s2 + $0x5c8] sm:$0xff] %vm1884_vm0, %v3108_v5  ;;  %v659_v9 = vpop.f32.mrb[63].mxu0  ;;  %3131 = vtanh.f32 %v2736_v7 }
 0x176   :  { %v1299_v10 = vpop.f32.mrb[63].mxu1  ;;  %v3112_v11 = vpop.eup %3111  ;;  %1941 = vst.msk [vmem:[%s5250_s2 + $0x1c0] sm:$0xff] %vm1884_vm0, %v3110_v8  ;;  %3133 = vtanh.f32 %v659_v9 }
 0x177   :  { %v3114_v12 = vpop.eup %3113  ;;  %2069 = vst.msk [vmem:[%s5250_s2 + $0x5c0] sm:$0xff] %vm1884_vm0, %v3112_v11  ;;  %3135 = vtanh.f32 %v1299_v10  ;;  %v2547_v14 = vpop.f32.mrb[64].mxu0 }
 0x178   :  { %v3116_v13 = vpop.eup %3115  ;;  %1944 = vst.msk [vmem:[%s5250_s2 + $0x1d8] sm:$0xff] %vm1884_vm0, %v3114_v12  ;;  %v2739_v15 = vpop.f32.mrb[64].mxu1  ;;  %3137 = vtanh.f32 %v2547_v14 }
 0x179   :  { %v3118_v16 = vpop.eup %3117  ;;  %2072 = vst.msk [vmem:[%s5250_s2 + $0x5d8] sm:$0xff] %vm1884_vm0, %v3116_v13  ;;  %v669_v17 = vpop.f32.mrb[65].mxu0  ;;  %3139 = vtanh.f32 %v2739_v15 }
 0x17a   :  { %v1309_v18 = vpop.f32.mrb[65].mxu1  ;;  %v3120_v19 = vpop.eup %3119  ;;  %1943 = vst.msk [vmem:[%s5250_s2 + $0x1d0] sm:$0xff] %vm1884_vm0, %v3118_v16  ;;  %3141 = vtanh.f32 %v669_v17 }
 0x17b   :  { %v3122_v20 = vpop.eup %3121  ;;  %2071 = vst.msk [vmem:[%s5250_s2 + $0x5d0] sm:$0xff] %vm1884_vm0, %v3120_v19  ;;  %3143 = vtanh.f32 %v1309_v18  ;;  %v2550_v22 = vpop.f32.mrb[66].mxu0 }
 0x17c   :  { %v3124_v21 = vpop.eup %3123  ;;  %1946 = vst.msk [vmem:[%s5250_s2 + $0x1e8] sm:$0xff] %vm1884_vm0, %v3122_v20  ;;  %v2742_v23 = vpop.f32.mrb[66].mxu1  ;;  %3145 = vtanh.f32 %v2550_v22 }
 0x17d   :  { %v3126_v24 = vpop.eup %3125  ;;  %2074 = vst.msk [vmem:[%s5250_s2 + $0x5e8] sm:$0xff] %vm1884_vm0, %v3124_v21  ;;  %v679_v25 = vpop.f32.mrb[67].mxu0  ;;  %3147 = vtanh.f32 %v2742_v23 }
 0x17e   :  { %v1319_v26 = vpop.f32.mrb[67].mxu1  ;;  %v3128_v27 = vpop.eup %3127  ;;  %1945 = vst.msk [vmem:[%s5250_s2 + $0x1e0] sm:$0xff] %vm1884_vm0, %v3126_v24  ;;  %3149 = vtanh.f32 %v679_v25 }
 0x17f   :  { %v3130_v28 = vpop.eup %3129  ;;  %2073 = vst.msk [vmem:[%s5250_s2 + $0x5e0] sm:$0xff] %vm1884_vm0, %v3128_v27  ;;  %3151 = vtanh.f32 %v1319_v26  ;;  %v2553_v30 = vpop.f32.mrb[68].mxu0 }
 0x180   :  { %v3132_v29 = vpop.eup %3131  ;;  %1948 = vst.msk [vmem:[%s5250_s2 + $0x1f8] sm:$0xff] %vm1884_vm0, %v3130_v28  ;;  %v2745_v31 = vpop.f32.mrb[68].mxu1  ;;  %3153 = vtanh.f32 %v2553_v30 }
 0x181   :  { %v3134_v32 = vpop.eup %3133  ;;  %2076 = vst.msk [vmem:[%s5250_s2 + $0x5f8] sm:$0xff] %vm1884_vm0, %v3132_v29  ;;  %v689_v33 = vpop.f32.mrb[69].mxu0  ;;  %3155 = vtanh.f32 %v2745_v31 }
 0x182   :  { %v1329_v34 = vpop.f32.mrb[69].mxu1  ;;  %v3136_v35 = vpop.eup %3135  ;;  %1947 = vst.msk [vmem:[%s5250_s2 + $0x1f0] sm:$0xff] %vm1884_vm0, %v3134_v32  ;;  %3157 = vtanh.f32 %v689_v33 }
 0x183   :  { %v3138_v36 = vpop.eup %3137  ;;  %2075 = vst.msk [vmem:[%s5250_s2 + $0x5f0] sm:$0xff] %vm1884_vm0, %v3136_v35  ;;  %3159 = vtanh.f32 %v1329_v34  ;;  %v2556_v38 = vpop.f32.mrb[70].mxu0 }
 0x184   :  { %v3140_v37 = vpop.eup %3139  ;;  %1950 = vst.msk [vmem:[%s5250_s2 + $0x208] sm:$0xff] %vm1884_vm0, %v3138_v36  ;;  %v2748_v39 = vpop.f32.mrb[70].mxu1  ;;  %3161 = vtanh.f32 %v2556_v38 }
 0x185   :  { %v3142_v40 = vpop.eup %3141  ;;  %2078 = vst.msk [vmem:[%s5250_s2 + $0x608] sm:$0xff] %vm1884_vm0, %v3140_v37  ;;  %v699_v41 = vpop.f32.mrb[71].mxu0  ;;  %3163 = vtanh.f32 %v2748_v39 }
 0x186   :  { %v1339_v42 = vpop.f32.mrb[71].mxu1  ;;  %v3144_v43 = vpop.eup %3143  ;;  %1949 = vst.msk [vmem:[%s5250_s2 + $0x200] sm:$0xff] %vm1884_vm0, %v3142_v40  ;;  %3165 = vtanh.f32 %v699_v41 }
 0x187   :  { %v3146_v44 = vpop.eup %3145  ;;  %2077 = vst.msk [vmem:[%s5250_s2 + $0x600] sm:$0xff] %vm1884_vm0, %v3144_v43  ;;  %3167 = vtanh.f32 %v1339_v42  ;;  %v2559_v46 = vpop.f32.mrb[72].mxu0 }
 0x188   :  { %v3148_v45 = vpop.eup %3147  ;;  %1952 = vst.msk [vmem:[%s5250_s2 + $0x218] sm:$0xff] %vm1884_vm0, %v3146_v44  ;;  %v2751_v47 = vpop.f32.mrb[72].mxu1  ;;  %3169 = vtanh.f32 %v2559_v46 }
 0x189   :  { %v3150_v48 = vpop.eup %3149  ;;  %2080 = vst.msk [vmem:[%s5250_s2 + $0x618] sm:$0xff] %vm1884_vm0, %v3148_v45  ;;  %v709_v49 = vpop.f32.mrb[73].mxu0  ;;  %3171 = vtanh.f32 %v2751_v47 }
 0x18a   :  { %v1349_v50 = vpop.f32.mrb[73].mxu1  ;;  %v3152_v51 = vpop.eup %3151  ;;  %1951 = vst.msk [vmem:[%s5250_s2 + $0x210] sm:$0xff] %vm1884_vm0, %v3150_v48  ;;  %3173 = vtanh.f32 %v709_v49 }
 0x18b   :  { %v3154_v52 = vpop.eup %3153  ;;  %2079 = vst.msk [vmem:[%s5250_s2 + $0x610] sm:$0xff] %vm1884_vm0, %v3152_v51  ;;  %3175 = vtanh.f32 %v1349_v50  ;;  %v2562_v54 = vpop.f32.mrb[74].mxu0 }
 0x18c   :  { %v3156_v53 = vpop.eup %3155  ;;  %1954 = vst.msk [vmem:[%s5250_s2 + $0x228] sm:$0xff] %vm1884_vm0, %v3154_v52  ;;  %v2754_v55 = vpop.f32.mrb[74].mxu1  ;;  %3177 = vtanh.f32 %v2562_v54 }
 0x18d   :  { %v3158_v56 = vpop.eup %3157  ;;  %2082 = vst.msk [vmem:[%s5250_s2 + $0x628] sm:$0xff] %vm1884_vm0, %v3156_v53  ;;  %v719_v57 = vpop.f32.mrb[75].mxu0  ;;  %3179 = vtanh.f32 %v2754_v55 }
 0x18e   :  { %v1359_v58 = vpop.f32.mrb[75].mxu1  ;;  %v3160_v59 = vpop.eup %3159  ;;  %1953 = vst.msk [vmem:[%s5250_s2 + $0x220] sm:$0xff] %vm1884_vm0, %v3158_v56  ;;  %3181 = vtanh.f32 %v719_v57 }
 0x18f   :  { %v3162_v60 = vpop.eup %3161  ;;  %2081 = vst.msk [vmem:[%s5250_s2 + $0x620] sm:$0xff] %vm1884_vm0, %v3160_v59  ;;  %3183 = vtanh.f32 %v1359_v58  ;;  %v2565_v62 = vpop.f32.mrb[76].mxu0 }
 0x190   :  { %v3164_v61 = vpop.eup %3163  ;;  %1956 = vst.msk [vmem:[%s5250_s2 + $0x238] sm:$0xff] %vm1884_vm0, %v3162_v60  ;;  %v2757_v63 = vpop.f32.mrb[76].mxu1  ;;  %3185 = vtanh.f32 %v2565_v62 }
 0x191   :  { %v3166_v0 = vpop.eup %3165  ;;  %2084 = vst.msk [vmem:[%s5250_s2 + $0x638] sm:$0xff] %vm1884_vm0, %v3164_v61  ;;  %v729_v1 = vpop.f32.mrb[77].mxu0  ;;  %3187 = vtanh.f32 %v2757_v63 }
 0x192   :  { %v1369_v2 = vpop.f32.mrb[77].mxu1  ;;  %v3168_v3 = vpop.eup %3167  ;;  %1955 = vst.msk [vmem:[%s5250_s2 + $0x230] sm:$0xff] %vm1884_vm0, %v3166_v0  ;;  %3189 = vtanh.f32 %v729_v1 }
 0x193   :  { %v3170_v4 = vpop.eup %3169  ;;  %2083 = vst.msk [vmem:[%s5250_s2 + $0x630] sm:$0xff] %vm1884_vm0, %v3168_v3  ;;  %3191 = vtanh.f32 %v1369_v2  ;;  %v2568_v6 = vpop.f32.mrb[78].mxu0 }
 0x194   :  { %v3172_v5 = vpop.eup %3171  ;;  %1958 = vst.msk [vmem:[%s5250_s2 + $0x248] sm:$0xff] %vm1884_vm0, %v3170_v4  ;;  %v2760_v7 = vpop.f32.mrb[78].mxu1  ;;  %3193 = vtanh.f32 %v2568_v6 }
 0x195   :  { %v3174_v8 = vpop.eup %3173  ;;  %2086 = vst.msk [vmem:[%s5250_s2 + $0x648] sm:$0xff] %vm1884_vm0, %v3172_v5  ;;  %v739_v9 = vpop.f32.mrb[79].mxu0  ;;  %3195 = vtanh.f32 %v2760_v7 }
 0x196   :  { %v1379_v10 = vpop.f32.mrb[79].mxu1  ;;  %v3176_v11 = vpop.eup %3175  ;;  %1957 = vst.msk [vmem:[%s5250_s2 + $0x240] sm:$0xff] %vm1884_vm0, %v3174_v8  ;;  %3197 = vtanh.f32 %v739_v9 }
 0x197   :  { %v3178_v12 = vpop.eup %3177  ;;  %2085 = vst.msk [vmem:[%s5250_s2 + $0x640] sm:$0xff] %vm1884_vm0, %v3176_v11  ;;  %3199 = vtanh.f32 %v1379_v10  ;;  %v2571_v14 = vpop.f32.mrb[80].mxu0 }
 0x198   :  { %v3180_v13 = vpop.eup %3179  ;;  %1960 = vst.msk [vmem:[%s5250_s2 + $0x258] sm:$0xff] %vm1884_vm0, %v3178_v12  ;;  %v2763_v15 = vpop.f32.mrb[80].mxu1  ;;  %3201 = vtanh.f32 %v2571_v14 }
 0x199   :  { %v3182_v16 = vpop.eup %3181  ;;  %2088 = vst.msk [vmem:[%s5250_s2 + $0x658] sm:$0xff] %vm1884_vm0, %v3180_v13  ;;  %v749_v17 = vpop.f32.mrb[81].mxu0  ;;  %3203 = vtanh.f32 %v2763_v15 }
 0x19a   :  { %v1389_v18 = vpop.f32.mrb[81].mxu1  ;;  %v3184_v19 = vpop.eup %3183  ;;  %1959 = vst.msk [vmem:[%s5250_s2 + $0x250] sm:$0xff] %vm1884_vm0, %v3182_v16  ;;  %3205 = vtanh.f32 %v749_v17 }
 0x19b   :  { %v3186_v20 = vpop.eup %3185  ;;  %2087 = vst.msk [vmem:[%s5250_s2 + $0x650] sm:$0xff] %vm1884_vm0, %v3184_v19  ;;  %3207 = vtanh.f32 %v1389_v18  ;;  %v2574_v22 = vpop.f32.mrb[82].mxu0 }
 0x19c   :  { %v3188_v21 = vpop.eup %3187  ;;  %1962 = vst.msk [vmem:[%s5250_s2 + $0x268] sm:$0xff] %vm1884_vm0, %v3186_v20  ;;  %v2766_v23 = vpop.f32.mrb[82].mxu1  ;;  %3209 = vtanh.f32 %v2574_v22 }
 0x19d   :  { %v3190_v24 = vpop.eup %3189  ;;  %2090 = vst.msk [vmem:[%s5250_s2 + $0x668] sm:$0xff] %vm1884_vm0, %v3188_v21  ;;  %v759_v25 = vpop.f32.mrb[83].mxu0  ;;  %3211 = vtanh.f32 %v2766_v23 }
 0x19e   :  { %v1399_v26 = vpop.f32.mrb[83].mxu1  ;;  %v3192_v27 = vpop.eup %3191  ;;  %1961 = vst.msk [vmem:[%s5250_s2 + $0x260] sm:$0xff] %vm1884_vm0, %v3190_v24  ;;  %3213 = vtanh.f32 %v759_v25 }
 0x19f   :  { %v3194_v28 = vpop.eup %3193  ;;  %2089 = vst.msk [vmem:[%s5250_s2 + $0x660] sm:$0xff] %vm1884_vm0, %v3192_v27  ;;  %3215 = vtanh.f32 %v1399_v26  ;;  %v2577_v30 = vpop.f32.mrb[84].mxu0 }
 0x1a0   :  { %v3196_v29 = vpop.eup %3195  ;;  %1964 = vst.msk [vmem:[%s5250_s2 + $0x278] sm:$0xff] %vm1884_vm0, %v3194_v28  ;;  %v2769_v31 = vpop.f32.mrb[84].mxu1  ;;  %3217 = vtanh.f32 %v2577_v30 }
 0x1a1   :  { %v3198_v32 = vpop.eup %3197  ;;  %2092 = vst.msk [vmem:[%s5250_s2 + $0x678] sm:$0xff] %vm1884_vm0, %v3196_v29  ;;  %v769_v33 = vpop.f32.mrb[85].mxu0  ;;  %3219 = vtanh.f32 %v2769_v31 }
 0x1a2   :  { %v1409_v34 = vpop.f32.mrb[85].mxu1  ;;  %v3200_v35 = vpop.eup %3199  ;;  %1963 = vst.msk [vmem:[%s5250_s2 + $0x270] sm:$0xff] %vm1884_vm0, %v3198_v32  ;;  %3221 = vtanh.f32 %v769_v33 }
 0x1a3   :  { %v3202_v36 = vpop.eup %3201  ;;  %2091 = vst.msk [vmem:[%s5250_s2 + $0x670] sm:$0xff] %vm1884_vm0, %v3200_v35  ;;  %3223 = vtanh.f32 %v1409_v34  ;;  %v2580_v38 = vpop.f32.mrb[86].mxu0 }
 0x1a4   :  { %v3204_v37 = vpop.eup %3203  ;;  %1966 = vst.msk [vmem:[%s5250_s2 + $0x288] sm:$0xff] %vm1884_vm0, %v3202_v36  ;;  %v2772_v39 = vpop.f32.mrb[86].mxu1  ;;  %3225 = vtanh.f32 %v2580_v38 }
 0x1a5   :  { %v3206_v40 = vpop.eup %3205  ;;  %2094 = vst.msk [vmem:[%s5250_s2 + $0x688] sm:$0xff] %vm1884_vm0, %v3204_v37  ;;  %v779_v41 = vpop.f32.mrb[87].mxu0  ;;  %3227 = vtanh.f32 %v2772_v39 }
 0x1a6   :  { %v1419_v42 = vpop.f32.mrb[87].mxu1  ;;  %v3208_v43 = vpop.eup %3207  ;;  %1965 = vst.msk [vmem:[%s5250_s2 + $0x280] sm:$0xff] %vm1884_vm0, %v3206_v40  ;;  %3229 = vtanh.f32 %v779_v41 }
 0x1a7   :  { %v3210_v44 = vpop.eup %3209  ;;  %2093 = vst.msk [vmem:[%s5250_s2 + $0x680] sm:$0xff] %vm1884_vm0, %v3208_v43  ;;  %3231 = vtanh.f32 %v1419_v42  ;;  %v2583_v46 = vpop.f32.mrb[88].mxu0 }
 0x1a8   :  { %v3212_v45 = vpop.eup %3211  ;;  %1968 = vst.msk [vmem:[%s5250_s2 + $0x298] sm:$0xff] %vm1884_vm0, %v3210_v44  ;;  %v2775_v47 = vpop.f32.mrb[88].mxu1  ;;  %3233 = vtanh.f32 %v2583_v46 }
 0x1a9   :  { %v3214_v48 = vpop.eup %3213  ;;  %2096 = vst.msk [vmem:[%s5250_s2 + $0x698] sm:$0xff] %vm1884_vm0, %v3212_v45  ;;  %v789_v49 = vpop.f32.mrb[89].mxu0  ;;  %3235 = vtanh.f32 %v2775_v47 }
 0x1aa   :  { %v1429_v50 = vpop.f32.mrb[89].mxu1  ;;  %v3216_v51 = vpop.eup %3215  ;;  %1967 = vst.msk [vmem:[%s5250_s2 + $0x290] sm:$0xff] %vm1884_vm0, %v3214_v48  ;;  %3237 = vtanh.f32 %v789_v49 }
 0x1ab   :  { %v3218_v52 = vpop.eup %3217  ;;  %2095 = vst.msk [vmem:[%s5250_s2 + $0x690] sm:$0xff] %vm1884_vm0, %v3216_v51  ;;  %3239 = vtanh.f32 %v1429_v50  ;;  %v2586_v54 = vpop.f32.mrb[90].mxu0 }
 0x1ac   :  { %v3220_v53 = vpop.eup %3219  ;;  %1970 = vst.msk [vmem:[%s5250_s2 + $0x2a8] sm:$0xff] %vm1884_vm0, %v3218_v52  ;;  %v2778_v55 = vpop.f32.mrb[90].mxu1  ;;  %3241 = vtanh.f32 %v2586_v54 }
 0x1ad   :  { %v3222_v56 = vpop.eup %3221  ;;  %2098 = vst.msk [vmem:[%s5250_s2 + $0x6a8] sm:$0xff] %vm1884_vm0, %v3220_v53  ;;  %v799_v57 = vpop.f32.mrb[91].mxu0  ;;  %3243 = vtanh.f32 %v2778_v55 }
 0x1ae   :  { %v1439_v58 = vpop.f32.mrb[91].mxu1  ;;  %v3224_v59 = vpop.eup %3223  ;;  %1969 = vst.msk [vmem:[%s5250_s2 + $0x2a0] sm:$0xff] %vm1884_vm0, %v3222_v56  ;;  %3245 = vtanh.f32 %v799_v57 }
 0x1af   :  { %v3226_v60 = vpop.eup %3225  ;;  %2097 = vst.msk [vmem:[%s5250_s2 + $0x6a0] sm:$0xff] %vm1884_vm0, %v3224_v59  ;;  %3247 = vtanh.f32 %v1439_v58  ;;  %v2589_v62 = vpop.f32.mrb[92].mxu0 }
 0x1b0   :  { %v3228_v61 = vpop.eup %3227  ;;  %1972 = vst.msk [vmem:[%s5250_s2 + $0x2b8] sm:$0xff] %vm1884_vm0, %v3226_v60  ;;  %v2781_v63 = vpop.f32.mrb[92].mxu1  ;;  %3249 = vtanh.f32 %v2589_v62 }
 0x1b1   :  { %v3230_v0 = vpop.eup %3229  ;;  %2100 = vst.msk [vmem:[%s5250_s2 + $0x6b8] sm:$0xff] %vm1884_vm0, %v3228_v61  ;;  %v809_v1 = vpop.f32.mrb[93].mxu0  ;;  %3251 = vtanh.f32 %v2781_v63 }
 0x1b2   :  { %v1449_v2 = vpop.f32.mrb[93].mxu1  ;;  %v3232_v3 = vpop.eup %3231  ;;  %1971 = vst.msk [vmem:[%s5250_s2 + $0x2b0] sm:$0xff] %vm1884_vm0, %v3230_v0  ;;  %3253 = vtanh.f32 %v809_v1 }
 0x1b3   :  { %v3234_v4 = vpop.eup %3233  ;;  %2099 = vst.msk [vmem:[%s5250_s2 + $0x6b0] sm:$0xff] %vm1884_vm0, %v3232_v3  ;;  %3255 = vtanh.f32 %v1449_v2  ;;  %v2592_v6 = vpop.f32.mrb[94].mxu0 }
 0x1b4   :  { %v3236_v5 = vpop.eup %3235  ;;  %1974 = vst.msk [vmem:[%s5250_s2 + $0x2c8] sm:$0xff] %vm1884_vm0, %v3234_v4  ;;  %v2784_v7 = vpop.f32.mrb[94].mxu1  ;;  %3257 = vtanh.f32 %v2592_v6 }
 0x1b5   :  { %v3238_v8 = vpop.eup %3237  ;;  %2102 = vst.msk [vmem:[%s5250_s2 + $0x6c8] sm:$0xff] %vm1884_vm0, %v3236_v5  ;;  %v819_v9 = vpop.f32.mrb[95].mxu0  ;;  %3259 = vtanh.f32 %v2784_v7 }
 0x1b6   :  { %v1459_v10 = vpop.f32.mrb[95].mxu1  ;;  %v3240_v11 = vpop.eup %3239  ;;  %1973 = vst.msk [vmem:[%s5250_s2 + $0x2c0] sm:$0xff] %vm1884_vm0, %v3238_v8  ;;  %3261 = vtanh.f32 %v819_v9 }
 0x1b7   :  { %v3242_v12 = vpop.eup %3241  ;;  %2101 = vst.msk [vmem:[%s5250_s2 + $0x6c0] sm:$0xff] %vm1884_vm0, %v3240_v11  ;;  %3263 = vtanh.f32 %v1459_v10  ;;  %v2595_v14 = vpop.f32.mrb[96].mxu0 }
 0x1b8   :  { %v3244_v13 = vpop.eup %3243  ;;  %1976 = vst.msk [vmem:[%s5250_s2 + $0x2d8] sm:$0xff] %vm1884_vm0, %v3242_v12  ;;  %v2787_v15 = vpop.f32.mrb[96].mxu1  ;;  %3265 = vtanh.f32 %v2595_v14 }
 0x1b9   :  { %v3246_v16 = vpop.eup %3245  ;;  %2104 = vst.msk [vmem:[%s5250_s2 + $0x6d8] sm:$0xff] %vm1884_vm0, %v3244_v13  ;;  %v829_v17 = vpop.f32.mrb[97].mxu0  ;;  %3267 = vtanh.f32 %v2787_v15 }
 0x1ba   :  { %v1469_v18 = vpop.f32.mrb[97].mxu1  ;;  %v3248_v19 = vpop.eup %3247  ;;  %1975 = vst.msk [vmem:[%s5250_s2 + $0x2d0] sm:$0xff] %vm1884_vm0, %v3246_v16  ;;  %3269 = vtanh.f32 %v829_v17 }
 0x1bb   :  { %v3250_v20 = vpop.eup %3249  ;;  %2103 = vst.msk [vmem:[%s5250_s2 + $0x6d0] sm:$0xff] %vm1884_vm0, %v3248_v19  ;;  %3271 = vtanh.f32 %v1469_v18  ;;  %v2598_v22 = vpop.f32.mrb[98].mxu0 }
 0x1bc   :  { %v3252_v21 = vpop.eup %3251  ;;  %1978 = vst.msk [vmem:[%s5250_s2 + $0x2e8] sm:$0xff] %vm1884_vm0, %v3250_v20  ;;  %v2790_v23 = vpop.f32.mrb[98].mxu1  ;;  %3273 = vtanh.f32 %v2598_v22 }
 0x1bd   :  { %v3254_v24 = vpop.eup %3253  ;;  %2106 = vst.msk [vmem:[%s5250_s2 + $0x6e8] sm:$0xff] %vm1884_vm0, %v3252_v21  ;;  %v839_v25 = vpop.f32.mrb[99].mxu0  ;;  %3275 = vtanh.f32 %v2790_v23 }
 0x1be   :  { %v1479_v26 = vpop.f32.mrb[99].mxu1  ;;  %v3256_v27 = vpop.eup %3255  ;;  %1977 = vst.msk [vmem:[%s5250_s2 + $0x2e0] sm:$0xff] %vm1884_vm0, %v3254_v24  ;;  %3277 = vtanh.f32 %v839_v25 }
 0x1bf   :  { %v3258_v28 = vpop.eup %3257  ;;  %2105 = vst.msk [vmem:[%s5250_s2 + $0x6e0] sm:$0xff] %vm1884_vm0, %v3256_v27  ;;  %3279 = vtanh.f32 %v1479_v26  ;;  %v2601_v30 = vpop.f32.mrb[100].mxu0 }
 0x1c0   :  { %v3260_v29 = vpop.eup %3259  ;;  %1980 = vst.msk [vmem:[%s5250_s2 + $0x2f8] sm:$0xff] %vm1884_vm0, %v3258_v28  ;;  %v2793_v31 = vpop.f32.mrb[100].mxu1  ;;  %3281 = vtanh.f32 %v2601_v30 }
 0x1c1   :  { %v3262_v32 = vpop.eup %3261  ;;  %2108 = vst.msk [vmem:[%s5250_s2 + $0x6f8] sm:$0xff] %vm1884_vm0, %v3260_v29  ;;  %v849_v33 = vpop.f32.mrb[101].mxu0  ;;  %3283 = vtanh.f32 %v2793_v31 }
 0x1c2   :  { %v1489_v34 = vpop.f32.mrb[101].mxu1  ;;  %v3264_v35 = vpop.eup %3263  ;;  %1979 = vst.msk [vmem:[%s5250_s2 + $0x2f0] sm:$0xff] %vm1884_vm0, %v3262_v32  ;;  %3285 = vtanh.f32 %v849_v33 }
 0x1c3   :  { %v3266_v36 = vpop.eup %3265  ;;  %2107 = vst.msk [vmem:[%s5250_s2 + $0x6f0] sm:$0xff] %vm1884_vm0, %v3264_v35  ;;  %3287 = vtanh.f32 %v1489_v34  ;;  %v2604_v38 = vpop.f32.mrb[102].mxu0 }
 0x1c4   :  { %v3268_v37 = vpop.eup %3267  ;;  %1982 = vst.msk [vmem:[%s5250_s2 + $0x308] sm:$0xff] %vm1884_vm0, %v3266_v36  ;;  %v2796_v39 = vpop.f32.mrb[102].mxu1  ;;  %3289 = vtanh.f32 %v2604_v38 }
 0x1c5   :  { %v3270_v40 = vpop.eup %3269  ;;  %2110 = vst.msk [vmem:[%s5250_s2 + $0x708] sm:$0xff] %vm1884_vm0, %v3268_v37  ;;  %v859_v41 = vpop.f32.mrb[103].mxu0  ;;  %3291 = vtanh.f32 %v2796_v39 }
 0x1c6   :  { %v1499_v42 = vpop.f32.mrb[103].mxu1  ;;  %v3272_v43 = vpop.eup %3271  ;;  %1981 = vst.msk [vmem:[%s5250_s2 + $0x300] sm:$0xff] %vm1884_vm0, %v3270_v40  ;;  %3293 = vtanh.f32 %v859_v41 }
 0x1c7   :  { %v3274_v44 = vpop.eup %3273  ;;  %2109 = vst.msk [vmem:[%s5250_s2 + $0x700] sm:$0xff] %vm1884_vm0, %v3272_v43  ;;  %3295 = vtanh.f32 %v1499_v42  ;;  %v2607_v46 = vpop.f32.mrb[104].mxu0 }
 0x1c8   :  { %v3276_v45 = vpop.eup %3275  ;;  %1984 = vst.msk [vmem:[%s5250_s2 + $0x318] sm:$0xff] %vm1884_vm0, %v3274_v44  ;;  %v2799_v47 = vpop.f32.mrb[104].mxu1  ;;  %3297 = vtanh.f32 %v2607_v46 }
 0x1c9   :  { %v3278_v48 = vpop.eup %3277  ;;  %2112 = vst.msk [vmem:[%s5250_s2 + $0x718] sm:$0xff] %vm1884_vm0, %v3276_v45  ;;  %v869_v49 = vpop.f32.mrb[105].mxu0  ;;  %3299 = vtanh.f32 %v2799_v47 }
 0x1ca   :  { %v1509_v50 = vpop.f32.mrb[105].mxu1  ;;  %v3280_v51 = vpop.eup %3279  ;;  %1983 = vst.msk [vmem:[%s5250_s2 + $0x310] sm:$0xff] %vm1884_vm0, %v3278_v48  ;;  %3301 = vtanh.f32 %v869_v49 }
 0x1cb   :  { %v3282_v52 = vpop.eup %3281  ;;  %2111 = vst.msk [vmem:[%s5250_s2 + $0x710] sm:$0xff] %vm1884_vm0, %v3280_v51  ;;  %3303 = vtanh.f32 %v1509_v50  ;;  %v2610_v54 = vpop.f32.mrb[106].mxu0 }
 0x1cc   :  { %v3284_v53 = vpop.eup %3283  ;;  %1986 = vst.msk [vmem:[%s5250_s2 + $0x328] sm:$0xff] %vm1884_vm0, %v3282_v52  ;;  %v2802_v55 = vpop.f32.mrb[106].mxu1  ;;  %3305 = vtanh.f32 %v2610_v54 }
 0x1cd   :  { %v3286_v56 = vpop.eup %3285  ;;  %2114 = vst.msk [vmem:[%s5250_s2 + $0x728] sm:$0xff] %vm1884_vm0, %v3284_v53  ;;  %v879_v57 = vpop.f32.mrb[107].mxu0  ;;  %3307 = vtanh.f32 %v2802_v55 }
 0x1ce   :  { %v1519_v58 = vpop.f32.mrb[107].mxu1  ;;  %v3288_v59 = vpop.eup %3287  ;;  %1985 = vst.msk [vmem:[%s5250_s2 + $0x320] sm:$0xff] %vm1884_vm0, %v3286_v56  ;;  %3309 = vtanh.f32 %v879_v57 }
 0x1cf   :  { %v3290_v60 = vpop.eup %3289  ;;  %2113 = vst.msk [vmem:[%s5250_s2 + $0x720] sm:$0xff] %vm1884_vm0, %v3288_v59  ;;  %3311 = vtanh.f32 %v1519_v58  ;;  %v2613_v62 = vpop.f32.mrb[108].mxu0 }
 0x1d0   :  { %v3292_v61 = vpop.eup %3291  ;;  %1988 = vst.msk [vmem:[%s5250_s2 + $0x338] sm:$0xff] %vm1884_vm0, %v3290_v60  ;;  %v2805_v63 = vpop.f32.mrb[108].mxu1  ;;  %3313 = vtanh.f32 %v2613_v62 }
 0x1d1   :  { %v3294_v0 = vpop.eup %3293  ;;  %2116 = vst.msk [vmem:[%s5250_s2 + $0x738] sm:$0xff] %vm1884_vm0, %v3292_v61  ;;  %v889_v1 = vpop.f32.mrb[109].mxu0  ;;  %3315 = vtanh.f32 %v2805_v63 }
 0x1d2   :  { %v1529_v2 = vpop.f32.mrb[109].mxu1  ;;  %v3296_v3 = vpop.eup %3295  ;;  %1987 = vst.msk [vmem:[%s5250_s2 + $0x330] sm:$0xff] %vm1884_vm0, %v3294_v0  ;;  %3317 = vtanh.f32 %v889_v1 }
 0x1d3   :  { %v3298_v4 = vpop.eup %3297  ;;  %2115 = vst.msk [vmem:[%s5250_s2 + $0x730] sm:$0xff] %vm1884_vm0, %v3296_v3  ;;  %3319 = vtanh.f32 %v1529_v2  ;;  %v2616_v6 = vpop.f32.mrb[110].mxu0 }
 0x1d4   :  { %v3300_v5 = vpop.eup %3299  ;;  %1990 = vst.msk [vmem:[%s5250_s2 + $0x348] sm:$0xff] %vm1884_vm0, %v3298_v4  ;;  %v2808_v7 = vpop.f32.mrb[110].mxu1  ;;  %3321 = vtanh.f32 %v2616_v6 }
 0x1d5   :  { %v3302_v8 = vpop.eup %3301  ;;  %2118 = vst.msk [vmem:[%s5250_s2 + $0x748] sm:$0xff] %vm1884_vm0, %v3300_v5  ;;  %v899_v9 = vpop.f32.mrb[111].mxu0  ;;  %3323 = vtanh.f32 %v2808_v7 }
 0x1d6   :  { %v1539_v10 = vpop.f32.mrb[111].mxu1  ;;  %v3304_v11 = vpop.eup %3303  ;;  %1989 = vst.msk [vmem:[%s5250_s2 + $0x340] sm:$0xff] %vm1884_vm0, %v3302_v8  ;;  %3325 = vtanh.f32 %v899_v9 }
 0x1d7   :  { %v3306_v12 = vpop.eup %3305  ;;  %2117 = vst.msk [vmem:[%s5250_s2 + $0x740] sm:$0xff] %vm1884_vm0, %v3304_v11  ;;  %3327 = vtanh.f32 %v1539_v10  ;;  %v2619_v14 = vpop.f32.mrb[112].mxu0 }
 0x1d8   :  { %v3308_v13 = vpop.eup %3307  ;;  %1992 = vst.msk [vmem:[%s5250_s2 + $0x358] sm:$0xff] %vm1884_vm0, %v3306_v12  ;;  %v2811_v15 = vpop.f32.mrb[112].mxu1  ;;  %3329 = vtanh.f32 %v2619_v14 }
 0x1d9   :  { %v3310_v16 = vpop.eup %3309  ;;  %2120 = vst.msk [vmem:[%s5250_s2 + $0x758] sm:$0xff] %vm1884_vm0, %v3308_v13  ;;  %v909_v17 = vpop.f32.mrb[113].mxu0  ;;  %3331 = vtanh.f32 %v2811_v15 }
 0x1da   :  { %v1549_v18 = vpop.f32.mrb[113].mxu1  ;;  %v3312_v19 = vpop.eup %3311  ;;  %1991 = vst.msk [vmem:[%s5250_s2 + $0x350] sm:$0xff] %vm1884_vm0, %v3310_v16  ;;  %3333 = vtanh.f32 %v909_v17 }
 0x1db   :  { %v3314_v20 = vpop.eup %3313  ;;  %2119 = vst.msk [vmem:[%s5250_s2 + $0x750] sm:$0xff] %vm1884_vm0, %v3312_v19  ;;  %3335 = vtanh.f32 %v1549_v18  ;;  %v2622_v22 = vpop.f32.mrb[114].mxu0 }
 0x1dc   :  { %v3316_v21 = vpop.eup %3315  ;;  %1994 = vst.msk [vmem:[%s5250_s2 + $0x368] sm:$0xff] %vm1884_vm0, %v3314_v20  ;;  %v2814_v23 = vpop.f32.mrb[114].mxu1  ;;  %3337 = vtanh.f32 %v2622_v22 }
 0x1dd   :  { %v3318_v24 = vpop.eup %3317  ;;  %2122 = vst.msk [vmem:[%s5250_s2 + $0x768] sm:$0xff] %vm1884_vm0, %v3316_v21  ;;  %v919_v25 = vpop.f32.mrb[115].mxu0  ;;  %3339 = vtanh.f32 %v2814_v23 }
 0x1de   :  { %v1559_v26 = vpop.f32.mrb[115].mxu1  ;;  %v3320_v27 = vpop.eup %3319  ;;  %1993 = vst.msk [vmem:[%s5250_s2 + $0x360] sm:$0xff] %vm1884_vm0, %v3318_v24  ;;  %3341 = vtanh.f32 %v919_v25 }
 0x1df   :  { %v3322_v28 = vpop.eup %3321  ;;  %2121 = vst.msk [vmem:[%s5250_s2 + $0x760] sm:$0xff] %vm1884_vm0, %v3320_v27  ;;  %3343 = vtanh.f32 %v1559_v26  ;;  %v2625_v30 = vpop.f32.mrb[116].mxu0 }
 0x1e0   :  { %v3324_v29 = vpop.eup %3323  ;;  %1996 = vst.msk [vmem:[%s5250_s2 + $0x378] sm:$0xff] %vm1884_vm0, %v3322_v28  ;;  %v2817_v31 = vpop.f32.mrb[116].mxu1  ;;  %3345 = vtanh.f32 %v2625_v30 }
 0x1e1   :  { %v3326_v32 = vpop.eup %3325  ;;  %2124 = vst.msk [vmem:[%s5250_s2 + $0x778] sm:$0xff] %vm1884_vm0, %v3324_v29  ;;  %v929_v33 = vpop.f32.mrb[117].mxu0  ;;  %3347 = vtanh.f32 %v2817_v31 }
 0x1e2   :  { %v1569_v34 = vpop.f32.mrb[117].mxu1  ;;  %v3328_v35 = vpop.eup %3327  ;;  %1995 = vst.msk [vmem:[%s5250_s2 + $0x370] sm:$0xff] %vm1884_vm0, %v3326_v32  ;;  %3349 = vtanh.f32 %v929_v33 }
 0x1e3   :  { %v3330_v36 = vpop.eup %3329  ;;  %2123 = vst.msk [vmem:[%s5250_s2 + $0x770] sm:$0xff] %vm1884_vm0, %v3328_v35  ;;  %3351 = vtanh.f32 %v1569_v34  ;;  %v2628_v38 = vpop.f32.mrb[118].mxu0 }
 0x1e4   :  { %v3332_v37 = vpop.eup %3331  ;;  %1998 = vst.msk [vmem:[%s5250_s2 + $0x388] sm:$0xff] %vm1884_vm0, %v3330_v36  ;;  %v2820_v39 = vpop.f32.mrb[118].mxu1  ;;  %3353 = vtanh.f32 %v2628_v38 }
 0x1e5   :  { %v3334_v40 = vpop.eup %3333  ;;  %2126 = vst.msk [vmem:[%s5250_s2 + $0x788] sm:$0xff] %vm1884_vm0, %v3332_v37  ;;  %v939_v41 = vpop.f32.mrb[119].mxu0  ;;  %3355 = vtanh.f32 %v2820_v39 }
 0x1e6   :  { %v1579_v42 = vpop.f32.mrb[119].mxu1  ;;  %v3336_v43 = vpop.eup %3335  ;;  %1997 = vst.msk [vmem:[%s5250_s2 + $0x380] sm:$0xff] %vm1884_vm0, %v3334_v40  ;;  %3357 = vtanh.f32 %v939_v41 }
 0x1e7   :  { %v3338_v44 = vpop.eup %3337  ;;  %2125 = vst.msk [vmem:[%s5250_s2 + $0x780] sm:$0xff] %vm1884_vm0, %v3336_v43  ;;  %3359 = vtanh.f32 %v1579_v42  ;;  %v2631_v46 = vpop.f32.mrb[120].mxu0 }
 0x1e8   :  { %v3340_v45 = vpop.eup %3339  ;;  %2000 = vst.msk [vmem:[%s5250_s2 + $0x398] sm:$0xff] %vm1884_vm0, %v3338_v44  ;;  %v2823_v47 = vpop.f32.mrb[120].mxu1  ;;  %3361 = vtanh.f32 %v2631_v46 }
 0x1e9   :  { %v3342_v48 = vpop.eup %3341  ;;  %2128 = vst.msk [vmem:[%s5250_s2 + $0x798] sm:$0xff] %vm1884_vm0, %v3340_v45  ;;  %v949_v49 = vpop.f32.mrb[121].mxu0  ;;  %3363 = vtanh.f32 %v2823_v47 }
 0x1ea   :  { %v1589_v50 = vpop.f32.mrb[121].mxu1  ;;  %v3344_v51 = vpop.eup %3343  ;;  %1999 = vst.msk [vmem:[%s5250_s2 + $0x390] sm:$0xff] %vm1884_vm0, %v3342_v48  ;;  %3365 = vtanh.f32 %v949_v49 }
 0x1eb   :  { %v3346_v52 = vpop.eup %3345  ;;  %2127 = vst.msk [vmem:[%s5250_s2 + $0x790] sm:$0xff] %vm1884_vm0, %v3344_v51  ;;  %3367 = vtanh.f32 %v1589_v50  ;;  %v2634_v54 = vpop.f32.mrb[122].mxu0 }
 0x1ec   :  { %v3348_v53 = vpop.eup %3347  ;;  %2002 = vst.msk [vmem:[%s5250_s2 + $0x3a8] sm:$0xff] %vm1884_vm0, %v3346_v52  ;;  %v2826_v55 = vpop.f32.mrb[122].mxu1  ;;  %3369 = vtanh.f32 %v2634_v54 }
 0x1ed   :  { %v3350_v56 = vpop.eup %3349  ;;  %2130 = vst.msk [vmem:[%s5250_s2 + $0x7a8] sm:$0xff] %vm1884_vm0, %v3348_v53  ;;  %v959_v57 = vpop.f32.mrb[123].mxu0  ;;  %3371 = vtanh.f32 %v2826_v55 }
 0x1ee   :  { %v1599_v58 = vpop.f32.mrb[123].mxu1  ;;  %v3352_v59 = vpop.eup %3351  ;;  %2001 = vst.msk [vmem:[%s5250_s2 + $0x3a0] sm:$0xff] %vm1884_vm0, %v3350_v56  ;;  %3373 = vtanh.f32 %v959_v57 }
 0x1ef   :  { %v3354_v60 = vpop.eup %3353  ;;  %2129 = vst.msk [vmem:[%s5250_s2 + $0x7a0] sm:$0xff] %vm1884_vm0, %v3352_v59  ;;  %3375 = vtanh.f32 %v1599_v58  ;;  %v2637_v62 = vpop.f32.mrb[124].mxu0 }
 0x1f0   :  { %v3356_v61 = vpop.eup %3355  ;;  %2004 = vst.msk [vmem:[%s5250_s2 + $0x3b8] sm:$0xff] %vm1884_vm0, %v3354_v60  ;;  %v2829_v63 = vpop.f32.mrb[124].mxu1  ;;  %3377 = vtanh.f32 %v2637_v62 }
 0x1f1   :  { %v3358_v0 = vpop.eup %3357  ;;  %2132 = vst.msk [vmem:[%s5250_s2 + $0x7b8] sm:$0xff] %vm1884_vm0, %v3356_v61  ;;  %v969_v1 = vpop.f32.mrb[125].mxu0  ;;  %3379 = vtanh.f32 %v2829_v63 }
 0x1f2   :  { %v1609_v2 = vpop.f32.mrb[125].mxu1  ;;  %v3360_v3 = vpop.eup %3359  ;;  %2003 = vst.msk [vmem:[%s5250_s2 + $0x3b0] sm:$0xff] %vm1884_vm0, %v3358_v0  ;;  %3381 = vtanh.f32 %v969_v1 }
 0x1f3   :  { %v3362_v4 = vpop.eup %3361  ;;  %2131 = vst.msk [vmem:[%s5250_s2 + $0x7b0] sm:$0xff] %vm1884_vm0, %v3360_v3  ;;  %3383 = vtanh.f32 %v1609_v2  ;;  %v2640_v6 = vpop.f32.mrb[126].mxu0 }
 0x1f4   :  { %v3364_v5 = vpop.eup %3363  ;;  %2006 = vst.msk [vmem:[%s5250_s2 + $0x3c8] sm:$0xff] %vm1884_vm0, %v3362_v4  ;;  %v2832_v7 = vpop.f32.mrb[126].mxu1  ;;  %3385 = vtanh.f32 %v2640_v6 }
 0x1f5   :  { %v3366_v8 = vpop.eup %3365  ;;  %2134 = vst.msk [vmem:[%s5250_s2 + $0x7c8] sm:$0xff] %vm1884_vm0, %v3364_v5  ;;  %v979_v9 = vpop.f32.mrb[127].mxu0  ;;  %3387 = vtanh.f32 %v2832_v7 }
 0x1f6   :  { %v1619_v10 = vpop.f32.mrb[127].mxu1  ;;  %v3368_v11 = vpop.eup %3367  ;;  %2005 = vst.msk [vmem:[%s5250_s2 + $0x3c0] sm:$0xff] %vm1884_vm0, %v3366_v8  ;;  %3389 = vtanh.f32 %v979_v9 }
 0x1f7   :  { %v3370_v12 = vpop.eup %3369  ;;  %2133 = vst.msk [vmem:[%s5250_s2 + $0x7c0] sm:$0xff] %vm1884_vm0, %v3368_v11  ;;  %3391 = vtanh.f32 %v1619_v10 }
 0x1f8   :  { %v3372_v13 = vpop.eup %3371  ;;  %2008 = vst.msk [vmem:[%s5250_s2 + $0x3d8] sm:$0xff] %vm1884_vm0, %v3370_v12 }
 0x1f9   :  { %v3374_v14 = vpop.eup %3373  ;;  %2136 = vst.msk [vmem:[%s5250_s2 + $0x7d8] sm:$0xff] %vm1884_vm0, %v3372_v13 }
 0x1fa   :  { %v3376_v15 = vpop.eup %3375  ;;  %2007 = vst.msk [vmem:[%s5250_s2 + $0x3d0] sm:$0xff] %vm1884_vm0, %v3374_v14 }
 0x1fb   :  { %v3378_v16 = vpop.eup %3377  ;;  %2135 = vst.msk [vmem:[%s5250_s2 + $0x7d0] sm:$0xff] %vm1884_vm0, %v3376_v15 }
 0x1fc   :  { %v3380_v17 = vpop.eup %3379  ;;  %2010 = vst.msk [vmem:[%s5250_s2 + $0x3e8] sm:$0xff] %vm1884_vm0, %v3378_v16 }
 0x1fd   :  { %v3382_v18 = vpop.eup %3381  ;;  %2138 = vst.msk [vmem:[%s5250_s2 + $0x7e8] sm:$0xff] %vm1884_vm0, %v3380_v17 }
 0x1fe   :  { %v3384_v19 = vpop.eup %3383  ;;  %2009 = vst.msk [vmem:[%s5250_s2 + $0x3e0] sm:$0xff] %vm1884_vm0, %v3382_v18 }
 0x1ff   :  { %v3386_v20 = vpop.eup %3385  ;;  %2137 = vst.msk [vmem:[%s5250_s2 + $0x7e0] sm:$0xff] %vm1884_vm0, %v3384_v19 }
 0x200   :  { %v3388_v21 = vpop.eup %3387  ;;  %2012 = vst.msk [vmem:[%s5250_s2 + $0x3f8] sm:$0xff] %vm1884_vm0, %v3386_v20 }
 0x201   :  { %v3390_v22 = vpop.eup %3389  ;;  %2140 = vst.msk [vmem:[%s5250_s2 + $0x7f8] sm:$0xff] %vm1884_vm0, %v3388_v21 }
 0x202   :  { %v3392_v23 = vpop.eup %3391  ;;  %2011 = vst.msk [vmem:[%s5250_s2 + $0x3f0] sm:$0xff] %vm1884_vm0, %v3390_v22 }
 0x203   :  { %2139 = vst.msk [vmem:[%s5250_s2 + $0x7f0] sm:$0xff] %vm1884_vm0, %v3392_v23 }

</bundles_post_ra>
